<compile_context>
chip_gen: v5e
topology: v5e:2x2
jax: 0.10.0
libtpu: 0.0.40
codegen_flags: <defaults>
</compile_context>

<pallas_src>
import math
import numpy as np
import jax
import jax.numpy as jnp
from jax import lax
from jax.experimental import pallas as pl
from jax.experimental.pallas import tpu as pltpu


# ------------------------------ parameters ----------------------------------

def init_params(band, classes, key):
    """PyTorch-equivalent parameter initialization (eval-mode BN stats)."""
    ks = iter(jax.random.split(key, 32))

    def conv(cout, cin, kh, kw, kl):
        fan_in = cin * kh * kw * kl
        bound = 1.0 / math.sqrt(fan_in)
        w = jax.random.uniform(next(ks), (cout, cin, kh, kw, kl),
                               jnp.float32, -bound, bound)
        b = jax.random.uniform(next(ks), (cout,), jnp.float32, -bound, bound)
        return w, b

    def conv2d(cout, cin):
        bound = 1.0 / math.sqrt(cin)
        w = jax.random.uniform(next(ks), (cout, cin), jnp.float32, -bound, bound)
        b = jax.random.uniform(next(ks), (cout,), jnp.float32, -bound, bound)
        return w, b

    def bn(c):
        # PyTorch defaults (eval): weight=1, bias=0, running mean/var = 0/1
        return (jnp.ones((c,), jnp.float32), jnp.zeros((c,), jnp.float32),
                jnp.zeros((c,), jnp.float32), jnp.ones((c,), jnp.float32))

    kernel_3d = math.floor((band - 6) / 2)
    p = {}
    p['conv11'] = conv(24, 1, 1, 1, 7)
    p['conv12'] = conv(12, 24, 1, 1, 7)
    p['conv13'] = conv(12, 36, 1, 1, 7)
    p['conv14'] = conv(12, 48, 1, 1, 7)
    p['conv15'] = conv(60, 60, 1, 1, kernel_3d)
    p['conv21'] = conv(24, 1, 1, 1, band)
    p['conv22'] = conv(12, 24, 3, 3, 1)
    p['conv23'] = conv(12, 36, 3, 3, 1)
    p['conv24'] = conv(12, 48, 3, 3, 1)
    # conv25 exists in __init__ but is never used in forward -> not created
    p['bn11'] = bn(24); p['bn12'] = bn(36); p['bn13'] = bn(48); p['bn14'] = bn(60)
    p['bn21'] = bn(24); p['bn22'] = bn(36); p['bn23'] = bn(48)
    p['bn_spectral'] = bn(60); p['bn_spatial'] = bn(60)
    p['pam_q'] = conv2d(60 // 8, 60)
    p['pam_k'] = conv2d(60 // 8, 60)
    p['pam_v'] = conv2d(60, 60)
    p['gamma_cam'] = jnp.zeros((), jnp.float32)   # PyTorch init: gamma = 0
    p['gamma_pam'] = jnp.zeros((), jnp.float32)
    fb = 1.0 / math.sqrt(120)
    p['fc_w'] = jax.random.uniform(next(ks), (classes, 120), jnp.float32, -fb, fb)
    p['fc_b'] = jax.random.uniform(next(ks), (classes,), jnp.float32, -fb, fb)
    return p


# ------------------------------ kernel builder -------------------------------

def make_dbda_forward(params, band, classes, B, H, W):
    N = B * H * W
    L1 = (band - 7) // 2 + 1                  # spectral length after conv11
    k3 = (band - 6) // 2                      # conv15 kernel size
    assert L1 >= 1 and k3 >= 1 and (L1 - k3 + 1) == 1, (
        "fused kernel assumes the DBDA geometry where conv15 collapses the "
        "spectral axis to 1 (true for even band >= 8)")
    f32, bf16 = jnp.float32, jnp.bfloat16
    eps = 1e-3

    # ---------------- host-side packing (numpy, one time) -------------------
    def npy(x):
        return np.asarray(x, np.float32)

    def fold(bn):
        w, b, m, v = (npy(t) for t in bn)
        s = w / np.sqrt(v + eps)
        return s, b - m * s

    def spec_fused(w):                        # (Cout,Cin,1,1,K) -> (Cout, K*Cin)
        w = npy(w)[:, :, 0, 0, :]
        return np.transpose(w, (0, 2, 1)).reshape(w.shape[0], -1)

    def spat_fused(w):                        # (Cout,Cin,3,3,1) -> (Cout, 9*Cin)
        w = npy(w)[:, :, :, :, 0]
        co, ci = w.shape[:2]
        return np.transpose(w.reshape(co, ci, 9), (0, 2, 1)).reshape(co, 9 * ci)

    p = params
    wq, bq = npy(p['pam_q'][0]), npy(p['pam_q'][1])
    wk, _bk = npy(p['pam_k'][0]), npy(p['pam_k'][1])
    wv, bv = npy(p['pam_v'][0]), npy(p['pam_v'][1])

    # PAM collapse: energy = x_i^T (Wq^T Wk) x_j + (Wk^T bq).x_j ; the
    # softmax-constant terms (bk related, bq.bk) cancel along the softmax axis.
    w_entries = [
        ('c11', npy(p['conv11'][0])[:, 0, 0, 0, :]),
        ('c12', spec_fused(p['conv12'][0])),
        ('c13', spec_fused(p['conv13'][0])),
        ('c14', spec_fused(p['conv14'][0])),
        ('c15', spec_fused(p['conv15'][0])),
        ('c21', npy(p['conv21'][0])[:, 0, 0, 0, :]),
        ('c22', spat_fused(p['conv22'][0])),
        ('c23', spat_fused(p['conv23'][0])),
        ('c24', spat_fused(p['conv24'][0])),
        ('pamA', wq.T @ wk),
        ('pamU', (wk.T @ bq)[None, :]),
        ('pamV', wv),
    ]

    bns, bnb = {}, {}
    for name in ('bn11', 'bn12', 'bn13', 'bn14', 'bn21', 'bn22', 'bn23',
                 'bn_spectral', 'bn_spatial'):
        bns[name], bnb[name] = fold(p[name])

    v_entries = [
        ('b11', npy(p['conv11'][1])),
        ('bn11s', bns['bn11']), ('bn11b', bnb['bn11']),
        ('b12', npy(p['conv12'][1])),
        ('bn12s', bns['bn12']), ('bn12b', bnb['bn12']),
        ('b13', npy(p['conv13'][1])),
        ('bn13s', bns['bn13']), ('bn13b', bnb['bn13']),
        ('b14', npy(p['conv14'][1])),
        ('bn14s', bns['bn14']), ('bn14b', bnb['bn14']),
        ('b15', npy(p['conv15'][1])),
        ('bnSPCs', bns['bn_spectral']), ('bnSPCb', bnb['bn_spectral']),
        ('b21', npy(p['conv21'][1])),
        ('bn21s', bns['bn21']), ('bn21b', bnb['bn21']),
        ('b22', npy(p['conv22'][1])),
        ('bn22s', bns['bn22']), ('bn22b', bnb['bn22']),
        ('b23', npy(p['conv23'][1])),
        ('bn23s', bns['bn23']), ('bn23b', bnb['bn23']),
        ('b24', npy(p['conv24'][1])),
        ('bnSPAs', bns['bn_spatial']), ('bnSPAb', bnb['bn_spatial']),
        ('pamBV', bv),
    ]

    def pack_slab(entries, width=None):
        mats = []
        for name, a in entries:
            a = npy(a)
            if a.ndim == 1:
                a = a[:, None]
            mats.append((name, a))
        if width is None:
            width = max(a.shape[1] for _, a in mats)
        row, offs, blocks = 0, {}, []
        for name, a in mats:
            r, c = a.shape
            rp = r + ((-r) % 8)               # 8-align each entry's row offset
            blk = np.zeros((rp, width), np.float32)
            blk[:r, :c] = a
            offs[name] = (row, r, c)
            blocks.append(blk)
            row += rp
        return np.concatenate(blocks, axis=0), offs

    wslab_np, w_off = pack_slab(w_entries)
    vslab_np, v_off = pack_slab(v_entries, width=1)
    head_np = np.concatenate([npy(p['fc_w']).T, npy(p['fc_b'])[None, :]], axis=0)

    # Mask slab: rows 0..8 = 3x3 edge masks per tap, rows 9..9+B-1 = per-sample
    # lane masks, rows 9+B.. = identity (used as an MXU transpose).
    masks_np = np.zeros((9 + B + N, N), np.float32)
    for kk in range(9):
        oh, ow = kk // 3 - 1, kk % 3 - 1
        for b in range(B):
            for h in range(H):
                for w in range(W):
                    if 0 <= h + oh < H and 0 <= w + ow < W:
                        masks_np[kk, (b * H + h) * W + w] = 1.0
    for b in range(B):
        masks_np[9 + b, b * H * W:(b + 1) * H * W] = 1.0
    masks_np[9 + B:, :] = np.eye(N, dtype=np.float32)

    wslab = jnp.asarray(wslab_np, dtype=bf16)
    vslab = jnp.asarray(vslab_np, dtype=f32)
    head = jnp.asarray(head_np, dtype=f32)
    masks = jnp.asarray(masks_np, dtype=f32)

    # -------------------------------- kernel --------------------------------
    def kernel(x_ref, w_ref, v_ref, hd_ref, m_ref, g_ref, o_ref):
        def wget(name):
            r0, r, c = w_off[name]
            return w_ref[r0:r0 + r, 0:c]              # bf16

        def vget(name):
            r0, r, _ = v_off[name]
            return v_ref[r0:r0 + r, 0:1]              # f32 column

        def mm(a, b):                                 # bf16 x bf16 -> f32 (MXU)
            return jnp.dot(a, b, preferred_element_type=f32)

        def mm_tt(a, b):                              # contract last dims of both
            return lax.dot_general(a, b, (((1,), (1,)), ((), ())),
                                   preferred_element_type=f32)

        def mish(y):
            # y * tanh(softplus(y)) with one transcendental:
            # tanh(log1p(e^y)) == ((1+e^y)^2 - 1) / ((1+e^y)^2 + 1)
            t = jnp.exp(jnp.minimum(y, 20.0))
            w2 = (1.0 + t) * (1.0 + t)
            tsp = (w2 - 1.0) * pl.reciprocal(w2 + 1.0, approx=True)
            return y * jnp.where(y > 20.0, 1.0, tsp)

        def bn_mish_bf16(x, sname, bname):
            return mish(x * vget(sname) + vget(bname)).astype(bf16)

        x_sp = x_ref[...]                             # (band, N) f32
        xs_bf = x_sp.astype(bf16)
        tapm = m_ref[0:9, 0:N].astype(bf16)           # (9, N)
        bmask = m_ref[9:9 + B, 0:N]                   # (B, N) f32
        ident = m_ref[9 + B:9 + B + N, 0:N].astype(bf16)  # (N, N)

        # ---------------- spectral branch: 1x1xK convs along the band -------
        pat11 = jnp.concatenate([xs_bf[2 * l:2 * l + 7, :] for l in range(L1)],
                                axis=1)               # (7, L1*N)
        x11 = mm(wget('c11'), pat11) + vget('b11')    # (24, L1*N) f32

        def spectral_layer(parts, wname, bname, sname, shname, ksz, pad):
            raw = parts[0] if len(parts) == 1 else jnp.concatenate(parts, axis=0)
            y = bn_mish_bf16(raw, sname, shname)      # (Cin, L*N) bf16, cast once
            cin = y.shape[0]
            if pad:
                z = jnp.zeros((cin, pad * N), bf16)
                y = jnp.concatenate([z, y, z], axis=1)
            lout = y.shape[1] // N - ksz + 1
            # in-kernel im2col: lane-aligned window slices stacked over taps,
            # then ONE fused bf16 matmul with K = ksz * Cin.
            patch = jnp.concatenate([y[:, t * N:(t + lout) * N]
                                     for t in range(ksz)], axis=0)
            return mm(wget(wname), patch) + vget(bname)

        x12 = spectral_layer([x11], 'c12', 'b12', 'bn11s', 'bn11b', 7, 3)
        x13 = spectral_layer([x11, x12], 'c13', 'b13', 'bn12s', 'bn12b', 7, 3)
        x14 = spectral_layer([x11, x12, x13], 'c14', 'b14', 'bn13s', 'bn13b', 7, 3)
        x16 = spectral_layer([x11, x12, x13, x14], 'c15', 'b15',
                             'bn14s', 'bn14b', k3, 0)            # (60, N)

        # CAM (channel attention), per sample via lane masks.
        g_cam = g_ref[0]
        x16_bf = x16.astype(bf16)
        cam_sum = jnp.zeros(x16.shape, f32)
        for b in range(B):
            mb = bmask[b:b + 1, :]
            xb = x16_bf * mb.astype(bf16)                        # (60, N)
            energy = mm_tt(xb, xb)                               # (60, 60)
            en = jnp.max(energy, axis=-1, keepdims=True) - energy
            en = en - jnp.max(en, axis=-1, keepdims=True)
            pe = jnp.exp(en)
            attn = pe * pl.reciprocal(jnp.sum(pe, axis=-1, keepdims=True),
                                      approx=True)
            cam_sum = cam_sum + mm(attn.astype(bf16), xb)
        x1 = g_cam * cam_sum + x16

        # ---------------- spatial branch: 3x3x1 convs over H, W -------------
        x21 = mm(wget('c21'), xs_bf) + vget('b21')               # (24, N) f32

        def shift_lanes(y, d):
            # out[:, i] = y[:, i + d]; lanes that fall outside are zeroed (and
            # additionally covered by the per-tap edge masks).
            if d == 0:
                return y
            cin = y.shape[0]
            if d > 0:
                return jnp.concatenate(
                    [y[:, d:], jnp.zeros((cin, d), y.dtype)], axis=1)
            return jnp.concatenate(
                [jnp.zeros((cin, -d), y.dtype), y[:, :d]], axis=1)

        def spatial_layer(parts, wname, bname, sname, shname):
            raw = parts[0] if len(parts) == 1 else jnp.concatenate(parts, axis=0)
            y = bn_mish_bf16(raw, sname, shname)                 # (Cin, N) bf16
            pieces = []
            for kk in range(9):
                oh, ow = kk // 3 - 1, kk % 3 - 1
                pieces.append(shift_lanes(y, oh * W + ow) * tapm[kk:kk + 1, :])
            patch = jnp.concatenate(pieces, axis=0)              # (9*Cin, N)
            return mm(wget(wname), patch) + vget(bname)

        x22 = spatial_layer([x21], 'c22', 'b22', 'bn21s', 'bn21b')
        x23 = spatial_layer([x21, x22], 'c23', 'b23', 'bn22s', 'bn22b')
        x24 = spatial_layer([x21, x22, x23], 'c24', 'b24', 'bn23s', 'bn23b')
        x25 = jnp.concatenate([x21, x22, x23, x24], axis=0)      # (60, N) f32

        # PAM (position attention) with the Wq^T.Wk collapse; the (C,N)->(N,C)
        # transpose is done on the MXU via the identity matrix.
        g_pam = g_ref[1]
        A = wget('pamA'); u = wget('pamU'); wV = wget('pamV'); bV = vget('pamBV')
        x25_bf = x25.astype(bf16)
        pam_sum = jnp.zeros(x25.shape, f32)
        for b in range(B):
            mb = bmask[b:b + 1, :]
            xb = x25_bf * mb.astype(bf16)                        # (60, N)
            xbT = mm_tt(ident, xb).astype(bf16)                  # (N, 60)
            z = mm(A, xb).astype(bf16)                           # (60, N)
            energy = mm(xbT, z) + mm(u, xb)                      # (N, N)
            energy = jnp.where(mb > 0.0, energy, -jnp.inf)       # keys of sample b
            energy = energy - jnp.max(energy, axis=-1, keepdims=True)
            pe = jnp.exp(energy)
            attn = pe * pl.reciprocal(jnp.sum(pe, axis=-1, keepdims=True),
                                      approx=True)
            vb = (mm(wV, xb) + bV).astype(bf16)                  # (60, N)
            pam_sum = pam_sum + mm_tt(vb, attn.astype(bf16)) * mb
        x2 = g_pam * pam_sum + x25

        # ---------------- heads: BN+mish (eval dropout), pool, FC (f32) -----
        y1 = mish(x1 * vget('bnSPCs') + vget('bnSPCb'))          # (60, N) f32
        y2 = mish(x2 * vget('bnSPAs') + vget('bnSPAb'))
        inv_pool = 1.0 / float(H * W)                            # spectral len 1
        p1 = lax.dot_general(bmask, y1, (((1,), (1,)), ((), ())),
                             preferred_element_type=f32) * inv_pool   # (B, 60)
        p2 = lax.dot_general(bmask, y2, (((1,), (1,)), ((), ())),
                             preferred_element_type=f32) * inv_pool
        fw1 = hd_ref[0:60, 0:classes]                            # (60, classes)
        fw2 = hd_ref[60:120, 0:classes]
        fb = hd_ref[120:121, 0:classes]                          # (1, classes)
        logits = (jnp.dot(p1, fw1, preferred_element_type=f32)
                  + jnp.dot(p2, fw2, preferred_element_type=f32) + fb)
        o_ref[...] = logits.astype(o_ref.dtype)

    # ---------------------------- pallas_call -------------------------------
    def _fullspec(shape):
        nd = len(shape)
        return pl.BlockSpec(shape, lambda i, _n=nd: (0,) * _n)

    in_specs = [
        _fullspec((band, N)),
        _fullspec(tuple(wslab.shape)),
        _fullspec(tuple(vslab.shape)),
        _fullspec(tuple(head.shape)),
        _fullspec(tuple(masks.shape)),
        pl.BlockSpec(memory_space=pltpu.MemorySpace.SMEM),
    ]
    out_spec = pl.BlockSpec((B, classes), lambda i: (0, 0))

    cost = pl.CostEstimate(flops=int(6e7), transcendentals=int(6e5),
                           bytes_accessed=int(4e6))

    pallas_fn = pl.pallas_call(
        kernel,
        grid=(1,),
        in_specs=in_specs,
        out_specs=out_spec,
        out_shape=jax.ShapeDtypeStruct((B, classes), f32),
        compiler_params=pltpu.CompilerParams(
            dimension_semantics=("arbitrary",)),
        cost_estimate=cost,
    )

    @jax.jit
    def forward(X, gammas):
        # layout plumbing only: (B,1,band,H,W) -> (band, B*H*W); lanes = (b,h,w)
        x_spec = jnp.transpose(X[:, 0].astype(f32), (1, 0, 2, 3)).reshape(band, N)
        return pallas_fn(x_spec, wslab, vslab, head, masks,
                         gammas.astype(f32).reshape(2))

    return forward


# --------------------------- pure-JAX reference ------------------------------

def reference_forward(p, X, gamma_cam, gamma_pam, eps=1e-3):
    """Eval-mode f32 reference mirroring the PyTorch forward."""
    X = X.astype(jnp.float32)
    Xp = jnp.transpose(X, (0, 1, 3, 4, 2))            # (B,1,H,W,band)

    def mishf(x):
        return x * jnp.tanh(jax.nn.softplus(x))

    def bn(x, bnp):
        w, b, m, v = bnp
        sh = (1, -1, 1, 1, 1)
        return ((x - m.reshape(sh)) / jnp.sqrt(v.reshape(sh) + eps)
                * w.reshape(sh) + b.reshape(sh))

    def conv_spec(x, wb, stride=1, pad=0):
        w, b = wb
        w2 = w[:, :, 0, 0, :]
        if pad:
            x = jnp.pad(x, ((0, 0), (0, 0), (0, 0), (0, 0), (pad, pad)))
        K, L = w2.shape[-1], x.shape[-1]
        lout = (L - K) // stride + 1
        cols = jnp.stack([x[..., l * stride:l * stride + K] for l in range(lout)],
                         axis=-2)
        return (jnp.einsum('bihwlk,oik->bohwl', cols, w2)
                + b.reshape(1, -1, 1, 1, 1))

    def conv_spat(x, wb):
        w, b = wb
        w2 = w[:, :, :, :, 0].reshape(w.shape[0], w.shape[1], 9)
        xs = x[..., 0]
        Hh, Ww = xs.shape[2], xs.shape[3]
        xpd = jnp.pad(xs, ((0, 0), (0, 0), (1, 1), (1, 1)))
        cols = jnp.stack([xpd[:, :, dh:dh + Hh, dw:dw + Ww]
                          for dh in range(3) for dw in range(3)], axis=-1)
        out = jnp.einsum('bihwk,oik->bohw', cols, w2) + b.reshape(1, -1, 1, 1)
        return out[..., None]

    cat = jnp.concatenate
    x11 = conv_spec(Xp, p['conv11'], stride=2)
    x12 = conv_spec(mishf(bn(x11, p['bn11'])), p['conv12'], 1, 3)
    x13 = conv_spec(mishf(bn(cat([x11, x12], 1), p['bn12'])), p['conv13'], 1, 3)
    x14 = conv_spec(mishf(bn(cat([x11, x12, x13], 1), p['bn13'])), p['conv14'], 1, 3)
    x16 = conv_spec(mishf(bn(cat([x11, x12, x13, x14], 1), p['bn14'])),
                    p['conv15'], 1, 0)

    Bn, C = x16.shape[0], x16.shape[1]
    v = x16.reshape(Bn, C, -1)
    energy = jnp.einsum('bcn,bdn->bcd', v, v)
    en = jnp.max(energy, -1, keepdims=True) - energy
    attn = jax.nn.softmax(en, axis=-1)
    camo = jnp.einsum('bcd,bdn->bcn', attn, v).reshape(x16.shape)
    x1 = gamma_cam * camo + x16

    x21 = conv_spec(Xp, p['conv21'], stride=1)
    x22 = conv_spat(mishf(bn(x21, p['bn21'])), p['conv22'])
    x23 = conv_spat(mishf(bn(cat([x21, x22], 1), p['bn22'])), p['conv23'])
    x24 = conv_spat(mishf(bn(cat([x21, x22, x23], 1), p['bn23'])), p['conv24'])
    x25 = cat([x21, x22, x23, x24], 1)

    xs = x25[..., 0]
    Bn, C, Hh, Ww = xs.shape
    flat = xs.reshape(Bn, C, Hh * Ww)
    wq, bq = p['pam_q']; wk, bk = p['pam_k']; wv, bv = p['pam_v']
    q = jnp.einsum('oc,bcn->bon', wq, flat) + bq.reshape(1, -1, 1)
    k = jnp.einsum('oc,bcn->bon', wk, flat) + bk.reshape(1, -1, 1)
    vv = jnp.einsum('oc,bcn->bon', wv, flat) + bv.reshape(1, -1, 1)
    energy = jnp.einsum('bon,bom->bnm', q, k)
    attn = jax.nn.softmax(energy, axis=-1)
    pamo = jnp.einsum('bcm,bnm->bcn', vv, attn).reshape(xs.shape)
    x2 = (gamma_pam * pamo + xs)[..., None]

    y1 = mishf(bn(x1, p['bn_spectral']))
    y2 = mishf(bn(x2, p['bn_spatial']))
    p1 = jnp.mean(y1, axis=(2, 3, 4))
    p2 = jnp.mean(y2, axis=(2, 3, 4))
    feats = jnp.concatenate([p1, p2], axis=1)
    return feats @ p['fc_w'].T + p['fc_b'][None, :]


# --------------------------------- main --------------------------------------

if __name__ == "__main__":
    band, classes = 16, 9
    B, H, W = 2, 8, 8
    key = jax.random.PRNGKey(0)
    k_x, k_p = jax.random.split(key)
    X = jax.random.normal(k_x, (B, 1, band, H, W), jnp.float32)
    params = init_params(band, classes, k_p)

    fwd = make_dbda_forward(params, band, classes, B, H, W)

    # First setting matches the PyTorch init (gamma = 0); the second exercises
    # the CAM / PAM attention paths with nonzero gammas.
    for g_cam, g_pam in ((0.0, 0.0), (0.25, -0.15)):
        gammas = jnp.array([g_cam, g_pam], jnp.float32)
        out = jax.block_until_ready(fwd(X, gammas))
        assert out.shape == (B, classes) and out.dtype == jnp.float32
        assert bool(jnp.isfinite(out).all())
        ref = reference_forward(params, X, g_cam, g_pam)
        err = float(jnp.max(jnp.abs(out - ref)))
        assert err < 2e-2, f"kernel/reference mismatch: {err}"

    print("KERNEL_OK")
</pallas_src>

<mosaic_0001>
module attributes {stable_mosaic.version = 11 : i64} {
  func.func @kernel(%arg0: i32, %arg1: memref<16x128xf32, #tpu.memory_space<vmem>>, %arg2: memref<344x432xbf16, #tpu.memory_space<vmem>>, %arg3: memref<1104x1xf32, #tpu.memory_space<vmem>>, %arg4: memref<121x9xf32, #tpu.memory_space<vmem>>, %arg5: memref<139x128xf32, #tpu.memory_space<vmem>>, %arg6: memref<2xf32, #tpu.memory_space<smem>>, %arg7: memref<2x9xf32, #tpu.memory_space<vmem>>) attributes {dimension_semantics = [#tpu.dimension_semantics<arbitrary>], iteration_bounds = array<i64: 1>, scalar_prefetch = 0 : i64, scratch_operands = 0 : i64, tpu.core_type = #tpu.core_type<tc>, window_params = [{pipeline_mode = #tpu.pipeline_mode<synchronous>, transform_indices = @transform_0, window_bounds = array<i64: 16, 128>}, {pipeline_mode = #tpu.pipeline_mode<synchronous>, transform_indices = @transform_1, window_bounds = array<i64: 344, 432>}, {pipeline_mode = #tpu.pipeline_mode<synchronous>, transform_indices = @transform_2, window_bounds = array<i64: 1104, 1>}, {pipeline_mode = #tpu.pipeline_mode<synchronous>, transform_indices = @transform_3, window_bounds = array<i64: 121, 9>}, {pipeline_mode = #tpu.pipeline_mode<synchronous>, transform_indices = @transform_4, window_bounds = array<i64: 139, 128>}, {transform_indices = @transform_5, window_bounds = array<i64: 2>}, {pipeline_mode = #tpu.pipeline_mode<synchronous>, transform_indices = @transform_6, window_bounds = array<i64: 2, 9>}]} {
    %c0 = arith.constant 0 : index
    %c0_0 = arith.constant 0 : index
    %0 = vector.load %arg1[%c0, %c0_0] : memref<16x128xf32, #tpu.memory_space<vmem>>, vector<16x128xf32>
    %1 = arith.truncf %0 : vector<16x128xf32> to vector<16x128xbf16>
    %c0_1 = arith.constant 0 : index
    %c0_2 = arith.constant 0 : index
    %2 = vector.load %arg5[%c0_1, %c0_2] : memref<139x128xf32, #tpu.memory_space<vmem>>, vector<9x128xf32>
    %3 = arith.truncf %2 : vector<9x128xf32> to vector<9x128xbf16>
    %c9 = arith.constant 9 : index
    %c0_3 = arith.constant 0 : index
    %4 = vector.load %arg5[%c9, %c0_3] : memref<139x128xf32, #tpu.memory_space<vmem>>, vector<2x128xf32>
    %c11 = arith.constant 11 : index
    %c0_4 = arith.constant 0 : index
    %5 = vector.load %arg5[%c11, %c0_4] : memref<139x128xf32, #tpu.memory_space<vmem>>, vector<128x128xf32>
    %6 = arith.truncf %5 : vector<128x128xf32> to vector<128x128xbf16>
    %7 = vector.extract_strided_slice %1 {offsets = [0, 0], sizes = [7, 128], strides = [1, 1]} : vector<16x128xbf16> to vector<7x128xbf16>
    %8 = vector.extract_strided_slice %1 {offsets = [2, 0], sizes = [7, 128], strides = [1, 1]} : vector<16x128xbf16> to vector<7x128xbf16>
    %9 = vector.extract_strided_slice %1 {offsets = [4, 0], sizes = [7, 128], strides = [1, 1]} : vector<16x128xbf16> to vector<7x128xbf16>
    %10 = vector.extract_strided_slice %1 {offsets = [6, 0], sizes = [7, 128], strides = [1, 1]} : vector<16x128xbf16> to vector<7x128xbf16>
    %11 = vector.extract_strided_slice %1 {offsets = [8, 0], sizes = [7, 128], strides = [1, 1]} : vector<16x128xbf16> to vector<7x128xbf16>
    %12 = tpu.concatenate %7, %8, %9, %10, %11 in 1 : vector<7x128xbf16>, vector<7x128xbf16>, vector<7x128xbf16>, vector<7x128xbf16>, vector<7x128xbf16> -> vector<7x640xbf16>
    %c0_5 = arith.constant 0 : index
    %c0_6 = arith.constant 0 : index
    %13 = vector.load %arg2[%c0_5, %c0_6] : memref<344x432xbf16, #tpu.memory_space<vmem>>, vector<24x7xbf16>
    %cst = arith.constant dense<0.000000e+00> : vector<24x640xf32>
    %14 = tpu.matmul %13, %12, %cst {dimension_numbers = #tpu.dot_dimension_numbers<[1], [0], [0], [1], [0, 0, 1, 1], [], []>} : vector<24x7xbf16>, vector<7x640xbf16>, vector<24x640xf32> -> vector<24x640xf32>
    %c0_7 = arith.constant 0 : index
    %c0_8 = arith.constant 0 : index
    %15 = vector.load %arg3[%c0_7, %c0_8] : memref<1104x1xf32, #tpu.memory_space<vmem>>, vector<24x1xf32>
    %16 = vector.broadcast %15 : vector<24x1xf32> to vector<24x640xf32>
    %17 = arith.addf %14, %16 : vector<24x640xf32>
    %c24 = arith.constant 24 : index
    %c0_9 = arith.constant 0 : index
    %18 = vector.load %arg3[%c24, %c0_9] : memref<1104x1xf32, #tpu.memory_space<vmem>>, vector<24x1xf32>
    %19 = vector.broadcast %18 : vector<24x1xf32> to vector<24x640xf32>
    %20 = arith.mulf %17, %19 : vector<24x640xf32>
    %c48 = arith.constant 48 : index
    %c0_10 = arith.constant 0 : index
    %21 = vector.load %arg3[%c48, %c0_10] : memref<1104x1xf32, #tpu.memory_space<vmem>>, vector<24x1xf32>
    %22 = vector.broadcast %21 : vector<24x1xf32> to vector<24x640xf32>
    %23 = arith.addf %20, %22 : vector<24x640xf32>
    %cst_11 = arith.constant 2.000000e+01 : f32
    %24 = vector.broadcast %cst_11 : f32 to vector<24x640xf32>
    %25 = arith.minimumf %23, %24 : vector<24x640xf32>
    %26 = math.exp %25 : vector<24x640xf32>
    %cst_12 = arith.constant 1.000000e+00 : f32
    %27 = vector.broadcast %cst_12 : f32 to vector<24x640xf32>
    %28 = arith.addf %27, %26 : vector<24x640xf32>
    %cst_13 = arith.constant 1.000000e+00 : f32
    %29 = vector.broadcast %cst_13 : f32 to vector<24x640xf32>
    %30 = arith.addf %29, %26 : vector<24x640xf32>
    %31 = arith.mulf %28, %30 : vector<24x640xf32>
    %cst_14 = arith.constant 1.000000e+00 : f32
    %32 = vector.broadcast %cst_14 : f32 to vector<24x640xf32>
    %33 = arith.subf %31, %32 : vector<24x640xf32>
    %cst_15 = arith.constant 1.000000e+00 : f32
    %34 = vector.broadcast %cst_15 : f32 to vector<24x640xf32>
    %35 = arith.addf %31, %34 : vector<24x640xf32>
    %36 = tpu.reciprocal %35 {approx = true} : vector<24x640xf32> -> vector<24x640xf32>
    %37 = arith.mulf %33, %36 : vector<24x640xf32>
    %cst_16 = arith.constant 2.000000e+01 : f32
    %38 = vector.broadcast %cst_16 : f32 to vector<24x640xf32>
    %39 = arith.cmpf ogt, %23, %38 : vector<24x640xf32>
    %cst_17 = arith.constant 1.000000e+00 : f32
    %40 = vector.broadcast %cst_17 : f32 to vector<24x640xf32>
    %41 = arith.select %39, %40, %37 : vector<24x640xi1>, vector<24x640xf32>
    %42 = arith.mulf %23, %41 : vector<24x640xf32>
    %43 = arith.truncf %42 : vector<24x640xf32> to vector<24x640xbf16>
    %cst_18 = arith.constant 0.000000e+00 : bf16
    %44 = vector.broadcast %cst_18 : bf16 to vector<24x384xbf16>
    %45 = tpu.concatenate %44, %43, %44 in 1 : vector<24x384xbf16>, vector<24x640xbf16>, vector<24x384xbf16> -> vector<24x1408xbf16>
    %46 = vector.extract_strided_slice %45 {offsets = [0, 0], sizes = [24, 640], strides = [1, 1]} : vector<24x1408xbf16> to vector<24x640xbf16>
    %47 = vector.extract_strided_slice %45 {offsets = [0, 128], sizes = [24, 640], strides = [1, 1]} : vector<24x1408xbf16> to vector<24x640xbf16>
    %48 = vector.extract_strided_slice %45 {offsets = [0, 256], sizes = [24, 640], strides = [1, 1]} : vector<24x1408xbf16> to vector<24x640xbf16>
    %49 = vector.extract_strided_slice %45 {offsets = [0, 384], sizes = [24, 640], strides = [1, 1]} : vector<24x1408xbf16> to vector<24x640xbf16>
    %50 = vector.extract_strided_slice %45 {offsets = [0, 512], sizes = [24, 640], strides = [1, 1]} : vector<24x1408xbf16> to vector<24x640xbf16>
    %51 = vector.extract_strided_slice %45 {offsets = [0, 640], sizes = [24, 640], strides = [1, 1]} : vector<24x1408xbf16> to vector<24x640xbf16>
    %52 = vector.extract_strided_slice %45 {offsets = [0, 768], sizes = [24, 640], strides = [1, 1]} : vector<24x1408xbf16> to vector<24x640xbf16>
    %53 = tpu.concatenate %46, %47, %48, %49, %50, %51, %52 in 0 : vector<24x640xbf16>, vector<24x640xbf16>, vector<24x640xbf16>, vector<24x640xbf16>, vector<24x640xbf16>, vector<24x640xbf16>, vector<24x640xbf16> -> vector<168x640xbf16>
    %c24_19 = arith.constant 24 : index
    %c0_20 = arith.constant 0 : index
    %54 = vector.load %arg2[%c24_19, %c0_20] : memref<344x432xbf16, #tpu.memory_space<vmem>>, vector<12x168xbf16>
    %cst_21 = arith.constant dense<0.000000e+00> : vector<12x640xf32>
    %55 = tpu.matmul %54, %53, %cst_21 {dimension_numbers = #tpu.dot_dimension_numbers<[1], [0], [0], [1], [0, 0, 1, 1], [], []>} : vector<12x168xbf16>, vector<168x640xbf16>, vector<12x640xf32> -> vector<12x640xf32>
    %c72 = arith.constant 72 : index
    %c0_22 = arith.constant 0 : index
    %56 = vector.load %arg3[%c72, %c0_22] : memref<1104x1xf32, #tpu.memory_space<vmem>>, vector<12x1xf32>
    %57 = vector.broadcast %56 : vector<12x1xf32> to vector<12x640xf32>
    %58 = arith.addf %55, %57 : vector<12x640xf32>
    %59 = tpu.concatenate %17, %58 in 0 : vector<24x640xf32>, vector<12x640xf32> -> vector<36x640xf32>
    %c88 = arith.constant 88 : index
    %c0_23 = arith.constant 0 : index
    %60 = vector.load %arg3[%c88, %c0_23] : memref<1104x1xf32, #tpu.memory_space<vmem>>, vector<36x1xf32>
    %61 = vector.broadcast %60 : vector<36x1xf32> to vector<36x640xf32>
    %62 = arith.mulf %59, %61 : vector<36x640xf32>
    %c128 = arith.constant 128 : index
    %c0_24 = arith.constant 0 : index
    %63 = vector.load %arg3[%c128, %c0_24] : memref<1104x1xf32, #tpu.memory_space<vmem>>, vector<36x1xf32>
    %64 = vector.broadcast %63 : vector<36x1xf32> to vector<36x640xf32>
    %65 = arith.addf %62, %64 : vector<36x640xf32>
    %cst_25 = arith.constant 2.000000e+01 : f32
    %66 = vector.broadcast %cst_25 : f32 to vector<36x640xf32>
    %67 = arith.minimumf %65, %66 : vector<36x640xf32>
    %68 = math.exp %67 : vector<36x640xf32>
    %cst_26 = arith.constant 1.000000e+00 : f32
    %69 = vector.broadcast %cst_26 : f32 to vector<36x640xf32>
    %70 = arith.addf %69, %68 : vector<36x640xf32>
    %cst_27 = arith.constant 1.000000e+00 : f32
    %71 = vector.broadcast %cst_27 : f32 to vector<36x640xf32>
    %72 = arith.addf %71, %68 : vector<36x640xf32>
    %73 = arith.mulf %70, %72 : vector<36x640xf32>
    %cst_28 = arith.constant 1.000000e+00 : f32
    %74 = vector.broadcast %cst_28 : f32 to vector<36x640xf32>
    %75 = arith.subf %73, %74 : vector<36x640xf32>
    %cst_29 = arith.constant 1.000000e+00 : f32
    %76 = vector.broadcast %cst_29 : f32 to vector<36x640xf32>
    %77 = arith.addf %73, %76 : vector<36x640xf32>
    %78 = tpu.reciprocal %77 {approx = true} : vector<36x640xf32> -> vector<36x640xf32>
    %79 = arith.mulf %75, %78 : vector<36x640xf32>
    %cst_30 = arith.constant 2.000000e+01 : f32
    %80 = vector.broadcast %cst_30 : f32 to vector<36x640xf32>
    %81 = arith.cmpf ogt, %65, %80 : vector<36x640xf32>
    %cst_31 = arith.constant 1.000000e+00 : f32
    %82 = vector.broadcast %cst_31 : f32 to vector<36x640xf32>
    %83 = arith.select %81, %82, %79 : vector<36x640xi1>, vector<36x640xf32>
    %84 = arith.mulf %65, %83 : vector<36x640xf32>
    %85 = arith.truncf %84 : vector<36x640xf32> to vector<36x640xbf16>
    %cst_32 = arith.constant 0.000000e+00 : bf16
    %86 = vector.broadcast %cst_32 : bf16 to vector<36x384xbf16>
    %87 = tpu.concatenate %86, %85, %86 in 1 : vector<36x384xbf16>, vector<36x640xbf16>, vector<36x384xbf16> -> vector<36x1408xbf16>
    %88 = vector.extract_strided_slice %87 {offsets = [0, 0], sizes = [36, 640], strides = [1, 1]} : vector<36x1408xbf16> to vector<36x640xbf16>
    %89 = vector.extract_strided_slice %87 {offsets = [0, 128], sizes = [36, 640], strides = [1, 1]} : vector<36x1408xbf16> to vector<36x640xbf16>
    %90 = vector.extract_strided_slice %87 {offsets = [0, 256], sizes = [36, 640], strides = [1, 1]} : vector<36x1408xbf16> to vector<36x640xbf16>
    %91 = vector.extract_strided_slice %87 {offsets = [0, 384], sizes = [36, 640], strides = [1, 1]} : vector<36x1408xbf16> to vector<36x640xbf16>
    %92 = vector.extract_strided_slice %87 {offsets = [0, 512], sizes = [36, 640], strides = [1, 1]} : vector<36x1408xbf16> to vector<36x640xbf16>
    %93 = vector.extract_strided_slice %87 {offsets = [0, 640], sizes = [36, 640], strides = [1, 1]} : vector<36x1408xbf16> to vector<36x640xbf16>
    %94 = vector.extract_strided_slice %87 {offsets = [0, 768], sizes = [36, 640], strides = [1, 1]} : vector<36x1408xbf16> to vector<36x640xbf16>
    %95 = tpu.concatenate %88, %89, %90, %91, %92, %93, %94 in 0 : vector<36x640xbf16>, vector<36x640xbf16>, vector<36x640xbf16>, vector<36x640xbf16>, vector<36x640xbf16>, vector<36x640xbf16>, vector<36x640xbf16> -> vector<252x640xbf16>
    %c40 = arith.constant 40 : index
    %c0_33 = arith.constant 0 : index
    %96 = vector.load %arg2[%c40, %c0_33] : memref<344x432xbf16, #tpu.memory_space<vmem>>, vector<12x252xbf16>
    %cst_34 = arith.constant dense<0.000000e+00> : vector<12x640xf32>
    %97 = tpu.matmul %96, %95, %cst_34 {dimension_numbers = #tpu.dot_dimension_numbers<[1], [0], [0], [1], [0, 0, 1, 1], [], []>} : vector<12x252xbf16>, vector<252x640xbf16>, vector<12x640xf32> -> vector<12x640xf32>
    %c168 = arith.constant 168 : index
    %c0_35 = arith.constant 0 : index
    %98 = vector.load %arg3[%c168, %c0_35] : memref<1104x1xf32, #tpu.memory_space<vmem>>, vector<12x1xf32>
    %99 = vector.broadcast %98 : vector<12x1xf32> to vector<12x640xf32>
    %100 = arith.addf %97, %99 : vector<12x640xf32>
    %101 = tpu.concatenate %17, %58, %100 in 0 : vector<24x640xf32>, vector<12x640xf32>, vector<12x640xf32> -> vector<48x640xf32>
    %c184 = arith.constant 184 : index
    %c0_36 = arith.constant 0 : index
    %102 = vector.load %arg3[%c184, %c0_36] : memref<1104x1xf32, #tpu.memory_space<vmem>>, vector<48x1xf32>
    %103 = vector.broadcast %102 : vector<48x1xf32> to vector<48x640xf32>
    %104 = arith.mulf %101, %103 : vector<48x640xf32>
    %c232 = arith.constant 232 : index
    %c0_37 = arith.constant 0 : index
    %105 = vector.load %arg3[%c232, %c0_37] : memref<1104x1xf32, #tpu.memory_space<vmem>>, vector<48x1xf32>
    %106 = vector.broadcast %105 : vector<48x1xf32> to vector<48x640xf32>
    %107 = arith.addf %104, %106 : vector<48x640xf32>
    %cst_38 = arith.constant 2.000000e+01 : f32
    %108 = vector.broadcast %cst_38 : f32 to vector<48x640xf32>
    %109 = arith.minimumf %107, %108 : vector<48x640xf32>
    %110 = math.exp %109 : vector<48x640xf32>
    %cst_39 = arith.constant 1.000000e+00 : f32
    %111 = vector.broadcast %cst_39 : f32 to vector<48x640xf32>
    %112 = arith.addf %111, %110 : vector<48x640xf32>
    %cst_40 = arith.constant 1.000000e+00 : f32
    %113 = vector.broadcast %cst_40 : f32 to vector<48x640xf32>
    %114 = arith.addf %113, %110 : vector<48x640xf32>
    %115 = arith.mulf %112, %114 : vector<48x640xf32>
    %cst_41 = arith.constant 1.000000e+00 : f32
    %116 = vector.broadcast %cst_41 : f32 to vector<48x640xf32>
    %117 = arith.subf %115, %116 : vector<48x640xf32>
    %cst_42 = arith.constant 1.000000e+00 : f32
    %118 = vector.broadcast %cst_42 : f32 to vector<48x640xf32>
    %119 = arith.addf %115, %118 : vector<48x640xf32>
    %120 = tpu.reciprocal %119 {approx = true} : vector<48x640xf32> -> vector<48x640xf32>
    %121 = arith.mulf %117, %120 : vector<48x640xf32>
    %cst_43 = arith.constant 2.000000e+01 : f32
    %122 = vector.broadcast %cst_43 : f32 to vector<48x640xf32>
    %123 = arith.cmpf ogt, %107, %122 : vector<48x640xf32>
    %cst_44 = arith.constant 1.000000e+00 : f32
    %124 = vector.broadcast %cst_44 : f32 to vector<48x640xf32>
    %125 = arith.select %123, %124, %121 : vector<48x640xi1>, vector<48x640xf32>
    %126 = arith.mulf %107, %125 : vector<48x640xf32>
    %127 = arith.truncf %126 : vector<48x640xf32> to vector<48x640xbf16>
    %cst_45 = arith.constant 0.000000e+00 : bf16
    %128 = vector.broadcast %cst_45 : bf16 to vector<48x384xbf16>
    %129 = tpu.concatenate %128, %127, %128 in 1 : vector<48x384xbf16>, vector<48x640xbf16>, vector<48x384xbf16> -> vector<48x1408xbf16>
    %130 = vector.extract_strided_slice %129 {offsets = [0, 0], sizes = [48, 640], strides = [1, 1]} : vector<48x1408xbf16> to vector<48x640xbf16>
    %131 = vector.extract_strided_slice %129 {offsets = [0, 128], sizes = [48, 640], strides = [1, 1]} : vector<48x1408xbf16> to vector<48x640xbf16>
    %132 = vector.extract_strided_slice %129 {offsets = [0, 256], sizes = [48, 640], strides = [1, 1]} : vector<48x1408xbf16> to vector<48x640xbf16>
    %133 = vector.extract_strided_slice %129 {offsets = [0, 384], sizes = [48, 640], strides = [1, 1]} : vector<48x1408xbf16> to vector<48x640xbf16>
    %134 = vector.extract_strided_slice %129 {offsets = [0, 512], sizes = [48, 640], strides = [1, 1]} : vector<48x1408xbf16> to vector<48x640xbf16>
    %135 = vector.extract_strided_slice %129 {offsets = [0, 640], sizes = [48, 640], strides = [1, 1]} : vector<48x1408xbf16> to vector<48x640xbf16>
    %136 = vector.extract_strided_slice %129 {offsets = [0, 768], sizes = [48, 640], strides = [1, 1]} : vector<48x1408xbf16> to vector<48x640xbf16>
    %137 = tpu.concatenate %130, %131, %132, %133, %134, %135, %136 in 0 : vector<48x640xbf16>, vector<48x640xbf16>, vector<48x640xbf16>, vector<48x640xbf16>, vector<48x640xbf16>, vector<48x640xbf16>, vector<48x640xbf16> -> vector<336x640xbf16>
    %c56 = arith.constant 56 : index
    %c0_46 = arith.constant 0 : index
    %138 = vector.load %arg2[%c56, %c0_46] : memref<344x432xbf16, #tpu.memory_space<vmem>>, vector<12x336xbf16>
    %cst_47 = arith.constant dense<0.000000e+00> : vector<12x640xf32>
    %139 = tpu.matmul %138, %137, %cst_47 {dimension_numbers = #tpu.dot_dimension_numbers<[1], [0], [0], [1], [0, 0, 1, 1], [], []>} : vector<12x336xbf16>, vector<336x640xbf16>, vector<12x640xf32> -> vector<12x640xf32>
    %c280 = arith.constant 280 : index
    %c0_48 = arith.constant 0 : index
    %140 = vector.load %arg3[%c280, %c0_48] : memref<1104x1xf32, #tpu.memory_space<vmem>>, vector<12x1xf32>
    %141 = vector.broadcast %140 : vector<12x1xf32> to vector<12x640xf32>
    %142 = arith.addf %139, %141 : vector<12x640xf32>
    %143 = tpu.concatenate %17, %58, %100, %142 in 0 : vector<24x640xf32>, vector<12x640xf32>, vector<12x640xf32>, vector<12x640xf32> -> vector<60x640xf32>
    %c296 = arith.constant 296 : index
    %c0_49 = arith.constant 0 : index
    %144 = vector.load %arg3[%c296, %c0_49] : memref<1104x1xf32, #tpu.memory_space<vmem>>, vector<60x1xf32>
    %145 = vector.broadcast %144 : vector<60x1xf32> to vector<60x640xf32>
    %146 = arith.mulf %143, %145 : vector<60x640xf32>
    %c360 = arith.constant 360 : index
    %c0_50 = arith.constant 0 : index
    %147 = vector.load %arg3[%c360, %c0_50] : memref<1104x1xf32, #tpu.memory_space<vmem>>, vector<60x1xf32>
    %148 = vector.broadcast %147 : vector<60x1xf32> to vector<60x640xf32>
    %149 = arith.addf %146, %148 : vector<60x640xf32>
    %cst_51 = arith.constant 2.000000e+01 : f32
    %150 = vector.broadcast %cst_51 : f32 to vector<60x640xf32>
    %151 = arith.minimumf %149, %150 : vector<60x640xf32>
    %152 = math.exp %151 : vector<60x640xf32>
    %cst_52 = arith.constant 1.000000e+00 : f32
    %153 = vector.broadcast %cst_52 : f32 to vector<60x640xf32>
    %154 = arith.addf %153, %152 : vector<60x640xf32>
    %cst_53 = arith.constant 1.000000e+00 : f32
    %155 = vector.broadcast %cst_53 : f32 to vector<60x640xf32>
    %156 = arith.addf %155, %152 : vector<60x640xf32>
    %157 = arith.mulf %154, %156 : vector<60x640xf32>
    %cst_54 = arith.constant 1.000000e+00 : f32
    %158 = vector.broadcast %cst_54 : f32 to vector<60x640xf32>
    %159 = arith.subf %157, %158 : vector<60x640xf32>
    %cst_55 = arith.constant 1.000000e+00 : f32
    %160 = vector.broadcast %cst_55 : f32 to vector<60x640xf32>
    %161 = arith.addf %157, %160 : vector<60x640xf32>
    %162 = tpu.reciprocal %161 {approx = true} : vector<60x640xf32> -> vector<60x640xf32>
    %163 = arith.mulf %159, %162 : vector<60x640xf32>
    %cst_56 = arith.constant 2.000000e+01 : f32
    %164 = vector.broadcast %cst_56 : f32 to vector<60x640xf32>
    %165 = arith.cmpf ogt, %149, %164 : vector<60x640xf32>
    %cst_57 = arith.constant 1.000000e+00 : f32
    %166 = vector.broadcast %cst_57 : f32 to vector<60x640xf32>
    %167 = arith.select %165, %166, %163 : vector<60x640xi1>, vector<60x640xf32>
    %168 = arith.mulf %149, %167 : vector<60x640xf32>
    %169 = arith.truncf %168 : vector<60x640xf32> to vector<60x640xbf16>
    %170 = vector.extract_strided_slice %169 {offsets = [0, 0], sizes = [60, 128], strides = [1, 1]} : vector<60x640xbf16> to vector<60x128xbf16>
    %171 = vector.extract_strided_slice %169 {offsets = [0, 128], sizes = [60, 128], strides = [1, 1]} : vector<60x640xbf16> to vector<60x128xbf16>
    %172 = vector.extract_strided_slice %169 {offsets = [0, 256], sizes = [60, 128], strides = [1, 1]} : vector<60x640xbf16> to vector<60x128xbf16>
    %173 = vector.extract_strided_slice %169 {offsets = [0, 384], sizes = [60, 128], strides = [1, 1]} : vector<60x640xbf16> to vector<60x128xbf16>
    %174 = vector.extract_strided_slice %169 {offsets = [0, 512], sizes = [60, 128], strides = [1, 1]} : vector<60x640xbf16> to vector<60x128xbf16>
    %175 = tpu.concatenate %170, %171, %172, %173, %174 in 0 : vector<60x128xbf16>, vector<60x128xbf16>, vector<60x128xbf16>, vector<60x128xbf16>, vector<60x128xbf16> -> vector<300x128xbf16>
    %c72_58 = arith.constant 72 : index
    %c0_59 = arith.constant 0 : index
    %176 = vector.load %arg2[%c72_58, %c0_59] : memref<344x432xbf16, #tpu.memory_space<vmem>>, vector<60x300xbf16>
    %cst_60 = arith.constant dense<0.000000e+00> : vector<60x128xf32>
    %177 = tpu.matmul %176, %175, %cst_60 {dimension_numbers = #tpu.dot_dimension_numbers<[1], [0], [0], [1], [0, 0, 1, 1], [], []>} : vector<60x300xbf16>, vector<300x128xbf16>, vector<60x128xf32> -> vector<60x128xf32>
    %c424 = arith.constant 424 : index
    %c0_61 = arith.constant 0 : index
    %178 = vector.load %arg3[%c424, %c0_61] : memref<1104x1xf32, #tpu.memory_space<vmem>>, vector<60x1xf32>
    %179 = vector.broadcast %178 : vector<60x1xf32> to vector<60x128xf32>
    %180 = arith.addf %177, %179 : vector<60x128xf32>
    %c0_62 = arith.constant 0 : index
    %181 = memref.load %arg6[%c0_62] : memref<2xf32, #tpu.memory_space<smem>>
    %182 = arith.truncf %180 : vector<60x128xf32> to vector<60x128xbf16>
    %cst_63 = arith.constant 0.000000e+00 : f32
    %183 = vector.broadcast %cst_63 : f32 to vector<60x128xf32>
    %184 = vector.extract_strided_slice %4 {offsets = [0, 0], sizes = [1, 128], strides = [1, 1]} : vector<2x128xf32> to vector<1x128xf32>
    %185 = arith.truncf %184 : vector<1x128xf32> to vector<1x128xbf16>
    %186 = vector.broadcast %185 : vector<1x128xbf16> to vector<60x128xbf16>
    %187 = arith.mulf %182, %186 : vector<60x128xbf16>
    %cst_64 = arith.constant dense<0.000000e+00> : vector<60x60xf32>
    %188 = tpu.matmul %187, %187, %cst_64 {dimension_numbers = #tpu.dot_dimension_numbers<[1], [1], [0], [0], [0, 0, 1, 0], [], []>} : vector<60x128xbf16>, vector<60x128xbf16>, vector<60x60xf32> -> vector<60x60xf32>
    %cst_65 = arith.constant dense<0xFF800000> : vector<60xf32>
    %189 = vector.multi_reduction <maximumf>, %188, %cst_65 [1] : vector<60x60xf32> to vector<60xf32>
    %190 = vector.shape_cast %189 : vector<60xf32> to vector<60x1xf32>
    %191 = vector.broadcast %190 : vector<60x1xf32> to vector<60x60xf32>
    %192 = arith.subf %191, %188 : vector<60x60xf32>
    %cst_66 = arith.constant dense<0xFF800000> : vector<60xf32>
    %193 = vector.multi_reduction <maximumf>, %192, %cst_66 [1] : vector<60x60xf32> to vector<60xf32>
    %194 = vector.shape_cast %193 : vector<60xf32> to vector<60x1xf32>
    %195 = vector.broadcast %194 : vector<60x1xf32> to vector<60x60xf32>
    %196 = arith.subf %192, %195 : vector<60x60xf32>
    %197 = math.exp %196 : vector<60x60xf32>
    %cst_67 = arith.constant dense<0.000000e+00> : vector<60xf32>
    %198 = vector.multi_reduction <add>, %197, %cst_67 [1] : vector<60x60xf32> to vector<60xf32>
    %199 = vector.shape_cast %198 : vector<60xf32> to vector<60x1xf32>
    %200 = tpu.reciprocal %199 {approx = true} : vector<60x1xf32> -> vector<60x1xf32>
    %201 = vector.broadcast %200 : vector<60x1xf32> to vector<60x60xf32>
    %202 = arith.mulf %197, %201 : vector<60x60xf32>
    %203 = arith.truncf %202 : vector<60x60xf32> to vector<60x60xbf16>
    %cst_68 = arith.constant dense<0.000000e+00> : vector<60x128xf32>
    %204 = tpu.matmul %203, %187, %cst_68 {dimension_numbers = #tpu.dot_dimension_numbers<[1], [0], [0], [1], [0, 0, 1, 1], [], []>} : vector<60x60xbf16>, vector<60x128xbf16>, vector<60x128xf32> -> vector<60x128xf32>
    %205 = arith.addf %183, %204 : vector<60x128xf32>
    %206 = vector.extract_strided_slice %4 {offsets = [1, 0], sizes = [1, 128], strides = [1, 1]} : vector<2x128xf32> to vector<1x128xf32>
    %207 = arith.truncf %206 : vector<1x128xf32> to vector<1x128xbf16>
    %208 = vector.broadcast %207 : vector<1x128xbf16> to vector<60x128xbf16>
    %209 = arith.mulf %182, %208 : vector<60x128xbf16>
    %cst_69 = arith.constant dense<0.000000e+00> : vector<60x60xf32>
    %210 = tpu.matmul %209, %209, %cst_69 {dimension_numbers = #tpu.dot_dimension_numbers<[1], [1], [0], [0], [0, 0, 1, 0], [], []>} : vector<60x128xbf16>, vector<60x128xbf16>, vector<60x60xf32> -> vector<60x60xf32>
    %cst_70 = arith.constant dense<0xFF800000> : vector<60xf32>
    %211 = vector.multi_reduction <maximumf>, %210, %cst_70 [1] : vector<60x60xf32> to vector<60xf32>
    %212 = vector.shape_cast %211 : vector<60xf32> to vector<60x1xf32>
    %213 = vector.broadcast %212 : vector<60x1xf32> to vector<60x60xf32>
    %214 = arith.subf %213, %210 : vector<60x60xf32>
    %cst_71 = arith.constant dense<0xFF800000> : vector<60xf32>
    %215 = vector.multi_reduction <maximumf>, %214, %cst_71 [1] : vector<60x60xf32> to vector<60xf32>
    %216 = vector.shape_cast %215 : vector<60xf32> to vector<60x1xf32>
    %217 = vector.broadcast %216 : vector<60x1xf32> to vector<60x60xf32>
    %218 = arith.subf %214, %217 : vector<60x60xf32>
    %219 = math.exp %218 : vector<60x60xf32>
    %cst_72 = arith.constant dense<0.000000e+00> : vector<60xf32>
    %220 = vector.multi_reduction <add>, %219, %cst_72 [1] : vector<60x60xf32> to vector<60xf32>
    %221 = vector.shape_cast %220 : vector<60xf32> to vector<60x1xf32>
    %222 = tpu.reciprocal %221 {approx = true} : vector<60x1xf32> -> vector<60x1xf32>
    %223 = vector.broadcast %222 : vector<60x1xf32> to vector<60x60xf32>
    %224 = arith.mulf %219, %223 : vector<60x60xf32>
    %225 = arith.truncf %224 : vector<60x60xf32> to vector<60x60xbf16>
    %cst_73 = arith.constant dense<0.000000e+00> : vector<60x128xf32>
    %226 = tpu.matmul %225, %209, %cst_73 {dimension_numbers = #tpu.dot_dimension_numbers<[1], [0], [0], [1], [0, 0, 1, 1], [], []>} : vector<60x60xbf16>, vector<60x128xbf16>, vector<60x128xf32> -> vector<60x128xf32>
    %227 = arith.addf %205, %226 : vector<60x128xf32>
    %228 = vector.broadcast %181 : f32 to vector<60x128xf32>
    %229 = arith.mulf %228, %227 : vector<60x128xf32>
    %230 = arith.addf %229, %180 : vector<60x128xf32>
    %c136 = arith.constant 136 : index
    %c0_74 = arith.constant 0 : index
    %231 = vector.load %arg2[%c136, %c0_74] : memref<344x432xbf16, #tpu.memory_space<vmem>>, vector<24x16xbf16>
    %cst_75 = arith.constant dense<0.000000e+00> : vector<24x128xf32>
    %232 = tpu.matmul %231, %1, %cst_75 {dimension_numbers = #tpu.dot_dimension_numbers<[1], [0], [0], [1], [0, 0, 1, 1], [], []>} : vector<24x16xbf16>, vector<16x128xbf16>, vector<24x128xf32> -> vector<24x128xf32>
    %c616 = arith.constant 616 : index
    %c0_76 = arith.constant 0 : index
    %233 = vector.load %arg3[%c616, %c0_76] : memref<1104x1xf32, #tpu.memory_space<vmem>>, vector<24x1xf32>
    %234 = vector.broadcast %233 : vector<24x1xf32> to vector<24x128xf32>
    %235 = arith.addf %232, %234 : vector<24x128xf32>
    %c640 = arith.constant 640 : index
    %c0_77 = arith.constant 0 : index
    %236 = vector.load %arg3[%c640, %c0_77] : memref<1104x1xf32, #tpu.memory_space<vmem>>, vector<24x1xf32>
    %237 = vector.broadcast %236 : vector<24x1xf32> to vector<24x128xf32>
    %238 = arith.mulf %235, %237 : vector<24x128xf32>
    %c664 = arith.constant 664 : index
    %c0_78 = arith.constant 0 : index
    %239 = vector.load %arg3[%c664, %c0_78] : memref<1104x1xf32, #tpu.memory_space<vmem>>, vector<24x1xf32>
    %240 = vector.broadcast %239 : vector<24x1xf32> to vector<24x128xf32>
    %241 = arith.addf %238, %240 : vector<24x128xf32>
    %cst_79 = arith.constant 2.000000e+01 : f32
    %242 = vector.broadcast %cst_79 : f32 to vector<24x128xf32>
    %243 = arith.minimumf %241, %242 : vector<24x128xf32>
    %244 = math.exp %243 : vector<24x128xf32>
    %cst_80 = arith.constant 1.000000e+00 : f32
    %245 = vector.broadcast %cst_80 : f32 to vector<24x128xf32>
    %246 = arith.addf %245, %244 : vector<24x128xf32>
    %cst_81 = arith.constant 1.000000e+00 : f32
    %247 = vector.broadcast %cst_81 : f32 to vector<24x128xf32>
    %248 = arith.addf %247, %244 : vector<24x128xf32>
    %249 = arith.mulf %246, %248 : vector<24x128xf32>
    %cst_82 = arith.constant 1.000000e+00 : f32
    %250 = vector.broadcast %cst_82 : f32 to vector<24x128xf32>
    %251 = arith.subf %249, %250 : vector<24x128xf32>
    %cst_83 = arith.constant 1.000000e+00 : f32
    %252 = vector.broadcast %cst_83 : f32 to vector<24x128xf32>
    %253 = arith.addf %249, %252 : vector<24x128xf32>
    %254 = tpu.reciprocal %253 {approx = true} : vector<24x128xf32> -> vector<24x128xf32>
    %255 = arith.mulf %251, %254 : vector<24x128xf32>
    %cst_84 = arith.constant 2.000000e+01 : f32
    %256 = vector.broadcast %cst_84 : f32 to vector<24x128xf32>
    %257 = arith.cmpf ogt, %241, %256 : vector<24x128xf32>
    %cst_85 = arith.constant 1.000000e+00 : f32
    %258 = vector.broadcast %cst_85 : f32 to vector<24x128xf32>
    %259 = arith.select %257, %258, %255 : vector<24x128xi1>, vector<24x128xf32>
    %260 = arith.mulf %241, %259 : vector<24x128xf32>
    %261 = arith.truncf %260 : vector<24x128xf32> to vector<24x128xbf16>
    %cst_86 = arith.constant 0.000000e+00 : bf16
    %262 = vector.broadcast %cst_86 : bf16 to vector<24x9xbf16>
    %263 = vector.extract_strided_slice %261 {offsets = [0, 0], sizes = [24, 119], strides = [1, 1]} : vector<24x128xbf16> to vector<24x119xbf16>
    %264 = tpu.concatenate %262, %263 in 1 : vector<24x9xbf16>, vector<24x119xbf16> -> vector<24x128xbf16>
    %265 = vector.extract_strided_slice %3 {offsets = [0, 0], sizes = [1, 128], strides = [1, 1]} : vector<9x128xbf16> to vector<1x128xbf16>
    %266 = vector.broadcast %265 : vector<1x128xbf16> to vector<24x128xbf16>
    %267 = arith.mulf %264, %266 : vector<24x128xbf16>
    %cst_87 = arith.constant 0.000000e+00 : bf16
    %268 = vector.broadcast %cst_87 : bf16 to vector<24x8xbf16>
    %269 = vector.extract_strided_slice %261 {offsets = [0, 0], sizes = [24, 120], strides = [1, 1]} : vector<24x128xbf16> to vector<24x120xbf16>
    %270 = tpu.concatenate %268, %269 in 1 : vector<24x8xbf16>, vector<24x120xbf16> -> vector<24x128xbf16>
    %271 = vector.extract_strided_slice %3 {offsets = [1, 0], sizes = [1, 128], strides = [1, 1]} : vector<9x128xbf16> to vector<1x128xbf16>
    %272 = vector.broadcast %271 : vector<1x128xbf16> to vector<24x128xbf16>
    %273 = arith.mulf %270, %272 : vector<24x128xbf16>
    %cst_88 = arith.constant 0.000000e+00 : bf16
    %274 = vector.broadcast %cst_88 : bf16 to vector<24x7xbf16>
    %275 = vector.extract_strided_slice %261 {offsets = [0, 0], sizes = [24, 121], strides = [1, 1]} : vector<24x128xbf16> to vector<24x121xbf16>
    %276 = tpu.concatenate %274, %275 in 1 : vector<24x7xbf16>, vector<24x121xbf16> -> vector<24x128xbf16>
    %277 = vector.extract_strided_slice %3 {offsets = [2, 0], sizes = [1, 128], strides = [1, 1]} : vector<9x128xbf16> to vector<1x128xbf16>
    %278 = vector.broadcast %277 : vector<1x128xbf16> to vector<24x128xbf16>
    %279 = arith.mulf %276, %278 : vector<24x128xbf16>
    %cst_89 = arith.constant 0.000000e+00 : bf16
    %280 = vector.broadcast %cst_89 : bf16 to vector<24x1xbf16>
    %281 = vector.extract_strided_slice %261 {offsets = [0, 0], sizes = [24, 127], strides = [1, 1]} : vector<24x128xbf16> to vector<24x127xbf16>
    %282 = tpu.concatenate %280, %281 in 1 : vector<24x1xbf16>, vector<24x127xbf16> -> vector<24x128xbf16>
    %283 = vector.extract_strided_slice %3 {offsets = [3, 0], sizes = [1, 128], strides = [1, 1]} : vector<9x128xbf16> to vector<1x128xbf16>
    %284 = vector.broadcast %283 : vector<1x128xbf16> to vector<24x128xbf16>
    %285 = arith.mulf %282, %284 : vector<24x128xbf16>
    %286 = vector.extract_strided_slice %3 {offsets = [4, 0], sizes = [1, 128], strides = [1, 1]} : vector<9x128xbf16> to vector<1x128xbf16>
    %287 = vector.broadcast %286 : vector<1x128xbf16> to vector<24x128xbf16>
    %288 = arith.mulf %261, %287 : vector<24x128xbf16>
    %289 = vector.extract_strided_slice %261 {offsets = [0, 1], sizes = [24, 127], strides = [1, 1]} : vector<24x128xbf16> to vector<24x127xbf16>
    %cst_90 = arith.constant 0.000000e+00 : bf16
    %290 = vector.broadcast %cst_90 : bf16 to vector<24x1xbf16>
    %291 = tpu.concatenate %289, %290 in 1 : vector<24x127xbf16>, vector<24x1xbf16> -> vector<24x128xbf16>
    %292 = vector.extract_strided_slice %3 {offsets = [5, 0], sizes = [1, 128], strides = [1, 1]} : vector<9x128xbf16> to vector<1x128xbf16>
    %293 = vector.broadcast %292 : vector<1x128xbf16> to vector<24x128xbf16>
    %294 = arith.mulf %291, %293 : vector<24x128xbf16>
    %295 = vector.extract_strided_slice %261 {offsets = [0, 7], sizes = [24, 121], strides = [1, 1]} : vector<24x128xbf16> to vector<24x121xbf16>
    %cst_91 = arith.constant 0.000000e+00 : bf16
    %296 = vector.broadcast %cst_91 : bf16 to vector<24x7xbf16>
    %297 = tpu.concatenate %295, %296 in 1 : vector<24x121xbf16>, vector<24x7xbf16> -> vector<24x128xbf16>
    %298 = vector.extract_strided_slice %3 {offsets = [6, 0], sizes = [1, 128], strides = [1, 1]} : vector<9x128xbf16> to vector<1x128xbf16>
    %299 = vector.broadcast %298 : vector<1x128xbf16> to vector<24x128xbf16>
    %300 = arith.mulf %297, %299 : vector<24x128xbf16>
    %301 = vector.extract_strided_slice %261 {offsets = [0, 8], sizes = [24, 120], strides = [1, 1]} : vector<24x128xbf16> to vector<24x120xbf16>
    %cst_92 = arith.constant 0.000000e+00 : bf16
    %302 = vector.broadcast %cst_92 : bf16 to vector<24x8xbf16>
    %303 = tpu.concatenate %301, %302 in 1 : vector<24x120xbf16>, vector<24x8xbf16> -> vector<24x128xbf16>
    %304 = vector.extract_strided_slice %3 {offsets = [7, 0], sizes = [1, 128], strides = [1, 1]} : vector<9x128xbf16> to vector<1x128xbf16>
    %305 = vector.broadcast %304 : vector<1x128xbf16> to vector<24x128xbf16>
    %306 = arith.mulf %303, %305 : vector<24x128xbf16>
    %307 = vector.extract_strided_slice %261 {offsets = [0, 9], sizes = [24, 119], strides = [1, 1]} : vector<24x128xbf16> to vector<24x119xbf16>
    %cst_93 = arith.constant 0.000000e+00 : bf16
    %308 = vector.broadcast %cst_93 : bf16 to vector<24x9xbf16>
    %309 = tpu.concatenate %307, %308 in 1 : vector<24x119xbf16>, vector<24x9xbf16> -> vector<24x128xbf16>
    %310 = vector.extract_strided_slice %3 {offsets = [8, 0], sizes = [1, 128], strides = [1, 1]} : vector<9x128xbf16> to vector<1x128xbf16>
    %311 = vector.broadcast %310 : vector<1x128xbf16> to vector<24x128xbf16>
    %312 = arith.mulf %309, %311 : vector<24x128xbf16>
    %313 = tpu.concatenate %267, %273, %279, %285, %288, %294, %300, %306, %312 in 0 : vector<24x128xbf16>, vector<24x128xbf16>, vector<24x128xbf16>, vector<24x128xbf16>, vector<24x128xbf16>, vector<24x128xbf16>, vector<24x128xbf16>, vector<24x128xbf16>, vector<24x128xbf16> -> vector<216x128xbf16>
    %c160 = arith.constant 160 : index
    %c0_94 = arith.constant 0 : index
    %314 = vector.load %arg2[%c160, %c0_94] : memref<344x432xbf16, #tpu.memory_space<vmem>>, vector<12x216xbf16>
    %cst_95 = arith.constant dense<0.000000e+00> : vector<12x128xf32>
    %315 = tpu.matmul %314, %313, %cst_95 {dimension_numbers = #tpu.dot_dimension_numbers<[1], [0], [0], [1], [0, 0, 1, 1], [], []>} : vector<12x216xbf16>, vector<216x128xbf16>, vector<12x128xf32> -> vector<12x128xf32>
    %c688 = arith.constant 688 : index
    %c0_96 = arith.constant 0 : index
    %316 = vector.load %arg3[%c688, %c0_96] : memref<1104x1xf32, #tpu.memory_space<vmem>>, vector<12x1xf32>
    %317 = vector.broadcast %316 : vector<12x1xf32> to vector<12x128xf32>
    %318 = arith.addf %315, %317 : vector<12x128xf32>
    %319 = tpu.concatenate %235, %318 in 0 : vector<24x128xf32>, vector<12x128xf32> -> vector<36x128xf32>
    %c704 = arith.constant 704 : index
    %c0_97 = arith.constant 0 : index
    %320 = vector.load %arg3[%c704, %c0_97] : memref<1104x1xf32, #tpu.memory_space<vmem>>, vector<36x1xf32>
    %321 = vector.broadcast %320 : vector<36x1xf32> to vector<36x128xf32>
    %322 = arith.mulf %319, %321 : vector<36x128xf32>
    %c744 = arith.constant 744 : index
    %c0_98 = arith.constant 0 : index
    %323 = vector.load %arg3[%c744, %c0_98] : memref<1104x1xf32, #tpu.memory_space<vmem>>, vector<36x1xf32>
    %324 = vector.broadcast %323 : vector<36x1xf32> to vector<36x128xf32>
    %325 = arith.addf %322, %324 : vector<36x128xf32>
    %cst_99 = arith.constant 2.000000e+01 : f32
    %326 = vector.broadcast %cst_99 : f32 to vector<36x128xf32>
    %327 = arith.minimumf %325, %326 : vector<36x128xf32>
    %328 = math.exp %327 : vector<36x128xf32>
    %cst_100 = arith.constant 1.000000e+00 : f32
    %329 = vector.broadcast %cst_100 : f32 to vector<36x128xf32>
    %330 = arith.addf %329, %328 : vector<36x128xf32>
    %cst_101 = arith.constant 1.000000e+00 : f32
    %331 = vector.broadcast %cst_101 : f32 to vector<36x128xf32>
    %332 = arith.addf %331, %328 : vector<36x128xf32>
    %333 = arith.mulf %330, %332 : vector<36x128xf32>
    %cst_102 = arith.constant 1.000000e+00 : f32
    %334 = vector.broadcast %cst_102 : f32 to vector<36x128xf32>
    %335 = arith.subf %333, %334 : vector<36x128xf32>
    %cst_103 = arith.constant 1.000000e+00 : f32
    %336 = vector.broadcast %cst_103 : f32 to vector<36x128xf32>
    %337 = arith.addf %333, %336 : vector<36x128xf32>
    %338 = tpu.reciprocal %337 {approx = true} : vector<36x128xf32> -> vector<36x128xf32>
    %339 = arith.mulf %335, %338 : vector<36x128xf32>
    %cst_104 = arith.constant 2.000000e+01 : f32
    %340 = vector.broadcast %cst_104 : f32 to vector<36x128xf32>
    %341 = arith.cmpf ogt, %325, %340 : vector<36x128xf32>
    %cst_105 = arith.constant 1.000000e+00 : f32
    %342 = vector.broadcast %cst_105 : f32 to vector<36x128xf32>
    %343 = arith.select %341, %342, %339 : vector<36x128xi1>, vector<36x128xf32>
    %344 = arith.mulf %325, %343 : vector<36x128xf32>
    %345 = arith.truncf %344 : vector<36x128xf32> to vector<36x128xbf16>
    %cst_106 = arith.constant 0.000000e+00 : bf16
    %346 = vector.broadcast %cst_106 : bf16 to vector<36x9xbf16>
    %347 = vector.extract_strided_slice %345 {offsets = [0, 0], sizes = [36, 119], strides = [1, 1]} : vector<36x128xbf16> to vector<36x119xbf16>
    %348 = tpu.concatenate %346, %347 in 1 : vector<36x9xbf16>, vector<36x119xbf16> -> vector<36x128xbf16>
    %349 = vector.extract_strided_slice %3 {offsets = [0, 0], sizes = [1, 128], strides = [1, 1]} : vector<9x128xbf16> to vector<1x128xbf16>
    %350 = vector.broadcast %349 : vector<1x128xbf16> to vector<36x128xbf16>
    %351 = arith.mulf %348, %350 : vector<36x128xbf16>
    %cst_107 = arith.constant 0.000000e+00 : bf16
    %352 = vector.broadcast %cst_107 : bf16 to vector<36x8xbf16>
    %353 = vector.extract_strided_slice %345 {offsets = [0, 0], sizes = [36, 120], strides = [1, 1]} : vector<36x128xbf16> to vector<36x120xbf16>
    %354 = tpu.concatenate %352, %353 in 1 : vector<36x8xbf16>, vector<36x120xbf16> -> vector<36x128xbf16>
    %355 = vector.extract_strided_slice %3 {offsets = [1, 0], sizes = [1, 128], strides = [1, 1]} : vector<9x128xbf16> to vector<1x128xbf16>
    %356 = vector.broadcast %355 : vector<1x128xbf16> to vector<36x128xbf16>
    %357 = arith.mulf %354, %356 : vector<36x128xbf16>
    %cst_108 = arith.constant 0.000000e+00 : bf16
    %358 = vector.broadcast %cst_108 : bf16 to vector<36x7xbf16>
    %359 = vector.extract_strided_slice %345 {offsets = [0, 0], sizes = [36, 121], strides = [1, 1]} : vector<36x128xbf16> to vector<36x121xbf16>
    %360 = tpu.concatenate %358, %359 in 1 : vector<36x7xbf16>, vector<36x121xbf16> -> vector<36x128xbf16>
    %361 = vector.extract_strided_slice %3 {offsets = [2, 0], sizes = [1, 128], strides = [1, 1]} : vector<9x128xbf16> to vector<1x128xbf16>
    %362 = vector.broadcast %361 : vector<1x128xbf16> to vector<36x128xbf16>
    %363 = arith.mulf %360, %362 : vector<36x128xbf16>
    %cst_109 = arith.constant 0.000000e+00 : bf16
    %364 = vector.broadcast %cst_109 : bf16 to vector<36x1xbf16>
    %365 = vector.extract_strided_slice %345 {offsets = [0, 0], sizes = [36, 127], strides = [1, 1]} : vector<36x128xbf16> to vector<36x127xbf16>
    %366 = tpu.concatenate %364, %365 in 1 : vector<36x1xbf16>, vector<36x127xbf16> -> vector<36x128xbf16>
    %367 = vector.extract_strided_slice %3 {offsets = [3, 0], sizes = [1, 128], strides = [1, 1]} : vector<9x128xbf16> to vector<1x128xbf16>
    %368 = vector.broadcast %367 : vector<1x128xbf16> to vector<36x128xbf16>
    %369 = arith.mulf %366, %368 : vector<36x128xbf16>
    %370 = vector.extract_strided_slice %3 {offsets = [4, 0], sizes = [1, 128], strides = [1, 1]} : vector<9x128xbf16> to vector<1x128xbf16>
    %371 = vector.broadcast %370 : vector<1x128xbf16> to vector<36x128xbf16>
    %372 = arith.mulf %345, %371 : vector<36x128xbf16>
    %373 = vector.extract_strided_slice %345 {offsets = [0, 1], sizes = [36, 127], strides = [1, 1]} : vector<36x128xbf16> to vector<36x127xbf16>
    %cst_110 = arith.constant 0.000000e+00 : bf16
    %374 = vector.broadcast %cst_110 : bf16 to vector<36x1xbf16>
    %375 = tpu.concatenate %373, %374 in 1 : vector<36x127xbf16>, vector<36x1xbf16> -> vector<36x128xbf16>
    %376 = vector.extract_strided_slice %3 {offsets = [5, 0], sizes = [1, 128], strides = [1, 1]} : vector<9x128xbf16> to vector<1x128xbf16>
    %377 = vector.broadcast %376 : vector<1x128xbf16> to vector<36x128xbf16>
    %378 = arith.mulf %375, %377 : vector<36x128xbf16>
    %379 = vector.extract_strided_slice %345 {offsets = [0, 7], sizes = [36, 121], strides = [1, 1]} : vector<36x128xbf16> to vector<36x121xbf16>
    %cst_111 = arith.constant 0.000000e+00 : bf16
    %380 = vector.broadcast %cst_111 : bf16 to vector<36x7xbf16>
    %381 = tpu.concatenate %379, %380 in 1 : vector<36x121xbf16>, vector<36x7xbf16> -> vector<36x128xbf16>
    %382 = vector.extract_strided_slice %3 {offsets = [6, 0], sizes = [1, 128], strides = [1, 1]} : vector<9x128xbf16> to vector<1x128xbf16>
    %383 = vector.broadcast %382 : vector<1x128xbf16> to vector<36x128xbf16>
    %384 = arith.mulf %381, %383 : vector<36x128xbf16>
    %385 = vector.extract_strided_slice %345 {offsets = [0, 8], sizes = [36, 120], strides = [1, 1]} : vector<36x128xbf16> to vector<36x120xbf16>
    %cst_112 = arith.constant 0.000000e+00 : bf16
    %386 = vector.broadcast %cst_112 : bf16 to vector<36x8xbf16>
    %387 = tpu.concatenate %385, %386 in 1 : vector<36x120xbf16>, vector<36x8xbf16> -> vector<36x128xbf16>
    %388 = vector.extract_strided_slice %3 {offsets = [7, 0], sizes = [1, 128], strides = [1, 1]} : vector<9x128xbf16> to vector<1x128xbf16>
    %389 = vector.broadcast %388 : vector<1x128xbf16> to vector<36x128xbf16>
    %390 = arith.mulf %387, %389 : vector<36x128xbf16>
    %391 = vector.extract_strided_slice %345 {offsets = [0, 9], sizes = [36, 119], strides = [1, 1]} : vector<36x128xbf16> to vector<36x119xbf16>
    %cst_113 = arith.constant 0.000000e+00 : bf16
    %392 = vector.broadcast %cst_113 : bf16 to vector<36x9xbf16>
    %393 = tpu.concatenate %391, %392 in 1 : vector<36x119xbf16>, vector<36x9xbf16> -> vector<36x128xbf16>
    %394 = vector.extract_strided_slice %3 {offsets = [8, 0], sizes = [1, 128], strides = [1, 1]} : vector<9x128xbf16> to vector<1x128xbf16>
    %395 = vector.broadcast %394 : vector<1x128xbf16> to vector<36x128xbf16>
    %396 = arith.mulf %393, %395 : vector<36x128xbf16>
    %397 = tpu.concatenate %351, %357, %363, %369, %372, %378, %384, %390, %396 in 0 : vector<36x128xbf16>, vector<36x128xbf16>, vector<36x128xbf16>, vector<36x128xbf16>, vector<36x128xbf16>, vector<36x128xbf16>, vector<36x128xbf16>, vector<36x128xbf16>, vector<36x128xbf16> -> vector<324x128xbf16>
    %c176 = arith.constant 176 : index
    %c0_114 = arith.constant 0 : index
    %398 = vector.load %arg2[%c176, %c0_114] : memref<344x432xbf16, #tpu.memory_space<vmem>>, vector<12x324xbf16>
    %cst_115 = arith.constant dense<0.000000e+00> : vector<12x128xf32>
    %399 = tpu.matmul %398, %397, %cst_115 {dimension_numbers = #tpu.dot_dimension_numbers<[1], [0], [0], [1], [0, 0, 1, 1], [], []>} : vector<12x324xbf16>, vector<324x128xbf16>, vector<12x128xf32> -> vector<12x128xf32>
    %c784 = arith.constant 784 : index
    %c0_116 = arith.constant 0 : index
    %400 = vector.load %arg3[%c784, %c0_116] : memref<1104x1xf32, #tpu.memory_space<vmem>>, vector<12x1xf32>
    %401 = vector.broadcast %400 : vector<12x1xf32> to vector<12x128xf32>
    %402 = arith.addf %399, %401 : vector<12x128xf32>
    %403 = tpu.concatenate %235, %318, %402 in 0 : vector<24x128xf32>, vector<12x128xf32>, vector<12x128xf32> -> vector<48x128xf32>
    %c800 = arith.constant 800 : index
    %c0_117 = arith.constant 0 : index
    %404 = vector.load %arg3[%c800, %c0_117] : memref<1104x1xf32, #tpu.memory_space<vmem>>, vector<48x1xf32>
    %405 = vector.broadcast %404 : vector<48x1xf32> to vector<48x128xf32>
    %406 = arith.mulf %403, %405 : vector<48x128xf32>
    %c848 = arith.constant 848 : index
    %c0_118 = arith.constant 0 : index
    %407 = vector.load %arg3[%c848, %c0_118] : memref<1104x1xf32, #tpu.memory_space<vmem>>, vector<48x1xf32>
    %408 = vector.broadcast %407 : vector<48x1xf32> to vector<48x128xf32>
    %409 = arith.addf %406, %408 : vector<48x128xf32>
    %cst_119 = arith.constant 2.000000e+01 : f32
    %410 = vector.broadcast %cst_119 : f32 to vector<48x128xf32>
    %411 = arith.minimumf %409, %410 : vector<48x128xf32>
    %412 = math.exp %411 : vector<48x128xf32>
    %cst_120 = arith.constant 1.000000e+00 : f32
    %413 = vector.broadcast %cst_120 : f32 to vector<48x128xf32>
    %414 = arith.addf %413, %412 : vector<48x128xf32>
    %cst_121 = arith.constant 1.000000e+00 : f32
    %415 = vector.broadcast %cst_121 : f32 to vector<48x128xf32>
    %416 = arith.addf %415, %412 : vector<48x128xf32>
    %417 = arith.mulf %414, %416 : vector<48x128xf32>
    %cst_122 = arith.constant 1.000000e+00 : f32
    %418 = vector.broadcast %cst_122 : f32 to vector<48x128xf32>
    %419 = arith.subf %417, %418 : vector<48x128xf32>
    %cst_123 = arith.constant 1.000000e+00 : f32
    %420 = vector.broadcast %cst_123 : f32 to vector<48x128xf32>
    %421 = arith.addf %417, %420 : vector<48x128xf32>
    %422 = tpu.reciprocal %421 {approx = true} : vector<48x128xf32> -> vector<48x128xf32>
    %423 = arith.mulf %419, %422 : vector<48x128xf32>
    %cst_124 = arith.constant 2.000000e+01 : f32
    %424 = vector.broadcast %cst_124 : f32 to vector<48x128xf32>
    %425 = arith.cmpf ogt, %409, %424 : vector<48x128xf32>
    %cst_125 = arith.constant 1.000000e+00 : f32
    %426 = vector.broadcast %cst_125 : f32 to vector<48x128xf32>
    %427 = arith.select %425, %426, %423 : vector<48x128xi1>, vector<48x128xf32>
    %428 = arith.mulf %409, %427 : vector<48x128xf32>
    %429 = arith.truncf %428 : vector<48x128xf32> to vector<48x128xbf16>
    %cst_126 = arith.constant 0.000000e+00 : bf16
    %430 = vector.broadcast %cst_126 : bf16 to vector<48x9xbf16>
    %431 = vector.extract_strided_slice %429 {offsets = [0, 0], sizes = [48, 119], strides = [1, 1]} : vector<48x128xbf16> to vector<48x119xbf16>
    %432 = tpu.concatenate %430, %431 in 1 : vector<48x9xbf16>, vector<48x119xbf16> -> vector<48x128xbf16>
    %433 = vector.extract_strided_slice %3 {offsets = [0, 0], sizes = [1, 128], strides = [1, 1]} : vector<9x128xbf16> to vector<1x128xbf16>
    %434 = vector.broadcast %433 : vector<1x128xbf16> to vector<48x128xbf16>
    %435 = arith.mulf %432, %434 : vector<48x128xbf16>
    %cst_127 = arith.constant 0.000000e+00 : bf16
    %436 = vector.broadcast %cst_127 : bf16 to vector<48x8xbf16>
    %437 = vector.extract_strided_slice %429 {offsets = [0, 0], sizes = [48, 120], strides = [1, 1]} : vector<48x128xbf16> to vector<48x120xbf16>
    %438 = tpu.concatenate %436, %437 in 1 : vector<48x8xbf16>, vector<48x120xbf16> -> vector<48x128xbf16>
    %439 = vector.extract_strided_slice %3 {offsets = [1, 0], sizes = [1, 128], strides = [1, 1]} : vector<9x128xbf16> to vector<1x128xbf16>
    %440 = vector.broadcast %439 : vector<1x128xbf16> to vector<48x128xbf16>
    %441 = arith.mulf %438, %440 : vector<48x128xbf16>
    %cst_128 = arith.constant 0.000000e+00 : bf16
    %442 = vector.broadcast %cst_128 : bf16 to vector<48x7xbf16>
    %443 = vector.extract_strided_slice %429 {offsets = [0, 0], sizes = [48, 121], strides = [1, 1]} : vector<48x128xbf16> to vector<48x121xbf16>
    %444 = tpu.concatenate %442, %443 in 1 : vector<48x7xbf16>, vector<48x121xbf16> -> vector<48x128xbf16>
    %445 = vector.extract_strided_slice %3 {offsets = [2, 0], sizes = [1, 128], strides = [1, 1]} : vector<9x128xbf16> to vector<1x128xbf16>
    %446 = vector.broadcast %445 : vector<1x128xbf16> to vector<48x128xbf16>
    %447 = arith.mulf %444, %446 : vector<48x128xbf16>
    %cst_129 = arith.constant 0.000000e+00 : bf16
    %448 = vector.broadcast %cst_129 : bf16 to vector<48x1xbf16>
    %449 = vector.extract_strided_slice %429 {offsets = [0, 0], sizes = [48, 127], strides = [1, 1]} : vector<48x128xbf16> to vector<48x127xbf16>
    %450 = tpu.concatenate %448, %449 in 1 : vector<48x1xbf16>, vector<48x127xbf16> -> vector<48x128xbf16>
    %451 = vector.extract_strided_slice %3 {offsets = [3, 0], sizes = [1, 128], strides = [1, 1]} : vector<9x128xbf16> to vector<1x128xbf16>
    %452 = vector.broadcast %451 : vector<1x128xbf16> to vector<48x128xbf16>
    %453 = arith.mulf %450, %452 : vector<48x128xbf16>
    %454 = vector.extract_strided_slice %3 {offsets = [4, 0], sizes = [1, 128], strides = [1, 1]} : vector<9x128xbf16> to vector<1x128xbf16>
    %455 = vector.broadcast %454 : vector<1x128xbf16> to vector<48x128xbf16>
    %456 = arith.mulf %429, %455 : vector<48x128xbf16>
    %457 = vector.extract_strided_slice %429 {offsets = [0, 1], sizes = [48, 127], strides = [1, 1]} : vector<48x128xbf16> to vector<48x127xbf16>
    %cst_130 = arith.constant 0.000000e+00 : bf16
    %458 = vector.broadcast %cst_130 : bf16 to vector<48x1xbf16>
    %459 = tpu.concatenate %457, %458 in 1 : vector<48x127xbf16>, vector<48x1xbf16> -> vector<48x128xbf16>
    %460 = vector.extract_strided_slice %3 {offsets = [5, 0], sizes = [1, 128], strides = [1, 1]} : vector<9x128xbf16> to vector<1x128xbf16>
    %461 = vector.broadcast %460 : vector<1x128xbf16> to vector<48x128xbf16>
    %462 = arith.mulf %459, %461 : vector<48x128xbf16>
    %463 = vector.extract_strided_slice %429 {offsets = [0, 7], sizes = [48, 121], strides = [1, 1]} : vector<48x128xbf16> to vector<48x121xbf16>
    %cst_131 = arith.constant 0.000000e+00 : bf16
    %464 = vector.broadcast %cst_131 : bf16 to vector<48x7xbf16>
    %465 = tpu.concatenate %463, %464 in 1 : vector<48x121xbf16>, vector<48x7xbf16> -> vector<48x128xbf16>
    %466 = vector.extract_strided_slice %3 {offsets = [6, 0], sizes = [1, 128], strides = [1, 1]} : vector<9x128xbf16> to vector<1x128xbf16>
    %467 = vector.broadcast %466 : vector<1x128xbf16> to vector<48x128xbf16>
    %468 = arith.mulf %465, %467 : vector<48x128xbf16>
    %469 = vector.extract_strided_slice %429 {offsets = [0, 8], sizes = [48, 120], strides = [1, 1]} : vector<48x128xbf16> to vector<48x120xbf16>
    %cst_132 = arith.constant 0.000000e+00 : bf16
    %470 = vector.broadcast %cst_132 : bf16 to vector<48x8xbf16>
    %471 = tpu.concatenate %469, %470 in 1 : vector<48x120xbf16>, vector<48x8xbf16> -> vector<48x128xbf16>
    %472 = vector.extract_strided_slice %3 {offsets = [7, 0], sizes = [1, 128], strides = [1, 1]} : vector<9x128xbf16> to vector<1x128xbf16>
    %473 = vector.broadcast %472 : vector<1x128xbf16> to vector<48x128xbf16>
    %474 = arith.mulf %471, %473 : vector<48x128xbf16>
    %475 = vector.extract_strided_slice %429 {offsets = [0, 9], sizes = [48, 119], strides = [1, 1]} : vector<48x128xbf16> to vector<48x119xbf16>
    %cst_133 = arith.constant 0.000000e+00 : bf16
    %476 = vector.broadcast %cst_133 : bf16 to vector<48x9xbf16>
    %477 = tpu.concatenate %475, %476 in 1 : vector<48x119xbf16>, vector<48x9xbf16> -> vector<48x128xbf16>
    %478 = vector.extract_strided_slice %3 {offsets = [8, 0], sizes = [1, 128], strides = [1, 1]} : vector<9x128xbf16> to vector<1x128xbf16>
    %479 = vector.broadcast %478 : vector<1x128xbf16> to vector<48x128xbf16>
    %480 = arith.mulf %477, %479 : vector<48x128xbf16>
    %481 = tpu.concatenate %435, %441, %447, %453, %456, %462, %468, %474, %480 in 0 : vector<48x128xbf16>, vector<48x128xbf16>, vector<48x128xbf16>, vector<48x128xbf16>, vector<48x128xbf16>, vector<48x128xbf16>, vector<48x128xbf16>, vector<48x128xbf16>, vector<48x128xbf16> -> vector<432x128xbf16>
    %c192 = arith.constant 192 : index
    %c0_134 = arith.constant 0 : index
    %482 = vector.load %arg2[%c192, %c0_134] : memref<344x432xbf16, #tpu.memory_space<vmem>>, vector<12x432xbf16>
    %cst_135 = arith.constant dense<0.000000e+00> : vector<12x128xf32>
    %483 = tpu.matmul %482, %481, %cst_135 {dimension_numbers = #tpu.dot_dimension_numbers<[1], [0], [0], [1], [0, 0, 1, 1], [], []>} : vector<12x432xbf16>, vector<432x128xbf16>, vector<12x128xf32> -> vector<12x128xf32>
    %c896 = arith.constant 896 : index
    %c0_136 = arith.constant 0 : index
    %484 = vector.load %arg3[%c896, %c0_136] : memref<1104x1xf32, #tpu.memory_space<vmem>>, vector<12x1xf32>
    %485 = vector.broadcast %484 : vector<12x1xf32> to vector<12x128xf32>
    %486 = arith.addf %483, %485 : vector<12x128xf32>
    %487 = tpu.concatenate %235, %318, %402, %486 in 0 : vector<24x128xf32>, vector<12x128xf32>, vector<12x128xf32>, vector<12x128xf32> -> vector<60x128xf32>
    %c1 = arith.constant 1 : index
    %488 = memref.load %arg6[%c1] : memref<2xf32, #tpu.memory_space<smem>>
    %c208 = arith.constant 208 : index
    %c0_137 = arith.constant 0 : index
    %489 = vector.load %arg2[%c208, %c0_137] : memref<344x432xbf16, #tpu.memory_space<vmem>>, vector<60x60xbf16>
    %c272 = arith.constant 272 : index
    %c0_138 = arith.constant 0 : index
    %490 = vector.load %arg2[%c272, %c0_138] : memref<344x432xbf16, #tpu.memory_space<vmem>>, vector<1x60xbf16>
    %c280_139 = arith.constant 280 : index
    %c0_140 = arith.constant 0 : index
    %491 = vector.load %arg2[%c280_139, %c0_140] : memref<344x432xbf16, #tpu.memory_space<vmem>>, vector<60x60xbf16>
    %c1040 = arith.constant 1040 : index
    %c0_141 = arith.constant 0 : index
    %492 = vector.load %arg3[%c1040, %c0_141] : memref<1104x1xf32, #tpu.memory_space<vmem>>, vector<60x1xf32>
    %493 = arith.truncf %487 : vector<60x128xf32> to vector<60x128xbf16>
    %cst_142 = arith.constant 0.000000e+00 : f32
    %494 = vector.broadcast %cst_142 : f32 to vector<60x128xf32>
    %495 = vector.extract_strided_slice %4 {offsets = [0, 0], sizes = [1, 128], strides = [1, 1]} : vector<2x128xf32> to vector<1x128xf32>
    %496 = arith.truncf %495 : vector<1x128xf32> to vector<1x128xbf16>
    %497 = vector.broadcast %496 : vector<1x128xbf16> to vector<60x128xbf16>
    %498 = arith.mulf %493, %497 : vector<60x128xbf16>
    %cst_143 = arith.constant dense<0.000000e+00> : vector<128x60xf32>
    %499 = tpu.matmul %6, %498, %cst_143 {dimension_numbers = #tpu.dot_dimension_numbers<[1], [1], [0], [0], [0, 0, 1, 0], [], []>} : vector<128x128xbf16>, vector<60x128xbf16>, vector<128x60xf32> -> vector<128x60xf32>
    %500 = arith.truncf %499 : vector<128x60xf32> to vector<128x60xbf16>
    %cst_144 = arith.constant dense<0.000000e+00> : vector<60x128xf32>
    %501 = tpu.matmul %489, %498, %cst_144 {dimension_numbers = #tpu.dot_dimension_numbers<[1], [0], [0], [1], [0, 0, 1, 1], [], []>} : vector<60x60xbf16>, vector<60x128xbf16>, vector<60x128xf32> -> vector<60x128xf32>
    %502 = arith.truncf %501 : vector<60x128xf32> to vector<60x128xbf16>
    %cst_145 = arith.constant dense<0.000000e+00> : vector<128x128xf32>
    %503 = tpu.matmul %500, %502, %cst_145 {dimension_numbers = #tpu.dot_dimension_numbers<[1], [0], [0], [1], [0, 0, 1, 1], [], []>} : vector<128x60xbf16>, vector<60x128xbf16>, vector<128x128xf32> -> vector<128x128xf32>
    %cst_146 = arith.constant dense<0.000000e+00> : vector<1x128xf32>
    %504 = tpu.matmul %490, %498, %cst_146 {dimension_numbers = #tpu.dot_dimension_numbers<[1], [0], [0], [1], [0, 0, 1, 1], [], []>} : vector<1x60xbf16>, vector<60x128xbf16>, vector<1x128xf32> -> vector<1x128xf32>
    %505 = vector.broadcast %504 : vector<1x128xf32> to vector<128x128xf32>
    %506 = arith.addf %503, %505 : vector<128x128xf32>
    %cst_147 = arith.constant 0.000000e+00 : f32
    %507 = vector.broadcast %cst_147 : f32 to vector<1x128xf32>
    %508 = arith.cmpf ogt, %495, %507 : vector<1x128xf32>
    %cst_148 = arith.constant 0xFF800000 : f32
    %509 = vector.shape_cast %508 : vector<1x128xi1> to vector<1x128xi1>
    %510 = vector.broadcast %509 : vector<1x128xi1> to vector<128x128xi1>
    %511 = vector.broadcast %cst_148 : f32 to vector<128x128xf32>
    %512 = arith.select %510, %506, %511 : vector<128x128xi1>, vector<128x128xf32>
    %cst_149 = arith.constant dense<0xFF800000> : vector<128xf32>
    %513 = vector.multi_reduction <maximumf>, %512, %cst_149 [1] : vector<128x128xf32> to vector<128xf32>
    %514 = vector.shape_cast %513 : vector<128xf32> to vector<128x1xf32>
    %515 = vector.broadcast %514 : vector<128x1xf32> to vector<128x128xf32>
    %516 = arith.subf %512, %515 : vector<128x128xf32>
    %517 = math.exp %516 : vector<128x128xf32>
    %cst_150 = arith.constant dense<0.000000e+00> : vector<128xf32>
    %518 = vector.multi_reduction <add>, %517, %cst_150 [1] : vector<128x128xf32> to vector<128xf32>
    %519 = vector.shape_cast %518 : vector<128xf32> to vector<128x1xf32>
    %520 = tpu.reciprocal %519 {approx = true} : vector<128x1xf32> -> vector<128x1xf32>
    %521 = vector.broadcast %520 : vector<128x1xf32> to vector<128x128xf32>
    %522 = arith.mulf %517, %521 : vector<128x128xf32>
    %cst_151 = arith.constant dense<0.000000e+00> : vector<60x128xf32>
    %523 = tpu.matmul %491, %498, %cst_151 {dimension_numbers = #tpu.dot_dimension_numbers<[1], [0], [0], [1], [0, 0, 1, 1], [], []>} : vector<60x60xbf16>, vector<60x128xbf16>, vector<60x128xf32> -> vector<60x128xf32>
    %524 = vector.broadcast %492 : vector<60x1xf32> to vector<60x128xf32>
    %525 = arith.addf %523, %524 : vector<60x128xf32>
    %526 = arith.truncf %525 : vector<60x128xf32> to vector<60x128xbf16>
    %527 = arith.truncf %522 : vector<128x128xf32> to vector<128x128xbf16>
    %cst_152 = arith.constant dense<0.000000e+00> : vector<60x128xf32>
    %528 = tpu.matmul %526, %527, %cst_152 {dimension_numbers = #tpu.dot_dimension_numbers<[1], [1], [0], [0], [0, 0, 1, 0], [], []>} : vector<60x128xbf16>, vector<128x128xbf16>, vector<60x128xf32> -> vector<60x128xf32>
    %529 = vector.broadcast %495 : vector<1x128xf32> to vector<60x128xf32>
    %530 = arith.mulf %528, %529 : vector<60x128xf32>
    %531 = arith.addf %494, %530 : vector<60x128xf32>
    %532 = vector.extract_strided_slice %4 {offsets = [1, 0], sizes = [1, 128], strides = [1, 1]} : vector<2x128xf32> to vector<1x128xf32>
    %533 = arith.truncf %532 : vector<1x128xf32> to vector<1x128xbf16>
    %534 = vector.broadcast %533 : vector<1x128xbf16> to vector<60x128xbf16>
    %535 = arith.mulf %493, %534 : vector<60x128xbf16>
    %cst_153 = arith.constant dense<0.000000e+00> : vector<128x60xf32>
    %536 = tpu.matmul %6, %535, %cst_153 {dimension_numbers = #tpu.dot_dimension_numbers<[1], [1], [0], [0], [0, 0, 1, 0], [], []>} : vector<128x128xbf16>, vector<60x128xbf16>, vector<128x60xf32> -> vector<128x60xf32>
    %537 = arith.truncf %536 : vector<128x60xf32> to vector<128x60xbf16>
    %cst_154 = arith.constant dense<0.000000e+00> : vector<60x128xf32>
    %538 = tpu.matmul %489, %535, %cst_154 {dimension_numbers = #tpu.dot_dimension_numbers<[1], [0], [0], [1], [0, 0, 1, 1], [], []>} : vector<60x60xbf16>, vector<60x128xbf16>, vector<60x128xf32> -> vector<60x128xf32>
    %539 = arith.truncf %538 : vector<60x128xf32> to vector<60x128xbf16>
    %cst_155 = arith.constant dense<0.000000e+00> : vector<128x128xf32>
    %540 = tpu.matmul %537, %539, %cst_155 {dimension_numbers = #tpu.dot_dimension_numbers<[1], [0], [0], [1], [0, 0, 1, 1], [], []>} : vector<128x60xbf16>, vector<60x128xbf16>, vector<128x128xf32> -> vector<128x128xf32>
    %cst_156 = arith.constant dense<0.000000e+00> : vector<1x128xf32>
    %541 = tpu.matmul %490, %535, %cst_156 {dimension_numbers = #tpu.dot_dimension_numbers<[1], [0], [0], [1], [0, 0, 1, 1], [], []>} : vector<1x60xbf16>, vector<60x128xbf16>, vector<1x128xf32> -> vector<1x128xf32>
    %542 = vector.broadcast %541 : vector<1x128xf32> to vector<128x128xf32>
    %543 = arith.addf %540, %542 : vector<128x128xf32>
    %cst_157 = arith.constant 0.000000e+00 : f32
    %544 = vector.broadcast %cst_157 : f32 to vector<1x128xf32>
    %545 = arith.cmpf ogt, %532, %544 : vector<1x128xf32>
    %cst_158 = arith.constant 0xFF800000 : f32
    %546 = vector.shape_cast %545 : vector<1x128xi1> to vector<1x128xi1>
    %547 = vector.broadcast %546 : vector<1x128xi1> to vector<128x128xi1>
    %548 = vector.broadcast %cst_158 : f32 to vector<128x128xf32>
    %549 = arith.select %547, %543, %548 : vector<128x128xi1>, vector<128x128xf32>
    %cst_159 = arith.constant dense<0xFF800000> : vector<128xf32>
    %550 = vector.multi_reduction <maximumf>, %549, %cst_159 [1] : vector<128x128xf32> to vector<128xf32>
    %551 = vector.shape_cast %550 : vector<128xf32> to vector<128x1xf32>
    %552 = vector.broadcast %551 : vector<128x1xf32> to vector<128x128xf32>
    %553 = arith.subf %549, %552 : vector<128x128xf32>
    %554 = math.exp %553 : vector<128x128xf32>
    %cst_160 = arith.constant dense<0.000000e+00> : vector<128xf32>
    %555 = vector.multi_reduction <add>, %554, %cst_160 [1] : vector<128x128xf32> to vector<128xf32>
    %556 = vector.shape_cast %555 : vector<128xf32> to vector<128x1xf32>
    %557 = tpu.reciprocal %556 {approx = true} : vector<128x1xf32> -> vector<128x1xf32>
    %558 = vector.broadcast %557 : vector<128x1xf32> to vector<128x128xf32>
    %559 = arith.mulf %554, %558 : vector<128x128xf32>
    %cst_161 = arith.constant dense<0.000000e+00> : vector<60x128xf32>
    %560 = tpu.matmul %491, %535, %cst_161 {dimension_numbers = #tpu.dot_dimension_numbers<[1], [0], [0], [1], [0, 0, 1, 1], [], []>} : vector<60x60xbf16>, vector<60x128xbf16>, vector<60x128xf32> -> vector<60x128xf32>
    %561 = vector.broadcast %492 : vector<60x1xf32> to vector<60x128xf32>
    %562 = arith.addf %560, %561 : vector<60x128xf32>
    %563 = arith.truncf %562 : vector<60x128xf32> to vector<60x128xbf16>
    %564 = arith.truncf %559 : vector<128x128xf32> to vector<128x128xbf16>
    %cst_162 = arith.constant dense<0.000000e+00> : vector<60x128xf32>
    %565 = tpu.matmul %563, %564, %cst_162 {dimension_numbers = #tpu.dot_dimension_numbers<[1], [1], [0], [0], [0, 0, 1, 0], [], []>} : vector<60x128xbf16>, vector<128x128xbf16>, vector<60x128xf32> -> vector<60x128xf32>
    %566 = vector.broadcast %532 : vector<1x128xf32> to vector<60x128xf32>
    %567 = arith.mulf %565, %566 : vector<60x128xf32>
    %568 = arith.addf %531, %567 : vector<60x128xf32>
    %569 = vector.broadcast %488 : f32 to vector<60x128xf32>
    %570 = arith.mulf %569, %568 : vector<60x128xf32>
    %571 = arith.addf %570, %487 : vector<60x128xf32>
    %c488 = arith.constant 488 : index
    %c0_163 = arith.constant 0 : index
    %572 = vector.load %arg3[%c488, %c0_163] : memref<1104x1xf32, #tpu.memory_space<vmem>>, vector<60x1xf32>
    %573 = vector.broadcast %572 : vector<60x1xf32> to vector<60x128xf32>
    %574 = arith.mulf %230, %573 : vector<60x128xf32>
    %c552 = arith.constant 552 : index
    %c0_164 = arith.constant 0 : index
    %575 = vector.load %arg3[%c552, %c0_164] : memref<1104x1xf32, #tpu.memory_space<vmem>>, vector<60x1xf32>
    %576 = vector.broadcast %575 : vector<60x1xf32> to vector<60x128xf32>
    %577 = arith.addf %574, %576 : vector<60x128xf32>
    %cst_165 = arith.constant 2.000000e+01 : f32
    %578 = vector.broadcast %cst_165 : f32 to vector<60x128xf32>
    %579 = arith.minimumf %577, %578 : vector<60x128xf32>
    %580 = math.exp %579 : vector<60x128xf32>
    %cst_166 = arith.constant 1.000000e+00 : f32
    %581 = vector.broadcast %cst_166 : f32 to vector<60x128xf32>
    %582 = arith.addf %581, %580 : vector<60x128xf32>
    %cst_167 = arith.constant 1.000000e+00 : f32
    %583 = vector.broadcast %cst_167 : f32 to vector<60x128xf32>
    %584 = arith.addf %583, %580 : vector<60x128xf32>
    %585 = arith.mulf %582, %584 : vector<60x128xf32>
    %cst_168 = arith.constant 1.000000e+00 : f32
    %586 = vector.broadcast %cst_168 : f32 to vector<60x128xf32>
    %587 = arith.subf %585, %586 : vector<60x128xf32>
    %cst_169 = arith.constant 1.000000e+00 : f32
    %588 = vector.broadcast %cst_169 : f32 to vector<60x128xf32>
    %589 = arith.addf %585, %588 : vector<60x128xf32>
    %590 = tpu.reciprocal %589 {approx = true} : vector<60x128xf32> -> vector<60x128xf32>
    %591 = arith.mulf %587, %590 : vector<60x128xf32>
    %cst_170 = arith.constant 2.000000e+01 : f32
    %592 = vector.broadcast %cst_170 : f32 to vector<60x128xf32>
    %593 = arith.cmpf ogt, %577, %592 : vector<60x128xf32>
    %cst_171 = arith.constant 1.000000e+00 : f32
    %594 = vector.broadcast %cst_171 : f32 to vector<60x128xf32>
    %595 = arith.select %593, %594, %591 : vector<60x128xi1>, vector<60x128xf32>
    %596 = arith.mulf %577, %595 : vector<60x128xf32>
    %c912 = arith.constant 912 : index
    %c0_172 = arith.constant 0 : index
    %597 = vector.load %arg3[%c912, %c0_172] : memref<1104x1xf32, #tpu.memory_space<vmem>>, vector<60x1xf32>
    %598 = vector.broadcast %597 : vector<60x1xf32> to vector<60x128xf32>
    %599 = arith.mulf %571, %598 : vector<60x128xf32>
    %c976 = arith.constant 976 : index
    %c0_173 = arith.constant 0 : index
    %600 = vector.load %arg3[%c976, %c0_173] : memref<1104x1xf32, #tpu.memory_space<vmem>>, vector<60x1xf32>
    %601 = vector.broadcast %600 : vector<60x1xf32> to vector<60x128xf32>
    %602 = arith.addf %599, %601 : vector<60x128xf32>
    %cst_174 = arith.constant 2.000000e+01 : f32
    %603 = vector.broadcast %cst_174 : f32 to vector<60x128xf32>
    %604 = arith.minimumf %602, %603 : vector<60x128xf32>
    %605 = math.exp %604 : vector<60x128xf32>
    %cst_175 = arith.constant 1.000000e+00 : f32
    %606 = vector.broadcast %cst_175 : f32 to vector<60x128xf32>
    %607 = arith.addf %606, %605 : vector<60x128xf32>
    %cst_176 = arith.constant 1.000000e+00 : f32
    %608 = vector.broadcast %cst_176 : f32 to vector<60x128xf32>
    %609 = arith.addf %608, %605 : vector<60x128xf32>
    %610 = arith.mulf %607, %609 : vector<60x128xf32>
    %cst_177 = arith.constant 1.000000e+00 : f32
    %611 = vector.broadcast %cst_177 : f32 to vector<60x128xf32>
    %612 = arith.subf %610, %611 : vector<60x128xf32>
    %cst_178 = arith.constant 1.000000e+00 : f32
    %613 = vector.broadcast %cst_178 : f32 to vector<60x128xf32>
    %614 = arith.addf %610, %613 : vector<60x128xf32>
    %615 = tpu.reciprocal %614 {approx = true} : vector<60x128xf32> -> vector<60x128xf32>
    %616 = arith.mulf %612, %615 : vector<60x128xf32>
    %cst_179 = arith.constant 2.000000e+01 : f32
    %617 = vector.broadcast %cst_179 : f32 to vector<60x128xf32>
    %618 = arith.cmpf ogt, %602, %617 : vector<60x128xf32>
    %cst_180 = arith.constant 1.000000e+00 : f32
    %619 = vector.broadcast %cst_180 : f32 to vector<60x128xf32>
    %620 = arith.select %618, %619, %616 : vector<60x128xi1>, vector<60x128xf32>
    %621 = arith.mulf %602, %620 : vector<60x128xf32>
    %cst_181 = arith.constant dense<0.000000e+00> : vector<2x60xf32>
    %622 = tpu.matmul %4, %596, %cst_181 {dimension_numbers = #tpu.dot_dimension_numbers<[1], [1], [0], [0], [0, 0, 1, 0], [], []>} : vector<2x128xf32>, vector<60x128xf32>, vector<2x60xf32> -> vector<2x60xf32>
    %cst_182 = arith.constant 1.562500e-02 : f32
    %623 = vector.broadcast %cst_182 : f32 to vector<2x60xf32>
    %624 = arith.mulf %622, %623 : vector<2x60xf32>
    %cst_183 = arith.constant dense<0.000000e+00> : vector<2x60xf32>
    %625 = tpu.matmul %4, %621, %cst_183 {dimension_numbers = #tpu.dot_dimension_numbers<[1], [1], [0], [0], [0, 0, 1, 0], [], []>} : vector<2x128xf32>, vector<60x128xf32>, vector<2x60xf32> -> vector<2x60xf32>
    %cst_184 = arith.constant 1.562500e-02 : f32
    %626 = vector.broadcast %cst_184 : f32 to vector<2x60xf32>
    %627 = arith.mulf %625, %626 : vector<2x60xf32>
    %c0_185 = arith.constant 0 : index
    %c0_186 = arith.constant 0 : index
    %628 = vector.load %arg4[%c0_185, %c0_186] : memref<121x9xf32, #tpu.memory_space<vmem>>, vector<60x9xf32>
    %c60 = arith.constant 60 : index
    %c0_187 = arith.constant 0 : index
    %629 = vector.load %arg4[%c60, %c0_187] : memref<121x9xf32, #tpu.memory_space<vmem>>, vector<60x9xf32>
    %c120 = arith.constant 120 : index
    %c0_188 = arith.constant 0 : index
    %630 = vector.load %arg4[%c120, %c0_188] : memref<121x9xf32, #tpu.memory_space<vmem>>, vector<1x9xf32>
    %cst_189 = arith.constant dense<0.000000e+00> : vector<2x9xf32>
    %631 = tpu.matmul %624, %628, %cst_189 {dimension_numbers = #tpu.dot_dimension_numbers<[1], [0], [0], [1], [0, 0, 1, 1], [], []>} : vector<2x60xf32>, vector<60x9xf32>, vector<2x9xf32> -> vector<2x9xf32>
    %cst_190 = arith.constant dense<0.000000e+00> : vector<2x9xf32>
    %632 = tpu.matmul %627, %629, %cst_190 {dimension_numbers = #tpu.dot_dimension_numbers<[1], [0], [0], [1], [0, 0, 1, 1], [], []>} : vector<2x60xf32>, vector<60x9xf32>, vector<2x9xf32> -> vector<2x9xf32>
    %633 = arith.addf %631, %632 : vector<2x9xf32>
    %634 = vector.broadcast %630 : vector<1x9xf32> to vector<2x9xf32>
    %635 = arith.addf %633, %634 : vector<2x9xf32>
    %c0_191 = arith.constant 0 : index
    %c0_192 = arith.constant 0 : index
    %636 = vector.load %arg7[%c0_191, %c0_192] : memref<2x9xf32, #tpu.memory_space<vmem>>, vector<2x9xf32>
    tpu.vector_store %arg7[%c0_191, %c0_192], %635 {strides = array<i32>} : memref<2x9xf32, #tpu.memory_space<vmem>>, vector<2x9xf32>,
    return
  }
  func.func @transform_0(%arg0: i32) -> (i32, i32) {
    %c0_i32 = arith.constant 0 : i32
    %c0_i32_0 = arith.constant 0 : i32
    %c0_i32_1 = arith.constant 0 : i32
    return %c0_i32, %c0_i32_0 : i32, i32
  }
  func.func @transform_1(%arg0: i32) -> (i32, i32) {
    %c0_i32 = arith.constant 0 : i32
    %c0_i32_0 = arith.constant 0 : i32
    %c0_i32_1 = arith.constant 0 : i32
    return %c0_i32, %c0_i32_0 : i32, i32
  }
  func.func @transform_2(%arg0: i32) -> (i32, i32) {
    %c0_i32 = arith.constant 0 : i32
    %c0_i32_0 = arith.constant 0 : i32
    %c0_i32_1 = arith.constant 0 : i32
    return %c0_i32, %c0_i32_0 : i32, i32
  }
  func.func @transform_3(%arg0: i32) -> (i32, i32) {
    %c0_i32 = arith.constant 0 : i32
    %c0_i32_0 = arith.constant 0 : i32
    %c0_i32_1 = arith.constant 0 : i32
    return %c0_i32, %c0_i32_0 : i32, i32
  }
  func.func @transform_4(%arg0: i32) -> (i32, i32) {
    %c0_i32 = arith.constant 0 : i32
    %c0_i32_0 = arith.constant 0 : i32
    %c0_i32_1 = arith.constant 0 : i32
    return %c0_i32, %c0_i32_0 : i32, i32
  }
  func.func @transform_5(%arg0: i32) -> i32 {
    %c0_i32 = arith.constant 0 : i32
    %c0_i32_0 = arith.constant 0 : i32
    return %c0_i32 : i32
  }
  func.func @transform_6(%arg0: i32) -> (i32, i32) {
    %c0_i32 = arith.constant 0 : i32
    %c0_i32_0 = arith.constant 0 : i32
    %c0_i32_1 = arith.constant 0 : i32
    return %c0_i32, %c0_i32_0 : i32, i32
  }
}

</mosaic_0001>

<bundles_post_ra>
// kernel: forward.1
= control target key start
LH: loop header
LB: loop body
LE: loop exit
PB: predicated region body
PF: predicated region fallthrough
CT: control target
= control target key end

     0   :  { %11 = vsyncpa [#allocation3], 0  ;;  %s12861_s0 = inlined_call_operand.vmem [shape: f32[16,128], index: 0, kind: input, shape index: {}]   ;;  %s12862_s1 = inlined_call_operand.hbm [shape: bf16[344,432], index: 1, kind: input, shape index: {}]   ;;  %s12863_s2 = inlined_call_operand.hbm [shape: f32[1104,1], index: 2, kind: input, shape index: {}]   ;;  %s12864_s3 = inlined_call_operand.hbm [shape: f32[121,9], index: 3, kind: input, shape index: {}]   ;;  %s12865_s4 = inlined_call_operand.vmem [shape: f32[139,128], index: 4, kind: input, shape index: {}]   ;;  %s12866_s5 = inlined_call_operand.vmem [shape: f32[2], index: 5, kind: input, shape index: {}]   ;;  %s12867_s6 = inlined_call_operand.hbm [shape: f32[2,9], index: 6, kind: output, shape index: {}]  }
   0x1   :  { %12 = vsyncpa [#allocation7], 0 }
   0x2   :  { %13 = vsyncpa [#allocation5], 0  ;;  %s34_s23 = sshll.u32 %s12863_s2, 4  ;;  %s35_s23 = int_to_ptr.hbm [resolvable:$true] %s34_s23 }
   0x3   :  { %14 = vsyncpa [#allocation4], 0  ;;  %s8799_s24 = smov [#allocation6]   ;;  %s21_s28 = sshll.u32 %s12862_s1, 4  ;;  %s22_s28 = int_to_ptr.hbm [resolvable:$true] %s21_s28 }
   0x4   :  { %s36_s25 = sshll.u32 %s8799_s24, 4  ;;  %s8800_s29 = smov 128   ;;  %s37_s25 = int_to_ptr.vmem [resolvable:$true] %s36_s25 }
   0x5   :  { %s8801_s30 = smov 8   ;;  %s8802_s7 = smov [#allocation2]  }
   0x6   :  { %42 = dma.hbm_to_vmem [thread:$0]  %s35_s23, 17664, %s37_s25, [#allocation7], %s8800_s29, %s8800_s29, %s8801_s30  }
   0x7   :  { %s23_s8 = sshll.u32 %s8802_s7, 4  ;;  %s8803_s9 = smov 256   ;;  %s24_s8 = int_to_ptr.vmem [resolvable:$true] %s23_s8 }
   0x8   :  { %s8804_s10 = smov 16   ;;  %s47_s12 = sshll.u32 %s12864_s3, 4  ;;  %s48_s12 = int_to_ptr.hbm [resolvable:$true] %s47_s12 }
   0x9   :  { %29 = dma.hbm_to_vmem [thread:$0]  %s22_s28, 11008, %s24_s8, [#allocation3], %s8803_s9, %s8803_s9, %s8804_s10  }
   0xa   :  { %s8805_s13 = smov [#allocation8]   ;;  %s63_s16 = sshll.u32 %s12866_s5, 4  ;;  %s64_s16 = int_to_ptr.vmem [resolvable:$true] %s63_s16 }
   0xb   :  { %s49_s14 = sshll.u32 %s8805_s13, 4  ;;  %s8806_s17 = smov [#allocation9]   ;;  %s50_s14 = int_to_ptr.vmem [resolvable:$true] %s49_s14 }
   0xc   :  { %55 = dma.hbm_to_vmem [thread:$0]  %s48_s12, 2048, %s50_s14, [#allocation7], %s8800_s29, %s8800_s29, %s8801_s30  }
   0xd   :  { %66 = dma.vmem_to_smem %s64_s16, 16, %s8806_s17, [#allocation5]  }
   0xe   :  { %8791 = dma.done.wait [#allocation3], 11008  }
   0xf   :  { %8792 = vsyncadd [#allocation3], 4294956288 }
  0x10   :  { %8793 = dma.done.wait [#allocation7], 19712  }
  0x11   :  { %8794 = vsyncadd [#allocation7], 4294947584 }
  0x12   :  { %8795 = dma.done.wait [#allocation5], 16  }
  0x13   :  { %8796 = vsyncadd [#allocation5], 4294967280 }
  0x14   :  { %83 = sfence }
  0x15   :  { %v272_v0 = vld [vmem:[#allocation6 + $0x20] sm:$0xff]  ;;  %v131_v1 = vld [vmem:[#allocation6 + $0x10] sm:$0xff]  ;;  %vm162_vm0 = vcmask 1042432   ;;  %vm163_vm1 = vcmask 1043456   ;;  %v12868_v3 = vmov 0   ;;  %v86_v5 = vld [vmem:[%s12861_s0 + $0x8] sm:$0xff] }
  0x16   :  { %v129_v2 = vld [vmem:[#allocation6] sm:$0xff]  ;;  %7927 = vset.pattern.permute.xlu2 %v12868_v3  ;;  %7926 = vset.pattern.permute.xlu1 %v12868_v3  ;;  %v85_v4 = vld [vmem:[%s12861_s0] sm:$0xff]  ;;  %v88_v7 = vpack.c.bf16 %v86_v5, %v86_v5  ;;  %v8808_v8 = vmov 65535   ;;  %vm155_vm2 = vcmask 56320   ;;  %v273_v19 = vld [vmem:[#allocation6 + $0x28] sm:$0xff]  ;;  %s8809_s23 = smov 119  }
  0x17   :  { %7925 = vset.pattern.permute.xlu0 %v12868_v3  ;;  %281 = vperm.xlu2 %7927, %v272_v0   ;;  %v87_v6 = vpack.c.bf16 %v85_v4, %v85_v4  ;;  %v164_v9 = vsel %vm162_vm0, 4294967295, %v8808_v8  ;;  %v7480_v10 = vld [vmem:[#allocation2] sm:$0xf]  ;;  %v7869_v11 = vld [vmem:[#allocation2 + $0xc] sm:$0xf0]  ;;  %v271_v20 = vld [vmem:[#allocation6 + $0x18] sm:$0xff] }
  0x18   :  { %144 = vperm.xlu1 %7926, %v131_v1   ;;  %134 = vperm.xlu0 %7925, %v129_v2   ;;  %v165_v12 = vsel %vm163_vm1, %v164_v9, 0  ;;  %v121_v14 = vunpack.c.l.b16 %v88_v7  ;;  %v7481_v17 = vor.u32 %v7869_v11, %v7480_v10  ;;  %v130_v21 = vld [vmem:[#allocation6 + $0x8] sm:$0xff]  ;;  %v128_v28 = vld [vmem:[#allocation2 + $0x20] sm:$0xf]  ;;  %v306_v29 = vld [vmem:[#allocation6 + $0x40] sm:$0xff]  ;;  %s8810_s24 = smov 1  }
  0x19   :  { %v120_v13 = vunpack.c.l.b16 %v87_v6  ;;  %v167_v15 = vand.u32 %v165_v12, %v87_v6  ;;  %v179_v16 = vand.u32 %v165_v12, %v88_v7  ;;  %v305_v30 = vld [vmem:[#allocation6 + $0x38] sm:$0xff]  ;;  %v304_v31 = vld [vmem:[#allocation6 + $0x30] sm:$0xff]  ;;  %v152_v32 = vunpack.c.l.b16 %v128_v28  ;;  %v791_v34 = vld [vmem:[#allocation6 + $0x68] sm:$0xff]  ;;  %s8811_s25 = smov 127   ;;  %s8812_s26 = smov 120  }
  0x1a   :  { %v619_v35 = vld [vmem:[#allocation6 + $0x50] sm:$0xf]  ;;  %v618_v36 = vld [vmem:[#allocation6 + $0x48] sm:$0xff]  ;;  %v793_v38 = vld [vmem:[#allocation6 + $0x78] sm:$0xf]  ;;  %s8813_s27 = smov 7  }
  0x1b   :  { %v8876_v18 = vpack.c.b16 %v121_v14, %v120_v13  ;;  %188 = vmatpush.bf16.msra.mxu0 %v167_v15  ;;  %v154_v33 = vpack.c.b16 %v152_v32, %v152_v32  ;;  %v846_v37 = vld [vmem:[#allocation6 + $0x90] sm:$0xff]  ;;  %v789_v40 = vld [vmem:[#allocation6 + $0x58] sm:$0xff]  ;;  %v848_v41 = vld [vmem:[#allocation6 + $0xa0] sm:$0xf]  ;;  %s8814_s28 = smov 121   ;;  %s8815_s29 = smov 9  }
  0x1c   :  { %v792_v39 = vld [vmem:[#allocation6 + $0x70] sm:$0xff]  ;;  %v847_v42 = vld [vmem:[#allocation6 + $0x98] sm:$0xff]  ;;  %v845_v43 = vld [vmem:[#allocation6 + $0x88] sm:$0xff]  ;;  %s3531_s12 = sld [smem:[#allocation9]]  ;;  %s8816_s1 = smov [#allocation10]  }
  0x1d   :  { %13005 = vst [vmem:[#allocation15_spill] sm:$0xff] %v8876_v18  ;;  %v123_v22 = vrot.slane %v8876_v18, 1  ;;  %v124_v23 = vrot.slane %v8876_v18, 2  ;;  %v125_v24 = vrot.slane %v8876_v18, 3  ;;  %v844_v44 = vld [vmem:[#allocation6 + $0x80] sm:$0xff]  ;;  %v1665_v46 = vld [vmem:[#allocation6 + $0xb8] sm:$0xff]  ;;  %vm9177_vm14 = vmneg %vm163_vm1 }
  0x1e   :  { %7482 = vmatmul.msk.bf16.vlgmr.msra.gmra.mxu0 %vm155_vm2, %v7481_v17  ;;  %v790_v45 = vld [vmem:[#allocation6 + $0x60] sm:$0xff]  ;;  %v1454_v47 = vld [vmem:[#allocation6 + $0xb0] sm:$0xf]  ;;  %v1453_v48 = vld [vmem:[#allocation6 + $0xa8] sm:$0xff]  ;;  %s7464_s15 = sshll.u32 %s8816_s1, 4  ;;  %s7466_s3 = sshll.u32 %s12867_s6, 4  ;;  %s7465_s15 = int_to_ptr.vmem [resolvable:$true] %s7464_s15  ;;  %s7467_s3 = int_to_ptr.hbm [resolvable:$true] %s7466_s3 }
  0x1f   :  { %260 = vmatpush.bf16.msrb.mxu0 %v179_v16  ;;  %286 = vperm.xlu2 %7927, %v273_v19   ;;  %v170_v25 = vand.u32 %v165_v12, %v123_v22  ;;  %v173_v26 = vand.u32 %v165_v12, %v124_v23  ;;  %v176_v27 = vand.u32 %v165_v12, %v125_v24  ;;  %v1732_v49 = vld [vmem:[#allocation6 + $0xf0] sm:$0xff]  ;;  %v1731_v50 = vld [vmem:[#allocation6 + $0xe8] sm:$0xff]  ;;  %v1666_v51 = vld [vmem:[#allocation6 + $0xc0] sm:$0xff] }
  0x20   :  { %276 = vperm.xlu1 %7926, %v271_v20   ;;  %139 = vperm.xlu0 %7925, %v130_v21   ;;  %v1735_v52 = vld [vmem:[#allocation6 + $0x108] sm:$0xff]  ;;  %v1670_v53 = vld [vmem:[#allocation6 + $0xe0] sm:$0xff]  ;;  %v1669_v54 = vld [vmem:[#allocation6 + $0xd8] sm:$0xff] }
  0x21   :  { %206 = vmatpush.bf16.msra.mxu1 %v170_v25  ;;  %224 = vmatpush.bf16.msra.mxu2 %v173_v26  ;;  %v1668_v55 = vld [vmem:[#allocation6 + $0xd0] sm:$0xff]  ;;  %v1667_v56 = vld [vmem:[#allocation6 + $0xc8] sm:$0xff]  ;;  %v2257_v58 = vld [vmem:[#allocation6 + $0x118] sm:$0xff] }
  0x22   :  { %242 = vmatpush.bf16.msra.mxu3 %v176_v27  ;;  %v1736_v57 = vld [vmem:[#allocation6 + $0x110] sm:$0xff]  ;;  %v1734_v59 = vld [vmem:[#allocation6 + $0x100] sm:$0xff]  ;;  %v1733_v60 = vld [vmem:[#allocation6 + $0xf8] sm:$0xff] }
  0x23   :  { %v2505_v61 = vld [vmem:[#allocation6 + $0x160] sm:$0xf]  ;;  %v2504_v62 = vld [vmem:[#allocation6 + $0x158] sm:$0xff]  ;;  %v2498_v2 = vld [vmem:[#allocation6 + $0x128] sm:$0xff] }
  0x24   :  { %7484 = vmatmul.msk.bf16.vlgmr.msra.gmra.mxu1 %vm155_vm2, %v7481_v17  ;;  %7486 = vmatmul.msk.bf16.vlgmr.msra.gmra.mxu2 %vm155_vm2, %v7481_v17  ;;  %v2258_v63 = vld [vmem:[#allocation6 + $0x120] sm:$0xf]  ;;  %v2592_v1 = vld [vmem:[#allocation6 + $0x198] sm:$0xff]  ;;  %v2586_v4 = vld [vmem:[#allocation6 + $0x168] sm:$0xff] }
  0x25   :  { %7488 = vmatmul.msk.bf16.vlgmr.msra.gmra.mxu3 %vm155_vm2, %v7481_v17  ;;  %v2593_v0 = vld [vmem:[#allocation6 + $0x1a0] sm:$0xf]  ;;  %v2503_v5 = vld [vmem:[#allocation6 + $0x150] sm:$0xff]  ;;  %v2502_v6 = vld [vmem:[#allocation6 + $0x148] sm:$0xff] }
  0x26   :  { %v2500_v7 = vld [vmem:[#allocation6 + $0x138] sm:$0xff]  ;;  %v2591_v8 = vld [vmem:[#allocation6 + $0x190] sm:$0xff]  ;;  %v2590_v9 = vld [vmem:[#allocation6 + $0x188] sm:$0xff] }
  0x27   :  { %319 = vperm.xlu2 %7927, %v306_v29   ;;  %v2589_v10 = vld [vmem:[#allocation6 + $0x180] sm:$0xff]  ;;  %v2588_v11 = vld [vmem:[#allocation6 + $0x178] sm:$0xff]  ;;  %v2587_v15 = vld [vmem:[#allocation6 + $0x170] sm:$0xff] }
  0x28   :  { %314 = vperm.xlu1 %7926, %v305_v30   ;;  %309 = vperm.xlu0 %7925, %v304_v31   ;;  %v2501_v12 = vld [vmem:[#allocation6 + $0x140] sm:$0xff]  ;;  %v3326_v14 = vld [vmem:[#allocation6 + $0x1d8] sm:$0xff]  ;;  %v2499_v16 = vld [vmem:[#allocation6 + $0x130] sm:$0xff] }
  0x29   :  { %v3325_v20 = vld [vmem:[#allocation6 + $0x1d0] sm:$0xff]  ;;  %v3324_v21 = vld [vmem:[#allocation6 + $0x1c8] sm:$0xff]  ;;  %v3327_v22 = vld [vmem:[#allocation6 + $0x1e0] sm:$0xf] }
  0x2a   :  { %v3320_v27 = vld [vmem:[#allocation6 + $0x1a8] sm:$0xff]  ;;  %v3323_v28 = vld [vmem:[#allocation6 + $0x1c0] sm:$0xff]  ;;  %v3322_v29 = vld [vmem:[#allocation6 + $0x1b8] sm:$0xff] }
  0x2e   :  { %7483 = vmatmul.msk.bf16.gmra.mxu0 %vm155_vm2, %v154_v33 }
  0x2f   :  { %806 = vperm.xlu2 %7927, %v791_v34   ;;  %v4000_v34 = vld [vmem:[#allocation6 + $0x270] sm:$0xff] }
  0x30   :  { %627 = vperm.xlu1 %7926, %v619_v35   ;;  %622 = vperm.xlu0 %7925, %v618_v36   ;;  %v3999_v35 = vld [vmem:[#allocation6 + $0x268] sm:$0xff]  ;;  %v3321_v36 = vld [vmem:[#allocation6 + $0x1b0] sm:$0xff] }
  0x34   :  { %7485 = vmatmul.msk.bf16.gmra.mxu1 %vm155_vm2, %v154_v33  ;;  %7487 = vmatmul.msk.bf16.gmra.mxu2 %vm155_vm2, %v154_v33 }
  0x35   :  { %7489 = vmatmul.msk.bf16.gmra.mxu3 %vm155_vm2, %v154_v33 }
  0x37   :  { %861 = vperm.xlu2 %7927, %v846_v37  }
  0x38   :  { %816 = vperm.xlu1 %7926, %v793_v38   ;;  %811 = vperm.xlu0 %7925, %v792_v39  }
  0x3e   :  { %7490 = vmatmul.msk.bf16.vlgmr.msrb.gmra.mxu0 %vm155_vm2, %v7481_v17 }
  0x3f   :  { %796 = vperm.xlu2 %7927, %v789_v40  }
  0x40   :  { %871 = vperm.xlu1 %7926, %v848_v41   ;;  %866 = vperm.xlu0 %7925, %v847_v42   ;;  %v4001_v42 = vld [vmem:[#allocation6 + $0x278] sm:$0xff] }
  0x47   :  { %856 = vperm.xlu2 %7927, %v845_v43   ;;  %v4052_v43 = vld [vmem:[#allocation6 + $0x288] sm:$0xff] }
  0x48   :  { %851 = vperm.xlu1 %7926, %v844_v44   ;;  %801 = vperm.xlu0 %7925, %v790_v45   ;;  %v4051_v44 = vld [vmem:[#allocation6 + $0x280] sm:$0xff] }
  0x4e   :  { %7491 = vmatmul.msk.bf16.gmra.mxu0 %vm155_vm2, %v154_v33 }
  0x4f   :  { %1673 = vperm.xlu2 %7927, %v1665_v46   ;;  %v4053_v46 = vld [vmem:[#allocation6 + $0x290] sm:$0xff] }
  0x50   :  { %1462 = vperm.xlu1 %7926, %v1454_v47   ;;  %1457 = vperm.xlu0 %7925, %v1453_v48   ;;  %v4073_v47 = vld [vmem:[#allocation6 + $0x2a0] sm:$0xff]  ;;  %v4072_v48 = vld [vmem:[#allocation6 + $0x298] sm:$0xff] }
  0x57   :  { %1744 = vperm.xlu2 %7927, %v1732_v49  }
  0x58   :  { %1739 = vperm.xlu1 %7926, %v1731_v50   ;;  %1678 = vperm.xlu0 %7925, %v1666_v51  }
  0x5f   :  { %1759 = vperm.xlu2 %7927, %v1735_v52  }
  0x60   :  { %1698 = vperm.xlu1 %7926, %v1670_v53   ;;  %1693 = vperm.xlu0 %7925, %v1669_v54  }
  0x67   :  { %1688 = vperm.xlu2 %7927, %v1668_v55  }
  0x68   :  { %1683 = vperm.xlu1 %7926, %v1667_v56   ;;  %1764 = vperm.xlu0 %7925, %v1736_v57  }
  0x6f   :  { %2261 = vperm.xlu2 %7927, %v2257_v58  }
  0x70   :  { %1754 = vperm.xlu1 %7926, %v1734_v59   ;;  %1749 = vperm.xlu0 %7925, %v1733_v60  }
  0x71   :  { %v8924_v57 = vpop.permute.xlu2 %281 }
  0x77   :  { %2543 = vperm.xlu2 %7927, %v2505_v61  }
  0x78   :  { %2538 = vperm.xlu1 %7926, %v2504_v62   ;;  %2266 = vperm.xlu0 %7925, %v2258_v63  }
  0x7f   :  { %2631 = vperm.xlu2 %7927, %v2593_v0  }
  0x80   :  { %2626 = vperm.xlu1 %7926, %v2592_v1   ;;  %2508 = vperm.xlu0 %7925, %v2498_v2  }
  0x87   :  { %2596 = vperm.xlu2 %7927, %v2586_v4  }
  0x88   :  { %2533 = vperm.xlu1 %7926, %v2503_v5   ;;  %2528 = vperm.xlu0 %7925, %v2502_v6  }
  0x8a   :  { %v8903_v45 = vpop.permute.xlu1 %144  ;;  %v8905_v49 = vpop.permute.xlu0 %134 }
  0x8f   :  { %2518 = vperm.xlu2 %7927, %v2500_v7  }
  0x90   :  { %2621 = vperm.xlu1 %7926, %v2591_v8   ;;  %2616 = vperm.xlu0 %7925, %v2590_v9  }
  0x92   :  { %v8909_v51 = vpop.permute.xlu1 %276  ;;  %v8911_v52 = vpop.permute.xlu0 %139 }
  0x97   :  { %2611 = vperm.xlu2 %7927, %v2589_v10  }
  0x98   :  { %2606 = vperm.xlu1 %7926, %v2588_v11   ;;  %2523 = vperm.xlu0 %7925, %v2501_v12  }
  0x9a   :  { %v8938_v63 = vpop.permute.xlu1 %314  ;;  %v8945_v2 = vpop.permute.xlu0 %309 }
  0x9b   :  { %v8891_v13 = vpop.f32.mrf.mxu0 }
  0x9f   :  { %3360 = vperm.xlu2 %7927, %v3326_v14   ;;  %v8971_v14 = vadd.f32 %v8891_v13, %v8905_v49 }
  0xa0   :  { %2601 = vperm.xlu1 %7926, %v2587_v15   ;;  %2513 = vperm.xlu0 %7925, %v2499_v16  }
  0xa1   :  { %v208_v17 = vpop.f32.mrf.mxu1  ;;  %13013 = vst [vmem:[#allocation23_spill] sm:$0xff] %v8971_v14  ;;  %v289_v13 = vmul.f32 %v8909_v51, %v8971_v14 }
  0xa2   :  { %v8934_v61 = vadd.f32 %v208_v17, %v8905_v49 }
  0xa3   :  { %v8893_v19 = vpop.f32.mrf.mxu0 }
  0xa4   :  { %13010 = vst [vmem:[#allocation20_spill] sm:$0xff] %v8934_v61  ;;  %v290_v5 = vmul.f32 %v8909_v51, %v8934_v61  ;;  %v8957_v7 = vadd.f32 %v8893_v19, %v8911_v52 }
  0xa6   :  { %13011 = vst [vmem:[#allocation21_spill] sm:$0xff] %v8957_v7  ;;  %v8974_v15 = vadd.f32 %v8945_v2, %v290_v5  ;;  %v294_v17 = vmul.f32 %v8924_v57, %v8957_v7 }
  0xa7   :  { %v226_v23 = vpop.f32.mrf.mxu2  ;;  %3355 = vperm.xlu2 %7927, %v3325_v20   ;;  %v8980_v20 = vpop.permute.xlu2 %286 }
  0xa8   :  { %v244_v24 = vpop.f32.mrf.mxu3  ;;  %3350 = vperm.xlu1 %7926, %v3324_v21   ;;  %3365 = vperm.xlu0 %7925, %v3327_v22   ;;  %v8920_v55 = vadd.f32 %v226_v23, %v8905_v49  ;;  %vm473_vm7 = vcmp.gt.f32.partialorder %v8974_v15, 20.0 }
  0xa9   :  { %v210_v25 = vpop.f32.mrf.mxu1  ;;  %v8927_v58 = vadd.f32 %v244_v24, %v8905_v49  ;;  %v338_v24 = vmin.f32 %v8974_v15, 20.0 }
  0xaa   :  { %13008 = vst [vmem:[#allocation18_spill] sm:$0xff] %v8920_v55  ;;  %v291_v62 = vmul.f32 %v8909_v51, %v8920_v55  ;;  %v8966_v11 = vadd.f32 %v210_v25, %v8911_v52 }
  0xab   :  { %v8895_v26 = vpop.f32.mrf.mxu0  ;;  %13009 = vst [vmem:[#allocation19_spill] sm:$0xff] %v8927_v58  ;;  %v292_v0 = vmul.f32 %v8909_v51, %v8927_v58 }
  0xac   :  { %v8953_v6 = vadd.f32 %v8945_v2, %v291_v62  ;;  %13012 = vst [vmem:[#allocation22_spill] sm:$0xff] %v8966_v11  ;;  %v295_v22 = vmul.f32 %v8924_v57, %v8966_v11 }
  0xad   :  { %v8960_v8 = vadd.f32 %v8945_v2, %v292_v0 }
  0xae   :  { %v339_v16 = vmin.f32 %v8953_v6, 20.0  ;;  %vm474_vm3 = vcmp.gt.f32.partialorder %v8953_v6, 20.0 }
  0xaf   :  { %v228_v30 = vpop.f32.mrf.mxu2  ;;  %3330 = vperm.xlu2 %7927, %v3320_v27   ;;  %v340_v19 = vmin.f32 %v8960_v8, 20.0  ;;  %v8988_v27 = vadd.f32 %v8938_v63, %v294_v17  ;;  %vm475_vm6 = vcmp.gt.f32.partialorder %v8960_v8, 20.0 }
  0xb0   :  { %v246_v31 = vpop.f32.mrf.mxu3  ;;  %3345 = vperm.xlu1 %7926, %v3323_v28   ;;  %3340 = vperm.xlu0 %7925, %v3322_v29   ;;  %v8914_v53 = vadd.f32 %v228_v30, %v8911_v52  ;;  %v356_v25 = vmul.f32 1.442695, %v339_v16  ;;  %v8992_v29 = vadd.f32 %v8895_v26, %v8903_v45  ;;  %v4074_v30 = vld [vmem:[#allocation6 + $0x2a8] sm:$0xff] }
  0xb1   :  { %v8897_v32 = vpop.f32.mrf.mxu1  ;;  %v8917_v54 = vadd.f32 %v246_v31, %v8911_v52  ;;  %v358_v28 = vmul.f32 1.442695, %v340_v19  ;;  %v342_v26 = vmin.f32 %v8988_v27, 20.0  ;;  %vm477_vm11 = vcmp.gt.f32.partialorder %v8988_v27, 20.0 }
  0xb2   :  { %13006 = vst [vmem:[#allocation16_spill] sm:$0xff] %v8914_v53  ;;  %v296_v59 = vmul.f32 %v8924_v57, %v8914_v53  ;;  %v8996_v31 = vadd.f32 %v8897_v32, %v8903_v45 }
  0xb3   :  { %v197_v33 = vpop.f32.mrf.mxu0  ;;  %13007 = vst [vmem:[#allocation17_spill] sm:$0xff] %v8917_v54  ;;  %v297_v60 = vmul.f32 %v8924_v57, %v8917_v54 }
  0xb4   :  { %v8943_v1 = vadd.f32 %v8938_v63, %v296_v59  ;;  %13014 = vst [vmem:[#allocation24_spill] sm:$0xff] %v8992_v29  ;;  %v300_v32 = vmul.f32 %v8980_v20, %v8996_v31 }
  0xb5   :  { %v8948_v4 = vadd.f32 %v8938_v63, %v297_v60  ;;  %13015 = vst [vmem:[#allocation25_spill] sm:$0xff] %v8996_v31 }
  0xb6   :  { %v344_v9 = vmin.f32 %v8943_v1, 20.0  ;;  %vm479_vm4 = vcmp.gt.f32.partialorder %v8943_v1, 20.0 }
  0xb7   :  { %v8899_v37 = vpop.f32.mrf.mxu2  ;;  %4009 = vperm.xlu2 %7927, %v4000_v34   ;;  %v345_v12 = vmin.f32 %v8948_v4, 20.0  ;;  %v8999_v34 = vadd.f32 %v8938_v63, %v295_v22  ;;  %vm480_vm5 = vcmp.gt.f32.partialorder %v8948_v4, 20.0 }
  0xb8   :  { %v8901_v38 = vpop.f32.mrf.mxu3  ;;  %4004 = vperm.xlu1 %7926, %v3999_v35   ;;  %3335 = vperm.xlu0 %7925, %v3321_v36   ;;  %v366_v21 = vmul.f32 1.442695, %v344_v9  ;;  %v9002_v35 = vadd.f32 %v8945_v2, %v289_v13  ;;  %v354_v36 = vmul.f32 1.442695, %v338_v24 }
  0xb9   :  { %v215_v39 = vpop.f32.mrf.mxu1  ;;  %v368_v23 = vmul.f32 1.442695, %v345_v12  ;;  %vm478_vm8 = vcmp.gt.f32.partialorder %v8999_v34, 20.0 }
  0xba   :  { %7929 = vpow2.f32 %v366_v21  ;;  %v299_v39 = vmul.f32 %v8980_v20, %v8992_v29  ;;  %vm472_vm12 = vcmp.gt.f32.partialorder %v9002_v35, 20.0 }
  0xbb   :  { %v8907_v50 = vpop.f32.mrf.mxu0  ;;  %7931 = vpow2.f32 %v368_v23 }
  0xbc   :  { %7933 = vpow2.f32 %v356_v25  ;;  %v9023_v22 = vadd.f32 %v8907_v50, %v8905_v49 }
  0xbd   :  { %7935 = vpow2.f32 %v358_v28 }
  0xbe   :  { %7937 = vpow2.f32 %v354_v36  ;;  %13016 = vst [vmem:[#allocation26_spill] sm:$0xff] %v9023_v22  ;;  %v293_v36 = vmul.f32 %v8909_v51, %v9023_v22  ;;  %v9038_v51 = vadd.f32 %v8901_v38, %v8903_v45 }
  0xbf   :  { %v233_v40 = vpop.f32.mrf.mxu2  ;;  %4014 = vperm.xlu2 %7927, %v4001_v42   ;;  %v9010_v42 = vpop.permute.xlu2 %319 }
  0xc0   :  { %v251_v41 = vpop.f32.mrf.mxu3  ;;  %4061 = vperm.xlu1 %7926, %v4052_v43   ;;  %4056 = vperm.xlu0 %7925, %v4051_v44   ;;  %v343_v40 = vmin.f32 %v8999_v34, 20.0  ;;  %v337_v43 = vmin.f32 %v9002_v35, 20.0  ;;  %v9017_v59 = vadd.f32 %v9010_v42, %v300_v32  ;;  %13018 = vst [vmem:[#allocation28_spill] sm:$0xff] %v9038_v51 }
  0xc1   :  { %v7930_v41 = vpop.eup %7929 }
  0xc2   :  { %v7932_v44 = vpop.eup %7931  ;;  %v364_v62 = vmul.f32 1.442695, %v343_v40  ;;  %v389_v0 = vadd.f32 1.0, %v7930_v41  ;;  %v352_v5 = vmul.f32 1.442695, %v337_v43  ;;  %v348_v21 = vmin.f32 %v9017_v59, 20.0 }
  0xc3   :  { %v8922_v56 = vpop.f32.mrf.mxu0  ;;  %v390_v9 = vadd.f32 1.0, %v7932_v44  ;;  %v9029_v40 = vadd.f32 %v8899_v37, %v8903_v45  ;;  %vm483_vm10 = vcmp.gt.f32.partialorder %v9017_v59, 20.0 }
  0xc4   :  { %v404_v23 = vmul.f32 %v389_v0, %v389_v0  ;;  %v9044_v0 = vadd.f32 %v8922_v56, %v8911_v52 }
  0xc5   :  { %v405_v13 = vmul.f32 %v390_v9, %v390_v9  ;;  %13017 = vst [vmem:[#allocation27_spill] sm:$0xff] %v9029_v40  ;;  %v301_v37 = vmul.f32 %v8980_v20, %v9029_v40 }
  0xc6   :  { %13019 = vst [vmem:[#allocation29_spill] sm:$0xff] %v9044_v0  ;;  %v298_v56 = vmul.f32 %v8924_v57, %v9044_v0 }
  0xc7   :  { %4066 = vperm.xlu2 %7927, %v4053_v46   ;;  %v362_v46 = vmul.f32 1.442695, %v342_v26  ;;  %v435_v32 = vadd.f32 1.0, %v405_v13 }
  0xc8   :  { %4082 = vperm.xlu1 %7926, %v4073_v47   ;;  %4077 = vperm.xlu0 %7925, %v4072_v48   ;;  %v9014_v47 = vadd.f32 %v9010_v42, %v299_v39  ;;  %v7934_v48 = vpop.eup %7933  ;;  %v434_v39 = vadd.f32 1.0, %v404_v23  ;;  %v9070_v3 = vadd.f32 %v8938_v63, %v298_v56 }
  0xc9   :  { %v7936_v60 = vpop.eup %7935  ;;  %7939 = vpow2.f32 %v362_v46  ;;  %v384_v12 = vadd.f32 1.0, %v7934_v48  ;;  %v9034_v48 = vadd.f32 %v8945_v2, %v293_v36 }
  0xca   :  { %v347_v16 = vmin.f32 %v9014_v47, 20.0  ;;  %v7938_v17 = vpop.eup %7937  ;;  %v385_v19 = vadd.f32 1.0, %v7936_v60  ;;  %7941 = vpow2.f32 %v364_v62  ;;  %v346_v56 = vmin.f32 %v9070_v3, 20.0 }
  0xcb   :  { %v8963_v10 = vpop.f32.mrf.mxu0  ;;  %7943 = vpow2.f32 %v352_v5  ;;  %v383_v24 = vadd.f32 1.0, %v7938_v17  ;;  %v399_v25 = vmul.f32 %v384_v12, %v384_v12  ;;  %v341_v9 = vmin.f32 %v9034_v48, 20.0  ;;  %v9052_v17 = vpop.permute.xlu1 %627 }
  0xcc   :  { %v372_v28 = vmul.f32 1.442695, %v347_v16  ;;  %v302_v12 = vmul.f32 %v8980_v20, %v9038_v51  ;;  %vm482_vm9 = vcmp.gt.f32.partialorder %v9014_v47, 20.0  ;;  %vm476_vm13 = vcmp.gt.f32.partialorder %v9034_v48, 20.0 }
  0xcd   :  { %v9031_v50 = vmul.f32 %v383_v24, %v383_v24  ;;  %v429_v41 = vadd.f32 1.0, %v399_v25  ;;  %v360_v36 = vmul.f32 1.442695, %v341_v9 }
  0xce   :  { %7945 = vpow2.f32 %v372_v28 }
  0xcf   :  { %v7940_v26 = vpop.eup %7939  ;;  %v428_v5 = vadd.f32 1.0, %v9031_v50 }
  0xd0   :  { %4087 = vperm.xlu0 %7925, %v4074_v30   ;;  %v400_v30 = vmul.f32 %v385_v19, %v385_v19  ;;  %v7942_v49 = vpop.eup %7941  ;;  %v387_v44 = vadd.f32 1.0, %v7940_v26 }
  0xd1   :  { %v7944_v43 = vpop.eup %7943  ;;  %v388_v60 = vadd.f32 1.0, %v7942_v49  ;;  %v7500_v49 = vadd.f32 -1.0, %v405_v13 }
  0xd2   :  { %v430_v46 = vadd.f32 1.0, %v400_v30  ;;  %v382_v62 = vadd.f32 1.0, %v7944_v43  ;;  %v9047_v2 = vmul.f32 %v387_v44, %v387_v44  ;;  %v7495_v44 = vadd.f32 -1.0, %v400_v30 }
  0xd3   :  { %v269_v33 = vpop.f32.mrf.mxu0  ;;  %v9054_v19 = vmul.f32 %v388_v60, %v388_v60 }
  0xd4   :  { %v374_v33 = vmul.f32 1.442695, %v348_v21  ;;  %v7946_v38 = vpop.eup %7945  ;;  %v9057_v21 = vadd.f32 %v9010_v42, %v301_v37  ;;  %v9061_v28 = vmul.f32 %v382_v62, %v382_v62 }
  0xd5   :  { %v392_v60 = vadd.f32 1.0, %v7946_v38  ;;  %v9076_v38 = vpop.permute.xlu2 %806 }
  0xd6   :  { %7947 = vpow2.f32 %v374_v33  ;;  %v432_v33 = vadd.f32 1.0, %v9047_v2  ;;  %v349_v57 = vmin.f32 %v9057_v21, 20.0  ;;  %vm484_vm15 = vcmp.gt.f32.partialorder %v9057_v21, 20.0 }
  0xd7   :  { %7949 = vrcp.f32 %v434_v39  ;;  %v7494_v39 = vadd.f32 -1.0, %v399_v25  ;;  %v427_v25 = vadd.f32 1.0, %v9061_v28 }
  0xd8   :  { %7951 = vrcp.f32 %v435_v32  ;;  %v7499_v32 = vadd.f32 -1.0, %v404_v23  ;;  %v376_v63 = vmul.f32 1.442695, %v349_v57 }
  0xd9   :  { %7953 = vrcp.f32 %v429_v41  ;;  %v9065_v41 = vadd.f32 %v9010_v42, %v302_v12  ;;  %v407_v12 = vmul.f32 %v392_v60, %v392_v60 }
  0xda   :  { %7955 = vrcp.f32 %v430_v46  ;;  %v433_v46 = vadd.f32 1.0, %v9054_v19 }
  0xdb   :  { %7957 = vrcp.f32 %v428_v5  ;;  %v350_v30 = vmin.f32 %v9065_v41, 20.0  ;;  %vm485_vm0 = vcmp.gt.f32.partialorder %v9065_v41, 20.0 }
  0xdc   :  { %v7948_v16 = vpop.eup %7947  ;;  %7959 = vpow2.f32 %v360_v36  ;;  %v9083_v36 = vpop.permute.xlu1 %816 }
  0xdd   :  { %v7950_v52 = vpop.eup %7949  ;;  %v393_v5 = vadd.f32 1.0, %v7948_v16  ;;  %7961 = vrcp.f32 %v432_v33  ;;  %13020 = vst [vmem:[#allocation30_spill] sm:$0xff] %v9083_v36 }
  0xde   :  { %v7952_v24 = vpop.eup %7951  ;;  %v464_v37 = vmul.f32 %v7950_v52, %v7499_v32  ;;  %7963 = vrcp.f32 %v433_v46  ;;  %v378_v32 = vmul.f32 1.442695, %v350_v30  ;;  %v7492_v30 = vadd.f32 -1.0, %v9061_v28 }
  0xdf   :  { %v7954_v26 = vpop.eup %7953  ;;  %v465_v62 = vmul.f32 %v7952_v24, %v7500_v49  ;;  %v408_v24 = vmul.f32 %v393_v5, %v393_v5  ;;  %7965 = vrcp.f32 %v427_v25  ;;  %v9087_v49 = vadd.f32 %v8963_v10, %v8903_v45 }
  0xe0   :  { %v7956_v43 = vpop.eup %7955  ;;  %v459_v23 = vmul.f32 %v7954_v26, %v7494_v39  ;;  %v494_v16 = vsel %vm479_vm4, 1.0, %v464_v37  ;;  %v437_v26 = vadd.f32 1.0, %v407_v12  ;;  %7967 = vpow2.f32 %v376_v63  ;;  %v9091_v37 = vpop.permute.xlu0 %622 }
  0xe1   :  { %v460_v13 = vmul.f32 %v7956_v43, %v7495_v44  ;;  %v7958_v9 = vpop.eup %7957  ;;  %v495_v52 = vsel %vm480_vm5, 1.0, %v465_v62  ;;  %v438_v43 = vadd.f32 1.0, %v408_v24  ;;  %v509_v46 = vmul.f32 %v494_v16, %v8943_v1 }
  0xe2   :  { %v489_v33 = vsel %vm474_vm3, 1.0, %v459_v23  ;;  %v7960_v44 = vpop.eup %7959  ;;  %v510_v60 = vmul.f32 %v495_v52, %v8948_v4  ;;  %v370_v62 = vmul.f32 1.442695, %v346_v56  ;;  %7969 = vrcp.f32 %v437_v26  ;;  %v9104_v52 = vpop.permute.xlu2 %861 }
  0xe3   :  { %v490_v39 = vsel %vm475_vm6, 1.0, %v460_v13  ;;  %v7962_v57 = vpop.eup %7961  ;;  %v504_v25 = vmul.f32 %v489_v33, %v8953_v6  ;;  %7971 = vrcp.f32 %v438_v43  ;;  %v386_v45 = vadd.f32 1.0, %v7960_v44 }
  0xe4   :  { %v7964_v5 = vpop.eup %7963  ;;  %v505_v23 = vmul.f32 %v490_v39, %v8960_v8  ;;  %7973 = vpow2.f32 %v378_v32  ;;  %v303_v10 = vmul.f32 %v8980_v20, %v9087_v49  ;;  %v7498_v1 = vadd.f32 -1.0, %v9054_v19  ;;  %v9114_v32 = vpop.permute.xlu1 %871 }
  0xe5   :  { %v7966_v4 = vpop.eup %7965  ;;  %v9098_v13 = vpack.c.bf16 %v510_v60, %v509_v46  ;;  %v7493_v63 = vadd.f32 -1.0, %v9031_v50  ;;  %v7497_v16 = vadd.f32 -1.0, %v9047_v2  ;;  %7975 = vpow2.f32 %v370_v62  ;;  %13021 = vst [vmem:[#allocation31_spill] sm:$0xff] %v9114_v32 }
  0xe6   :  { %v463_v6 = vmul.f32 %v7964_v5, %v7498_v1  ;;  %v7968_v8 = vpop.eup %7967  ;;  %v7502_v56 = vadd.f32 -1.0, %v407_v12  ;;  %v9106_v20 = vpack.c.bf16 %v505_v23, %v504_v25  ;;  %v9108_v39 = vmul.f32 %v386_v45, %v386_v45 }
  0xe7   :  { %v458_v19 = vmul.f32 %v7958_v9, %v7493_v63  ;;  %v462_v33 = vmul.f32 %v7962_v57, %v7497_v16  ;;  %v9111_v28 = vadd.f32 %v9010_v42, %v303_v10  ;;  %v7503_v50 = vadd.f32 -1.0, %v408_v24 }
  0xe8   :  { %v7970_v26 = vpop.eup %7969  ;;  %v542_v44 = vunpack.c.l.b16 %v9098_v13  ;;  %v457_v12 = vmul.f32 %v7966_v4, %v7492_v30  ;;  %v493_v46 = vsel %vm478_vm8, 1.0, %v463_v6  ;;  %v537_v24 = vunpack.c.l.b16 %v9106_v20  ;;  %v9124_v25 = vpop.permute.xlu0 %811 }
  0xe9   :  { %v7972_v2 = vpop.eup %7971  ;;  %v467_v43 = vmul.f32 %v7970_v26, %v7502_v56  ;;  %v488_v57 = vsel %vm473_vm7, 1.0, %v458_v19  ;;  %v492_v62 = vsel %vm477_vm11, 1.0, %v462_v33  ;;  %v351_v23 = vmin.f32 %v9111_v28, 20.0 }
  0xea   :  { %v7974_v60 = vpop.eup %7973  ;;  %v468_v9 = vmul.f32 %v7972_v2, %v7503_v50  ;;  %v508_v10 = vmul.f32 %v493_v46, %v8999_v34  ;;  %v9130_v30 = vpack.c.b16 %v542_v44, %v537_v24  ;;  %v487_v63 = vsel %vm472_vm12, 1.0, %v457_v12  ;;  %v9136_v34 = vpop.permute.xlu2 %796 }
  0xeb   :  { %v497_v42 = vsel %vm482_vm9, 1.0, %v467_v43  ;;  %v7976_v5 = vpop.eup %7975  ;;  %v503_v16 = vmul.f32 %v488_v57, %v8974_v15  ;;  %v507_v6 = vmul.f32 %v492_v62, %v8988_v27  ;;  %v431_v56 = vadd.f32 1.0, %v9108_v39 }
  0xec   :  { %v498_v45 = vsel %vm483_vm10, 1.0, %v468_v9  ;;  %v512_v1 = vmul.f32 %v497_v42, %v9014_v47  ;;  %v391_v19 = vadd.f32 1.0, %v7976_v5  ;;  %v380_v26 = vmul.f32 1.442695, %v351_v23  ;;  %v9139_v44 = vpop.permute.xlu1 %851 }
  0xed   :  { %v513_v4 = vmul.f32 %v498_v45, %v9017_v59  ;;  %v502_v50 = vmul.f32 %v487_v63, %v9002_v35  ;;  %v520_v2 = vpack.c.bf16 %v508_v10, %v507_v6  ;;  %v12871_v59 = vrot.slane %v9130_v30, 4 }
  0xee   :  { %7977 = vrcp.f32 %v431_v56  ;;  %v406_v15 = vmul.f32 %v391_v19, %v391_v19  ;;  %v394_v46 = vadd.f32 1.0, %v7968_v8  ;;  %v395_v9 = vadd.f32 1.0, %v7974_v60 }
  0xef   :  { %v523_v33 = vpack.c.bf16 %v513_v4, %v512_v1  ;;  %v517_v43 = vpack.c.bf16 %v503_v16, %v502_v50  ;;  %7979 = vpow2.f32 %v380_v26  ;;  %v541_v27 = vunpack.c.h.b16 %v520_v2 }
  0xf0   :  { %v9149_v42 = vpop.permute.xlu0 %866  ;;  %v409_v57 = vmul.f32 %v394_v46, %v394_v46  ;;  %v410_v62 = vmul.f32 %v395_v9, %v395_v9  ;;  %v540_v23 = vunpack.c.l.b16 %v520_v2  ;;  %v436_v45 = vadd.f32 1.0, %v406_v15 }
  0xf1   :  { %v546_v47 = vunpack.c.h.b16 %v523_v33  ;;  %13022 = vst [vmem:[#allocation32_spill] sm:$0xff] %v9149_v42  ;;  %v536_v24 = vunpack.c.h.b16 %v517_v43  ;;  %v535_v5 = vunpack.c.l.b16 %v517_v43  ;;  %v545_v4 = vunpack.c.l.b16 %v523_v33 }
  0xf2   :  { %v439_v8 = vadd.f32 1.0, %v409_v57  ;;  %v440_v1 = vadd.f32 1.0, %v410_v62  ;;  %v9157_v6 = vpop.permute.xlu2 %856  ;;  %v7496_v56 = vadd.f32 -1.0, %v9108_v39  ;;  %v7504_v43 = vadd.f32 -1.0, %v409_v57 }
  0xf3   :  { %v9141_v12 = vpack.c.b16 %v546_v47, %v546_v47  ;;  %v9152_v10 = vpack.c.b16 %v541_v27, %v536_v24  ;;  %v9154_v63 = vpack.c.b16 %v540_v23, %v535_v5  ;;  %v9160_v19 = vpack.c.b16 %v545_v4, %v545_v4 }
  0xf4   :  { %v7978_v60 = vpop.eup %7977  ;;  %7981 = vrcp.f32 %v439_v8  ;;  %v9162_v50 = vpop.permute.xlu1 %1462  ;;  %v7505_v9 = vadd.f32 -1.0, %v410_v62  ;;  %v543_v62 = vunpack.c.h.b16 %v9098_v13  ;;  %v7501_v4 = vadd.f32 -1.0, %v406_v15 }
  0xf5   :  { %v9147_v35 = vsel %vm163_vm1, %v9141_v12, %v12871_v59  ;;  %v7980_v16 = vpop.eup %7979  ;;  %7983 = vrcp.f32 %v440_v1  ;;  %v461_v26 = vmul.f32 %v7978_v60, %v7496_v56  ;;  %13023 = vst [vmem:[#allocation33_spill] sm:$0xff] %v9162_v50  ;;  %v9165_v33 = vrot.slane %v9154_v63, 4  ;;  %v7511_v59 = vld [vmem:[#allocation2 + $0x40] sm:$0x30] }
  0xf6   :  { %649 = vmatpush.bf16.msrb.mxu1 %v9147_v35  ;;  %7985 = vrcp.f32 %v436_v45  ;;  %v396_v2 = vadd.f32 1.0, %v7980_v16  ;;  %v572_v47 = vrot.slane %v9160_v19, 4  ;;  %vm481_vm3 = vcmp.gt.f32.partialorder %v9070_v3, 20.0 }
  0xf7   :  { %v491_v5 = vsel %vm476_vm13, 1.0, %v461_v26  ;;  %vm486_vm4 = vcmp.gt.f32.partialorder %v9111_v28, 20.0  ;;  %v13031_v42 = vrot.slane %v9130_v30, 4  ;;  %vm639_vm5 = vcmask 326656  }
  0xf8   :  { %v9170_v27 = vsel %vm163_vm1, %v9165_v33, %v572_v47  ;;  %v9172_v39 = vpop.permute.xlu0 %801  ;;  %v411_v23 = vmul.f32 %v396_v2, %v396_v2  ;;  %v506_v16 = vmul.f32 %v491_v5, %v9034_v48  ;;  %v13028_v5 = vmov 0  }
  0xfa   :  { %650 = vmatpush.bf16.msrb.mxu1 %v9152_v10  ;;  %v7982_v46 = vpop.eup %7981  ;;  %v9189_v2 = vpop.permute.xlu2 %1673  ;;  %v441_v47 = vadd.f32 1.0, %v411_v23 }
  0xfb   :  { %v7984_v24 = vpop.eup %7983  ;;  %v469_v45 = vmul.f32 %v7982_v46, %v7504_v43  ;;  %13026 = vst [vmem:[#allocation34_spill] sm:$0xff] %v9189_v2  ;;  %v538_v46 = vunpack.c.h.b16 %v9106_v20 }
  0xfc   :  { %v7986_v57 = vpop.eup %7985  ;;  %v470_v60 = vmul.f32 %v7984_v24, %v7505_v9  ;;  %v9194_v13 = vpop.permute.xlu1 %1739  ;;  %v1701_v24 = vmul.f32 %v9189_v2, %v8971_v14  ;;  %7987 = vrcp.f32 %v441_v47 }
  0xfd   :  { %v499_v1 = vsel %vm484_vm15, 1.0, %v469_v45  ;;  %v466_v9 = vmul.f32 %v7986_v57, %v7501_v4  ;;  %13027 = vst [vmem:[#allocation35_spill] sm:$0xff] %v9194_v13  ;;  %v9196_v15 = vpack.c.b16 %v543_v62, %v538_v46  ;;  %v9210_v4 = vrot.slane %v13028_v5, 4 }
  0xfe   :  { %651 = vmatpush.bf16.msrb.mxu1 %v9170_v27  ;;  %v500_v56 = vsel %vm485_vm0, 1.0, %v470_v60  ;;  %v514_v26 = vmul.f32 %v499_v1, %v9057_v21  ;;  %v519_v60 = vpack.c.bf16 %v506_v16, %v506_v16  ;;  %v9207_v62 = vadd.f32 %v9194_v13, %v1701_v24 }
  0xff   :  { %v515_v43 = vmul.f32 %v500_v56, %v9065_v41  ;;  %v496_v21 = vsel %vm481_vm3, 1.0, %v466_v9  ;;  %v1702_v41 = vmul.f32 %v9189_v2, %v8934_v61 }
 0x100   :  { %v511_v45 = vmul.f32 %v496_v21, %v9070_v3  ;;  %v9204_v1 = vpop.permute.xlu0 %1457  ;;  %v539_v47 = vunpack.c.l.b16 %v519_v60  ;;  %vm2067_vm6 = vcmp.gt.f32.partialorder %v9207_v62, 20.0 }
 0x101   :  { %v524_v48 = vpack.c.bf16 %v515_v43, %v514_v26  ;;  %13029 = vst [vmem:[#allocation36_spill] sm:$0xff] %v9204_v1  ;;  %v9213_v26 = vadd.f32 %v9194_v13, %v1702_v41  ;;  %v12870_v43 = vrot.slane %v9196_v15, 4 }
 0x102   :  { %7516 = vmatpush.bf16.msk.msrb.mxu1 %vm9177_vm14, %v9165_v33  ;;  %v522_v56 = vpack.c.bf16 %v511_v45, %v511_v45  ;;  %v7988_v24 = vpop.eup %7987  ;;  %v1797_v45 = vmin.f32 %v9207_v62, 20.0 }
 0x103   :  { %v548_v20 = vunpack.c.h.b16 %v524_v48  ;;  %v547_v57 = vunpack.c.l.b16 %v524_v48  ;;  %v1798_v41 = vmin.f32 %v9213_v26, 20.0  ;;  %vm2068_vm7 = vcmp.gt.f32.partialorder %v9213_v26, 20.0 }
 0x104   :  { %v544_v46 = vunpack.c.l.b16 %v522_v56  ;;  %v7871_v56 = vld [vmem:[#allocation2 + $0x3c] sm:$0x30] }
 0x105   :  { %v9215_v3 = vpack.c.b16 %v548_v20, %v548_v20  ;;  %v557_v16 = vpack.c.b16 %v547_v57, %v547_v57  ;;  %v7506_v20 = vadd.f32 -1.0, %v411_v23  ;;  %v7509_v57 = vld [vmem:[#allocation2 + $0x30] sm:$0xf]  ;;  %v569_v23 = vrot.slane %v9152_v10, 4 }
 0x106   :  { %653 = vmatpush.bf16.msrb.mxu1 %v13028_v5  ;;  %v9227_v21 = vpack.c.b16 %v544_v46, %v539_v47  ;;  %v7870_v46 = vld [vmem:[#allocation2 + $0x34] sm:$0xf]  ;;  %v1829_v50 = vmul.f32 1.442695, %v1798_v41 }
 0x107   :  { %v643_v9 = vsel %vm163_vm1, %v9215_v3, 0  ;;  %v9224_v48 = vsel %vm163_vm1, %v557_v16, %v12870_v43  ;;  %v576_v43 = vrot.slane %v557_v16, 4  ;;  %v471_v18 = vmul.f32 %v7988_v24, %v7506_v20 }
 0x108   :  { %668 = vmatpush.bf16.msrb.mxu2 %v643_v9  ;;  %677 = vmatpush.bf16.msrb.mxu3 %v9224_v48  ;;  %v583_v60 = vrot.slane %v9227_v21, 4  ;;  %v574_v9 = vrot.slane %v9141_v12, 4  ;;  %v9245_v16 = vor.u32 %v7871_v56, %v7509_v57  ;;  %v1827_v12 = vmul.f32 1.442695, %v1797_v45  ;;  %v9247_v1 = vpop.permute.xlu0 %1678 }
 0x109   :  { %13030 = vst [vmem:[#allocation37_spill] sm:$0xff] %v9247_v1  ;;  %v501_v32 = vsel %vm486_vm4, 1.0, %v471_v18  ;;  %v9253_v36 = vsel %vm163_vm1, %v13031_v42, %v576_v43  ;;  %v9258_v20 = vor.u32 %v7870_v46, %v7511_v59  ;;  %v1706_v18 = vmul.f32 %v9247_v1, %v8957_v7  ;;  %v9276_v43 = vpop.permute.xlu2 %1744 }
 0x10a   :  { %654 = vmatpush.bf16.msrb.mxu1 %v9210_v4  ;;  %v9240_v47 = vsel %vm163_vm1, %v9215_v3, %v583_v60  ;;  %v9256_v24 = vsel %vm163_vm1, %v569_v23, %v574_v9  ;;  %v516_v57 = vmul.f32 %v501_v32, %v9111_v28  ;;  %7989 = vpow2.f32 %v1827_v12  ;;  %13032 = vst [vmem:[#allocation38_spill] sm:$0xff] %v9276_v43 }
 0x10b   :  { %705 = vmatpush.bf16.msra.mxu0 %v9240_v47  ;;  %7991 = vpow2.f32 %v1829_v50  ;;  %v1707_v28 = vmul.f32 %v9247_v1, %v8966_v11  ;;  %v9272_v32 = vsel %vm163_vm1, %v9160_v19, %v569_v23  ;;  %v9280_v45 = vadd.f32 %v9276_v43, %v1706_v18 }
 0x10c   :  { %669 = vmatpush.bf16.msrb.mxu2 %v9196_v15  ;;  %678 = vmatpush.bf16.msrb.mxu3 %v9130_v30  ;;  %v525_v42 = vpack.c.bf16 %v516_v57, %v516_v57 }
 0x10d   :  { %v9284_v41 = vadd.f32 %v9276_v43, %v1707_v28  ;;  %v1802_v46 = vmin.f32 %v9280_v45, 20.0  ;;  %vm2072_vm8 = vcmp.gt.f32.partialorder %v9280_v45, 20.0 }
 0x10e   :  { %7518 = vmatpush.bf16.msk.msrb.mxu1 %vm9177_vm14, %v9210_v4  ;;  %v549_v59 = vunpack.c.l.b16 %v525_v42 }
 0x10f   :  { %706 = vmatpush.bf16.msra.mxu0 %v9196_v15  ;;  %v1803_v57 = vmin.f32 %v9284_v41, 20.0  ;;  %v1837_v42 = vmul.f32 1.442695, %v1802_v46  ;;  %v584_v46 = vrot.slane %v9215_v3, 4  ;;  %vm2073_vm9 = vcmp.gt.f32.partialorder %v9284_v41, 20.0 }
 0x110   :  { %670 = vmatpush.bf16.msrb.mxu2 %v9253_v36  ;;  %679 = vmatpush.bf16.msrb.mxu3 %v9256_v24  ;;  %v559_v50 = vpack.c.b16 %v549_v59, %v549_v59  ;;  %v7990_v19 = vpop.eup %7989 }
 0x111   :  { %v7992_v9 = vpop.eup %7991  ;;  %v1887_v12 = vadd.f32 1.0, %v7990_v19  ;;  %v1839_v59 = vmul.f32 1.442695, %v1803_v57  ;;  %7993 = vpow2.f32 %v1837_v42 }
 0x112   :  { %656 = vmatpush.bf16.msrb.mxu1 %v13028_v5  ;;  %v586_v56 = vrot.slane %v559_v50, 4  ;;  %v1888_v18 = vadd.f32 1.0, %v7992_v9  ;;  %v645_v9 = vsel %vm163_vm1, %v559_v50, 0  ;;  %v614_v3 = vsel %vm163_vm1, %v559_v50, %v9210_v4 }
 0x113   :  { %7519 = vmatmul.msk.bf16.vlgmr.msrb.gmra.mxu2 %vm639_vm5, %v9258_v20  ;;  %707 = vmatpush.bf16.msra.mxu0 %v9253_v36  ;;  %v1917_v28 = vmul.f32 %v1887_v12, %v1887_v12  ;;  %7995 = vpow2.f32 %v1839_v59 }
 0x114   :  { %680 = vmatpush.bf16.msrb.mxu3 %v9272_v32  ;;  %v587_v23 = vsel %vm163_vm1, %v583_v60, %v586_v56  ;;  %v1918_v60 = vmul.f32 %v1888_v18, %v1888_v18 }
 0x115   :  { %657 = vmatmul.bf16.vlgmr.msrb.gmra.mxu1 %v9245_v16  ;;  %726 = vmatpush.bf16.msra.mxu2 %v587_v23  ;;  %v1977_v56 = vadd.f32 1.0, %v1917_v28 }
 0x116   :  { %754 = vmatpush.bf16.msra.mxu1 %v9210_v4  ;;  %v1978_v19 = vadd.f32 1.0, %v1918_v60 }
 0x117   :  { %708 = vmatpush.bf16.msra.mxu0 %v9147_v35  ;;  %7997 = vrcp.f32 %v1977_v56 }
 0x118   :  { %681 = vmatpush.bf16.msrb.mxu3 %v9154_v63  ;;  %7999 = vrcp.f32 %v1978_v19  ;;  %v7576_v19 = vadd.f32 -1.0, %v1917_v28 }
 0x119   :  { %7528 = vmatpush.bf16.msk.msrb.mxu2 %vm9177_vm14, %v9210_v4 }
 0x11b   :  { %709 = vmatpush.bf16.msra.mxu0 %v9152_v10 }
 0x11c   :  { %682 = vmatpush.bf16.msrb.mxu3 %v9210_v4 }
 0x11d   :  { %762 = vmatpush.bf16.msrb.mxu2 %v13028_v5 }
 0x11f   :  { %710 = vmatpush.bf16.msra.mxu0 %v9170_v27  ;;  %v7994_v27 = vpop.eup %7993 }
 0x120   :  { %7521 = vmatpush.bf16.msk.msrb.mxu3 %vm9177_vm14, %v9210_v4  ;;  %v1892_v12 = vadd.f32 1.0, %v7994_v27 }
 0x121   :  { %763 = vmatpush.bf16.msrb.mxu2 %v587_v23  ;;  %v7996_v23 = vpop.eup %7995 }
 0x122   :  { %v1922_v57 = vmul.f32 %v1892_v12, %v1892_v12  ;;  %v7998_v18 = vpop.eup %7997 }
 0x123   :  { %7525 = vmatmul.msk.bf16.vlgmr.msra.gmra.mxu2 %vm639_vm5, %v9258_v20  ;;  %7524 = vmatpush.bf16.msk.msra.mxu0 %vm9177_vm14, %v9165_v33  ;;  %v13033_v33 = vrot.slane %v9196_v15, 4  ;;  %v8000_v42 = vpop.eup %7999  ;;  %v2037_v27 = vmul.f32 %v7998_v18, %v7576_v19 }
 0x124   :  { %684 = vmatpush.bf16.msrb.mxu3 %v13028_v5  ;;  %v1982_v56 = vadd.f32 1.0, %v1922_v57  ;;  %v7581_v12 = vadd.f32 -1.0, %v1922_v57 }
 0x125   :  { %7526 = vmatmul.msk.bf16.vlgmr.msra.gmra.mxu1 %vm639_vm5, %v9258_v20  ;;  %764 = vmatpush.bf16.msrb.mxu2 %v9240_v47  ;;  %v585_v8 = vsel %vm163_vm1, %v13033_v33, %v584_v46  ;;  %v1893_v47 = vadd.f32 1.0, %v7996_v23  ;;  %v2097_v50 = vsel %vm2067_vm6, 1.0, %v2037_v27  ;;  %v9377_v27 = vpop.permute.xlu0 %1693 }
 0x126   :  { %8001 = vrcp.f32 %v1982_v56  ;;  %v2127_v33 = vmul.f32 %v2097_v50, %v9207_v62  ;;  %v9368_v56 = vpop.permute.xlu1 %1698  ;;  %13038 = vst [vmem:[#allocation43_spill] sm:$0xff] %v9377_v27 }
 0x127   :  { %685 = vmatmul.bf16.vlgmr.msrb.gmra.mxu3 %v9245_v16  ;;  %712 = vmatpush.bf16.msra.mxu0 %v13028_v5  ;;  %v1923_v59 = vmul.f32 %v1893_v47, %v1893_v47  ;;  %13037 = vst [vmem:[#allocation42_spill] sm:$0xff] %v9368_v56 }
 0x128   :  { %696 = vmatpush.bf16.msra.mxu3 %v645_v9  ;;  %v7577_v9 = vadd.f32 -1.0, %v1918_v60 }
 0x129   :  { %765 = vmatpush.bf16.msrb.mxu2 %v9196_v15  ;;  %v1983_v15 = vadd.f32 1.0, %v1923_v59  ;;  %v7582_v28 = vadd.f32 -1.0, %v1923_v59 }
 0x12a   :  { %713 = vmatmul.bf16.vlgmr.msra.gmra.mxu0 %v9245_v16  ;;  %v2038_v46 = vmul.f32 %v8000_v42, %v7577_v9 }
 0x12b   :  { %782 = vmatpush.bf16.msrb.mxu0 %v9210_v4  ;;  %8003 = vrcp.f32 %v1983_v15  ;;  %v819_v15 = vmul.f32 %v9136_v34, %v8971_v14 }
 0x12c   :  { %697 = vmatpush.bf16.msra.mxu3 %v9227_v21  ;;  %v2098_v23 = vsel %vm2068_vm7, 1.0, %v2038_v46  ;;  %v820_v46 = vmul.f32 %v9136_v34, %v8934_v61 }
 0x12d   :  { %766 = vmatpush.bf16.msrb.mxu2 %v9253_v36  ;;  %v8002_v36 = vpop.eup %8001 }
 0x130   :  { %698 = vmatpush.bf16.msra.mxu3 %v585_v8 }
 0x131   :  { %767 = vmatpush.bf16.msrb.mxu2 %v9147_v35  ;;  %v8004_v60 = vpop.eup %8003  ;;  %v2128_v35 = vmul.f32 %v2098_v23, %v9213_v26  ;;  %v9383_v23 = vadd.f32 %v9139_v44, %v819_v15 }
 0x132   :  { %v2043_v47 = vmul.f32 %v8004_v60, %v7582_v28  ;;  %v9391_v28 = vadd.f32 %v9139_v44, %v820_v46  ;;  %v822_v60 = vmul.f32 %v9136_v34, %v8927_v58 }
 0x133   :  { %v9341_v18 = vpack.c.bf16 %v2128_v35, %v2127_v33  ;;  %vm1124_vm13 = vcmp.gt.f32.partialorder %v9383_v23, 20.0 }
 0x134   :  { %733 = vmatpush.bf16.msrb.mxu3 %v614_v3  ;;  %v2103_v57 = vsel %vm2073_vm9, 1.0, %v2043_v47  ;;  %vm1125_vm14 = vcmp.gt.f32.partialorder %v9391_v28, 20.0 }
 0x135   :  { %768 = vmatpush.bf16.msrb.mxu2 %v9152_v10  ;;  %v2133_v62 = vmul.f32 %v2103_v57, %v9284_v41  ;;  %13034 = vst [vmem:[#allocation39_spill] sm:$0xff] %v9341_v18 }
 0x137   :  { %7522 = vmatmul.msk.bf16.vlgmr.msra.gmra.mxu3 %vm639_vm5, %v9258_v20 }
 0x138   :  { %734 = vmatpush.bf16.msrb.mxu3 %v9227_v21  ;;  %v2042_v21 = vmul.f32 %v8002_v36, %v7581_v12  ;;  %769 = vmatmul.bf16.vlgmr.msrb.gmra.mxu2 %v9245_v16  ;;  %v821_v12 = vmul.f32 %v9136_v34, %v8920_v55 }
 0x13a   :  { %7529 = vmatmul.msk.bf16.vlgmr.msrb.gmra.mxu0 %vm639_vm5, %v9258_v20  ;;  %v830_v20 = vmul.f32 %v9076_v38, %v8996_v31  ;;  %v9398_v33 = vadd.f32 %v9139_v44, %v821_v12  ;;  %v825_v12 = vmul.f32 %v9172_v39, %v8966_v11 }
 0x13c   :  { %735 = vmatpush.bf16.msrb.mxu3 %v585_v8  ;;  %v2102_v8 = vsel %vm2072_vm8, 1.0, %v2042_v21  ;;  %v9395_v21 = vpop.permute.xlu2 %1759  ;;  %vm1126_vm0 = vcmp.gt.f32.partialorder %v9398_v33, 20.0 }
 0x13d   :  { %v2132_v10 = vmul.f32 %v2102_v8, %v9280_v45  ;;  %v9359_v45 = vadd.f32 %v9104_v52, %v830_v20  ;;  %13039 = vst [vmem:[#allocation44_spill] sm:$0xff] %v9395_v21  ;;  %v899_v8 = vmin.f32 %v9383_v23, 20.0 }
 0x13f   :  { %v9344_v26 = vpack.c.bf16 %v2133_v62, %v2132_v10  ;;  %v9403_v10 = vadd.f32 %v9139_v44, %v822_v60  ;;  %v9405_v62 = vpop.permute.xlu1 %1683  ;;  %vm1135_vm10 = vcmp.gt.f32.partialorder %v9359_v45, 20.0 }
 0x140   :  { %736 = vmatpush.bf16.msrb.mxu3 %v9224_v48  ;;  %v2194_v48 = vunpack.c.h.b16 %v9341_v18  ;;  %13040 = vst [vmem:[#allocation45_spill] sm:$0xff] %v9405_v62 }
 0x141   :  { %13035 = vst [vmem:[#allocation40_spill] sm:$0xff] %v9344_v26  ;;  %v2199_v3 = vunpack.c.h.b16 %v9344_v26  ;;  %vm1127_vm3 = vcmp.gt.f32.partialorder %v9403_v10, 20.0 }
 0x143   :  { %v9349_v42 = vpack.c.b16 %v2199_v3, %v2194_v48  ;;  %v900_v3 = vmin.f32 %v9391_v28, 20.0 }
 0x144   :  { %737 = vmatpush.bf16.msrb.mxu3 %v9130_v30  ;;  %v829_v30 = vmul.f32 %v9076_v38, %v8992_v29 }
 0x145   :  { %13036 = vst [vmem:[#allocation41_spill] sm:$0xff] %v9349_v42 }
 0x146   :  { %v9362_v41 = vadd.f32 %v9104_v52, %v829_v30  ;;  %v901_v30 = vmin.f32 %v9398_v33, 20.0 }
 0x148   :  { %738 = vmatpush.bf16.msrb.mxu3 %v9256_v24  ;;  %v910_v24 = vmin.f32 %v9359_v45, 20.0  ;;  %v928_v46 = vmul.f32 1.442695, %v901_v30  ;;  %v9425_v30 = vpop.permute.xlu1 %1754  ;;  %vm1134_vm11 = vcmp.gt.f32.partialorder %v9362_v41, 20.0 }
 0x14a   :  { %v946_v59 = vmul.f32 1.442695, %v910_v24  ;;  %v924_v24 = vmul.f32 1.442695, %v899_v8 }
 0x14c   :  { %739 = vmatpush.bf16.msrb.mxu3 %v9272_v32  ;;  %v909_v32 = vmin.f32 %v9362_v41, 20.0  ;;  %8005 = vpow2.f32 %v946_v59  ;;  %v902_v59 = vmin.f32 %v9403_v10, 20.0 }
 0x14e   :  { %v944_v19 = vmul.f32 1.442695, %v909_v32 }
 0x150   :  { %740 = vmatpush.bf16.msrb.mxu3 %v9154_v63  ;;  %v831_v63 = vmul.f32 %v9076_v38, %v9029_v40  ;;  %8007 = vpow2.f32 %v944_v19  ;;  %v9410_v19 = vpop.permute.xlu0 %1764  ;;  %v9462_v18 = vpop.permute.xlu1 %2538 }
 0x151   :  { %13041 = vst [vmem:[#allocation46_spill] sm:$0xff] %v9410_v19 }
 0x152   :  { %v9371_v9 = vadd.f32 %v9104_v52, %v831_v63  ;;  %v8006_v35 = vpop.eup %8005  ;;  %13044 = vst [vmem:[#allocation49_spill] sm:$0xff] %v9462_v18 }
 0x153   :  { %741 = vmatmul.bf16.vlgmr.msrb.gmra.mxu3 %v9245_v16  ;;  %v832_v16 = vmul.f32 %v9076_v38, %v9038_v51  ;;  %v985_v20 = vadd.f32 1.0, %v8006_v35  ;;  %v930_v35 = vmul.f32 1.442695, %v902_v59 }
 0x154   :  { %v911_v50 = vmin.f32 %v9371_v9, 20.0  ;;  %vm1136_vm12 = vcmp.gt.f32.partialorder %v9371_v9, 20.0 }
 0x155   :  { %v9388_v36 = vadd.f32 %v9104_v52, %v832_v16  ;;  %v926_v16 = vmul.f32 1.442695, %v900_v3  ;;  %v1010_v15 = vmul.f32 %v985_v20, %v985_v20  ;;  %v827_v3 = vmul.f32 %v9172_v39, %v8917_v54 }
 0x156   :  { %v948_v47 = vmul.f32 1.442695, %v911_v50  ;;  %v8008_v48 = vpop.eup %8007  ;;  %v824_v50 = vmul.f32 %v9172_v39, %v8957_v7 }
 0x157   :  { %v912_v57 = vmin.f32 %v9388_v36, 20.0  ;;  %v984_v32 = vadd.f32 1.0, %v8008_v48  ;;  %v1060_v48 = vadd.f32 1.0, %v1010_v15  ;;  %vm1137_vm15 = vcmp.gt.f32.partialorder %v9388_v36, 20.0 }
 0x158   :  { %8009 = vpow2.f32 %v948_v47  ;;  %v9416_v47 = vpop.permute.xlu2 %1688  ;;  %v9423_v20 = vadd.f32 %v9157_v6, %v824_v50  ;;  %v9436_v50 = vadd.f32 %v9157_v6, %v827_v3  ;;  %v9439_v61 = vpop.permute.xlu0 %1749 }
 0x159   :  { %v950_v63 = vmul.f32 1.442695, %v912_v57  ;;  %8011 = vpow2.f32 %v924_v24  ;;  %v1009_v60 = vmul.f32 %v984_v32, %v984_v32  ;;  %v826_v57 = vmul.f32 %v9172_v39, %v8914_v53  ;;  %13042 = vst [vmem:[#allocation47_spill] sm:$0xff] %v9439_v61 }
 0x15a   :  { %v9428_v24 = vadd.f32 %v9157_v6, %v825_v12  ;;  %v823_v32 = vmul.f32 %v9136_v34, %v9023_v22  ;;  %v904_v7 = vmin.f32 %v9423_v20, 20.0  ;;  %v907_v21 = vmin.f32 %v9436_v50, 20.0 }
 0x15b   :  { %8013 = vpow2.f32 %v950_v63  ;;  %v1059_v63 = vadd.f32 1.0, %v1009_v60  ;;  %v7540_v40 = vadd.f32 -1.0, %v1009_v60  ;;  %vm1129_vm4 = vcmp.gt.f32.partialorder %v9423_v20, 20.0 }
 0x15c   :  { %8015 = vpow2.f32 %v926_v16  ;;  %v905_v14 = vmin.f32 %v9428_v24, 20.0  ;;  %v9443_v34 = vadd.f32 %v9139_v44, %v823_v32  ;;  %v934_v27 = vmul.f32 1.442695, %v904_v7 }
 0x15d   :  { %8017 = vpow2.f32 %v928_v46  ;;  %v9433_v46 = vadd.f32 %v9157_v6, %v826_v57  ;;  %v833_v44 = vmul.f32 %v9076_v38, %v9087_v49  ;;  %v7541_v7 = vadd.f32 -1.0, %v1010_v15 }
 0x15e   :  { %v8010_v8 = vpop.eup %8009  ;;  %8019 = vpow2.f32 %v930_v35  ;;  %v940_v22 = vmul.f32 1.442695, %v907_v21  ;;  %vm1130_vm5 = vcmp.gt.f32.partialorder %v9428_v24, 20.0  ;;  %vm1128_vm7 = vcmp.gt.f32.partialorder %v9443_v34, 20.0 }
 0x15f   :  { %v986_v59 = vadd.f32 1.0, %v8010_v8  ;;  %v8012_v16 = vpop.eup %8011  ;;  %8021 = vrcp.f32 %v1060_v48  ;;  %v828_v48 = vmul.f32 %v9172_v39, %v9044_v0  ;;  %v906_v42 = vmin.f32 %v9433_v46, 20.0 }
 0x160   :  { %8023 = vrcp.f32 %v1059_v63  ;;  %v974_v57 = vadd.f32 1.0, %v8012_v16  ;;  %v9451_v51 = vpop.permute.xlu2 %2261  ;;  %v936_v63 = vmul.f32 1.442695, %v905_v14  ;;  %v9469_v60 = vadd.f32 %v9104_v52, %v833_v44 }
 0x161   :  { %v8014_v11 = vpop.eup %8013  ;;  %v9445_v8 = vmul.f32 %v986_v59, %v986_v59  ;;  %13043 = vst [vmem:[#allocation48_spill] sm:$0xff] %v9451_v51  ;;  %v903_v59 = vmin.f32 %v9443_v34, 20.0  ;;  %v938_v38 = vmul.f32 1.442695, %v906_v42  ;;  %8025 = vpow2.f32 %v934_v27 }
 0x162   :  { %v8016_v12 = vpop.eup %8015  ;;  %v987_v3 = vadd.f32 1.0, %v8014_v11  ;;  %v9457_v39 = vmul.f32 %v974_v57, %v974_v57  ;;  %8027 = vpow2.f32 %v936_v63  ;;  %v913_v21 = vmin.f32 %v9469_v60, 20.0 }
 0x163   :  { %v8018_v35 = vpop.eup %8017  ;;  %v975_v56 = vadd.f32 1.0, %v8016_v12  ;;  %v1061_v11 = vadd.f32 1.0, %v9445_v8  ;;  %v9460_v12 = vadd.f32 %v9157_v6, %v828_v48  ;;  %v932_v6 = vmul.f32 1.442695, %v903_v59 }
 0x164   :  { %v8020_v19 = vpop.eup %8019  ;;  %v976_v32 = vadd.f32 1.0, %v8018_v35  ;;  %v9464_v51 = vmul.f32 %v987_v3, %v987_v3  ;;  %v1049_v15 = vadd.f32 1.0, %v9457_v39  ;;  %vm1131_vm6 = vcmp.gt.f32.partialorder %v9433_v46, 20.0 }
 0x165   :  { %v8022_v16 = vpop.eup %8021  ;;  %v977_v26 = vadd.f32 1.0, %v8020_v19  ;;  %v9466_v14 = vmul.f32 %v975_v56, %v975_v56  ;;  %8029 = vrcp.f32 %v1061_v11  ;;  %v908_v48 = vmin.f32 %v9460_v12, 20.0  ;;  %v9475_v19 = vpop.permute.xlu0 %2266 }
 0x166   :  { %v8024_v35 = vpop.eup %8023  ;;  %v1110_v57 = vmul.f32 %v8022_v16, %v7541_v7  ;;  %v9471_v0 = vmul.f32 %v976_v32, %v976_v32  ;;  %13045 = vst [vmem:[#allocation50_spill] sm:$0xff] %v9475_v19  ;;  %v1062_v56 = vadd.f32 1.0, %v9464_v51  ;;  %8031 = vpow2.f32 %v938_v38  ;;  %v9489_v38 = vpop.permute.xlu1 %2626 }
 0x167   :  { %v1109_v42 = vmul.f32 %v8024_v35, %v7540_v40  ;;  %v9478_v27 = vmul.f32 %v977_v26, %v977_v26  ;;  %v1050_v52 = vadd.f32 1.0, %v9466_v14  ;;  %8033 = vpow2.f32 %v940_v22  ;;  %v8026_v32 = vpop.eup %8025  ;;  %13047 = vst [vmem:[#allocation52_spill] sm:$0xff] %v9489_v38 }
 0x168   :  { %v1160_v3 = vsel %vm1135_vm10, 1.0, %v1110_v57  ;;  %v1051_v44 = vadd.f32 1.0, %v9471_v0  ;;  %8035 = vpow2.f32 %v932_v6  ;;  %v942_v40 = vmul.f32 1.442695, %v908_v48  ;;  %v9485_v63 = vpop.permute.xlu2 %2543  ;;  %v8028_v26 = vpop.eup %8027 }
 0x169   :  { %8037 = vrcp.f32 %v1049_v15  ;;  %13046 = vst [vmem:[#allocation51_spill] sm:$0xff] %v9485_v63  ;;  %v1159_v59 = vsel %vm1134_vm11, 1.0, %v1109_v42  ;;  %v1052_v16 = vadd.f32 1.0, %v9478_v27  ;;  %v1185_v22 = vmul.f32 %v1160_v3, %v9359_v45 }
 0x16a   :  { %8039 = vrcp.f32 %v1062_v56  ;;  %v952_v7 = vmul.f32 1.442695, %v913_v21  ;;  %v979_v57 = vadd.f32 1.0, %v8026_v32  ;;  %v9493_v15 = vmul.f32 %v9189_v2, %v8920_v55 }
 0x16b   :  { %v8030_v11 = vpop.eup %8029  ;;  %8041 = vrcp.f32 %v1050_v52  ;;  %v1184_v48 = vmul.f32 %v1159_v59, %v9362_v41  ;;  %v980_v42 = vadd.f32 1.0, %v8028_v26  ;;  %v9498_v45 = vmul.f32 %v9189_v2, %v8927_v58 }
 0x16c   :  { %v8032_v35 = vpop.eup %8031  ;;  %8043 = vrcp.f32 %v1051_v44  ;;  %v7530_v32 = vadd.f32 -1.0, %v9457_v39  ;;  %v9509_v26 = vmul.f32 %v979_v57, %v979_v57  ;;  %v1711_v59 = vmul.f32 %v9405_v62, %v8992_v29 }
 0x16d   :  { %v8034_v6 = vpop.eup %8033  ;;  %8045 = vpow2.f32 %v942_v40  ;;  %v9502_v21 = vpack.c.bf16 %v1185_v22, %v1184_v48  ;;  %v981_v3 = vadd.f32 1.0, %v8032_v35  ;;  %v9505_v41 = vpop.permute.xlu0 %2508  ;;  %v7542_v22 = vadd.f32 -1.0, %v9445_v8 }
 0x16e   :  { %v8036_v56 = vpop.eup %8035  ;;  %8047 = vrcp.f32 %v1052_v16  ;;  %13048 = vst [vmem:[#allocation53_spill] sm:$0xff] %v9505_v41  ;;  %v982_v40 = vadd.f32 1.0, %v8034_v6  ;;  %v9515_v35 = vmul.f32 %v980_v42, %v980_v42  ;;  %v1712_v48 = vmul.f32 %v9405_v62, %v8996_v31 }
 0x16f   :  { %v8038_v52 = vpop.eup %8037  ;;  %8049 = vpow2.f32 %v952_v7  ;;  %v978_v7 = vadd.f32 1.0, %v8036_v56  ;;  %v7543_v39 = vadd.f32 -1.0, %v9464_v51  ;;  %v7531_v57 = vadd.f32 -1.0, %v9466_v14 }
 0x170   :  { %v8040_v44 = vpop.eup %8039  ;;  %v1099_v6 = vmul.f32 %v8038_v52, %v7530_v32  ;;  %v9523_v63 = vadd.f32 %v9439_v61, %v1711_v59  ;;  %v1111_v42 = vmul.f32 %v8030_v11, %v7542_v22  ;;  %v9526_v19 = vmul.f32 %v981_v3, %v981_v3  ;;  %v9528_v56 = vpop.permute.xlu2 %2631 }
 0x171   :  { %v8042_v16 = vpop.eup %8041  ;;  %13049 = vst [vmem:[#allocation54_spill] sm:$0xff] %v9528_v56  ;;  %v9531_v58 = vadd.f32 %v9439_v61, %v1712_v48  ;;  %v7532_v14 = vadd.f32 -1.0, %v9471_v0  ;;  %v9534_v32 = vmul.f32 %v982_v40, %v982_v40  ;;  %v1054_v59 = vadd.f32 1.0, %v9509_v26  ;;  %v9541_v22 = vpop.permute.xlu1 %2533 }
 0x172   :  { %v8044_v38 = vpop.eup %8043  ;;  %v1100_v52 = vmul.f32 %v8042_v16, %v7531_v57  ;;  %v1112_v41 = vmul.f32 %v8040_v44, %v7543_v39  ;;  %v7533_v18 = vadd.f32 -1.0, %v9478_v27  ;;  %v1055_v11 = vadd.f32 1.0, %v9515_v35  ;;  %13050 = vst [vmem:[#allocation55_spill] sm:$0xff] %v9541_v22 }
 0x173   :  { %v8046_v8 = vpop.eup %8045  ;;  %v9539_v3 = vmul.f32 %v978_v7, %v978_v7  ;;  %v1101_v48 = vmul.f32 %v8044_v38, %v7532_v14  ;;  %v1149_v56 = vsel %vm1124_vm13, 1.0, %v1099_v6  ;;  %v1807_v40 = vmin.f32 %v9523_v63, 20.0 }
 0x174   :  { %v8048_v51 = vpop.eup %8047  ;;  %v983_v0 = vadd.f32 1.0, %v8046_v8  ;;  %v1161_v16 = vsel %vm1136_vm12, 1.0, %v1111_v42  ;;  %v1056_v44 = vadd.f32 1.0, %v9526_v19  ;;  %v1808_v27 = vmin.f32 %v9531_v58, 20.0 }
 0x175   :  { %v8050_v55 = vpop.eup %8049  ;;  %v1102_v57 = vmul.f32 %v8048_v51, %v7533_v18  ;;  %v1150_v7 = vsel %vm1125_vm14, 1.0, %v1100_v52  ;;  %v1057_v39 = vadd.f32 1.0, %v9534_v32  ;;  %8051 = vrcp.f32 %v1054_v59  ;;  %v9557_v18 = vpop.permute.xlu0 %2528 }
 0x176   :  { %v988_v38 = vadd.f32 1.0, %v8050_v55  ;;  %v1162_v6 = vsel %vm1137_vm15, 1.0, %v1112_v41  ;;  %v1174_v8 = vmul.f32 %v1149_v56, %v9383_v23  ;;  %8053 = vrcp.f32 %v1055_v11  ;;  %13051 = vst [vmem:[#allocation56_spill] sm:$0xff] %v9557_v18 }
 0x177   :  { %v1053_v42 = vadd.f32 1.0, %v9539_v3  ;;  %v1151_v14 = vsel %vm1126_vm0, 1.0, %v1101_v48  ;;  %v9561_v22 = vmul.f32 %v983_v0, %v983_v0  ;;  %v1715_v52 = vmul.f32 %v9405_v62, %v9087_v49 }
 0x178   :  { %v1847_v55 = vmul.f32 1.442695, %v1807_v40  ;;  %v1152_v41 = vsel %vm1127_vm3, 1.0, %v1102_v57  ;;  %v1175_v23 = vmul.f32 %v1150_v7, %v9391_v28  ;;  %8055 = vrcp.f32 %v1056_v44  ;;  %v9580_v28 = vpop.permute.xlu2 %2596 }
 0x179   :  { %v1849_v56 = vmul.f32 1.442695, %v1808_v27  ;;  %8057 = vrcp.f32 %v1057_v39  ;;  %v9569_v59 = vmul.f32 %v988_v38, %v988_v38  ;;  %v9572_v11 = vadd.f32 %v9439_v61, %v1715_v52  ;;  %13053 = vst [vmem:[#allocation58_spill] sm:$0xff] %v9580_v28 }
 0x17a   :  { %v1186_v48 = vmul.f32 %v1161_v16, %v9371_v9  ;;  %v1187_v0 = vmul.f32 %v1162_v6, %v9388_v36  ;;  %8059 = vrcp.f32 %v1053_v42  ;;  %v9578_v40 = vadd.f32 %v9194_v13, %v9493_v15  ;;  %v9592_v15 = vpop.permute.xlu1 %2621 }
 0x17b   :  { %v8052_v57 = vpop.eup %8051  ;;  %v1176_v44 = vmul.f32 %v1151_v14, %v9398_v33  ;;  %v1177_v27 = vmul.f32 %v1152_v41, %v9403_v10  ;;  %v1058_v7 = vadd.f32 1.0, %v9561_v22  ;;  %8061 = vpow2.f32 %v1847_v55  ;;  %13055 = vst [vmem:[#allocation60_spill] sm:$0xff] %v9592_v15 }
 0x17c   :  { %13052 = vst [vmem:[#allocation57_spill] sm:$0xff] %v9578_v40  ;;  %v8054_v39 = vpop.eup %8053  ;;  %v9585_v38 = vpack.c.bf16 %v1175_v23, %v1174_v8  ;;  %v7535_v9 = vadd.f32 -1.0, %v9509_v26  ;;  %v9590_v36 = vadd.f32 %v9194_v13, %v9498_v45  ;;  %8063 = vpow2.f32 %v1849_v56 }
 0x17d   :  { %v7536_v16 = vadd.f32 -1.0, %v9515_v35  ;;  %v1063_v33 = vadd.f32 1.0, %v9569_v59  ;;  %v1811_v10 = vmin.f32 %v9572_v11, 20.0  ;;  %v1799_v26 = vmin.f32 %v9578_v40, 20.0 }
 0x17e   :  { %13054 = vst [vmem:[#allocation59_spill] sm:$0xff] %v9590_v36  ;;  %v8056_v6 = vpop.eup %8055  ;;  %v1104_v8 = vmul.f32 %v8052_v57, %v7535_v9  ;;  %v7537_v52 = vadd.f32 -1.0, %v9526_v19  ;;  %8065 = vrcp.f32 %v1058_v7  ;;  %v9603_v41 = vpack.c.bf16 %v1187_v0, %v1186_v48  ;;  %v9609_v9 = vpop.permute.xlu0 %2616 }
 0x17f   :  { %v8058_v14 = vpop.eup %8057  ;;  %v1105_v55 = vmul.f32 %v8054_v39, %v7536_v16  ;;  %v9605_v23 = vpack.c.bf16 %v1177_v27, %v1176_v44  ;;  %v1800_v57 = vmin.f32 %v9590_v36, 20.0  ;;  %13056 = vst [vmem:[#allocation61_spill] sm:$0xff] %v9609_v9  ;;  %v7538_v15 = vadd.f32 -1.0, %v9534_v32 }
 0x180   :  { %v8060_v35 = vpop.eup %8059  ;;  %v1106_v19 = vmul.f32 %v8056_v6, %v7537_v52  ;;  %vm1132_vm8 = vcmp.gt.f32.partialorder %v9436_v50, 20.0  ;;  %8067 = vrcp.f32 %v1063_v33  ;;  %v1855_v7 = vmul.f32 1.442695, %v1811_v10  ;;  %v9622_v9 = vpop.permute.xlu2 %2518 }
 0x181   :  { %v8062_v28 = vpop.eup %8061  ;;  %v1154_v48 = vsel %vm1129_vm4, 1.0, %v1104_v8  ;;  %v7534_v0 = vadd.f32 -1.0, %v9539_v3  ;;  %v1831_v44 = vmul.f32 1.442695, %v1799_v26  ;;  %v1155_v16 = vsel %vm1130_vm5, 1.0, %v1105_v55  ;;  %13057 = vst [vmem:[#allocation62_spill] sm:$0xff] %v9622_v9 }
 0x182   :  { %v8064_v39 = vpop.eup %8063  ;;  %vm1133_vm9 = vcmp.gt.f32.partialorder %v9460_v12, 20.0  ;;  %v1708_v32 = vmul.f32 %v9247_v1, %v8914_v53  ;;  %v1107_v33 = vmul.f32 %v8058_v14, %v7538_v15  ;;  %v1833_v52 = vmul.f32 1.442695, %v1800_v57 }
 0x183   :  { %v1103_v10 = vmul.f32 %v8060_v35, %v7534_v0  ;;  %v1897_v56 = vadd.f32 1.0, %v8062_v28  ;;  %v1156_v3 = vsel %vm1131_vm6, 1.0, %v1106_v19  ;;  %v1179_v26 = vmul.f32 %v1154_v48, %v9423_v20 }
 0x184   :  { %v8066_v8 = vpop.eup %8065  ;;  %8069 = vpow2.f32 %v1855_v7  ;;  %v7539_v55 = vadd.f32 -1.0, %v9561_v22  ;;  %v1709_v35 = vmul.f32 %v9247_v1, %v8917_v54  ;;  %v9635_v57 = vadd.f32 %v9276_v43, %v1708_v32 }
 0x185   :  { %8071 = vpow2.f32 %v1831_v44  ;;  %v2560_v20 = vmul.f32 %v9622_v9, %v9087_v49  ;;  %v7544_v7 = vadd.f32 -1.0, %v9569_v59  ;;  %v13061_v44 = vld [vmem:[#allocation30_spill] sm:$0xff]  ;;  %v1157_v49 = vsel %vm1132_vm8, 1.0, %v1107_v33 }
 0x186   :  { %v8068_v14 = vpop.eup %8067  ;;  %13059 = vst [vmem:[#allocation64_spill] sm:$0xff] %v9635_v57  ;;  %v1108_v22 = vmul.f32 %v8066_v8, %v7539_v55  ;;  %v9659_v59 = vpop.permute.xlu0 %2523  ;;  %vm1138_vm10 = vcmp.gt.f32.partialorder %v9469_v60, 20.0  ;;  %8073 = vpow2.f32 %v1833_v52  ;;  %vm1325_vm11 = vcmask 1045504  }
 0x187   :  { %vm2077_vm12 = vcmp.gt.f32.partialorder %v9523_v63, 20.0  ;;  %vm2078_vm13 = vcmp.gt.f32.partialorder %v9531_v58, 20.0  ;;  %vm2081_vm14 = vcmp.gt.f32.partialorder %v9572_v11, 20.0 }
 0x188   :  { %v9684_v53 = vpop.permute.xlu2 %2611 }
 0x192   :  { %v658_v51 = vpop.f32.mrf.mxu1 }
 0x193   :  { %v659_v45 = vadd.f32 %v658_v51, %v9091_v37 }
 0x196   :  { %v672_v42 = vpop.f32.mrf.mxu2 }
 0x197   :  { %v673_v27 = vadd.f32 %v672_v42, %v659_v45  ;;  %v1898_v45 = vadd.f32 1.0, %v8064_v39  ;;  %v1180_v42 = vmul.f32 %v1155_v16, %v9428_v24  ;;  %v1153_v24 = vsel %vm1128_vm7, 1.0, %v1103_v10 }
 0x198   :  { %v9644_v39 = vmul.f32 %v1897_v56, %v1897_v56  ;;  %v1113_v10 = vmul.f32 %v8068_v14, %v7544_v7  ;;  %v13062_v56 = vld [vmem:[#allocation32_spill] sm:$0xff]  ;;  %v1178_v55 = vmul.f32 %v1153_v24, %v9443_v34  ;;  %v13065_v14 = vld [vmem:[#allocation31_spill] sm:$0xff] }
 0x199   :  { %v834_v15 = vmul.f32 %v9124_v25, %v673_v27  ;;  %v9646_v48 = vmul.f32 %v1898_v45, %v1898_v45  ;;  %v1716_v0 = vmul.f32 %v9416_v47, %v673_v27  ;;  %v8070_v45 = vpop.eup %8069  ;;  %v2561_v54 = vmul.f32 %v9659_v59, %v673_v27 }
 0x19a   :  { %v660_v51 = vpop.f32.mrf.mxu1  ;;  %v9670_v33 = vpop.eup %8071  ;;  %v1202_v7 = vpack.c.bf16 %v1180_v42, %v1179_v26  ;;  %v1163_v24 = vsel %vm1138_vm10, 1.0, %v1113_v10  ;;  %v1201_v18 = vpack.c.bf16 %v1178_v55, %v1178_v55 }
 0x19b   :  { %v661_v6 = vadd.f32 %v660_v51, %v9052_v17  ;;  %v9629_v51 = vpop.permute.xlu1 %2606  ;;  %v9662_v8 = vadd.f32 %v13062_v56, %v834_v15  ;;  %13064 = vst [vmem:[#allocation32_spill] sm:$0xff] %v9670_v33  ;;  %v1988_v34 = vadd.f32 1.0, %v9646_v48  ;;  %v9689_v42 = vadd.f32 %v9684_v53, %v2561_v54 }
 0x19c   :  { %13058 = vst [vmem:[#allocation63_spill] sm:$0xff] %v9629_v51  ;;  %v9652_v32 = vadd.f32 %v9629_v51, %v2560_v20  ;;  %v1804_v20 = vmin.f32 %v9635_v57, 20.0  ;;  %v1234_v31 = vunpack.c.l.b16 %v1202_v7  ;;  %v1188_v52 = vmul.f32 %v1163_v24, %v9469_v60  ;;  %v9703_v24 = vpop.eup %8073 }
 0x19d   :  { %v2689_v60 = vmin.f32 %v9689_v42, 20.0  ;;  %13066 = vst [vmem:[#allocation31_spill] sm:$0xff] %v9703_v24  ;;  %v1233_v36 = vunpack.c.l.b16 %v1201_v18  ;;  %vm1139_vm15 = vcmp.gt.f32.partialorder %v9662_v8, 20.0  ;;  %vm3049_vm4 = vcmp.gt.f32.partialorder %v9689_v42, 20.0 }
 0x19e   :  { %v674_v28 = vpop.f32.mrf.mxu2  ;;  %v2688_v27 = vmin.f32 %v9652_v32, 20.0  ;;  %v1841_v26 = vmul.f32 1.442695, %v1804_v20  ;;  %v1229_v20 = vunpack.c.l.b16 %v9585_v38 }
 0x19f   :  { %v9639_v19 = vadd.f32 %v674_v28, %v661_v6  ;;  %v9657_v6 = vmul.f32 %v1156_v3, %v9433_v46  ;;  %v9666_v28 = vadd.f32 %v9276_v43, %v1709_v35  ;;  %v1158_v46 = vsel %vm1133_vm9, 1.0, %v1108_v22 }
 0x1a0   :  { %v1987_v3 = vadd.f32 1.0, %v9644_v39  ;;  %v9681_v35 = vadd.f32 %v9425_v30, %v1716_v0  ;;  %v914_v22 = vmin.f32 %v9662_v8, 20.0  ;;  %v1183_v51 = vmul.f32 %v1158_v46, %v9460_v12 }
 0x1a1   :  { %13060 = vst [vmem:[#allocation65_spill] sm:$0xff] %v9639_v19  ;;  %v839_v16 = vmul.f32 %v13061_v44, %v9639_v19  ;;  %v1901_v19 = vadd.f32 1.0, %v8070_v45  ;;  %v2742_v55 = vmul.f32 1.442695, %v2688_v27  ;;  %v1182_v46 = vmul.f32 %v1157_v49, %v9436_v50 }
 0x1a2   :  { %13063 = vst [vmem:[#allocation30_spill] sm:$0xff] %v9666_v28  ;;  %8075 = vrcp.f32 %v1987_v3  ;;  %v1812_v10 = vmin.f32 %v9681_v35, 20.0  ;;  %v954_v29 = vmul.f32 1.442695, %v914_v22  ;;  %v9707_v22 = vpack.c.b16 %v1234_v31, %v1229_v20 }
 0x1a3   :  { %v9676_v15 = vadd.f32 %v13065_v14, %v839_v16  ;;  %v1805_v16 = vmin.f32 %v9666_v28, 20.0  ;;  %8077 = vrcp.f32 %v1988_v34  ;;  %v9699_v12 = vmul.f32 %v1901_v19, %v1901_v19 }
 0x1a4   :  { %v1235_v34 = vunpack.c.h.b16 %v1202_v7  ;;  %8079 = vpow2.f32 %v1841_v26  ;;  %v1857_v40 = vmul.f32 1.442695, %v1812_v10  ;;  %v1204_v49 = vpack.c.bf16 %v1183_v51, %v1183_v51 }
 0x1a5   :  { %v919_v0 = vmin.f32 %v9676_v15, 20.0  ;;  %v1843_v3 = vmul.f32 1.442695, %v1805_v16  ;;  %8081 = vpow2.f32 %v2742_v55  ;;  %v1991_v7 = vadd.f32 1.0, %v9699_v12 }
 0x1a6   :  { %v728_v9 = vpop.f32.mrf.mxu2  ;;  %8083 = vpow2.f32 %v954_v29  ;;  %v2744_v26 = vmul.f32 1.442695, %v2689_v60  ;;  %v9717_v31 = vrot.slane %v13028_v5, 6  ;;  %v7587_v55 = vadd.f32 -1.0, %v9646_v48 }
 0x1a7   :  { %v714_v45 = vpop.f32.mrf.mxu0  ;;  %v964_v62 = vmul.f32 1.442695, %v919_v0  ;;  %8085 = vpow2.f32 %v1843_v3  ;;  %v1238_v3 = vunpack.c.l.b16 %v1204_v49  ;;  %v1231_v51 = vunpack.c.l.b16 %v9605_v23 }
 0x1a8   :  { %v715_v54 = vadd.f32 %v714_v45, %v9091_v37  ;;  %v1207_v45 = vpack.c.bf16 %v1188_v52, %v1188_v52  ;;  %v8076_v19 = vpop.eup %8075  ;;  %v7590_v24 = vadd.f32 -1.0, %v9699_v12  ;;  %vm1144_vm0 = vcmp.gt.f32.partialorder %v9676_v15, 20.0 }
 0x1a9   :  { %v8078_v16 = vpop.eup %8077  ;;  %8087 = vpow2.f32 %v964_v62  ;;  %vm2082_vm3 = vcmp.gt.f32.partialorder %v9681_v35, 20.0 }
 0x1aa   :  { %v9695_v61 = vpop.f32.mrf.mxu3  ;;  %v9705_v27 = vadd.f32 %v728_v9, %v715_v54  ;;  %v13067_v9 = vunpack.c.h.b16 %v9585_v38  ;;  %8089 = vpow2.f32 %v1857_v40  ;;  %v7586_v38 = vadd.f32 -1.0, %v9644_v39  ;;  %v9730_v54 = vpop.eup %8079 }
 0x1ab   :  { %13068 = vst [vmem:[#allocation66_spill] sm:$0xff] %v9730_v54  ;;  %v9732_v62 = vunpack.c.l.b16 %v1207_v45  ;;  %8091 = vrcp.f32 %v1991_v7  ;;  %v8082_v60 = vpop.eup %8081  ;;  %v1203_v45 = vpack.c.bf16 %v1182_v46, %v9657_v6  ;;  %v1232_v6 = vunpack.c.h.b16 %v9605_v23 }
 0x1ac   :  { %v836_v50 = vmul.f32 %v9124_v25, %v9705_v27  ;;  %v9714_v0 = vpack.c.b16 %v1235_v34, %v13067_v9  ;;  %v1718_v29 = vmul.f32 %v9416_v47, %v9705_v27  ;;  %8093 = vpow2.f32 %v2744_v26  ;;  %v8084_v39 = vpop.eup %8083 }
 0x1ad   :  { %v2048_v9 = vmul.f32 %v8078_v16, %v7587_v55  ;;  %v9745_v49 = vpop.eup %8085  ;;  %v13070_v26 = vrot.slane %v9707_v22, 2  ;;  %v13071_v16 = vrot.slane %v9707_v22, 4  ;;  %v2808_v57 = vadd.f32 1.0, %v8082_v60 }
 0x1ae   :  { %v9720_v18 = vadd.f32 %v13062_v56, %v836_v50  ;;  %v9736_v40 = vpop.f32.mrf.mxu2  ;;  %v2047_v50 = vmul.f32 %v8076_v19, %v7586_v38  ;;  %v9741_v10 = vadd.f32 %v9425_v30, %v1718_v29  ;;  %13069 = vst [vmem:[#allocation67_spill] sm:$0xff] %v9745_v49  ;;  %v9761_v38 = vpack.c.b16 %v1238_v3, %v1233_v36 }
 0x1af   :  { %v9725_v52 = vpop.f32.mrf.mxu0  ;;  %v9752_v19 = vsel %vm1325_vm11, %v9210_v4, %v13070_v26  ;;  %v9758_v29 = vsel %vm163_vm1, %v9717_v31, %v13071_v16  ;;  %v8088_v46 = vpop.eup %8087  ;;  %v989_v26 = vadd.f32 1.0, %v8084_v39  ;;  %v2108_v28 = vsel %vm2078_vm13, 1.0, %v2048_v9 }
 0x1b0   :  { %v916_v48 = vmin.f32 %v9720_v18, 20.0  ;;  %v8090_v7 = vpop.eup %8089  ;;  %v2107_v34 = vsel %vm2077_vm12, 1.0, %v2047_v50  ;;  %v1814_v16 = vmin.f32 %v9741_v10, 20.0  ;;  %v1236_v2 = vunpack.c.l.b16 %v1203_v45 }
 0x1b1   :  { %v8092_v13 = vpop.eup %8091  ;;  %v994_v3 = vadd.f32 1.0, %v8088_v46  ;;  %v687_v55 = vadd.f32 %v9695_v61, %v9091_v37  ;;  %v1237_v1 = vunpack.c.h.b16 %v1203_v45  ;;  %v1902_v33 = vadd.f32 1.0, %v8090_v7 }
 0x1b2   :  { %v9734_v20 = vpop.f32.mrf.mxu3  ;;  %v958_v43 = vmul.f32 1.442695, %v916_v48  ;;  %v8094_v36 = vpop.eup %8093  ;;  %v2137_v60 = vmul.f32 %v2107_v34, %v9523_v63  ;;  %v2138_v9 = vmul.f32 %v2108_v28, %v9531_v58  ;;  %v9774_v48 = vmul.f32 %v989_v26, %v989_v26 }
 0x1b3   :  { %v2051_v54 = vmul.f32 %v8092_v13, %v7590_v24  ;;  %v2848_v46 = vmul.f32 %v2808_v57, %v2808_v57  ;;  %v2809_v5 = vadd.f32 1.0, %v8094_v36  ;;  %v1861_v61 = vmul.f32 1.442695, %v1814_v16 }
 0x1b4   :  { %8095 = vpow2.f32 %v958_v43  ;;  %v2563_v12 = vmul.f32 %v9659_v59, %v9705_v27  ;;  %v9778_v45 = vmul.f32 %v994_v3, %v994_v3  ;;  %v9781_v63 = vpack.c.b16 %v1236_v2, %v1231_v51 }
 0x1b5   :  { %v9783_v58 = vpack.c.b16 %v1237_v1, %v1232_v6  ;;  %v1932_v28 = vmul.f32 %v1902_v33, %v1902_v33  ;;  %v717_v13 = vadd.f32 %v9725_v52, %v9052_v17  ;;  %v9787_v57 = vpack.c.bf16 %v2138_v9, %v2137_v60 }
 0x1b6   :  { %13072 = vst [vmem:[#allocation68_spill] sm:$0xff] %v9781_v63  ;;  %v1064_v43 = vadd.f32 1.0, %v9774_v48  ;;  %v2111_v34 = vsel %vm2081_vm14, 1.0, %v2051_v54  ;;  %v9795_v2 = vmul.f32 %v2809_v5, %v2809_v5  ;;  %8097 = vpow2.f32 %v1861_v61 }
 0x1b7   :  { %v784_v23 = vpop.f32.mrf.mxu0  ;;  %13073 = vst [vmem:[#allocation69_spill] sm:$0xff] %v9783_v58  ;;  %v9798_v1 = vadd.f32 %v9684_v53, %v2563_v12  ;;  %v2928_v33 = vadd.f32 1.0, %v2848_v46  ;;  %v1069_v51 = vadd.f32 1.0, %v9778_v45  ;;  %v1992_v16 = vadd.f32 1.0, %v1932_v28 }
 0x1b8   :  { %13074 = vst [vmem:[#allocation70_spill] sm:$0xff] %v9787_v57  ;;  %v9805_v36 = vadd.f32 %v9736_v40, %v717_v13  ;;  %v9809_v3 = vmul.f32 %v2111_v34, %v9572_v11  ;;  %8099 = vrcp.f32 %v1064_v43  ;;  %v2929_v9 = vadd.f32 1.0, %v9795_v2 }
 0x1b9   :  { %13075 = vst [vmem:[#allocation71_spill] sm:$0xff] %v9798_v1  ;;  %v2691_v61 = vmin.f32 %v9798_v1, 20.0  ;;  %v9816_v12 = vadd.f32 -1.0, %v2848_v46  ;;  %8101 = vrcp.f32 %v2928_v33  ;;  %v7638_v1 = vadd.f32 -1.0, %v9795_v2 }
 0x1ba   :  { %v700_v39 = vpop.f32.mrf.mxu3  ;;  %v8096_v26 = vpop.eup %8095  ;;  %13076 = vst [vmem:[#allocation72_spill] sm:$0xff] %v9805_v36  ;;  %8103 = vrcp.f32 %v1069_v51  ;;  %vm1141_vm5 = vcmp.gt.f32.partialorder %v9720_v18, 20.0  ;;  %vm2084_vm7 = vcmp.gt.f32.partialorder %v9741_v10, 20.0 }
 0x1bb   :  { %v701_v49 = vadd.f32 %v700_v39, %v687_v55  ;;  %v770_v50 = vpop.f32.mrf.mxu2  ;;  %13077 = vst [vmem:[#allocation73_spill] sm:$0xff] %v9809_v3  ;;  %v689_v39 = vadd.f32 %v9734_v20, %v9052_v17  ;;  %v991_v40 = vadd.f32 1.0, %v8096_v26  ;;  %8105 = vrcp.f32 %v1992_v16 }
 0x1bc   :  { %v771_v6 = vadd.f32 %v770_v50, %v9091_v37  ;;  %v8098_v34 = vpop.eup %8097  ;;  %v2748_v51 = vmul.f32 1.442695, %v2691_v61 }
 0x1bd   :  { %v835_v7 = vmul.f32 %v9124_v25, %v701_v49  ;;  %v1717_v50 = vmul.f32 %v9416_v47, %v701_v49  ;;  %v2562_v20 = vmul.f32 %v9659_v59, %v701_v49  ;;  %v9836_v26 = vmul.f32 %v991_v40, %v991_v40 }
 0x1be   :  { %v9820_v11 = vadd.f32 %v784_v23, %v771_v6  ;;  %v8100_v6 = vpop.eup %8099  ;;  %v1904_v16 = vadd.f32 1.0, %v8098_v34 }
 0x1bf   :  { %v9792_v24 = vadd.f32 %v13062_v56, %v835_v7  ;;  %v786_v43 = vpop.f32.mrf.mxu0  ;;  %v9827_v46 = vadd.f32 %v9425_v30, %v1717_v50  ;;  %v7545_v50 = vadd.f32 -1.0, %v9774_v48  ;;  %v1066_v55 = vadd.f32 1.0, %v9836_v26 }
 0x1c0   :  { %v838_v23 = vmul.f32 %v9124_v25, %v9820_v11  ;;  %v1934_v54 = vmul.f32 %v1904_v16, %v1904_v16 }
 0x1c1   :  { %v915_v52 = vmin.f32 %v9792_v24, 20.0  ;;  %v1813_v61 = vmin.f32 %v9827_v46, 20.0  ;;  %v1114_v48 = vmul.f32 %v8100_v6, %v7545_v50  ;;  %vm1140_vm6 = vcmp.gt.f32.partialorder %v9792_v24, 20.0 }
 0x1c2   :  { %v702_v5 = vpop.f32.mrf.mxu3  ;;  %vm2083_vm12 = vcmp.gt.f32.partialorder %v9827_v46, 20.0 }
 0x1c3   :  { %v956_v60 = vmul.f32 1.442695, %v915_v52  ;;  %v9818_v7 = vadd.f32 %v702_v5, %v689_v39  ;;  %v772_v13 = vpop.f32.mrf.mxu2  ;;  %v841_v52 = vmul.f32 %v13061_v44, %v9805_v36  ;;  %v9842_v39 = vadd.f32 %v13062_v56, %v838_v23 }
 0x1c4   :  { %v773_v27 = vadd.f32 %v772_v13, %v9052_v17  ;;  %v7591_v13 = vadd.f32 -1.0, %v1932_v28  ;;  %v7550_v28 = vadd.f32 -1.0, %v9778_v45  ;;  %v1859_v6 = vmul.f32 1.442695, %v1813_v61 }
 0x1c5   :  { %13078 = vst [vmem:[#allocation74_spill] sm:$0xff] %v9818_v7  ;;  %8107 = vpow2.f32 %v956_v60  ;;  %v840_v33 = vmul.f32 %v13061_v44, %v9818_v7  ;;  %v9844_v60 = vpop.eup %8101  ;;  %v9854_v40 = vadd.f32 %v13065_v14, %v841_v52  ;;  %v918_v34 = vmin.f32 %v9842_v39, 20.0 }
 0x1c6   :  { %8109 = vrcp.f32 %v2929_v9  ;;  %v9834_v49 = vadd.f32 %v786_v43, %v773_v27  ;;  %v9849_v27 = vadd.f32 %v9684_v53, %v2562_v20  ;;  %v8104_v9 = vpop.eup %8103  ;;  %v1164_v2 = vsel %vm1139_vm15, 1.0, %v1114_v48 }
 0x1c7   :  { %v9839_v5 = vadd.f32 %v13065_v14, %v840_v33  ;;  %v8106_v33 = vpop.eup %8105  ;;  %8111 = vpow2.f32 %v2748_v51  ;;  %v962_v7 = vmul.f32 1.442695, %v918_v34  ;;  %v1119_v58 = vmul.f32 %v8104_v9, %v7550_v28 }
 0x1c8   :  { %13079 = vst [vmem:[#allocation75_spill] sm:$0xff] %v9834_v49  ;;  %v843_v20 = vmul.f32 %v13061_v44, %v9834_v49  ;;  %v2690_v57 = vmin.f32 %v9849_v27, 20.0  ;;  %v921_v45 = vmin.f32 %v9854_v40, 20.0  ;;  %v1720_v51 = vmul.f32 %v9416_v47, %v9820_v11 }
 0x1c9   :  { %v920_v43 = vmin.f32 %v9839_v5, 20.0  ;;  %v2052_v50 = vmul.f32 %v8106_v33, %v7591_v13  ;;  %v1994_v34 = vadd.f32 1.0, %v1934_v54  ;;  %v1189_v48 = vmul.f32 %v1164_v2, %v9662_v8 }
 0x1ca   :  { %v9868_v16 = vadd.f32 %v13065_v14, %v843_v20  ;;  %v7547_v2 = vadd.f32 -1.0, %v9836_v26  ;;  %vm1145_vm8 = vcmp.gt.f32.partialorder %v9839_v5, 20.0  ;;  %vm1143_vm9 = vcmp.gt.f32.partialorder %v9842_v39, 20.0 }
 0x1cb   :  { %v8108_v23 = vpop.eup %8107  ;;  %v966_v36 = vmul.f32 1.442695, %v920_v43  ;;  %vm3050_vm13 = vcmp.gt.f32.partialorder %v9849_v27, 20.0  ;;  %vm1279_vm15 = vcmask 1041408  }
 0x1cc   :  { %v8110_v52 = vpop.eup %8109  ;;  %v990_v63 = vadd.f32 1.0, %v8108_v23  ;;  %v2746_v23 = vmul.f32 1.442695, %v2690_v57  ;;  %v923_v33 = vmin.f32 %v9868_v16, 20.0  ;;  %vm1148_vm10 = vcmp.gt.f32.partialorder %v9868_v16, 20.0 }
 0x1cd   :  { %8113 = vpow2.f32 %v966_v36  ;;  %v3009_v9 = vmul.f32 %v8110_v52, %v7638_v1  ;;  %v8112_v61 = vpop.eup %8111  ;;  %v1169_v36 = vsel %vm1144_vm0, 1.0, %v1119_v58  ;;  %v9882_v1 = vsel %vm2082_vm3, 1.0, %v2052_v50  ;;  %vm10037_vm3 = vmneg %vm1279_vm15 }
 0x1ce   :  { %v1015_v49 = vmul.f32 %v990_v63, %v990_v63  ;;  %8115 = vpow2.f32 %v962_v7  ;;  %v968_v63 = vmul.f32 1.442695, %v921_v45  ;;  %v9876_v7 = vadd.f32 %v9425_v30, %v1720_v51 }
 0x1cf   :  { %8117 = vrcp.f32 %v1066_v55  ;;  %v9885_v57 = vsel %vm3049_vm4, 1.0, %v3009_v9  ;;  %v756_v55 = vpop.f32.mrf.mxu1  ;;  %v972_v20 = vmul.f32 1.442695, %v923_v33  ;;  %v2811_v8 = vadd.f32 1.0, %v8112_v61 }
 0x1d0   :  { %v1065_v28 = vadd.f32 1.0, %v1015_v49  ;;  %8119 = vpow2.f32 %v1859_v6  ;;  %13080 = vst [vmem:[#allocation76_spill] sm:$0xff] %v9876_v7  ;;  %v7593_v33 = vadd.f32 -1.0, %v1934_v54  ;;  %vm3048_vm4 = vcmp.gt.f32.partialorder %v9652_v32, 20.0 }
 0x1d2   :  { %8121 = vrcp.f32 %v1065_v28 }
 0x1d3   :  { %v8114_v58 = vpop.eup %8113  ;;  %8123 = vrcp.f32 %v1994_v34 }
 0x1d4   :  { %v8116_v52 = vpop.eup %8115  ;;  %8125 = vpow2.f32 %v2746_v23  ;;  %v995_v6 = vadd.f32 1.0, %v8114_v58 }
 0x1d5   :  { %v8118_v51 = vpop.eup %8117  ;;  %8127 = vpow2.f32 %v968_v63  ;;  %v993_v50 = vadd.f32 1.0, %v8116_v52 }
 0x1d6   :  { %v742_v43 = vpop.f32.mrf.mxu3  ;;  %v1020_v9 = vmul.f32 %v995_v6, %v995_v6  ;;  %8129 = vpow2.f32 %v972_v20  ;;  %v8120_v61 = vpop.eup %8119  ;;  %v1116_v63 = vmul.f32 %v8118_v51, %v7547_v2 }
 0x1d7   :  { %v743_v13 = vadd.f32 %v742_v43, %v9091_v37  ;;  %v9888_v37 = vmul.f32 %v1169_v36, %v9676_v15  ;;  %v1816_v43 = vmin.f32 %v9876_v7, 20.0  ;;  %v2565_v15 = vmul.f32 %v9659_v59, %v9820_v11 }
 0x1d8   :  { %v7546_v36 = vadd.f32 -1.0, %v1015_v49  ;;  %v1018_v28 = vmul.f32 %v993_v50, %v993_v50  ;;  %v1070_v58 = vadd.f32 1.0, %v1020_v9  ;;  %v1903_v6 = vadd.f32 1.0, %v8120_v61 }
 0x1d9   :  { %v9891_v45 = vadd.f32 %v756_v55, %v743_v13  ;;  %v8122_v13 = vpop.eup %8121  ;;  %v1865_v52 = vmul.f32 1.442695, %v1816_v43 }
 0x1da   :  { %v8124_v26 = vpop.eup %8123  ;;  %v1115_v55 = vmul.f32 %v8122_v13, %v7546_v36  ;;  %v1068_v20 = vadd.f32 1.0, %v1018_v28  ;;  %8131 = vrcp.f32 %v1070_v58  ;;  %v9925_v13 = vmul.f32 %v1903_v6, %v1903_v6 }
 0x1db   :  { %v837_v34 = vmul.f32 %v9124_v25, %v9891_v45  ;;  %v1719_v23 = vmul.f32 %v9416_v47, %v9891_v45  ;;  %v9906_v25 = vadd.f32 %v9684_v53, %v2565_v15  ;;  %v8126_v49 = vpop.eup %8125  ;;  %v9920_v15 = vsel %vm1141_vm5, 1.0, %v1116_v63 }
 0x1dc   :  { %v8128_v54 = vpop.eup %8127  ;;  %v1165_v51 = vsel %vm1140_vm6, 1.0, %v1115_v55  ;;  %8133 = vrcp.f32 %v1068_v20  ;;  %v2054_v2 = vmul.f32 %v8124_v26, %v7593_v33  ;;  %v7551_v63 = vadd.f32 -1.0, %v1020_v9 }
 0x1dd   :  { %v9903_v11 = vadd.f32 %v13062_v56, %v837_v34  ;;  %v9910_v47 = vadd.f32 %v9425_v30, %v1719_v23  ;;  %v9913_v56 = vmul.f32 %v2811_v8, %v2811_v8  ;;  %v8130_v43 = vpop.eup %8129  ;;  %v1190_v30 = vmul.f32 %v1165_v51, %v9792_v24 }
 0x1de   :  { %v2810_v34 = vadd.f32 1.0, %v8126_v49  ;;  %v998_v61 = vadd.f32 1.0, %v8130_v43  ;;  %8135 = vpow2.f32 %v1865_v52  ;;  %v744_v55 = vpop.f32.mrf.mxu3  ;;  %v996_v20 = vadd.f32 1.0, %v8128_v54 }
 0x1df   :  { %v917_v50 = vmin.f32 %v9903_v11, 20.0  ;;  %v1208_v23 = vpack.c.bf16 %v1190_v30, %v1189_v48  ;;  %v1815_v58 = vmin.f32 %v9910_v47, 20.0  ;;  %v7549_v51 = vadd.f32 -1.0, %v1018_v28  ;;  %v758_v30 = vpop.f32.mrf.mxu1 }
 0x1e0   :  { %v1023_v7 = vmul.f32 %v998_v61, %v998_v61  ;;  %v8132_v33 = vpop.eup %8131  ;;  %v9928_v8 = vmul.f32 %v2810_v34, %v2810_v34  ;;  %v745_v6 = vadd.f32 %v744_v55, %v9052_v17  ;;  %v13081_v52 = vunpack.c.h.b16 %v9502_v21 }
 0x1e1   :  { %v960_v36 = vmul.f32 1.442695, %v917_v50  ;;  %v1244_v24 = vunpack.c.l.b16 %v1208_v23  ;;  %v1245_v26 = vunpack.c.h.b16 %v1208_v23  ;;  %v1863_v49 = vmul.f32 1.442695, %v1815_v58 }
 0x1e2   :  { %v8134_v3 = vpop.eup %8133  ;;  %v1120_v50 = vmul.f32 %v8132_v33, %v7551_v63  ;;  %v1073_v48 = vadd.f32 1.0, %v1023_v7  ;;  %v2564_v9 = vmul.f32 %v9659_v59, %v9891_v45  ;;  %v1993_v28 = vadd.f32 1.0, %v9925_v13 }
 0x1e3   :  { %8137 = vpow2.f32 %v960_v36  ;;  %v9933_v43 = vpack.c.b16 %v1245_v26, %v13081_v52  ;;  %v1118_v54 = vmul.f32 %v8134_v3, %v7549_v51  ;;  %v9940_v61 = vadd.f32 %v758_v30, %v745_v6 }
 0x1e4   :  { %8139 = vpow2.f32 %v1863_v49  ;;  %v1170_v34 = vsel %vm1145_vm8, 1.0, %v1120_v50  ;;  %v8136_v36 = vpop.eup %8135  ;;  %v2114_v17 = vsel %vm2084_vm7, 1.0, %v2054_v2  ;;  %v13082_v59 = vunpack.c.l.b16 %v9502_v21 }
 0x1e5   :  { %8141 = vrcp.f32 %v1073_v48  ;;  %v1195_v23 = vmul.f32 %v1170_v34, %v9839_v5  ;;  %v1168_v3 = vsel %vm1143_vm9, 1.0, %v1118_v54  ;;  %v2930_v55 = vadd.f32 1.0, %v9928_v8 }
 0x1e6   :  { %v9949_v45 = vpack.c.b16 %v1244_v24, %v13082_v59  ;;  %v1193_v63 = vmul.f32 %v1168_v3, %v9842_v39  ;;  %v842_v33 = vmul.f32 %v13061_v44, %v9940_v61  ;;  %v1333_v26 = vrot.slane %v9933_v43, 2 }
 0x1e7   :  { %v9957_v2 = vpack.c.bf16 %v1195_v23, %v9888_v37  ;;  %v9960_v51 = vadd.f32 %v9684_v53, %v2564_v9  ;;  %8143 = vrcp.f32 %v1993_v28  ;;  %v1021_v24 = vmul.f32 %v996_v20, %v996_v20 }
 0x1e8   :  { %v12951_v21 = vrot.slane %v9949_v45, 2  ;;  %v9964_v49 = vadd.f32 %v13065_v14, %v842_v33  ;;  %v13083_v44 = vrot.slane %v9714_v0, 2  ;;  %v7554_v48 = vadd.f32 -1.0, %v1023_v7 }
 0x1e9   :  { %v8138_v58 = vpop.eup %8137  ;;  %v1249_v37 = vunpack.c.l.b16 %v9957_v2  ;;  %v13084_v53 = vrot.slane %v9707_v22, 2  ;;  %8145 = vrcp.f32 %v2930_v55  ;;  %v1210_v52 = vpack.c.bf16 %v1193_v63, %v1193_v63 }
 0x1ea   :  { %v992_v5 = vadd.f32 1.0, %v8138_v58  ;;  %v1334_v39 = vsel %vm1325_vm11, %v13083_v44, %v1333_v26  ;;  %v8140_v50 = vpop.eup %8139  ;;  %v922_v9 = vmin.f32 %v9964_v49, 20.0  ;;  %v2692_v7 = vmin.f32 %v9960_v51, 20.0 }
 0x1eb   :  { %v1332_v20 = vsel %vm1325_vm11, %v13084_v53, %v12951_v21  ;;  %1513 = vmatpush.bf16.msra.mxu0 %v1334_v39  ;;  %v8142_v14 = vpop.eup %8141  ;;  %v1905_v54 = vadd.f32 1.0, %v8140_v50  ;;  %v9978_v30 = vpack.c.b16 %v1249_v37, %v1249_v37  ;;  %v1071_v34 = vadd.f32 1.0, %v1021_v24 }
 0x1ec   :  { %v1017_v6 = vmul.f32 %v992_v5, %v992_v5  ;;  %1485 = vmatpush.bf16.msrb.mxu1 %v1332_v20  ;;  %v1123_v28 = vmul.f32 %v8142_v14, %v7554_v48  ;;  %v970_v59 = vmul.f32 1.442695, %v922_v9  ;;  %v1906_v58 = vadd.f32 1.0, %v8136_v36 }
 0x1ed   :  { %v1935_v3 = vmul.f32 %v1905_v54, %v1905_v54  ;;  %v1305_v63 = vrot.slane %v9949_v45, 4  ;;  %v1313_v33 = vrot.slane %v9978_v30, 4  ;;  %v8144_v5 = vpop.eup %8143  ;;  %v1248_v44 = vunpack.c.l.b16 %v1210_v52 }
 0x1ee   :  { %v1067_v23 = vadd.f32 1.0, %v1017_v6  ;;  %v1173_v55 = vsel %vm1148_vm10, 1.0, %v1123_v28  ;;  %v13085_v37 = vmin.f32 %v9906_v25, 20.0  ;;  %v2750_v53 = vmul.f32 1.442695, %v2692_v7 }
 0x1ef   :  { %v1198_v39 = vmul.f32 %v1173_v55, %v9868_v16  ;;  %v1995_v50 = vadd.f32 1.0, %v1935_v3  ;;  %v1314_v36 = vsel %vm163_vm1, %v1305_v63, %v1313_v33  ;;  %v8146_v20 = vpop.eup %8145  ;;  %v7592_v14 = vadd.f32 -1.0, %v9925_v13 }
 0x1f0   :  { %8147 = vrcp.f32 %v1067_v23  ;;  %1486 = vmatpush.bf16.msrb.mxu1 %v9752_v19  ;;  %v2752_v48 = vmul.f32 1.442695, %v13085_v37  ;;  %v13086_v52 = vrot.slane %v9714_v0, 2  ;;  %v1191_v9 = vmul.f32 %v9920_v15, %v9720_v18 }
 0x1f1   :  { %8149 = vpow2.f32 %v970_v59  ;;  %v1213_v54 = vpack.c.bf16 %v1198_v39, %v1198_v39  ;;  %v2144_v19 = vmul.f32 %v2114_v17, %v9741_v10  ;;  %v7639_v28 = vadd.f32 -1.0, %v9928_v8 }
 0x1f2   :  { %8151 = vrcp.f32 %v1995_v50  ;;  %v1419_v16 = vsel %vm1325_vm11, %v1314_v36, %v13086_v52  ;;  %v9999_v7 = vmul.f32 %v1906_v58, %v1906_v58  ;;  %v2053_v23 = vmul.f32 %v8144_v5, %v7592_v14 }
 0x1f3   :  { %1514 = vmatpush.bf16.msra.mxu0 %v1419_v16  ;;  %8153 = vrcp.f32 %v1071_v34  ;;  %v10002_v13 = vpack.c.b16 %v1248_v44, %v9732_v62  ;;  %v1253_v59 = vunpack.c.l.b16 %v1213_v54  ;;  %v3010_v55 = vmul.f32 %v8146_v20, %v7639_v28 }
 0x1f4   :  { %1487 = vmatpush.bf16.msrb.mxu1 %v9210_v4  ;;  %v7548_v33 = vadd.f32 -1.0, %v1017_v6  ;;  %8155 = vpow2.f32 %v2750_v53  ;;  %v10008_v18 = vsel %vm163_vm1, %v9717_v31, %v9210_v4  ;;  %v7552_v15 = vadd.f32 -1.0, %v1021_v24 }
 0x1f5   :  { %8157 = vpow2.f32 %v2752_v48  ;;  %v10010_v8 = vpack.c.b16 %v1253_v59, %v1253_v59  ;;  %v13087_v17 = vrot.slane %v9707_v22, 4  ;;  %v1996_v58 = vadd.f32 1.0, %v9999_v7 }
 0x1f6   :  { %v8148_v10 = vpop.eup %8147  ;;  %vm1142_vm14 = vcmp.gt.f32.partialorder %v9903_v11, 20.0  ;;  %v7594_v6 = vadd.f32 -1.0, %v1935_v3  ;;  %v2113_v39 = vsel %vm2083_vm12, 1.0, %v2053_v23  ;;  %v1374_v50 = vrot.slane %v10002_v13, 4 }
 0x1f7   :  { %v1306_v62 = vsel %vm163_vm1, %v13087_v17, %v1305_v63  ;;  %v8150_v34 = vpop.eup %8149  ;;  %v1117_v5 = vmul.f32 %v8148_v10, %v7548_v33  ;;  %v1376_v37 = vrot.slane %v10010_v8, 4  ;;  %v3090_v63 = vsel %vm3050_vm13, 1.0, %v3010_v55 }
 0x1f8   :  { %1515 = vmatpush.bf16.msra.mxu0 %v1306_v62  ;;  %v8152_v44 = vpop.eup %8151  ;;  %v997_v24 = vadd.f32 1.0, %v8150_v34  ;;  %1488 = vmatpush.bf16.msrb.mxu1 %v10008_v18  ;;  %vm2085_vm0 = vcmp.gt.f32.partialorder %v9910_v47, 20.0  ;;  %v2143_v52 = vmul.f32 %v2113_v39, %v9827_v46  ;;  %8159 = vrcp.f32 %v1996_v58 }
 0x1f9   :  { %v1167_v48 = vsel %vm1142_vm14, 1.0, %v1117_v5  ;;  %v2055_v53 = vmul.f32 %v8152_v44, %v7594_v6  ;;  %v8154_v36 = vpop.eup %8153  ;;  %v1377_v14 = vsel %vm163_vm1, %v1374_v50, %v1376_v37  ;;  %v1250_v59 = vunpack.c.h.b16 %v9957_v2 }
 0x1fa   :  { %v1192_v3 = vmul.f32 %v1167_v48, %v9903_v11  ;;  %v1022_v20 = vmul.f32 %v997_v24, %v997_v24  ;;  %v8156_v54 = vpop.eup %8155  ;;  %v1481_v28 = vsel %vm1325_vm11, %v1377_v14, 0  ;;  %v2142_v10 = vmul.f32 %v9882_v1, %v9681_v35  ;;  %v7557_v48 = vld [vmem:[#allocation2 + $0x50] sm:$0xf]  ;;  %v13095_v14 = vld [vmem:[#allocation70_spill] sm:$0xff] }
 0x1fb   :  { %v2115_v16 = vsel %vm2085_vm0, 1.0, %v2055_v53  ;;  %v8158_v23 = vpop.eup %8157  ;;  %1527 = vmatpush.bf16.msra.mxu2 %v1481_v28  ;;  %v3130_v46 = vmul.f32 %v3090_v63, %v9849_v27  ;;  %v1121_v17 = vmul.f32 %v8154_v36, %v7552_v15  ;;  %v3008_v2 = vmul.f32 %v9844_v60, %v9816_v12  ;;  %v7873_v53 = vld [vmem:[#allocation2 + $0x5c] sm:$0x30] }
 0x1fc   :  { %1516 = vmatpush.bf16.msra.mxu0 %v9758_v29  ;;  %v1209_v55 = vpack.c.bf16 %v1192_v3, %v1191_v9  ;;  %v2145_v11 = vmul.f32 %v2115_v16, %v9910_v47  ;;  %v1072_v33 = vadd.f32 1.0, %v1022_v20  ;;  %1489 = vmatpush.bf16.msrb.mxu1 %v9717_v31  ;;  %v2812_v62 = vadd.f32 1.0, %v8156_v54  ;;  %v13134_v29 = vld [vmem:[#allocation45_spill] sm:$0xff] }
 0x1fd   :  { %v3129_v34 = vmul.f32 %v9885_v57, %v9689_v42  ;;  %v13090_v27 = vrot.slane %v9761_v38, 4  ;;  %v10051_v15 = vpack.c.bf16 %v2143_v52, %v2142_v10  ;;  %v2931_v58 = vadd.f32 1.0, %v9913_v56 }
 0x1fe   :  { %v1246_v9 = vunpack.c.l.b16 %v1209_v55  ;;  %v10043_v47 = vpack.c.bf16 %v2145_v11, %v2144_v19  ;;  %8161 = vrcp.f32 %v1072_v33  ;;  %v1247_v35 = vunpack.c.h.b16 %v1209_v55  ;;  %v8160_v57 = vpop.eup %8159  ;;  %v13098_v11 = vld [vmem:[#allocation76_spill] sm:$0xff] }
 0x1ff   :  { %v1375_v1 = vsel %vm163_vm1, %v13090_v27, %v1374_v50  ;;  %v10054_v12 = vpack.c.b16 %v1250_v59, %v1250_v59  ;;  %v13091_v42 = vunpack.c.l.b16 %v9603_v41  ;;  %vm1146_vm5 = vcmp.gt.f32.partialorder %v9854_v40, 20.0  ;;  %v13093_v50 = vld [vmem:[#allocation73_spill] sm:$0xff] }
 0x200   :  { %1517 = vmatpush.bf16.msra.mxu0 %v9717_v31  ;;  %7564 = vmatpush.bf16.msk.msrb.mxu1 %vm10037_vm3, %v9717_v31  ;;  %v2209_v19 = vunpack.c.h.b16 %v10051_v15  ;;  %v10066_v5 = vpack.c.bf16 %v3130_v46, %v3129_v34  ;;  %v3088_v6 = vsel %vm3048_vm4, 1.0, %v3008_v2  ;;  %v1171_v44 = vsel %vm1146_vm5, 1.0, %v1121_v17  ;;  %v13099_v34 = vld [vmem:[#allocation68_spill] sm:$0xff] }
 0x201   :  { %1528 = vmatpush.bf16.msra.mxu2 %v1375_v1  ;;  %v10061_v60 = vpack.c.b16 %v1246_v9, %v13091_v42  ;;  %v2813_v39 = vadd.f32 1.0, %v8158_v23  ;;  %v10068_v24 = vmul.f32 %v2812_v62, %v2812_v62  ;;  %v2165_v37 = vpack.c.bf16 %v13093_v50, %v13093_v50  ;;  %v13101_v42 = vld [vmem:[#allocation69_spill] sm:$0xff] }
 0x202   :  { %13092 = vst [vmem:[#allocation77_spill] sm:$0xff] %v10066_v5  ;;  %v7553_v63 = vadd.f32 -1.0, %v1022_v20  ;;  %v13094_v36 = vunpack.c.h.b16 %v9603_v41  ;;  %v13096_v54 = vunpack.c.h.b16 %v13095_v14  ;;  %v7595_v16 = vadd.f32 -1.0, %v9999_v7 }
 0x203   :  { %8163 = vrcp.f32 %v2931_v58  ;;  %v13097_v23 = vmov 0   ;;  %v12949_v20 = vrot.slane %v10061_v60, 2  ;;  %v1315_v59 = vrot.slane %v10054_v12, 4 }
 0x204   :  { %7567 = vmatpush.bf16.msk.msra.mxu0 %vm10037_vm3, %v9717_v31  ;;  %v10077_v3 = vpack.c.b16 %v1247_v35, %v13094_v36  ;;  %v10081_v52 = vpack.c.b16 %v2209_v19, %v13096_v54  ;;  %v8162_v28 = vpop.eup %8161  ;;  %1491 = vmatpush.bf16.msrb.mxu1 %v13097_v23  ;;  %v10088_v55 = vmul.f32 %v3088_v6, %v9652_v32  ;;  %vm2086_vm6 = vcmp.gt.f32.partialorder %v13098_v11, 20.0 }
 0x205   :  { %v1196_v41 = vmul.f32 %v1171_v44, %v9854_v40  ;;  %v1122_v33 = vmul.f32 %v8162_v28, %v7553_v63  ;;  %v2056_v10 = vmul.f32 %v8160_v57, %v7595_v16  ;;  %v2932_v46 = vadd.f32 1.0, %v10068_v24 }
 0x206   :  { %vm1147_vm7 = vcmp.gt.f32.partialorder %v9964_v49, 20.0  ;;  %v10094_v7 = vor.u32 %v7873_v53, %v7557_v48  ;;  %v1307_v17 = vrot.slane %v9933_v43, 4  ;;  %v12950_v32 = vrot.slane %v10077_v3, 2 }
 0x207   :  { %v1172_v2 = vsel %vm1147_vm7, 1.0, %v1122_v33  ;;  %v2116_v9 = vsel %vm2086_vm6, 1.0, %v2056_v10  ;;  %v2853_v62 = vmul.f32 %v2813_v39, %v2813_v39  ;;  %v13100_v35 = vrot.slane %v13099_v34, 2 }
 0x208   :  { %1519 = vmatpush.bf16.msra.mxu0 %v13097_v23  ;;  %v1197_v40 = vmul.f32 %v1172_v2, %v9964_v49  ;;  %1492 = vmatpush.bf16.msrb.mxu1 %v13097_v23  ;;  %v1316_v1 = vsel %vm163_vm1, %v1307_v17, %v1315_v59  ;;  %v2146_v58 = vmul.f32 %v2116_v9, %v13098_v11  ;;  %v1329_v57 = vrot.slane %v13101_v42, 2  ;;  %v13103_v11 = vld [vmem:[#allocation71_spill] sm:$0xff] }
 0x209   :  { %v1336_v27 = vsel %vm1325_vm11, %v13100_v35, %v12949_v20  ;;  %v1304_v19 = vrot.slane %v13101_v42, 4  ;;  %v1361_v6 = vrot.slane %v13101_v42, 6  ;;  %v1303_v49 = vrot.slane %v13099_v34, 4  ;;  %v8164_v44 = vpop.eup %8163 }
 0x20a   :  { %v1212_v39 = vpack.c.bf16 %v1197_v40, %v1196_v41  ;;  %v1281_v50 = vrot.slane %v9707_v22, 6  ;;  %v2168_v63 = vpack.c.bf16 %v2146_v58, %v2146_v58  ;;  %v2207_v48 = vunpack.c.l.b16 %v2165_v37 }
 0x20b   :  { %1493 = vmatmul.bf16.vlgmr.msrb.gmra.mxu1 %v10094_v7  ;;  %v13102_v53 = vmov %v13100_v35  ;;  %v1338_v54 = vsel %vm1325_vm11, %v1329_v57, %v12950_v32  ;;  %v2933_v16 = vadd.f32 1.0, %v2853_v62  ;;  %v3162_v28 = vpack.c.bf16 %v10088_v55, %v10088_v55 }
 0x20c   :  { %1541 = vmatpush.bf16.msra.mxu1 %v1336_v27  ;;  %1520 = vmatpush.bf16.msra.mxu0 %v13097_v23  ;;  %v1423_v36 = vsel %vm1325_vm11, %v1316_v1, %v13102_v53  ;;  %8165 = vrcp.f32 %v2932_v46  ;;  %v1251_v59 = vunpack.c.l.b16 %v1212_v39  ;;  %v1252_v41 = vunpack.c.h.b16 %v1212_v39 }
 0x20d   :  { %v2212_v37 = vunpack.c.l.b16 %v2168_v63  ;;  %vm3051_vm8 = vcmp.gt.f32.partialorder %v13103_v11, 20.0  ;;  %v1285_v33 = vrot.slane %v9949_v45, 6  ;;  %v1291_v10 = vrot.slane %v9978_v30, 6 }
 0x20e   :  { %8167 = vrcp.f32 %v2933_v16  ;;  %vm3052_vm9 = vcmp.gt.f32.partialorder %v9960_v51, 20.0  ;;  %v10127_v2 = vpack.c.b16 %v1252_v41, %v1252_v41  ;;  %v10130_v9 = vpack.c.b16 %v1251_v59, %v1251_v59 }
 0x20f   :  { %1521 = vmatmul.bf16.vlgmr.msra.gmra.mxu0 %v10094_v7  ;;  %v10132_v46 = vpack.c.b16 %v2212_v37, %v2207_v48  ;;  %v7640_v40 = vadd.f32 -1.0, %v9913_v56  ;;  %v1311_v35 = vrot.slane %v10077_v3, 4  ;;  %v1363_v27 = vrot.slane %v10077_v3, 6 }
 0x210   :  { %1569 = vmatpush.bf16.msrb.mxu0 %v1338_v54  ;;  %1542 = vmatpush.bf16.msra.mxu1 %v1423_v36  ;;  %v13105_v1 = vrot.slane %v9714_v0, 4  ;;  %v1309_v39 = vrot.slane %v10061_v60, 4  ;;  %v1319_v63 = vrot.slane %v10127_v2, 4  ;;  %v1367_v53 = vrot.slane %v10127_v2, 6 }
 0x211   :  { %13104 = vst [vmem:[#allocation73_spill] sm:$0xff] %v10132_v46  ;;  %v1317_v36 = vrot.slane %v10130_v9, 4  ;;  %v3011_v48 = vmul.f32 %v8164_v44, %v7640_v40  ;;  %v1292_v56 = vsel %vm1279_vm15, %v1285_v33, %v1291_v10  ;;  %v1286_v54 = vsel %vm1279_vm15, %v1281_v50, %v1285_v33 }
 0x212   :  { %v1308_v58 = vsel %vm163_vm1, %v13105_v1, %v1307_v17  ;;  %v1287_v16 = vrot.slane %v9933_v43, 6  ;;  %v1293_v17 = vrot.slane %v10054_v12, 6  ;;  %v8166_v59 = vpop.eup %8165  ;;  %v10151_v41 = vsel %vm163_vm1, %v1311_v35, %v1319_v63 }
 0x213   :  { %v1368_v37 = vsel %vm1279_vm15, %v1363_v27, %v1367_v53  ;;  %v1318_v1 = vsel %vm163_vm1, %v1309_v39, %v1317_v36  ;;  %v7641_v44 = vadd.f32 -1.0, %v10068_v24  ;;  %v1478_v10 = vsel %vm1325_vm11, %v10151_v41, 0 }
 0x214   :  { %1543 = vmatpush.bf16.msra.mxu1 %v1308_v58  ;;  %v8168_v40 = vpop.eup %8167  ;;  %v13106_v33 = vrot.slane %v9761_v38, 4  ;;  %v1295_v20 = vrot.slane %v10130_v9, 6  ;;  %v7642_v32 = vadd.f32 -1.0, %v2853_v62  ;;  %1499 = vmatpush.bf16.msra.mxu3 %v1478_v10  ;;  %v1427_v63 = vsel %vm1325_vm11, %v1318_v1, %v1329_v57 }
 0x215   :  { %v13107_v53 = vrot.slane %v9714_v0, 4  ;;  %v1339_v24 = vrot.slane %v10002_v13, 2  ;;  %v3091_v21 = vsel %vm3051_vm8, 1.0, %v3011_v48  ;;  %1570 = vmatpush.bf16.msrb.mxu0 %v1427_v63  ;;  %v1289_v62 = vrot.slane %v10061_v60, 6 }
 0x216   :  { %v1446_v58 = vsel %vm163_vm1, %v1368_v37, %v13106_v33  ;;  %v10172_v37 = vsel %vm163_vm1, %v1304_v19, %v1311_v35  ;;  %v3012_v10 = vmul.f32 %v8166_v59, %v7641_v44  ;;  %v3013_v57 = vmul.f32 %v8168_v40, %v7642_v32  ;;  %v13108_v40 = vld [vmem:[#allocation66_spill] sm:$0xff] }
 0x217   :  { %1529 = vmatpush.bf16.msra.mxu2 %v1446_v58  ;;  %v1402_v36 = vsel %vm163_vm1, %v1292_v56, %v13107_v53  ;;  %v1364_v56 = vsel %vm1279_vm15, %v1361_v6, %v1363_v27  ;;  %v1310_v1 = vsel %vm163_vm1, %v1303_v49, %v1309_v39  ;;  %v1349_v48 = vrot.slane %v10010_v8, 2 }
 0x218   :  { %1544 = vmatpush.bf16.msra.mxu1 %v1402_v36  ;;  %vm3053_vm10 = vcmp.gt.f32.partialorder %v9906_v25, 20.0  ;;  %v1296_v35 = vsel %vm1279_vm15, %v1289_v62, %v1295_v20  ;;  %v3092_v33 = vsel %vm3052_vm9, 1.0, %v3012_v10  ;;  %v3131_v59 = vmul.f32 %v3091_v21, %v13103_v11  ;;  %1500 = vmatpush.bf16.msra.mxu3 %v10172_v37  ;;  %v13112_v36 = vld [vmem:[#allocation32_spill] sm:$0xff] }
 0x219   :  { %v3093_v32 = vsel %vm3053_vm10, 1.0, %v3013_v57  ;;  %v10191_v27 = vsel %vm1325_vm11, %v1339_v24, %v1349_v48  ;;  %v3132_v39 = vmul.f32 %v3092_v33, %v9960_v51  ;;  %1571 = vmatpush.bf16.msrb.mxu0 %v1310_v1  ;;  %v1294_v20 = vsel %vm1279_vm15, %v1287_v16, %v1293_v17  ;;  %v13109_v51 = vld [vmem:[#allocation67_spill] sm:$0xff]  ;;  %v13115_v1 = vld [vmem:[#allocation37_spill] sm:$0xff] }
 0x21a   :  { %v3133_v44 = vmul.f32 %v3093_v32, %v9906_v25  ;;  %v1894_v58 = vadd.f32 1.0, %v13108_v40  ;;  %v10204_v63 = vsel %vm163_vm1, %v1296_v35, %v1304_v19  ;;  %v1435_v25 = vsel %vm1279_vm15, %v10130_v9, %v1361_v6  ;;  %v13113_v57 = vld [vmem:[#allocation31_spill] sm:$0xff]  ;;  %v13118_v40 = vld [vmem:[#allocation38_spill] sm:$0xff] }
 0x21b   :  { %1530 = vmatpush.bf16.msra.mxu2 %v1364_v56  ;;  %v10198_v21 = vpack.c.bf16 %v3132_v39, %v3131_v59  ;;  %v1406_v17 = vsel %vm163_vm1, %v1294_v20, %v1303_v49  ;;  %v10218_v53 = vunpack.c.l.b16 %v3162_v28  ;;  %v1889_v10 = vadd.f32 1.0, %v13112_v36  ;;  %v13114_v49 = vld [vmem:[#allocation29_spill] sm:$0xff]  ;;  %v13116_v39 = vld [vmem:[#allocation26_spill] sm:$0xff] }
 0x21c   :  { %1545 = vmatpush.bf16.msra.mxu1 %v1286_v54  ;;  %v3165_v11 = vpack.c.bf16 %v3133_v44, %v3133_v44  ;;  %v1895_v54 = vadd.f32 1.0, %v13109_v51  ;;  %1501 = vmatpush.bf16.msra.mxu3 %v10204_v63  ;;  %v1283_v6 = vrot.slane %v13099_v34, 6  ;;  %v1890_v56 = vadd.f32 1.0, %v13113_v57  ;;  %v13117_v44 = vld [vmem:[#allocation34_spill] sm:$0xff]  ;;  %v7872_v57 = vld [vmem:[#allocation2 + $0x54] sm:$0xf] }
 0x21d   :  { %13110 = vst [vmem:[#allocation70_spill] sm:$0xff] %v10218_v53  ;;  %1572 = vmatpush.bf16.msrb.mxu0 %v1406_v17  ;;  %v1710_v48 = vmul.f32 %v13115_v1, %v13114_v49  ;;  %v1282_v55 = vrot.slane %v9714_v0, 6  ;;  %v1924_v35 = vmul.f32 %v1894_v58, %v1894_v58  ;;  %v1919_v32 = vmul.f32 %v1889_v10, %v1889_v10 }
 0x21e   :  { %v10220_v19 = vunpack.c.l.b16 %v3165_v11  ;;  %v10235_v33 = vsel %vm1279_vm15, %v1283_v6, %v1289_v62  ;;  %v1925_v59 = vmul.f32 %v1895_v54, %v1895_v54  ;;  %v1705_v20 = vmul.f32 %v13117_v44, %v13116_v39  ;;  %v13119_v54 = vld [vmem:[#allocation35_spill] sm:$0xff] }
 0x21f   :  { %1531 = vmatpush.bf16.msra.mxu2 %v1435_v25  ;;  %v1920_v11 = vmul.f32 %v1890_v56, %v1890_v56  ;;  %v10246_v62 = vadd.f32 %v13118_v40, %v1710_v48  ;;  %v1984_v58 = vadd.f32 1.0, %v1924_v35  ;;  %v10250_v25 = vsel %vm1279_vm15, %v10054_v12, %v1283_v6  ;;  %v7559_v56 = vld [vmem:[#allocation2 + $0x60] sm:$0x30] }
 0x220   :  { %13111 = vst [vmem:[#allocation76_spill] sm:$0xff] %v10220_v19  ;;  %7570 = vmatpush.bf16.msk.msra.mxu1 %vm10037_vm3, %v1281_v50  ;;  %1502 = vmatpush.bf16.msra.mxu3 %v10235_v33  ;;  %v1288_v50 = vsel %vm1279_vm15, %v1282_v55, %v1287_v16  ;;  %v1343_v51 = vrot.slane %v10054_v12, 2  ;;  %v1330_v16 = vrot.slane %v9761_v38, 2  ;;  %v10255_v17 = vadd.f32 %v13119_v54, %v1705_v20 }
 0x221   :  { %1573 = vmatpush.bf16.msrb.mxu0 %v1288_v50  ;;  %v1985_v36 = vadd.f32 1.0, %v1925_v59  ;;  %v1388_v10 = vsel %vm1279_vm15, %v9978_v30, %v1282_v55  ;;  %v1979_v1 = vadd.f32 1.0, %v1919_v32  ;;  %v1980_v6 = vadd.f32 1.0, %v1920_v11 }
 0x222   :  { %v1340_v12 = vsel %vm1325_vm11, %v1330_v16, %v1339_v24  ;;  %v1806_v48 = vmin.f32 %v10246_v62, 20.0  ;;  %v10268_v50 = vsel %vm1325_vm11, %v9210_v4, 0  ;;  %8169 = vrcp.f32 %v1984_v58 }
 0x223   :  { %1532 = vmatpush.bf16.msra.mxu2 %v10061_v60  ;;  %v10273_v55 = vor.u32 %v7872_v57, %v7559_v56  ;;  %v1801_v44 = vmin.f32 %v10255_v17, 20.0  ;;  %8171 = vrcp.f32 %v1985_v36  ;;  %vm1474_vm12 = vcmask 1014784  }
 0x224   :  { %1547 = vmatpush.bf16.msra.mxu1 %v13097_v23  ;;  %1503 = vmatpush.bf16.msra.mxu3 %v10250_v25  ;;  %8173 = vrcp.f32 %v1979_v1  ;;  %v1845_v24 = vmul.f32 1.442695, %v1806_v48  ;;  %v1341_v20 = vrot.slane %v9978_v30, 2  ;;  %v7583_v30 = vadd.f32 -1.0, %v1924_v35 }
 0x225   :  { %1574 = vmatpush.bf16.msrb.mxu0 %v1388_v10  ;;  %8175 = vrcp.f32 %v1980_v6  ;;  %v1835_v40 = vmul.f32 1.442695, %v1801_v44  ;;  %v7584_v36 = vadd.f32 -1.0, %v1925_v59  ;;  %v7578_v57 = vadd.f32 -1.0, %v1919_v32  ;;  %v13121_v59 = vld [vmem:[#allocation64_spill] sm:$0xff]  ;;  %v13122_v32 = vld [vmem:[#allocation30_spill] sm:$0xff] }
 0x226   :  { %8177 = vpow2.f32 %v1845_v24  ;;  %v1369_v56 = vrot.slane %v10010_v8, 6  ;;  %vm2074_vm13 = vcmp.gt.f32.partialorder %v13121_v59, 20.0  ;;  %vm2075_vm14 = vcmp.gt.f32.partialorder %v13122_v32, 20.0  ;;  %v13123_v24 = vld [vmem:[#allocation57_spill] sm:$0xff] }
 0x227   :  { %1533 = vmatpush.bf16.msra.mxu2 %v13099_v34  ;;  %v1344_v34 = vsel %vm1325_vm11, %v1333_v26, %v1343_v51  ;;  %v1431_v26 = vsel %vm1325_vm11, %v10151_v41, %v1330_v16  ;;  %v13120_v41 = vrot.slane %v9949_v45, 2  ;;  %8179 = vpow2.f32 %v1835_v40 }
 0x228   :  { %1548 = vmatpush.bf16.msra.mxu1 %v13097_v23  ;;  %1504 = vmatpush.bf16.msra.mxu3 %v9933_v43  ;;  %v8170_v58 = vpop.eup %8169  ;;  %vm2069_vm0 = vcmp.gt.f32.partialorder %v13123_v24, 20.0  ;;  %vm2076_vm5 = vcmp.gt.f32.partialorder %v10246_v62, 20.0  ;;  %vm2071_vm6 = vcmp.gt.f32.partialorder %v10255_v17, 20.0 }
 0x229   :  { %1575 = vmatpush.bf16.msrb.mxu0 %v9949_v45  ;;  %v8172_v51 = vpop.eup %8171  ;;  %v1342_v16 = vsel %vm1325_vm11, %v13120_v41, %v1341_v20  ;;  %v2044_v45 = vmul.f32 %v8170_v58, %v7583_v30  ;;  %v7875_v30 = vld [vmem:[#allocation2 + $0x7c] sm:$0x30] }
 0x22a   :  { %v8174_v54 = vpop.eup %8173  ;;  %v2045_v1 = vmul.f32 %v8172_v51, %v7584_v36  ;;  %v1442_v51 = vsel %vm1279_vm15, %v10010_v8, %v9717_v31 }
 0x22b   :  { %1534 = vmatpush.bf16.msra.mxu2 %v1344_v34  ;;  %1549 = vmatmul.bf16.vlgmr.msra.gmra.mxu1 %v10094_v7  ;;  %v8176_v10 = vpop.eup %8175  ;;  %v2104_v48 = vsel %vm2074_vm13, 1.0, %v2044_v45 }
 0x22c   :  { %1597 = vmatpush.bf16.msrb.mxu1 %v1340_v12  ;;  %1505 = vmatpush.bf16.msra.mxu3 %v9714_v0  ;;  %v2039_v12 = vmul.f32 %v8174_v54, %v7578_v57  ;;  %v8178_v35 = vpop.eup %8177  ;;  %v2105_v34 = vsel %vm2075_vm14, 1.0, %v2045_v1  ;;  %v2134_v54 = vmul.f32 %v2104_v48, %v13121_v59  ;;  %v1362_v57 = vrot.slane %v9761_v38, 6 }
 0x22d   :  { %1576 = vmatpush.bf16.msrb.mxu0 %v9707_v22  ;;  %v7579_v22 = vadd.f32 -1.0, %v1920_v11  ;;  %v8180_v44 = vpop.eup %8179  ;;  %v1896_v40 = vadd.f32 1.0, %v8178_v35  ;;  %v2135_v41 = vmul.f32 %v2105_v34, %v13122_v32  ;;  %v2203_v32 = vunpack.c.l.b16 %v13095_v14  ;;  %v13129_v14 = vld [vmem:[#allocation39_spill] sm:$0xff] }
 0x22e   :  { %7568 = vmatmul.msk.bf16.vlgmr.msra.gmra.mxu2 %vm1474_vm12, %v10273_v55  ;;  %v2099_v20 = vsel %vm2069_vm0, 1.0, %v2039_v12  ;;  %v1891_v36 = vadd.f32 1.0, %v8180_v44  ;;  %v13127_v34 = vrot.slane %v10077_v3, 2 }
 0x22f   :  { %1583 = vmatpush.bf16.msrb.mxu2 %v10268_v50  ;;  %v2040_v6 = vmul.f32 %v8176_v10, %v7579_v22  ;;  %v2129_v10 = vmul.f32 %v2099_v20, %v13123_v24  ;;  %v1926_v22 = vmul.f32 %v1896_v40, %v1896_v40  ;;  %v10323_v45 = vpack.c.bf16 %v2135_v41, %v2134_v54 }
 0x230   :  { %1598 = vmatpush.bf16.msrb.mxu1 %v1431_v26  ;;  %1506 = vmatpush.bf16.msra.mxu3 %v1342_v16  ;;  %v13124_v26 = vld [vmem:[#allocation59_spill] sm:$0xff]  ;;  %v7608_v16 = vld [vmem:[#allocation2 + $0x70] sm:$0xf]  ;;  %v1921_v1 = vmul.f32 %v1891_v36, %v1891_v36  ;;  %v1345_v24 = vrot.slane %v10130_v9, 2 }
 0x231   :  { %2295 = vmatpush.bf16.msra.mxu0 %v13097_v23  ;;  %vm2070_vm4 = vcmp.gt.f32.partialorder %v13124_v26, 20.0  ;;  %v1986_v35 = vadd.f32 1.0, %v1926_v22  ;;  %v2200_v59 = vunpack.c.l.b16 %v10323_v45  ;;  %v7585_v20 = vadd.f32 -1.0, %v1926_v22 }
 0x232   :  { %1577 = vmatmul.bf16.vlgmr.msrb.gmra.mxu0 %v10094_v7 }
 0x233   :  { %1584 = vmatpush.bf16.msrb.mxu2 %v9210_v4  ;;  %7565 = vmatmul.msk.bf16.vlgmr.msra.gmra.mxu3 %vm1474_vm12, %v10273_v55  ;;  %8181 = vrcp.f32 %v1986_v35 }
 0x234   :  { %1599 = vmatpush.bf16.msrb.mxu1 %v10172_v37  ;;  %1555 = vmatpush.bf16.msrb.mxu3 %v10268_v50  ;;  %v1365_v37 = vrot.slane %v10002_v13, 6 }
 0x236   :  { %v1370_v11 = vsel %vm1279_vm15, %v1365_v37, %v1369_v56  ;;  %v1366_v8 = vsel %vm1279_vm15, %v1362_v57, %v1365_v37  ;;  %v10321_v56 = vor.u32 %v7875_v30, %v7608_v16  ;;  %v1347_v37 = vrot.slane %v10127_v2, 2 }
 0x237   :  { %1585 = vmatpush.bf16.msrb.mxu2 %v10008_v18  ;;  %v1449_v58 = vsel %vm163_vm1, %v1370_v11, %v9210_v4 }
 0x238   :  { %1600 = vmatpush.bf16.msrb.mxu1 %v10204_v63  ;;  %1556 = vmatpush.bf16.msrb.mxu3 %v9210_v4  ;;  %v2100_v63 = vsel %vm2070_vm4, 1.0, %v2040_v6  ;;  %13125 = vst [vmem:[#allocation68_spill] sm:$0xff] %v10321_v56  ;;  %v2208_v6 = vunpack.c.l.b16 %v10051_v15 }
 0x23a   :  { %v10338_v11 = vpack.c.b16 %v2208_v6, %v2203_v32 }
 0x23b   :  { %1586 = vmatpush.bf16.msrb.mxu2 %v9717_v31 }
 0x23c   :  { %1601 = vmatpush.bf16.msrb.mxu1 %v10235_v33  ;;  %1557 = vmatpush.bf16.msrb.mxu3 %v1449_v58  ;;  %v2130_v33 = vmul.f32 %v2100_v63, %v13124_v26  ;;  %v8182_v26 = vpop.eup %8181  ;;  %v13130_v63 = vrot.slane %v10061_v60, 2 }
 0x23d   :  { %v2046_v58 = vmul.f32 %v8182_v26, %v7585_v20 }
 0x23e   :  { %v10326_v12 = vpack.c.bf16 %v2130_v33, %v2129_v10  ;;  %v1346_v40 = vsel %vm1325_vm11, %v13130_v63, %v1345_v24  ;;  %v13135_v10 = vld [vmem:[#allocation28_spill] sm:$0xff] }
 0x23f   :  { %1587 = vmatpush.bf16.msrb.mxu2 %v1442_v51  ;;  %v1714_v33 = vmul.f32 %v13134_v29, %v13135_v10 }
 0x240   :  { %1602 = vmatpush.bf16.msrb.mxu1 %v10250_v25  ;;  %1558 = vmatpush.bf16.msrb.mxu3 %v1366_v8  ;;  %v1439_v25 = vsel %vm1279_vm15, %v10127_v2, %v1362_v57  ;;  %v2195_v15 = vunpack.c.l.b16 %v10326_v12  ;;  %v1348_v2 = vsel %vm1325_vm11, %v13127_v34, %v1347_v37  ;;  %v13136_v57 = vld [vmem:[#allocation47_spill] sm:$0xff] }
 0x241   :  { %v10403_v8 = vadd.f32 %v13136_v57, %v1714_v33 }
 0x242   :  { %2296 = vmatmul.bf16.vlgmr.msra.gmra.mxu0 %v10321_v56  ;;  %v10345_v44 = vpack.c.b16 %v2200_v59, %v2195_v15 }
 0x243   :  { %1588 = vmatpush.bf16.msrb.mxu2 %v10002_v13  ;;  %v1981_v13 = vadd.f32 1.0, %v1921_v1  ;;  %vm2080_vm7 = vcmp.gt.f32.partialorder %v10403_v8, 20.0 }
 0x244   :  { %1603 = vmatpush.bf16.msrb.mxu1 %v9933_v43  ;;  %1559 = vmatpush.bf16.msrb.mxu3 %v1439_v25  ;;  %v13126_v43 = vld [vmem:[#allocation40_spill] sm:$0xff]  ;;  %13128 = vst [vmem:[#allocation69_spill] sm:$0xff] %v10345_v44  ;;  %v13140_v25 = vld [vmem:[#allocation63_spill] sm:$0xff] }
 0x245   :  { %v2198_v48 = vunpack.c.l.b16 %v13126_v43  ;;  %8183 = vrcp.f32 %v1981_v13 }
 0x247   :  { %1589 = vmatpush.bf16.msrb.mxu2 %v9761_v38  ;;  %v2193_v38 = vunpack.c.l.b16 %v13129_v14 }
 0x248   :  { %1604 = vmatpush.bf16.msrb.mxu1 %v9714_v0  ;;  %1560 = vmatpush.bf16.msrb.mxu3 %v10077_v3 }
 0x249   :  { %v10352_v0 = vpack.c.b16 %v2198_v48, %v2193_v38 }
 0x24b   :  { %1590 = vmatpush.bf16.msrb.mxu2 %v1348_v2  ;;  %1605 = vmatmul.bf16.vlgmr.msrb.gmra.mxu1 %v10094_v7  ;;  %v8184_v3 = vpop.eup %8183  ;;  %v7580_v7 = vadd.f32 -1.0, %v1921_v1  ;;  %v13137_v1 = vld [vmem:[#allocation24_spill] sm:$0xff] }
 0x24c   :  { %2330 = vmatpush.bf16.msra.mxu1 %v10338_v11  ;;  %1561 = vmatpush.bf16.msrb.mxu3 %v13101_v42  ;;  %v2106_v42 = vsel %vm2076_vm5, 1.0, %v2046_v58 }
 0x24d   :  { %v2041_v51 = vmul.f32 %v8184_v3, %v7580_v7  ;;  %v2136_v9 = vmul.f32 %v2106_v42, %v10246_v62  ;;  %v2196_v62 = vunpack.c.h.b16 %v10326_v12  ;;  %v13138_v12 = vld [vmem:[#allocation62_spill] sm:$0xff] }
 0x24e   :  { %7572 = vmatmul.msk.bf16.vlgmr.msrb.gmra.mxu2 %vm1474_vm12, %v10273_v55  ;;  %v2556_v6 = vmul.f32 %v13138_v12, %v13137_v1  ;;  %v2559_v14 = vmul.f32 %v13138_v12, %v13135_v10 }
 0x24f   :  { %2302 = vmatpush.bf16.msra.mxu2 %v10345_v44  ;;  %v2101_v60 = vsel %vm2071_vm6, 1.0, %v2041_v51  ;;  %v2162_v54 = vpack.c.bf16 %v2136_v9, %v2136_v9 }
 0x250   :  { %2331 = vmatpush.bf16.msra.mxu1 %v10352_v0  ;;  %1562 = vmatpush.bf16.msrb.mxu3 %v1346_v40  ;;  %v10412_v37 = vadd.f32 %v13140_v25, %v2556_v6  ;;  %v10427_v20 = vadd.f32 %v13140_v25, %v2559_v14  ;;  %v13143_v6 = vld [vmem:[#allocation43_spill] sm:$0xff] }
 0x251   :  { %v2202_v16 = vunpack.c.l.b16 %v2162_v54 }
 0x252   :  { %v2684_v15 = vmin.f32 %v10412_v37, 20.0  ;;  %v2687_v7 = vmin.f32 %v10427_v20, 20.0  ;;  %vm3044_vm8 = vcmp.gt.f32.partialorder %v10412_v37, 20.0 }
 0x253   :  { %7571 = vmatmul.msk.bf16.vlgmr.msrb.gmra.mxu3 %vm1474_vm12, %v10273_v55 }
 0x254   :  { %2332 = vmatpush.bf16.msra.mxu1 %v13097_v23  ;;  %1611 = vmatpush.bf16.msra.mxu3 %v10268_v50  ;;  %v2131_v50 = vmul.f32 %v2101_v60, %v10255_v17  ;;  %v2734_v34 = vmul.f32 1.442695, %v2684_v15  ;;  %v2740_v54 = vmul.f32 1.442695, %v2687_v7  ;;  %v13144_v15 = vld [vmem:[#allocation44_spill] sm:$0xff] }
 0x256   :  { %v2159_v41 = vpack.c.bf16 %v2131_v50, %v2131_v50 }
 0x258   :  { %2333 = vmatpush.bf16.msra.mxu1 %v13097_v23  ;;  %1612 = vmatpush.bf16.msra.mxu3 %v9210_v4  ;;  %v2197_v30 = vunpack.c.l.b16 %v2159_v41 }
 0x25a   :  { %v10380_v4 = vpack.c.b16 %v2202_v16, %v2197_v30  ;;  %v13141_v16 = vld [vmem:[#allocation36_spill] sm:$0xff] }
 0x25c   :  { %2334 = vmatpush.bf16.msra.mxu1 %v13097_v23  ;;  %1613 = vmatpush.bf16.msra.mxu3 %v10008_v18  ;;  %13131 = vst [vmem:[#allocation71_spill] sm:$0xff] %v10380_v4  ;;  %v2201_v18 = vunpack.c.h.b16 %v10323_v45 }
 0x25e   :  { %v10389_v17 = vpack.c.b16 %v2201_v18, %v2196_v62 }
 0x260   :  { %2335 = vmatpush.bf16.msra.mxu1 %v13097_v23  ;;  %1614 = vmatpush.bf16.msra.mxu3 %v9717_v31  ;;  %13132 = vst [vmem:[#allocation66_spill] sm:$0xff] %v10389_v17 }
 0x264   :  { %2336 = vmatpush.bf16.msra.mxu1 %v13097_v23  ;;  %7574 = vmatpush.bf16.msk.msra.mxu3 %vm10037_vm3, %v9717_v31  ;;  %v13133_v31 = vld [vmem:[#allocation27_spill] sm:$0xff] }
 0x265   :  { %v1713_v36 = vmul.f32 %v13134_v29, %v13133_v31  ;;  %v2558_v48 = vmul.f32 %v13138_v12, %v13133_v31 }
 0x267   :  { %v10400_v22 = vadd.f32 %v13136_v57, %v1713_v36  ;;  %v10424_v38 = vadd.f32 %v13140_v25, %v2558_v48 }
 0x268   :  { %2337 = vmatpush.bf16.msra.mxu1 %v13097_v23  ;;  %1616 = vmatpush.bf16.msra.mxu3 %v13097_v23 }
 0x269   :  { %v1809_v45 = vmin.f32 %v10400_v22, 20.0  ;;  %v2686_v63 = vmin.f32 %v10424_v38, 20.0  ;;  %vm2079_vm3 = vcmp.gt.f32.partialorder %v10400_v22, 20.0  ;;  %vm3046_vm10 = vcmp.gt.f32.partialorder %v10424_v38, 20.0 }
 0x26b   :  { %2338 = vmatmul.bf16.vlgmr.msra.gmra.mxu1 %v10321_v56  ;;  %v1851_v59 = vmul.f32 1.442695, %v1809_v45  ;;  %v2738_v42 = vmul.f32 1.442695, %v2686_v63 }
 0x26c   :  { %2386 = vmatpush.bf16.msrb.mxu1 %v10380_v4  ;;  %1617 = vmatpush.bf16.msra.mxu3 %v13097_v23 }
 0x26d   :  { %8185 = vpow2.f32 %v1851_v59 }
 0x270   :  { %1618 = vmatpush.bf16.msra.mxu3 %v10191_v27  ;;  %v1810_v27 = vmin.f32 %v10403_v8, 20.0 }
 0x272   :  { %v1853_v13 = vmul.f32 1.442695, %v1810_v27  ;;  %v13142_v27 = vld [vmem:[#allocation74_spill] sm:$0xff] }
 0x273   :  { %7575 = vmatmul.msk.bf16.vlgmr.msra.gmra.mxu3 %vm1474_vm12, %v10273_v55  ;;  %v13139_v55 = vld [vmem:[#allocation25_spill] sm:$0xff]  ;;  %v8186_v24 = vpop.eup %8185  ;;  %vm3047_vm12 = vcmp.gt.f32.partialorder %v10427_v20, 20.0 }
 0x274   :  { %2344 = vmatpush.bf16.msrb.mxu3 %v10389_v17  ;;  %v2557_v35 = vmul.f32 %v13138_v12, %v13139_v55  ;;  %8187 = vpow2.f32 %v1853_v13  ;;  %v1899_v3 = vadd.f32 1.0, %v8186_v24 }
 0x275   :  { %8189 = vpow2.f32 %v2734_v34 }
 0x276   :  { %v10415_v32 = vadd.f32 %v13140_v25, %v2557_v35  ;;  %v1929_v51 = vmul.f32 %v1899_v3, %v1899_v3 }
 0x278   :  { %v2685_v43 = vmin.f32 %v10415_v32, 20.0  ;;  %v1989_v18 = vadd.f32 1.0, %v1929_v51  ;;  %vm3045_vm9 = vcmp.gt.f32.partialorder %v10415_v32, 20.0 }
 0x27a   :  { %v2736_v2 = vmul.f32 1.442695, %v2685_v43  ;;  %v8188_v26 = vpop.eup %8187 }
 0x27b   :  { %v1900_v40 = vadd.f32 1.0, %v8188_v26  ;;  %v8190_v58 = vpop.eup %8189 }
 0x27c   :  { %8191 = vpow2.f32 %v2736_v2  ;;  %v2804_v41 = vadd.f32 1.0, %v8190_v58 }
 0x27d   :  { %v1930_v50 = vmul.f32 %v1900_v40, %v1900_v40  ;;  %8193 = vpow2.f32 %v2738_v42  ;;  %v13145_v40 = vld [vmem:[#allocation56_spill] sm:$0xff]  ;;  %v7588_v42 = vadd.f32 -1.0, %v1929_v51 }
 0x27e   :  { %8195 = vpow2.f32 %v2740_v54  ;;  %v2844_v10 = vmul.f32 %v2804_v41, %v2804_v41  ;;  %v13146_v41 = vld [vmem:[#allocation65_spill] sm:$0xff] }
 0x27f   :  { %v1990_v29 = vadd.f32 1.0, %v1930_v50  ;;  %8197 = vrcp.f32 %v1989_v18 }
 0x280   :  { %v2924_v35 = vadd.f32 1.0, %v2844_v10 }
 0x281   :  { %8199 = vrcp.f32 %v1990_v29 }
 0x282   :  { %v8192_v9 = vpop.eup %8191  ;;  %8201 = vrcp.f32 %v2924_v35 }
 0x283   :  { %v2805_v62 = vadd.f32 1.0, %v8192_v9  ;;  %v8194_v12 = vpop.eup %8193 }
 0x284   :  { %v8196_v59 = vpop.eup %8195  ;;  %v2806_v34 = vadd.f32 1.0, %v8194_v12 }
 0x285   :  { %v2845_v57 = vmul.f32 %v2805_v62, %v2805_v62  ;;  %v8198_v14 = vpop.eup %8197  ;;  %v2807_v3 = vadd.f32 1.0, %v8196_v59 }
 0x286   :  { %v2846_v9 = vmul.f32 %v2806_v34, %v2806_v34  ;;  %v2049_v18 = vmul.f32 %v8198_v14, %v7588_v42  ;;  %v7633_v42 = vadd.f32 -1.0, %v2844_v10 }
 0x287   :  { %v2925_v13 = vadd.f32 1.0, %v2845_v57  ;;  %v8200_v26 = vpop.eup %8199 }
 0x288   :  { %v1494_v45 = vpop.f32.mrf.mxu1  ;;  %v8202_v35 = vpop.eup %8201  ;;  %v2109_v14 = vsel %vm2079_vm3, 1.0, %v2049_v18 }
 0x289   :  { %v1495_v25 = vadd.f32 %v1494_v45, %v13141_v16  ;;  %8203 = vrcp.f32 %v2925_v13  ;;  %v10453_v45 = vmul.f32 %v2807_v3, %v2807_v3  ;;  %v2926_v13 = vadd.f32 1.0, %v2846_v9 }
 0x28a   :  { %v2139_v28 = vmul.f32 %v2109_v14, %v10400_v22 }
 0x28c   :  { %v1522_v60 = vpop.f32.mrf.mxu0 }
 0x28d   :  { %v1523_v30 = vadd.f32 %v1522_v60, %v13141_v16  ;;  %v7589_v60 = vadd.f32 -1.0, %v1930_v50 }
 0x28f   :  { %v2050_v62 = vmul.f32 %v8200_v26, %v7589_v60  ;;  %v8204_v34 = vpop.eup %8203  ;;  %v7634_v60 = vadd.f32 -1.0, %v2845_v57 }
 0x294   :  { %v1524_v63 = vpop.f32.mrf.mxu0 }
 0x2b1   :  { %v1536_v31 = vpop.f32.mrf.mxu2 }
 0x2b2   :  { %v10432_v36 = vadd.f32 %v1536_v31, %v1523_v30  ;;  %v13147_v31 = vld [vmem:[#allocation33_spill] sm:$0xff] }
 0x2b3   :  { %v1525_v29 = vadd.f32 %v1524_v63, %v13147_v31  ;;  %v2927_v63 = vadd.f32 1.0, %v10453_v45 }
 0x2b4   :  { %v1636_v33 = vrot.slane %v10432_v36, 4 }
 0x2b6   :  { %v1661_v1 = vsel %vm163_vm1, %v13142_v27, %v1636_v33  ;;  %v1508_v48 = vpop.f32.mrf.mxu3  ;;  %v13148_v27 = vld [vmem:[#allocation61_spill] sm:$0xff] }
 0x2b7   :  { %v1722_v55 = vmul.f32 %v13143_v6, %v1661_v1  ;;  %v10442_v2 = vadd.f32 %v1508_v48, %v1495_v25  ;;  %v2567_v7 = vmul.f32 %v13145_v40, %v1661_v1  ;;  %v13149_v25 = vld [vmem:[#allocation53_spill] sm:$0xff]  ;;  %v1496_v48 = vpop.f32.mrf.mxu1 }
 0x2b8   :  { %v10466_v59 = vmul.f32 %v13149_v25, %v13116_v39  ;;  %v1497_v39 = vadd.f32 %v1496_v48, %v13147_v31 }
 0x2b9   :  { %v10440_v43 = vadd.f32 %v13144_v15, %v1722_v55  ;;  %v12952_v58 = vrot.slane %v10442_v2, 4  ;;  %v10456_v1 = vadd.f32 %v13148_v27, %v2567_v7  ;;  %v1538_v51 = vpop.f32.mrf.mxu2 }
 0x2ba   :  { %v1539_v55 = vadd.f32 %v1538_v51, %v1525_v29  ;;  %v3004_v51 = vmul.f32 %v8202_v35, %v7633_v42 }
 0x2bb   :  { %v1818_v24 = vmin.f32 %v10440_v43, 20.0  ;;  %v1660_v30 = vsel %vm163_vm1, %v13146_v41, %v12952_v58  ;;  %v2695_v7 = vmin.f32 %v10456_v1, 20.0  ;;  %v10471_v41 = vpop.permute.xlu0 %2513  ;;  %vm2088_vm13 = vcmp.gt.f32.partialorder %v10440_v43, 20.0 }
 0x2bc   :  { %v1721_v36 = vmul.f32 %v13143_v6, %v1660_v30  ;;  %v2566_v12 = vmul.f32 %v13145_v40, %v1660_v30  ;;  %v1642_v3 = vrot.slane %v1539_v55, 4  ;;  %13150 = vst [vmem:[#allocation67_spill] sm:$0xff] %v10471_v41  ;;  %v3005_v55 = vmul.f32 %v8204_v34, %v7634_v60 }
 0x2bd   :  { %v1869_v54 = vmul.f32 1.442695, %v1818_v24  ;;  %v2110_v24 = vsel %vm2080_vm7, 1.0, %v2050_v62  ;;  %v13151_v62 = vld [vmem:[#allocation42_spill] sm:$0xff]  ;;  %v2555_v48 = vmul.f32 %v10471_v41, %v13114_v49  ;;  %v1578_v49 = vpop.f32.mrf.mxu0  ;;  %v7635_v60 = vadd.f32 -1.0, %v2846_v9 }
 0x2be   :  { %v10460_v50 = vadd.f32 %v13144_v15, %v1721_v36  ;;  %v10475_v29 = vadd.f32 %v13148_v27, %v2566_v12  ;;  %v1510_v18 = vpop.f32.mrf.mxu3  ;;  %v2140_v10 = vmul.f32 %v2110_v24, %v10403_v8  ;;  %v2756_v12 = vmul.f32 1.442695, %v2695_v7 }
 0x2bf   :  { %8205 = vpow2.f32 %v1869_v54  ;;  %v1643_v54 = vsel %vm163_vm1, %v1636_v33, %v1642_v3  ;;  %v1511_v57 = vadd.f32 %v1510_v18, %v1497_v39  ;;  %v13153_v33 = vld [vmem:[#allocation55_spill] sm:$0xff]  ;;  %v3084_v8 = vsel %vm3044_vm8, 1.0, %v3004_v51  ;;  %v10500_v51 = vpop.permute.xlu1 %2601 }
 0x2c0   :  { %v1817_v26 = vmin.f32 %v10460_v50, 20.0  ;;  %8207 = vrcp.f32 %v2926_v13  ;;  %v1727_v36 = vmul.f32 %v13151_v62, %v1643_v54  ;;  %v2572_v13 = vmul.f32 %v13153_v33, %v1643_v54  ;;  %v13155_v54 = vld [vmem:[#allocation60_spill] sm:$0xff]  ;;  %13156 = vst [vmem:[#allocation32_spill] sm:$0xff] %v10500_v51 }
 0x2c1   :  { %v2694_v3 = vmin.f32 %v10475_v29, 20.0  ;;  %v1640_v35 = vrot.slane %v1511_v57, 4  ;;  %v3085_v34 = vsel %vm3045_vm9, 1.0, %v3005_v55  ;;  %v13154_v24 = vrot.slane %v10442_v2, 4 }
 0x2c2   :  { %v1867_v30 = vmul.f32 1.442695, %v1817_v26  ;;  %v13152_v26 = vld [vmem:[#allocation46_spill] sm:$0xff]  ;;  %v10494_v42 = vpack.c.bf16 %v2140_v10, %v2139_v28  ;;  %v10497_v18 = vadd.f32 %v13155_v54, %v2572_v13  ;;  %v3124_v2 = vmul.f32 %v3084_v8, %v10412_v37  ;;  %v1550_v10 = vpop.f32.mrf.mxu1 }
 0x2c3   :  { %v10484_v53 = vadd.f32 %v13152_v26, %v1727_v36  ;;  %v1641_v7 = vsel %vm163_vm1, %v13154_v24, %v1640_v35  ;;  %v3125_v28 = vmul.f32 %v3085_v34, %v10415_v32  ;;  %v1579_v9 = vadd.f32 %v1578_v49, %v13141_v16 }
 0x2c4   :  { %8209 = vpow2.f32 %v1867_v30  ;;  %v2571_v55 = vmul.f32 %v13153_v33, %v1641_v7  ;;  %v10510_v35 = vadd.f32 %v10500_v51, %v2555_v48  ;;  %v2700_v34 = vmin.f32 %v10497_v18, 20.0 }
 0x2c5   :  { %v8206_v58 = vpop.eup %8205  ;;  %8211 = vrcp.f32 %v2927_v63  ;;  %v1823_v22 = vmin.f32 %v10484_v53, 20.0  ;;  %v1726_v63 = vmul.f32 %v13151_v62, %v1641_v7  ;;  %v7636_v48 = vadd.f32 -1.0, %v10453_v45 }
 0x2c6   :  { %v1908_v14 = vadd.f32 1.0, %v8206_v58  ;;  %v8208_v39 = vpop.eup %8207  ;;  %8213 = vpow2.f32 %v2756_v12  ;;  %v2754_v58 = vmul.f32 1.442695, %v2694_v3  ;;  %13157 = vst [vmem:[#allocation31_spill] sm:$0xff] %v10510_v35  ;;  %v10515_v3 = vadd.f32 %v13155_v54, %v2571_v55 }
 0x2c7   :  { %v1879_v30 = vmul.f32 1.442695, %v1823_v22  ;;  %v10507_v12 = vadd.f32 %v13152_v26, %v1726_v63  ;;  %v3006_v37 = vmul.f32 %v8208_v39, %v7635_v60  ;;  %vm2087_vm14 = vcmp.gt.f32.partialorder %v10460_v50, 20.0 }
 0x2c8   :  { %v10512_v22 = vmul.f32 %v1908_v14, %v1908_v14  ;;  %v2699_v60 = vmin.f32 %v10515_v3, 20.0  ;;  %vm2093_vm0 = vcmp.gt.f32.partialorder %v10484_v53, 20.0  ;;  %vm3054_vm5 = vcmp.gt.f32.partialorder %v10475_v29, 20.0 }
 0x2c9   :  { %8215 = vpow2.f32 %v1879_v30  ;;  %v1822_v49 = vmin.f32 %v10507_v12, 20.0  ;;  %v10522_v30 = vpack.c.bf16 %v3125_v28, %v3124_v2  ;;  %v3204_v2 = vunpack.c.h.b16 %v10066_v5 }
 0x2ca   :  { %v8210_v36 = vpop.eup %8209  ;;  %8217 = vpow2.f32 %v2754_v58  ;;  %v1998_v55 = vadd.f32 1.0, %v10512_v22  ;;  %v3086_v28 = vsel %vm3046_vm10, 1.0, %v3006_v37  ;;  %vm2092_vm4 = vcmp.gt.f32.partialorder %v10507_v12, 20.0 }
 0x2cb   :  { %v1907_v57 = vadd.f32 1.0, %v8210_v36  ;;  %v8212_v8 = vpop.eup %8211  ;;  %13158 = vst [vmem:[#allocation29_spill] sm:$0xff] %v10522_v30  ;;  %v1877_v36 = vmul.f32 1.442695, %v1822_v49  ;;  %vm3055_vm3 = vcmp.gt.f32.partialorder %v10456_v1, 20.0  ;;  %vm3059_vm7 = vcmp.gt.f32.partialorder %v10515_v3, 20.0 }
 0x2cc   :  { %v8214_v14 = vpop.eup %8213  ;;  %vm3060_vm8 = vcmp.gt.f32.partialorder %v10497_v18, 20.0 }
 0x2cd   :  { %v1937_v32 = vmul.f32 %v1907_v57, %v1907_v57  ;;  %v3007_v57 = vmul.f32 %v8212_v8, %v7636_v48  ;;  %v1551_v8 = vadd.f32 %v1550_v10, %v13141_v16  ;;  %v2764_v48 = vmul.f32 1.442695, %v2699_v60 }
 0x2cf   :  { %v1997_v63 = vadd.f32 1.0, %v1937_v32  ;;  %v8216_v58 = vpop.eup %8215  ;;  %v10546_v10 = vsel %vm3047_vm12, 1.0, %v3007_v57 }
 0x2d0   :  { %v1913_v49 = vadd.f32 1.0, %v8216_v58  ;;  %v8218_v51 = vpop.eup %8217  ;;  %v1580_v58 = vpop.f32.mrf.mxu0 }
 0x2d1   :  { %v1592_v13 = vpop.f32.mrf.mxu2  ;;  %8219 = vrcp.f32 %v1997_v63 }
 0x2d2   :  { %v10519_v24 = vadd.f32 %v1592_v13, %v1579_v9  ;;  %v2766_v9 = vmul.f32 1.442695, %v2700_v34  ;;  %v2815_v13 = vadd.f32 1.0, %v8214_v14  ;;  %8221 = vpow2.f32 %v1877_v36  ;;  %v1552_v14 = vpop.f32.mrf.mxu1 }
 0x2d3   :  { %v3203_v34 = vunpack.c.h.b16 %v10522_v30  ;;  %8223 = vrcp.f32 %v1998_v55  ;;  %v1943_v41 = vmul.f32 %v1913_v49, %v1913_v49  ;;  %v10549_v36 = vmul.f32 %v3086_v28, %v10424_v38 }
 0x2d4   :  { %v12959_v39 = vrot.slane %v10519_v24, 4  ;;  %8225 = vpow2.f32 %v2766_v9  ;;  %v10551_v60 = vmul.f32 %v2815_v13, %v2815_v13  ;;  %v1553_v38 = vadd.f32 %v1552_v14, %v13147_v31 }
 0x2d5   :  { %v2003_v55 = vadd.f32 1.0, %v1943_v41  ;;  %v10554_v49 = vpack.c.b16 %v3204_v2, %v3203_v34  ;;  %8227 = vpow2.f32 %v2764_v48  ;;  %v13160_v17 = vrot.slane %v10519_v24, 4 }
 0x2d6   :  { %v1663_v45 = vsel %vm163_vm1, %v9940_v61, %v12959_v39  ;;  %v1564_v19 = vpop.f32.mrf.mxu3  ;;  %v1581_v39 = vadd.f32 %v1580_v58, %v13147_v31 }
 0x2d7   :  { %v1724_v7 = vmul.f32 %v13143_v6, %v1663_v45  ;;  %v2569_v37 = vmul.f32 %v13145_v40, %v1663_v45  ;;  %v10542_v63 = vadd.f32 %v1564_v19, %v1551_v8  ;;  %v2814_v45 = vadd.f32 1.0, %v8218_v51  ;;  %v8220_v57 = vpop.eup %8219  ;;  %v13159_v51 = vld [vmem:[#allocation72_spill] sm:$0xff] }
 0x2d8   :  { %8229 = vrcp.f32 %v2003_v55  ;;  %v8222_v13 = vpop.eup %8221  ;;  %v7596_v8 = vadd.f32 -1.0, %v1937_v32 }
 0x2d9   :  { %v10539_v61 = vadd.f32 %v13144_v15, %v1724_v7  ;;  %v10557_v19 = vadd.f32 %v13148_v27, %v2569_v37  ;;  %v12964_v9 = vrot.slane %v10542_v63, 4  ;;  %v8224_v34 = vpop.eup %8223  ;;  %v2935_v37 = vadd.f32 1.0, %v10551_v60  ;;  %v1594_v25 = vpop.f32.mrf.mxu2 }
 0x2da   :  { %v1912_v30 = vadd.f32 1.0, %v8222_v13  ;;  %v8226_v55 = vpop.eup %8225  ;;  %v2057_v32 = vmul.f32 %v8220_v57, %v7596_v8  ;;  %v10571_v5 = vmul.f32 %v2814_v45, %v2814_v45 }
 0x2db   :  { %v1820_v7 = vmin.f32 %v10539_v61, 20.0  ;;  %v2697_v2 = vmin.f32 %v10557_v19, 20.0  ;;  %v1662_v48 = vsel %vm163_vm1, %v13159_v51, %v12964_v9  ;;  %v1595_v9 = vadd.f32 %v1594_v25, %v1581_v39  ;;  %v8228_v13 = vpop.eup %8227 }
 0x2dc   :  { %v1723_v14 = vmul.f32 %v13143_v6, %v1662_v48  ;;  %v2568_v58 = vmul.f32 %v13145_v40, %v1662_v48  ;;  %v1942_v56 = vmul.f32 %v1912_v30, %v1912_v30  ;;  %v2820_v57 = vadd.f32 1.0, %v8226_v55 }
 0x2dd   :  { %v1873_v28 = vmul.f32 1.442695, %v1820_v7  ;;  %v7597_v7 = vadd.f32 -1.0, %v10512_v22  ;;  %v2760_v4 = vmul.f32 1.442695, %v2697_v2  ;;  %v2117_v46 = vsel %vm2087_vm14, 1.0, %v2057_v32 }
 0x2de   :  { %v10576_v51 = vadd.f32 %v13144_v15, %v1723_v14  ;;  %v10580_v22 = vadd.f32 %v13148_v27, %v2568_v58  ;;  %v8230_v45 = vpop.eup %8229  ;;  %v2002_v8 = vadd.f32 1.0, %v1942_v56  ;;  %v2934_v30 = vadd.f32 1.0, %v10571_v5  ;;  %v1566_v35 = vpop.f32.mrf.mxu3 }
 0x2df   :  { %8231 = vpow2.f32 %v1873_v28  ;;  %v2058_v28 = vmul.f32 %v8224_v34, %v7597_v7  ;;  %v7602_v14 = vadd.f32 -1.0, %v1943_v41  ;;  %v2819_v34 = vadd.f32 1.0, %v8228_v13  ;;  %v1606_v13 = vpop.f32.mrf.mxu1 }
 0x2e0   :  { %8233 = vrcp.f32 %v2935_v37  ;;  %v1819_v48 = vmin.f32 %v10576_v51, 20.0  ;;  %v2696_v25 = vmin.f32 %v10580_v22, 20.0  ;;  %v1646_v2 = vrot.slane %v1595_v9, 4 }
 0x2e1   :  { %8235 = vrcp.f32 %v2002_v8  ;;  %v2118_v58 = vsel %vm2088_vm13, 1.0, %v2058_v28  ;;  %v2063_v44 = vmul.f32 %v8230_v45, %v7602_v14  ;;  %v10587_v55 = vmul.f32 %v2820_v57, %v2820_v57 }
 0x2e2   :  { %v1871_v7 = vmul.f32 1.442695, %v1819_v48  ;;  %8237 = vpow2.f32 %v2760_v4  ;;  %v2758_v32 = vmul.f32 1.442695, %v2696_v25  ;;  %v1647_v41 = vsel %vm163_vm1, %v13160_v17, %v1646_v2 }
 0x2e3   :  { %v2147_v8 = vmul.f32 %v2117_v46, %v10460_v50  ;;  %v1729_v9 = vmul.f32 %v13151_v62, %v1647_v41  ;;  %v2574_v28 = vmul.f32 %v13153_v33, %v1647_v41  ;;  %v2148_v4 = vmul.f32 %v2118_v58, %v10440_v43 }
 0x2e4   :  { %8239 = vpow2.f32 %v1871_v7  ;;  %v10600_v57 = vmul.f32 %v2819_v34, %v2819_v34  ;;  %v1567_v24 = vadd.f32 %v1566_v35, %v1553_v38  ;;  %v2123_v17 = vsel %vm2093_vm0, 1.0, %v2063_v44 }
 0x2e5   :  { %v8232_v39 = vpop.eup %8231  ;;  %8241 = vrcp.f32 %v2934_v30  ;;  %v7601_v14 = vadd.f32 -1.0, %v1942_v56  ;;  %v10605_v46 = vadd.f32 %v13152_v26, %v1729_v9  ;;  %v10608_v50 = vadd.f32 %v13155_v54, %v2574_v28 }
 0x2e6   :  { %v1910_v37 = vadd.f32 1.0, %v8232_v39  ;;  %v10597_v45 = vpop.eup %8233  ;;  %8243 = vpow2.f32 %v2758_v32  ;;  %v1644_v43 = vrot.slane %v1567_v24, 4  ;;  %v10612_v34 = vpack.c.bf16 %v2148_v4, %v2147_v8 }
 0x2e7   :  { %v8236_v25 = vpop.eup %8235  ;;  %v2940_v35 = vadd.f32 1.0, %v10587_v55  ;;  %v1825_v56 = vmin.f32 %v10605_v46, 20.0  ;;  %v2153_v7 = vmul.f32 %v2123_v17, %v10484_v53  ;;  %v2939_v2 = vadd.f32 1.0, %v10600_v57 }
 0x2e8   :  { %v10593_v48 = vmul.f32 %v1910_v37, %v1910_v37  ;;  %v8238_v30 = vpop.eup %8237  ;;  %v2062_v44 = vmul.f32 %v8236_v25, %v7601_v14  ;;  %v2702_v58 = vmin.f32 %v10608_v50, 20.0  ;;  %v13161_v37 = vrot.slane %v10542_v63, 4 }
 0x2e9   :  { %v1883_v8 = vmul.f32 1.442695, %v1825_v56  ;;  %v2817_v14 = vadd.f32 1.0, %v8238_v30  ;;  %vm2090_vm6 = vcmp.gt.f32.partialorder %v10539_v61, 20.0  ;;  %vm2089_vm9 = vcmp.gt.f32.partialorder %v10576_v51, 20.0  ;;  %v13163_v56 = vld [vmem:[#allocation75_spill] sm:$0xff] }
 0x2ea   :  { %v2000_v39 = vadd.f32 1.0, %v10593_v48  ;;  %v8240_v38 = vpop.eup %8239  ;;  %v1645_v32 = vsel %vm163_vm1, %v13161_v37, %v1644_v43  ;;  %v2122_v41 = vsel %vm2092_vm4, 1.0, %v2062_v44  ;;  %v2770_v25 = vmul.f32 1.442695, %v2702_v58 }
 0x2eb   :  { %v1909_v9 = vadd.f32 1.0, %v8240_v38  ;;  %v1728_v28 = vmul.f32 %v13151_v62, %v1645_v32  ;;  %v8242_v4 = vpop.eup %8241  ;;  %v2152_v24 = vmul.f32 %v2122_v41, %v10507_v12  ;;  %v2573_v63 = vmul.f32 %v13153_v33, %v1645_v32 }
 0x2ec   :  { %8245 = vrcp.f32 %v2000_v39  ;;  %v8244_v43 = vpop.eup %8243  ;;  %v10635_v12 = vmul.f32 %v10546_v10, %v10427_v20  ;;  %v1608_v39 = vpop.f32.mrf.mxu1  ;;  %v10640_v37 = vmul.f32 %v2817_v14, %v2817_v14  ;;  %v2214_v20 = vunpack.c.h.b16 %v10612_v34 }
 0x2ed   :  { %v10624_v53 = vmul.f32 %v1909_v9, %v1909_v9  ;;  %8247 = vpow2.f32 %v1883_v8  ;;  %v10627_v17 = vadd.f32 %v13152_v26, %v1728_v28  ;;  %v10630_v44 = vpack.c.bf16 %v2153_v7, %v2152_v24 }
 0x2ee   :  { %8249 = vpow2.f32 %v2770_v25  ;;  %v10643_v7 = vadd.f32 %v13155_v54, %v2573_v63  ;;  %v2816_v41 = vadd.f32 1.0, %v8244_v43  ;;  %v1607_v8 = vadd.f32 %v1606_v13, %v13141_v16 }
 0x2ef   :  { %8251 = vrcp.f32 %v2940_v35  ;;  %v1999_v30 = vadd.f32 1.0, %v10624_v53  ;;  %v1824_v38 = vmin.f32 %v10627_v17, 20.0  ;;  %v2219_v10 = vunpack.c.h.b16 %v10630_v44 }
 0x2f0   :  { %8253 = vrcp.f32 %v2939_v2  ;;  %v1609_v2 = vadd.f32 %v1608_v39, %v13147_v31  ;;  %v2701_v28 = vmin.f32 %v10643_v7, 20.0  ;;  %v7644_v63 = vadd.f32 -1.0, %v10551_v60 }
 0x2f1   :  { %v1881_v9 = vmul.f32 1.442695, %v1824_v38  ;;  %8255 = vrcp.f32 %v1999_v30  ;;  %v10653_v25 = vpack.c.b16 %v2219_v10, %v2214_v20  ;;  %v2937_v16 = vadd.f32 1.0, %v10640_v37 }
 0x2f2   :  { %v8246_v35 = vpop.eup %8245  ;;  %v2768_v13 = vmul.f32 1.442695, %v2701_v28  ;;  %v7599_v38 = vadd.f32 -1.0, %v10593_v48  ;;  %v10660_v32 = vmul.f32 %v2816_v41, %v2816_v41  ;;  %v7649_v60 = vadd.f32 -1.0, %v10587_v55 }
 0x2f3   :  { %v8248_v14 = vpop.eup %8247  ;;  %8257 = vpow2.f32 %v1881_v9  ;;  %13162 = vst [vmem:[#allocation37_spill] sm:$0xff] %v10653_v25  ;;  %2303 = vmatpush.bf16.msra.mxu2 %v10653_v25  ;;  %v7643_v9 = vadd.f32 -1.0, %v10571_v5  ;;  %v3015_v48 = vmul.f32 %v10597_v45, %v7644_v63  ;;  %v2218_v25 = vunpack.c.l.b16 %v10630_v44 }
 0x2f4   :  { %v8250_v43 = vpop.eup %8249  ;;  %v1915_v31 = vadd.f32 1.0, %v8248_v14  ;;  %8259 = vpow2.f32 %v2768_v13  ;;  %v2060_v28 = vmul.f32 %v8246_v35, %v7599_v38  ;;  %v2936_v35 = vadd.f32 1.0, %v10660_v32 }
 0x2f5   :  { %v8252_v30 = vpop.eup %8251  ;;  %v2822_v58 = vadd.f32 1.0, %v8250_v43  ;;  %8261 = vrcp.f32 %v2937_v16  ;;  %v7598_v43 = vadd.f32 -1.0, %v10624_v53  ;;  %v2213_v16 = vunpack.c.l.b16 %v10612_v34 }
 0x2f6   :  { %v1620_v24 = vpop.f32.mrf.mxu3  ;;  %v8254_v20 = vpop.eup %8253  ;;  %v1945_v10 = vmul.f32 %v1915_v31, %v1915_v31  ;;  %v2120_v44 = vsel %vm2090_vm6, 1.0, %v2060_v28  ;;  %v3020_v53 = vmul.f32 %v8252_v30, %v7649_v60  ;;  %v3095_v28 = vsel %vm3055_vm3, 1.0, %v3015_v48 }
 0x2f7   :  { %v1621_v39 = vadd.f32 %v1620_v24, %v1607_v8  ;;  %v7648_v8 = vadd.f32 -1.0, %v10600_v57  ;;  %v3014_v24 = vmul.f32 %v8242_v4, %v7643_v9  ;;  %v8256_v41 = vpop.eup %8255  ;;  %2304 = vmatpush.bf16.msra.mxu2 %v10081_v52  ;;  %v10676_v4 = vmul.f32 %v2822_v58, %v2822_v58 }
 0x2f8   :  { %v2005_v5 = vadd.f32 1.0, %v1945_v10  ;;  %vm3057_vm10 = vcmp.gt.f32.partialorder %v10557_v19, 20.0  ;;  %vm2095_vm12 = vcmp.gt.f32.partialorder %v10605_v46, 20.0  ;;  %vm2094_vm13 = vcmp.gt.f32.partialorder %v10627_v17, 20.0 }
 0x2f9   :  { %v1639_v14 = vrot.slane %v1621_v39, 4  ;;  %v8258_v31 = vpop.eup %8257  ;;  %v3019_v45 = vmul.f32 %v8254_v20, %v7648_v8  ;;  %v3094_v39 = vsel %vm3054_vm5, 1.0, %v3014_v24  ;;  %v10686_v20 = vpack.c.b16 %v2218_v25, %v2213_v16 }
 0x2fa   :  { %8263 = vrcp.f32 %v2005_v5  ;;  %v1914_v63 = vadd.f32 1.0, %v8258_v31  ;;  %v8260_v38 = vpop.eup %8259  ;;  %v7604_v8 = vadd.f32 -1.0, %v1945_v10  ;;  %v13164_v5 = vld [vmem:[#allocation41_spill] sm:$0xff]  ;;  %v2942_v60 = vadd.f32 1.0, %v10676_v4 }
 0x2fb   :  { %v1664_v55 = vsel %vm163_vm1, %v13163_v56, %v1639_v14  ;;  %2305 = vmatpush.bf16.msra.mxu2 %v13164_v5  ;;  %v8262_v30 = vpop.eup %8261  ;;  %v3134_v25 = vmul.f32 %v3094_v39, %v10475_v29  ;;  %v2821_v31 = vadd.f32 1.0, %v8260_v38  ;;  %v7874_v29 = vld [vmem:[#allocation2 + $0x74] sm:$0xf]  ;;  %vm3056_vm14 = vcmp.gt.f32.partialorder %v10580_v22, 20.0 }
 0x2fc   :  { %v1725_v57 = vmul.f32 %v13143_v6, %v1664_v55  ;;  %v2059_v6 = vmul.f32 %v8256_v41, %v7598_v43  ;;  %v1944_v9 = vmul.f32 %v1914_v63, %v1914_v63  ;;  %v2570_v10 = vmul.f32 %v13145_v40, %v1664_v55  ;;  %v7610_v55 = vld [vmem:[#allocation2 + $0x80] sm:$0x30] }
 0x2fd   :  { %v3100_v43 = vsel %vm3060_vm8, 1.0, %v3020_v53  ;;  %v10711_v53 = vmul.f32 %v2821_v31, %v2821_v31  ;;  %v10717_v38 = vor.u32 %v7874_v29, %v7610_v55  ;;  %vm3062_vm0 = vcmp.gt.f32.partialorder %v10608_v50, 20.0 }
 0x2fe   :  { %v1622_v13 = vpop.f32.mrf.mxu3  ;;  %v10682_v56 = vadd.f32 %v13144_v15, %v1725_v57  ;;  %v3099_v15 = vsel %vm3059_vm7, 1.0, %v3019_v45  ;;  %v2004_v24 = vadd.f32 1.0, %v1944_v9  ;;  %v3135_v45 = vmul.f32 %v3095_v28, %v10456_v1 }
 0x2ff   :  { %v1623_v58 = vadd.f32 %v1622_v13, %v1609_v2  ;;  %v3139_v63 = vmul.f32 %v3099_v15, %v10515_v3  ;;  %v2119_v16 = vsel %vm2089_vm9, 1.0, %v2059_v6  ;;  %2306 = vmatpush.bf16.msra.mxu2 %v10686_v20  ;;  %v3140_v1 = vmul.f32 %v3100_v43, %v10497_v18 }
 0x300   :  { %v1821_v34 = vmin.f32 %v10682_v56, 20.0  ;;  %v8264_v57 = vpop.eup %8263  ;;  %8265 = vrcp.f32 %v2004_v24  ;;  %v3166_v3 = vpack.c.bf16 %v3135_v45, %v3134_v25  ;;  %vm3061_vm4 = vcmp.gt.f32.partialorder %v10643_v7, 20.0 }
 0x301   :  { %v1648_v41 = vrot.slane %v1623_v58, 4  ;;  %v2065_v13 = vmul.f32 %v8264_v57, %v7604_v8  ;;  %v3169_v6 = vpack.c.bf16 %v3140_v1, %v3139_v63  ;;  %v7603_v8 = vadd.f32 -1.0, %v1944_v9 }
 0x302   :  { %v1875_v2 = vmul.f32 1.442695, %v1821_v34  ;;  %v10720_v34 = vadd.f32 %v13148_v27, %v2570_v10  ;;  %vm2091_vm5 = vcmp.gt.f32.partialorder %v10682_v56, 20.0  ;;  %vm2284_vm3 = vcmask 654336  }
 0x303   :  { %v1649_v48 = vsel %vm163_vm1, %v1639_v14, %v1648_v41  ;;  %v2150_v14 = vmul.f32 %v2120_v44, %v10539_v61  ;;  %v2125_v58 = vsel %vm2095_vm12, 1.0, %v2065_v13  ;;  %2307 = vmatpush.bf16.msra.mxu2 %v10338_v11  ;;  %v3206_v44 = vunpack.c.h.b16 %v3169_v6 }
 0x304   :  { %8267 = vpow2.f32 %v1875_v2  ;;  %v1730_v40 = vmul.f32 %v13151_v62, %v1649_v48  ;;  %v2149_v62 = vmul.f32 %v2119_v16, %v10576_v51  ;;  %v3191_v28 = vunpack.c.l.b16 %v3169_v6 }
 0x305   :  { %8269 = vrcp.f32 %v2936_v35  ;;  %v3205_v35 = vunpack.c.h.b16 %v3166_v3  ;;  %v7646_v41 = vadd.f32 -1.0, %v10640_v37  ;;  %v2155_v10 = vmul.f32 %v2125_v58, %v10605_v46 }
 0x306   :  { %v10714_v39 = vadd.f32 %v13152_v26, %v1730_v40  ;;  %8271 = vrcp.f32 %v2942_v60  ;;  %v8266_v61 = vpop.eup %8265  ;;  %v3190_v26 = vunpack.c.l.b16 %v3166_v3  ;;  %v2941_v60 = vadd.f32 1.0, %v10711_v53 }
 0x307   :  { %v2064_v51 = vmul.f32 %v8266_v61, %v7603_v8  ;;  %v2170_v9 = vpack.c.bf16 %v2150_v14, %v2149_v62  ;;  %v10726_v27 = vpack.c.b16 %v3206_v44, %v3205_v35  ;;  %2308 = vmatpush.bf16.msra.mxu2 %v10352_v0  ;;  %v3017_v57 = vmul.f32 %v8262_v30, %v7646_v41 }
 0x308   :  { %v1826_v18 = vmin.f32 %v10714_v39, 20.0  ;;  %v10728_v31 = vpack.c.b16 %v3191_v28, %v3190_v26  ;;  %v7645_v13 = vadd.f32 -1.0, %v10660_v32  ;;  %v2698_v40 = vmin.f32 %v10720_v34, 20.0 }
 0x309   :  { %v2124_v43 = vsel %vm2094_vm13, 1.0, %v2064_v51  ;;  %v12977_v16 = vrot.slane %v10726_v27, 2  ;;  %v2575_v46 = vmul.f32 %v13153_v33, %v1649_v48  ;;  %v3097_v29 = vsel %vm3057_vm10, 1.0, %v3017_v57 }
 0x30a   :  { %v8268_v15 = vpop.eup %8267  ;;  %v1885_v24 = vmul.f32 1.442695, %v1826_v18  ;;  %v2154_v63 = vmul.f32 %v2124_v43, %v10627_v17  ;;  %v13165_v30 = vrot.slane %v10554_v49, 2  ;;  %v2216_v32 = vunpack.c.h.b16 %v2170_v9 }
 0x30b   :  { %v1911_v25 = vadd.f32 1.0, %v8268_v15  ;;  %v8270_v2 = vpop.eup %8269  ;;  %2309 = vmatpush.bf16.msra.mxu2 %v13097_v23  ;;  %v2215_v14 = vunpack.c.l.b16 %v2170_v9  ;;  %v7651_v33 = vadd.f32 -1.0, %v10676_v4  ;;  %v2762_v8 = vmul.f32 1.442695, %v2698_v40 }
 0x30c   :  { %8273 = vpow2.f32 %v1885_v24  ;;  %v8272_v45 = vpop.eup %8271  ;;  %v2173_v1 = vpack.c.bf16 %v2155_v10, %v2154_v63  ;;  %v10746_v17 = vsel %vm1325_vm11, %v13165_v30, %v12977_v16  ;;  %v3016_v3 = vmul.f32 %v8270_v2, %v7645_v13  ;;  %v13170_v13 = vld [vmem:[#allocation58_spill] sm:$0xff] }
 0x30d   :  { %v1941_v37 = vmul.f32 %v1911_v25, %v1911_v25  ;;  %8275 = vrcp.f32 %v2941_v60  ;;  %v10752_v18 = vadd.f32 %v13155_v54, %v2575_v46  ;;  %v3137_v35 = vmul.f32 %v3097_v29, %v10557_v19 }
 0x30e   :  { %v2221_v48 = vunpack.c.h.b16 %v2173_v1  ;;  %v2220_v62 = vunpack.c.l.b16 %v2173_v1  ;;  %v3096_v6 = vsel %vm3056_vm14, 1.0, %v3016_v3  ;;  %2310 = vmatmul.bf16.vlgmr.msra.gmra.mxu2 %v10717_v38  ;;  %v3022_v4 = vmul.f32 %v8272_v45, %v7651_v33  ;;  %v13171_v1 = vld [vmem:[#allocation31_spill] sm:$0xff] }
 0x30f   :  { %v2001_v55 = vadd.f32 1.0, %v1941_v37  ;;  %v3136_v61 = vmul.f32 %v3096_v6, %v10580_v22  ;;  %v13166_v51 = vunpack.c.h.b16 %v10494_v42  ;;  %v13167_v60 = vunpack.c.h.b16 %v10043_v47 }
 0x310   :  { %v10757_v26 = vpack.c.b16 %v2221_v48, %v2216_v32  ;;  %v10759_v28 = vpack.c.b16 %v2220_v62, %v2215_v14  ;;  %v2205_v54 = vunpack.c.l.b16 %v10494_v42  ;;  %v10770_v19 = vpack.c.bf16 %v10635_v12, %v10549_v36  ;;  %v13173_v62 = vld [vmem:[#allocation69_spill] sm:$0xff] }
 0x311   :  { %8277 = vrcp.f32 %v2001_v55  ;;  %v10765_v24 = vpack.c.b16 %v13167_v60, %v13166_v51  ;;  %v3167_v22 = vpack.c.bf16 %v3137_v35, %v3136_v61  ;;  %v7650_v9 = vadd.f32 -1.0, %v10711_v53  ;;  %v13174_v60 = vld [vmem:[#allocation37_spill] sm:$0xff] }
 0x312   :  { %v8274_v58 = vpop.eup %8273  ;;  %13168 = vst [vmem:[#allocation26_spill] sm:$0xff] %v10770_v19  ;;  %2319 = vmatpush.bf16.msrb.mxu0 %v10757_v26  ;;  %2345 = vmatpush.bf16.msrb.mxu3 %v10759_v28  ;;  %v3234_v25 = vunpack.c.l.b16 %v10198_v21  ;;  %8279 = vpow2.f32 %v2762_v8  ;;  %v2703_v2 = vmin.f32 %v10752_v18, 20.0  ;;  %v7600_v42 = vadd.f32 -1.0, %v1941_v37 }
 0x313   :  { %v1916_v44 = vadd.f32 1.0, %v8274_v58  ;;  %v8276_v15 = vpop.eup %8275  ;;  %2387 = vmatpush.bf16.msrb.mxu1 %v10757_v26  ;;  %v3235_v10 = vunpack.c.l.b16 %v3167_v22  ;;  %v13169_v12 = vunpack.c.l.b16 %v10043_v47  ;;  %v3102_v63 = vsel %vm3062_vm0, 1.0, %v3022_v4 }
 0x314   :  { %v3021_v45 = vmul.f32 %v8276_v15, %v7650_v9  ;;  %v10785_v53 = vadd.f32 %v13170_v13, %v10466_v59  ;;  %v3250_v37 = vunpack.c.h.b16 %v10198_v21  ;;  %v2772_v29 = vmul.f32 1.442695, %v2703_v2  ;;  %v13172_v21 = vld [vmem:[#allocation66_spill] sm:$0xff]  ;;  %v7876_v9 = vld [vmem:[#allocation2 + $0x84] sm:$0x30] }
 0x315   :  { %v1946_v41 = vmul.f32 %v1916_v44, %v1916_v44  ;;  %v10781_v43 = vpack.c.b16 %v13169_v12, %v2205_v54  ;;  %v10788_v46 = vpack.c.b16 %v3235_v10, %v3234_v25  ;;  %v3142_v59 = vmul.f32 %v3102_v63, %v10608_v50  ;;  %v7616_v54 = vld [vmem:[#allocation2 + $0x78] sm:$0xf] }
 0x316   :  { %2320 = vmatpush.bf16.msrb.mxu0 %v10765_v24  ;;  %v3101_v47 = vsel %vm3061_vm4, 1.0, %v3021_v45  ;;  %v2683_v30 = vmin.f32 %v13171_v1, 20.0  ;;  %v3249_v3 = vunpack.c.h.b16 %v10770_v19  ;;  %v2678_v14 = vmin.f32 %v10785_v53, 20.0 }
 0x317   :  { %v8278_v36 = vpop.eup %8277  ;;  %v2006_v57 = vadd.f32 1.0, %v1946_v41  ;;  %2346 = vmatpush.bf16.msrb.mxu3 %v10781_v43  ;;  %2388 = vmatpush.bf16.msrb.mxu1 %v10765_v24  ;;  %v3141_v55 = vmul.f32 %v3101_v47, %v10643_v7  ;;  %v7605_v50 = vadd.f32 -1.0, %v1946_v41  ;;  %v3251_v7 = vunpack.c.h.b16 %v3167_v22 }
 0x318   :  { %v2061_v40 = vmul.f32 %v8278_v36, %v7600_v42  ;;  %v8280_v32 = vpop.eup %8279  ;;  %v10804_v6 = vpack.c.b16 %v3250_v37, %v3249_v3  ;;  %v2732_v61 = vmul.f32 1.442695, %v2683_v30  ;;  %v2722_v4 = vmul.f32 1.442695, %v2678_v14 }
 0x319   :  { %8281 = vrcp.f32 %v2006_v57  ;;  %v10800_v48 = vpack.c.bf16 %v3142_v59, %v3141_v55  ;;  %v2818_v44 = vadd.f32 1.0, %v8280_v32  ;;  %vm2096_vm6 = vcmp.gt.f32.partialorder %v10714_v39, 20.0 }
 0x31a   :  { %v2121_v33 = vsel %vm2091_vm5, 1.0, %v2061_v40  ;;  %2321 = vmatpush.bf16.msrb.mxu0 %v13172_v21  ;;  %8283 = vpow2.f32 %v2772_v29  ;;  %v10818_v12 = vor.u32 %v7876_v9, %v7616_v54  ;;  %vm3058_vm7 = vcmp.gt.f32.partialorder %v10720_v34, 20.0 }
 0x31b   :  { %2347 = vmatpush.bf16.msrb.mxu3 %v13173_v62  ;;  %2389 = vmatpush.bf16.msrb.mxu1 %v13172_v21  ;;  %v3252_v58 = vunpack.c.h.b16 %v10800_v48  ;;  %v2151_v35 = vmul.f32 %v2121_v33, %v10682_v56  ;;  %v2858_v22 = vmul.f32 %v2818_v44, %v2818_v44  ;;  %v12975_v56 = vrot.slane %v10804_v6, 6 }
 0x31c   :  { %8285 = vpow2.f32 %v2732_v61  ;;  %vm3063_vm8 = vcmp.gt.f32.partialorder %v10752_v18, 20.0  ;;  %vm3043_vm9 = vcmp.gt.f32.partialorder %v13171_v1, 20.0  ;;  %vm3038_vm10 = vcmp.gt.f32.partialorder %v10785_v53, 20.0 }
 0x31d   :  { %v10809_v51 = vpack.c.b16 %v3252_v58, %v3251_v7  ;;  %v2171_v42 = vpack.c.bf16 %v2151_v35, %v2151_v35  ;;  %v2938_v10 = vadd.f32 1.0, %v2858_v22  ;;  %8287 = vpow2.f32 %v2722_v4  ;;  %v13176_v4 = vld [vmem:[#allocation71_spill] sm:$0xff] }
 0x31e   :  { %2322 = vmatpush.bf16.msrb.mxu0 %v10759_v28  ;;  %v7647_v59 = vadd.f32 -1.0, %v2858_v22 }
 0x31f   :  { %v8282_v8 = vpop.eup %8281  ;;  %2348 = vmatpush.bf16.msrb.mxu3 %v13174_v60  ;;  %2390 = vmatpush.bf16.msrb.mxu1 %v10759_v28  ;;  %v12976_v25 = vrot.slane %v10809_v51, 6  ;;  %8289 = vrcp.f32 %v2938_v10 }
 0x320   :  { %v2066_v15 = vmul.f32 %v8282_v8, %v7605_v50  ;;  %v8284_v36 = vpop.eup %8283  ;;  %v13175_v50 = vld [vmem:[#allocation73_spill] sm:$0xff] }
 0x321   :  { %v10825_v57 = vsel %vm1279_vm15, %v12975_v56, %v12976_v25  ;;  %v2823_v40 = vadd.f32 1.0, %v8284_v36 }
 0x322   :  { %v2126_v41 = vsel %vm2096_vm6, 1.0, %v2066_v15  ;;  %2323 = vmatpush.bf16.msrb.mxu0 %v10781_v43  ;;  %v8286_v47 = vpop.eup %8285 }
 0x323   :  { %v2156_v2 = vmul.f32 %v2126_v41, %v10714_v39  ;;  %2349 = vmatpush.bf16.msrb.mxu3 %v10081_v52  ;;  %2391 = vmatpush.bf16.msrb.mxu1 %v10781_v43  ;;  %v2217_v39 = vunpack.c.l.b16 %v2171_v42  ;;  %v2863_v29 = vmul.f32 %v2823_v40, %v2823_v40  ;;  %v8288_v55 = vpop.eup %8287  ;;  %v2803_v32 = vadd.f32 1.0, %v8286_v47  ;;  %v13177_v47 = vld [vmem:[#allocation68_spill] sm:$0xff] }
 0x324   :  { %v2798_v33 = vadd.f32 1.0, %v8288_v55 }
 0x325   :  { %v2174_v45 = vpack.c.bf16 %v2156_v2, %v2156_v2  ;;  %7618 = vmatmul.msk.bf16.vlgmr.msrb.gmra.mxu0 %vm2284_vm3, %v10818_v12  ;;  %v8290_v30 = vpop.eup %8289  ;;  %v2943_v3 = vadd.f32 1.0, %v2863_v29  ;;  %v2843_v7 = vmul.f32 %v2803_v32, %v2803_v32  ;;  %v7652_v61 = vadd.f32 -1.0, %v2863_v29 }
 0x326   :  { %2372 = vmatpush.bf16.msra.mxu0 %v10081_v52  ;;  %v3018_v14 = vmul.f32 %v8290_v30, %v7647_v59  ;;  %v2838_v8 = vmul.f32 %v2798_v33, %v2798_v33  ;;  %v13180_v59 = vld [vmem:[#allocation19_spill] sm:$0xff] }
 0x327   :  { %v2222_v63 = vunpack.c.l.b16 %v2174_v45  ;;  %2350 = vmatpush.bf16.msrb.mxu3 %v13164_v5  ;;  %2392 = vmatpush.bf16.msrb.mxu1 %v13173_v62  ;;  %8291 = vrcp.f32 %v2943_v3  ;;  %v2923_v15 = vadd.f32 1.0, %v2843_v7  ;;  %v7632_v45 = vadd.f32 -1.0, %v2843_v7 }
 0x328   :  { %v3098_v58 = vsel %vm3058_vm7, 1.0, %v3018_v14  ;;  %v2918_v9 = vadd.f32 1.0, %v2838_v8  ;;  %v13181_v14 = vld [vmem:[#allocation23_spill] sm:$0xff] }
 0x329   :  { %v10834_v37 = vpack.c.b16 %v2222_v63, %v2217_v39  ;;  %v3138_v44 = vmul.f32 %v3098_v58, %v10720_v34  ;;  %8293 = vrcp.f32 %v2923_v15  ;;  %v2339_v58 = vpop.f32.mrf.mxu1 }
 0x32a   :  { %2373 = vmatpush.bf16.msra.mxu0 %v13164_v5  ;;  %8295 = vrcp.f32 %v2918_v9  ;;  %v13184_v9 = vld [vmem:[#allocation50_spill] sm:$0xff] }
 0x32b   :  { %2361 = vmatpush.bf16.msrb.mxu2 %v10834_v37  ;;  %2351 = vmatpush.bf16.msrb.mxu3 %v10686_v20  ;;  %v3168_v2 = vpack.c.bf16 %v3138_v44, %v3138_v44  ;;  %v13183_v44 = vld [vmem:[#allocation48_spill] sm:$0xff] }
 0x32c   :  { %2393 = vmatpush.bf16.msrb.mxu1 %v13174_v60 }
 0x32d   :  { %v8292_v35 = vpop.eup %8291  ;;  %v10862_v42 = vunpack.c.l.b16 %v3168_v2 }
 0x32e   :  { %2374 = vmatpush.bf16.msra.mxu0 %v10686_v20  ;;  %2352 = vmatmul.bf16.vlgmr.msrb.gmra.mxu3 %v10717_v38  ;;  %v3023_v54 = vmul.f32 %v8292_v35, %v7652_v61 }
 0x32f   :  { %2406 = vmatpush.bf16.msra.mxu3 %v10834_v37  ;;  %2362 = vmatpush.bf16.msrb.mxu2 %v13175_v50  ;;  %v8294_v36 = vpop.eup %8293 }
 0x330   :  { %2456 = vmatpush.bf16.msra.mxu1 %v10765_v24  ;;  %v3103_v22 = vsel %vm3063_vm8, 1.0, %v3023_v54  ;;  %v8296_v39 = vpop.eup %8295  ;;  %v3003_v63 = vmul.f32 %v8294_v36, %v7632_v45 }
 0x331   :  { %2394 = vmatmul.bf16.vlgmr.msrb.gmra.mxu1 %v10717_v38  ;;  %v3143_v41 = vmul.f32 %v3103_v22, %v10752_v18 }
 0x332   :  { %2375 = vmatpush.bf16.msra.mxu0 %v10338_v11  ;;  %v3083_v29 = vsel %vm3043_vm9, 1.0, %v3003_v63  ;;  %v13186_v63 = vld [vmem:[#allocation67_spill] sm:$0xff] }
 0x333   :  { %2407 = vmatpush.bf16.msra.mxu3 %v13175_v50  ;;  %2363 = vmatpush.bf16.msrb.mxu2 %v13176_v4  ;;  %v3171_v34 = vpack.c.bf16 %v3143_v41, %v3143_v41  ;;  %v3123_v55 = vmul.f32 %v3083_v29, %v13171_v1 }
 0x334   :  { %2457 = vmatpush.bf16.msra.mxu1 %v13172_v21 }
 0x335   :  { %v10864_v10 = vunpack.c.l.b16 %v3171_v34 }
 0x336   :  { %2376 = vmatpush.bf16.msra.mxu0 %v10352_v0 }
 0x337   :  { %2429 = vmatpush.bf16.msrb.mxu3 %v10834_v37  ;;  %2364 = vmatpush.bf16.msrb.mxu2 %v10757_v26 }
 0x338   :  { %2458 = vmatpush.bf16.msra.mxu1 %v10759_v28 }
 0x33a   :  { %2377 = vmatpush.bf16.msra.mxu0 %v13097_v23 }
 0x33b   :  { %2430 = vmatpush.bf16.msrb.mxu3 %v13175_v50  ;;  %2365 = vmatpush.bf16.msrb.mxu2 %v10765_v24 }
 0x33c   :  { %2459 = vmatpush.bf16.msra.mxu1 %v10781_v43 }
 0x33e   :  { %2378 = vmatpush.bf16.msra.mxu0 %v13097_v23  ;;  %7619 = vmatmul.msk.bf16.vlgmr.msrb.gmra.mxu2 %vm2284_vm3, %v10818_v12 }
 0x33f   :  { %2431 = vmatpush.bf16.msrb.mxu3 %v13176_v4  ;;  %2414 = vmatpush.bf16.msra.mxu2 %v10781_v43  ;;  %v7627_v43 = vadd.f32 -1.0, %v2838_v8  ;;  %v13182_v8 = vld [vmem:[#allocation20_spill] sm:$0xff] }
 0x340   :  { %2460 = vmatpush.bf16.msra.mxu1 %v13173_v62  ;;  %7620 = vmatmul.msk.bf16.vlgmr.msra.gmra.mxu3 %vm2284_vm3, %v10818_v12 }
 0x341   :  { %v2998_v40 = vmul.f32 %v8296_v39, %v7627_v43  ;;  %v13185_v43 = vld [vmem:[#allocation21_spill] sm:$0xff] }
 0x342   :  { %2379 = vmatpush.bf16.msra.mxu0 %v13097_v23 }
 0x343   :  { %2432 = vmatpush.bf16.msrb.mxu3 %v10757_v26  ;;  %2415 = vmatpush.bf16.msra.mxu2 %v13173_v62  ;;  %v3078_v62 = vsel %vm3038_vm10, 1.0, %v2998_v40  ;;  %v2551_v40 = vmul.f32 %v13186_v63, %v13185_v43 }
 0x344   :  { %2461 = vmatpush.bf16.msra.mxu1 %v13174_v60 }
 0x345   :  { %2380 = vmatmul.bf16.vlgmr.msra.gmra.mxu0 %v13177_v47 }
 0x346   :  { %2449 = vmatpush.bf16.msrb.mxu0 %v13097_v23 }
 0x347   :  { %2433 = vmatpush.bf16.msrb.mxu3 %v10765_v24  ;;  %2416 = vmatpush.bf16.msra.mxu2 %v13174_v60  ;;  %v3118_v24 = vmul.f32 %v3078_v62, %v10785_v53 }
 0x348   :  { %2462 = vmatpush.bf16.msra.mxu1 %v10081_v52 }
 0x349   :  { %v3156_v60 = vpack.c.bf16 %v3118_v24, %v3118_v24 }
 0x34a   :  { %2474 = vmatpush.bf16.msra.mxu0 %v10834_v37  ;;  %v3159_v37 = vpack.c.bf16 %v3123_v55, %v3123_v55 }
 0x34b   :  { %2434 = vmatpush.bf16.msrb.mxu3 %v13172_v21  ;;  %2417 = vmatpush.bf16.msra.mxu2 %v10081_v52  ;;  %v3277_v52 = vunpack.c.l.b16 %v3156_v60  ;;  %v13187_v60 = vld [vmem:[#allocation49_spill] sm:$0xff] }
 0x34c   :  { %2463 = vmatpush.bf16.msra.mxu1 %v13164_v5  ;;  %v3278_v1 = vunpack.c.l.b16 %v3159_v37  ;;  %v2341_v37 = vpop.f32.mrf.mxu1 }
 0x34e   :  { %2475 = vmatpush.bf16.msra.mxu0 %v13175_v50  ;;  %v3285_v53 = vpack.c.b16 %v3278_v1, %v3277_v52  ;;  %v13188_v52 = vld [vmem:[#allocation32_spill] sm:$0xff] }
 0x34f   :  { %2435 = vmatpush.bf16.msrb.mxu3 %v10759_v28  ;;  %2464 = vmatmul.bf16.vlgmr.msra.gmra.mxu1 %v13177_v47  ;;  %v13179_v28 = vld [vmem:[#allocation53_spill] sm:$0xff] }
 0x350   :  { %2418 = vmatpush.bf16.msra.mxu2 %v13164_v5  ;;  %v2297_v5 = vpop.f32.mrf.mxu0  ;;  %v2549_v30 = vmul.f32 %v13179_v28, %v13180_v59  ;;  %v2546_v33 = vmul.f32 %v13179_v28, %v13181_v14  ;;  %v2547_v61 = vmul.f32 %v13179_v28, %v13182_v8  ;;  %v13192_v14 = vld [vmem:[#allocation54_spill] sm:$0xff] }
 0x352   :  { %2476 = vmatpush.bf16.msra.mxu0 %v13176_v4  ;;  %2436 = vmatmul.bf16.vlgmr.msrb.gmra.mxu3 %v10717_v38  ;;  %v10928_v35 = vadd.f32 %v13170_v13, %v2546_v33  ;;  %v2298_v4 = vadd.f32 %v2297_v5, %v13183_v44  ;;  %v10933_v34 = vadd.f32 %v13170_v13, %v2547_v61 }
 0x354   :  { %2419 = vmatpush.bf16.msra.mxu2 %v10686_v20  ;;  %v2674_v45 = vmin.f32 %v10928_v35, 20.0  ;;  %v2675_v62 = vmin.f32 %v10933_v34, 20.0  ;;  %vm3034_vm14 = vcmp.gt.f32.partialorder %v10928_v35, 20.0  ;;  %vm3035_vm0 = vcmp.gt.f32.partialorder %v10933_v34, 20.0 }
 0x355   :  { %7621 = vmatmul.msk.bf16.vlgmr.msrb.gmra.mxu0 %vm2284_vm3, %v10818_v12 }
 0x356   :  { %2477 = vmatpush.bf16.msra.mxu0 %v10757_v26  ;;  %v13178_v26 = vld [vmem:[#allocation18_spill] sm:$0xff]  ;;  %v2714_v24 = vmul.f32 1.442695, %v2674_v45  ;;  %v2716_v59 = vmul.f32 1.442695, %v2675_v62 }
 0x357   :  { %v2548_v21 = vmul.f32 %v13179_v28, %v13178_v26 }
 0x358   :  { %2420 = vmatpush.bf16.msra.mxu2 %v10338_v11  ;;  %v2299_v20 = vpop.f32.mrf.mxu0 }
 0x359   :  { %v10916_v11 = vadd.f32 %v13170_v13, %v2548_v21  ;;  %v2300_v22 = vadd.f32 %v2299_v20, %v13184_v9  ;;  %v13190_v20 = vld [vmem:[#allocation22_spill] sm:$0xff] }
 0x35a   :  { %3473 = vmatpush.bf16.msrb.mxu0 %v3285_v53  ;;  %v10941_v53 = vadd.f32 %v13188_v52, %v2551_v40  ;;  %v2552_v26 = vmul.f32 %v13186_v63, %v13190_v20 }
 0x35b   :  { %vm3036_vm12 = vcmp.gt.f32.partialorder %v10916_v11, 20.0 }
 0x35c   :  { %2421 = vmatpush.bf16.msra.mxu2 %v10352_v0  ;;  %v10919_v0 = vadd.f32 %v13170_v13, %v2549_v30  ;;  %v13189_v13 = vld [vmem:[#allocation51_spill] sm:$0xff]  ;;  %vm3039_vm4 = vcmp.gt.f32.partialorder %v10941_v53, 20.0 }
 0x35e   :  { %vm3037_vm13 = vcmp.gt.f32.partialorder %v10919_v0, 20.0 }
 0x35f   :  { %2422 = vmatmul.bf16.vlgmr.msra.gmra.mxu2 %v13177_v47 }
 0x360   :  { %2491 = vmatpush.bf16.msrb.mxu2 %v13097_v23 }
 0x365   :  { %2478 = vmatmul.bf16.vlgmr.msra.gmra.mxu0 %v10717_v38  ;;  %v2676_v38 = vmin.f32 %v10916_v11, 20.0 }
 0x367   :  { %v2718_v50 = vmul.f32 1.442695, %v2676_v38 }
 0x369   :  { %8297 = vpow2.f32 %v2718_v50  ;;  %v10954_v50 = vadd.f32 %v13188_v52, %v2552_v26 }
 0x36b   :  { %v2680_v40 = vmin.f32 %v10954_v50, 20.0  ;;  %vm3040_vm5 = vcmp.gt.f32.partialorder %v10954_v50, 20.0 }
 0x36f   :  { %7622 = vmatmul.msk.bf16.vlgmr.msrb.gmra.mxu2 %vm2284_vm3, %v10818_v12  ;;  %v2677_v12 = vmin.f32 %v10919_v0, 20.0  ;;  %v8298_v29 = vpop.eup %8297 }
 0x370   :  { %v2796_v21 = vadd.f32 1.0, %v8298_v29 }
 0x371   :  { %v2720_v7 = vmul.f32 1.442695, %v2677_v12  ;;  %v2679_v12 = vmin.f32 %v10941_v53, 20.0 }
 0x372   :  { %v2836_v8 = vmul.f32 %v2796_v21, %v2796_v21 }
 0x373   :  { %8299 = vpow2.f32 %v2720_v7  ;;  %v2340_v7 = vadd.f32 %v2339_v58, %v13183_v44 }
 0x374   :  { %8301 = vpow2.f32 %v2714_v24  ;;  %v2916_v58 = vadd.f32 1.0, %v2836_v8 }
 0x375   :  { %8303 = vpow2.f32 %v2716_v59  ;;  %v2726_v59 = vmul.f32 1.442695, %v2680_v40 }
 0x379   :  { %v8300_v55 = vpop.eup %8299 }
 0x37a   :  { %v8302_v45 = vpop.eup %8301 }
 0x37b   :  { %v2794_v26 = vadd.f32 1.0, %v8302_v45 }
 0x391   :  { %v2311_v3 = vpop.f32.mrf.mxu2 }
 0x392   :  { %v2312_v41 = vadd.f32 %v2311_v3, %v2298_v4  ;;  %v2797_v3 = vadd.f32 1.0, %v8300_v55 }
 0x394   :  { %v2837_v61 = vmul.f32 %v2797_v3, %v2797_v3 }
 0x396   :  { %v2917_v62 = vadd.f32 1.0, %v2837_v61 }
 0x399   :  { %v2313_v15 = vpop.f32.mrf.mxu2 }
 0x39a   :  { %v2314_v36 = vadd.f32 %v2313_v15, %v2300_v22 }
 0x3a2   :  { %v2325_v32 = vpop.f32.mrf.mxu0 }
 0x3a3   :  { %v2326_v39 = vadd.f32 %v2325_v32, %v2312_v41  ;;  %v13191_v32 = vld [vmem:[#allocation52_spill] sm:$0xff]  ;;  %v2724_v41 = vmul.f32 1.442695, %v2679_v12  ;;  %v13194_v12 = vld [vmem:[#allocation17_spill] sm:$0xff] }
 0x3a5   :  { %v2576_v1 = vmul.f32 %v13187_v60, %v2326_v39  ;;  %v13193_v39 = vld [vmem:[#allocation16_spill] sm:$0xff]  ;;  %8305 = vpow2.f32 %v2724_v41  ;;  %v2342_v41 = vadd.f32 %v2341_v37, %v13184_v9 }
 0x3a6   :  { %v2553_v43 = vmul.f32 %v13186_v63, %v13193_v39  ;;  %8307 = vrcp.f32 %v2916_v58 }
 0x3a7   :  { %v10947_v38 = vadd.f32 %v13191_v32, %v2576_v1  ;;  %v8304_v1 = vpop.eup %8303  ;;  %8309 = vrcp.f32 %v2917_v62 }
 0x3a8   :  { %v10965_v21 = vadd.f32 %v13188_v52, %v2553_v43 }
 0x3a9   :  { %v2704_v4 = vmin.f32 %v10947_v38, 20.0  ;;  %vm3064_vm3 = vcmp.gt.f32.partialorder %v10947_v38, 20.0 }
 0x3aa   :  { %v2327_v2 = vpop.f32.mrf.mxu0  ;;  %v2681_v45 = vmin.f32 %v10965_v21, 20.0  ;;  %vm3041_vm10 = vcmp.gt.f32.partialorder %v10965_v21, 20.0 }
 0x3ab   :  { %v2328_v47 = vadd.f32 %v2327_v2, %v2314_v36  ;;  %v2774_v55 = vmul.f32 1.442695, %v2704_v4  ;;  %v8306_v40 = vpop.eup %8305 }
 0x3ac   :  { %v8308_v62 = vpop.eup %8307 }
 0x3ad   :  { %v2581_v5 = vmul.f32 %v13189_v13, %v2328_v47  ;;  %8311 = vpow2.f32 %v2774_v55  ;;  %v8310_v37 = vpop.eup %8309 }
 0x3ae   :  { %v2395_v22 = vpop.f32.mrf.mxu1 }
 0x3af   :  { %v10951_v33 = vadd.f32 %v13192_v14, %v2581_v5 }
 0x3b1   :  { %v2353_v54 = vpop.f32.mrf.mxu3  ;;  %v2709_v2 = vmin.f32 %v10951_v33, 20.0  ;;  %vm3069_vm7 = vcmp.gt.f32.partialorder %v10951_v33, 20.0 }
 0x3b2   :  { %v2354_v15 = vadd.f32 %v2353_v54, %v2340_v7  ;;  %v2554_v7 = vmul.f32 %v13186_v63, %v13194_v12 }
 0x3b3   :  { %v2784_v54 = vmul.f32 1.442695, %v2709_v2 }
 0x3b4   :  { %v10977_v63 = vadd.f32 %v13188_v52, %v2554_v7 }
 0x3b5   :  { %8313 = vpow2.f32 %v2784_v54 }
 0x3b6   :  { %8315 = vpow2.f32 %v2726_v59  ;;  %v2397_v39 = vpop.f32.mrf.mxu1  ;;  %v2682_v12 = vmin.f32 %v10977_v63, 20.0 }
 0x3b9   :  { %v2355_v28 = vpop.f32.mrf.mxu3 }
 0x3c1   :  { %v2367_v36 = vpop.f32.mrf.mxu2 }
 0x3c2   :  { %v2381_v30 = vpop.f32.mrf.mxu0  ;;  %v2368_v29 = vadd.f32 %v2367_v36, %v2354_v15  ;;  %v2834_v36 = vmul.f32 %v2794_v26, %v2794_v26  ;;  %v2728_v26 = vmul.f32 1.442695, %v2681_v45 }
 0x3c3   :  { %v2409_v47 = vpop.f32.mrf.mxu3  ;;  %v2382_v5 = vadd.f32 %v2381_v30, %v13183_v44  ;;  %v2795_v30 = vadd.f32 1.0, %v8304_v1 }
 0x3c4   :  { %v2577_v24 = vmul.f32 %v13187_v60, %v2368_v29  ;;  %v2356_v29 = vadd.f32 %v2355_v28, %v2342_v41  ;;  %v7625_v28 = vadd.f32 -1.0, %v2836_v8  ;;  %v2799_v41 = vadd.f32 1.0, %v8306_v40 }
 0x3c5   :  { %v2396_v2 = vadd.f32 %v2395_v22, %v2382_v5  ;;  %v2835_v1 = vmul.f32 %v2795_v30, %v2795_v30  ;;  %v2914_v5 = vadd.f32 1.0, %v2834_v36  ;;  %v2730_v40 = vmul.f32 1.442695, %v2682_v12 }
 0x3c6   :  { %v10968_v3 = vadd.f32 %v13191_v32, %v2577_v24 }
 0x3c7   :  { %v2410_v54 = vadd.f32 %v2409_v47, %v2396_v2 }
 0x3c8   :  { %v2705_v15 = vmin.f32 %v10968_v3, 20.0  ;;  %vm3065_vm6 = vcmp.gt.f32.partialorder %v10968_v3, 20.0 }
 0x3c9   :  { %v2369_v24 = vpop.f32.mrf.mxu2  ;;  %v2578_v30 = vmul.f32 %v13187_v60, %v2410_v54 }
 0x3ca   :  { %v2383_v20 = vpop.f32.mrf.mxu0  ;;  %v2776_v43 = vmul.f32 1.442695, %v2705_v15  ;;  %v2370_v22 = vadd.f32 %v2369_v24, %v2356_v29  ;;  %v2996_v24 = vmul.f32 %v8308_v62, %v7625_v28 }
 0x3cb   :  { %v2384_v4 = vadd.f32 %v2383_v20, %v13184_v9  ;;  %v2411_v55 = vpop.f32.mrf.mxu3  ;;  %v8312_v20 = vpop.eup %8311 }
 0x3cc   :  { %8317 = vpow2.f32 %v2776_v43  ;;  %v8314_v59 = vpop.eup %8313  ;;  %v2582_v52 = vmul.f32 %v13189_v13, %v2370_v22  ;;  %v2824_v43 = vadd.f32 1.0, %v8312_v20  ;;  %v10987_v20 = vmul.f32 %v2799_v41, %v2799_v41 }
 0x3cd   :  { %v2398_v58 = vadd.f32 %v2397_v39, %v2384_v4  ;;  %v8316_v7 = vpop.eup %8315  ;;  %v7626_v4 = vadd.f32 -1.0, %v2837_v61  ;;  %v2915_v39 = vadd.f32 1.0, %v2835_v1  ;;  %8319 = vrcp.f32 %v2914_v5 }
 0x3ce   :  { %v10983_v47 = vadd.f32 %v13192_v14, %v2582_v52  ;;  %8321 = vpow2.f32 %v2728_v26  ;;  %v2829_v29 = vadd.f32 1.0, %v8314_v59  ;;  %v2800_v61 = vadd.f32 1.0, %v8316_v7 }
 0x3cf   :  { %v2412_v15 = vadd.f32 %v2411_v55, %v2398_v58  ;;  %v2997_v58 = vmul.f32 %v8310_v37, %v7626_v4  ;;  %8323 = vrcp.f32 %v2915_v39  ;;  %v10989_v54 = vmul.f32 %v2824_v43, %v2824_v43 }
 0x3d0   :  { %v2710_v8 = vmin.f32 %v10983_v47, 20.0  ;;  %v10992_v52 = vadd.f32 %v13191_v32, %v2578_v30  ;;  %v10995_v62 = vmul.f32 %v2829_v29, %v2829_v29  ;;  %v3076_v26 = vsel %vm3036_vm12, 1.0, %v2996_v24 }
 0x3d1   :  { %v2583_v22 = vmul.f32 %v13189_v13, %v2412_v15  ;;  %v3077_v7 = vsel %vm3037_vm13, 1.0, %v2997_v58  ;;  %v11001_v28 = vmul.f32 %v2800_v61, %v2800_v61  ;;  %v7623_v41 = vadd.f32 -1.0, %v2834_v36 }
 0x3d2   :  { %v2451_v2 = vpop.f32.mrf.mxu0  ;;  %v8318_v45 = vpop.eup %8317  ;;  %v2786_v37 = vmul.f32 1.442695, %v2710_v8  ;;  %v2919_v39 = vadd.f32 1.0, %v10987_v20  ;;  %v2944_v43 = vadd.f32 1.0, %v10989_v54  ;;  %v2706_v30 = vmin.f32 %v10992_v52, 20.0 }
 0x3d3   :  { %v2825_v55 = vadd.f32 1.0, %v8318_v45  ;;  %v8320_v59 = vpop.eup %8319  ;;  %v10999_v12 = vadd.f32 %v13192_v14, %v2583_v22  ;;  %v7624_v45 = vadd.f32 -1.0, %v2835_v1  ;;  %v2949_v24 = vadd.f32 1.0, %v10995_v62 }
 0x3d4   :  { %v8322_v4 = vpop.eup %8321  ;;  %8325 = vpow2.f32 %v2786_v37  ;;  %v3116_v58 = vmul.f32 %v3076_v26, %v10916_v11  ;;  %v3117_v8 = vmul.f32 %v3077_v7, %v10919_v0  ;;  %v2994_v61 = vmul.f32 %v8320_v59, %v7623_v41 }
 0x3d5   :  { %v2865_v5 = vmul.f32 %v2825_v55, %v2825_v55  ;;  %8327 = vpow2.f32 %v2730_v40  ;;  %v8324_v29 = vpop.eup %8323  ;;  %v2711_v36 = vmin.f32 %v10999_v12, 20.0  ;;  %v2437_v40 = vpop.f32.mrf.mxu3  ;;  %v2920_v18 = vadd.f32 1.0, %v11001_v28 }
 0x3d6   :  { %v2778_v1 = vmul.f32 1.442695, %v2706_v30  ;;  %v2995_v25 = vmul.f32 %v8324_v29, %v7624_v45  ;;  %v11015_v11 = vpack.c.bf16 %v3117_v8, %v3116_v58  ;;  %v3074_v0 = vsel %vm3034_vm14, 1.0, %v2994_v61 }
 0x3d7   :  { %v2945_v15 = vadd.f32 1.0, %v2865_v5  ;;  %v2801_v26 = vadd.f32 1.0, %v8322_v4  ;;  %v7654_v29 = vadd.f32 -1.0, %v2865_v5  ;;  %v11022_v4 = vmul.f32 %v3074_v0, %v10928_v35 }
 0x3d8   :  { %v11019_v30 = vsel %vm3035_vm0, 1.0, %v2995_v25  ;;  %v7653_v5 = vadd.f32 -1.0, %v10989_v54  ;;  %v7658_v0 = vadd.f32 -1.0, %v10995_v62  ;;  %vm3070_vm8 = vcmp.gt.f32.partialorder %v10983_v47, 20.0 }
 0x3d9   :  { %8329 = vrcp.f32 %v2945_v15  ;;  %v2788_v15 = vmul.f32 1.442695, %v2711_v36  ;;  %vm3042_vm12 = vcmp.gt.f32.partialorder %v10977_v63, 20.0  ;;  %vm3066_vm13 = vcmp.gt.f32.partialorder %v10992_v52, 20.0 }
 0x3da   :  { %v11007_v55 = vpop.f32.mrf.mxu0  ;;  %8331 = vrcp.f32 %v2919_v39  ;;  %v8326_v16 = vpop.eup %8325  ;;  %vm3071_vm14 = vcmp.gt.f32.partialorder %v10999_v12, 20.0 }
 0x3db   :  { %8333 = vrcp.f32 %v2944_v43  ;;  %v8328_v59 = vpop.eup %8327  ;;  %v2830_v7 = vadd.f32 1.0, %v8326_v16  ;;  %v11024_v16 = vmul.f32 %v2801_v26, %v2801_v26 }
 0x3dc   :  { %8335 = vrcp.f32 %v2949_v24  ;;  %v2465_v24 = vpop.f32.mrf.mxu1  ;;  %v2802_v8 = vadd.f32 1.0, %v8328_v59 }
 0x3dd   :  { %8337 = vrcp.f32 %v2920_v18  ;;  %v2439_v59 = vpop.f32.mrf.mxu3 }
 0x3de   :  { %8339 = vpow2.f32 %v2778_v1  ;;  %v11038_v54 = vmul.f32 %v2802_v8, %v2802_v8 }
 0x3df   :  { %v8330_v39 = vpop.eup %8329  ;;  %8341 = vpow2.f32 %v2788_v15  ;;  %v7629_v15 = vadd.f32 -1.0, %v11001_v28 }
 0x3e0   :  { %v8332_v45 = vpop.eup %8331  ;;  %v3025_v36 = vmul.f32 %v8330_v39, %v7654_v29  ;;  %v2921_v39 = vadd.f32 1.0, %v11024_v16 }
 0x3e2   :  { %v2423_v22 = vpop.f32.mrf.mxu2  ;;  %v3105_v62 = vsel %vm3065_vm6, 1.0, %v3025_v36  ;;  %vm3428_vm6 = vcmask 359424  }
 0x3e3   :  { %v2424_v37 = vadd.f32 %v2423_v22, %v13183_v44  ;;  %v2870_v22 = vmul.f32 %v2830_v7, %v2830_v7  ;;  %v3145_v36 = vmul.f32 %v3105_v62, %v10968_v3 }
 0x3e5   :  { %v2438_v56 = vadd.f32 %v2437_v40, %v2424_v37  ;;  %v2950_v18 = vadd.f32 1.0, %v2870_v22  ;;  %v2479_v40 = vpop.f32.mrf.mxu0  ;;  %v7628_v37 = vadd.f32 -1.0, %v10987_v20  ;;  %v2466_v20 = vadd.f32 %v2465_v24, %v13183_v44 }
 0x3e7   :  { %v2452_v41 = vadd.f32 %v2451_v2, %v2438_v56  ;;  %v8334_v56 = vpop.eup %8333  ;;  %8343 = vrcp.f32 %v2950_v18  ;;  %v2999_v61 = vmul.f32 %v8332_v45, %v7628_v37  ;;  %v2480_v28 = vadd.f32 %v2479_v40, %v2466_v20 }
 0x3e8   :  { %v8336_v25 = vpop.eup %8335  ;;  %v3024_v7 = vmul.f32 %v8334_v56, %v7653_v5  ;;  %v2922_v45 = vadd.f32 1.0, %v11038_v54 }
 0x3e9   :  { %v2579_v43 = vmul.f32 %v13187_v60, %v2452_v41  ;;  %v8338_v1 = vpop.eup %8337  ;;  %v3029_v29 = vmul.f32 %v8336_v25, %v7658_v0  ;;  %v7659_v25 = vadd.f32 -1.0, %v2870_v22  ;;  %v2467_v0 = vpop.f32.mrf.mxu1  ;;  %v3079_v40 = vsel %vm3039_vm4, 1.0, %v2999_v61 }
 0x3ea   :  { %v2425_v58 = vpop.f32.mrf.mxu2  ;;  %v3000_v23 = vmul.f32 %v8338_v1, %v7629_v15  ;;  %v3104_v8 = vsel %vm3064_vm3, 1.0, %v3024_v7  ;;  %vm4026_vm3 = vcmask 130048  }
 0x3eb   :  { %v11027_v2 = vadd.f32 %v13191_v32, %v2579_v43  ;;  %v2426_v35 = vadd.f32 %v2425_v58, %v13184_v9  ;;  %v8340_v43 = vpop.eup %8339  ;;  %v3109_v24 = vsel %vm3069_vm7, 1.0, %v3029_v29  ;;  %v3144_v22 = vmul.f32 %v3104_v8, %v10947_v38 }
 0x3ec   :  { %v8342_v19 = vpop.eup %8341  ;;  %v2826_v56 = vadd.f32 1.0, %v8340_v43  ;;  %v3080_v3 = vsel %vm3040_vm5, 1.0, %v3000_v23  ;;  %v3149_v15 = vmul.f32 %v3109_v24, %v10951_v33  ;;  %v2468_v38 = vadd.f32 %v2467_v0, %v13184_v9 }
 0x3ed   :  { %v2707_v26 = vmin.f32 %v11027_v2, 20.0  ;;  %v2440_v41 = vadd.f32 %v2439_v59, %v2426_v35  ;;  %v8344_v44 = vpop.eup %8343  ;;  %v2831_v37 = vadd.f32 1.0, %v8342_v19  ;;  %v11061_v20 = vpack.c.bf16 %v3145_v36, %v3144_v22 }
 0x3ee   :  { %v3030_v1 = vmul.f32 %v8344_v44, %v7659_v25  ;;  %v2866_v19 = vmul.f32 %v2826_v56, %v2826_v56  ;;  %v3119_v8 = vmul.f32 %v3079_v40, %v10941_v53  ;;  %v3120_v9 = vmul.f32 %v3080_v3, %v10954_v50 }
 0x3ef   :  { %v2780_v58 = vmul.f32 1.442695, %v2707_v26  ;;  %v2454_v18 = vadd.f32 %v11007_v55, %v2440_v41  ;;  %v2481_v41 = vpop.f32.mrf.mxu0  ;;  %v3115_v36 = vmul.f32 %v11019_v30, %v10933_v34  ;;  %v13195_v50 = vunpack.c.l.b16 %v11015_v11 }
 0x3f0   :  { %v3110_v7 = vsel %vm3070_vm8, 1.0, %v3030_v1  ;;  %v2946_v56 = vadd.f32 1.0, %v2866_v19  ;;  %v11084_v22 = vpack.c.bf16 %v3120_v9, %v3119_v8  ;;  %v7631_v8 = vadd.f32 -1.0, %v11038_v54 }
 0x3f1   :  { %8345 = vpow2.f32 %v2780_v58  ;;  %v2584_v5 = vmul.f32 %v13189_v13, %v2454_v18  ;;  %v3150_v61 = vmul.f32 %v3110_v7, %v10983_v47  ;;  %v2482_v18 = vadd.f32 %v2481_v41, %v2468_v38 }
 0x3f2   :  { %v2493_v35 = vpop.f32.mrf.mxu2  ;;  %8347 = vrcp.f32 %v2921_v39  ;;  %v3239_v1 = vpack.c.b16 %v13195_v50, %v13195_v50  ;;  %v11087_v34 = vpack.c.bf16 %v3115_v36, %v11022_v4  ;;  %v7630_v4 = vadd.f32 -1.0, %v11024_v16 }
 0x3f3   :  { %v2494_v55 = vadd.f32 %v2493_v35, %v2480_v28  ;;  %v11050_v26 = vadd.f32 %v13192_v14, %v2584_v5  ;;  %v11068_v33 = vpack.c.bf16 %v3150_v61, %v3149_v15  ;;  %v3207_v35 = vunpack.c.h.b16 %v11061_v20 }
 0x3f4   :  { %v3201_v61 = vunpack.c.h.b16 %v11087_v34  ;;  %vm3067_vm9 = vcmp.gt.f32.partialorder %v11027_v2, 20.0  ;;  %vm3595_vm7 = vcmask 490496  }
 0x3f5   :  { %v2580_v59 = vmul.f32 %v13187_v60, %v2494_v55  ;;  %v2712_v43 = vmin.f32 %v11050_v26, 20.0  ;;  %v2871_v60 = vmul.f32 %v2831_v37, %v2831_v37  ;;  %v3208_v44 = vunpack.c.h.b16 %v11068_v33 }
 0x3f6   :  { %vm3072_vm0 = vcmp.gt.f32.partialorder %v11050_v26, 20.0 }
 0x3f7   :  { %v8346_v29 = vpop.eup %8345  ;;  %v11066_v58 = vadd.f32 %v13191_v32, %v2580_v59  ;;  %v2790_v23 = vmul.f32 1.442695, %v2712_v43  ;;  %v2951_v39 = vadd.f32 1.0, %v2871_v60  ;;  %v3212_v55 = vpack.c.b16 %v3208_v44, %v3207_v35 }
 0x3f8   :  { %v2827_v62 = vadd.f32 1.0, %v8346_v29  ;;  %v8348_v37 = vpop.eup %8347  ;;  %v7660_v35 = vadd.f32 -1.0, %v2871_v60 }
 0x3f9   :  { %v2708_v28 = vmin.f32 %v11066_v58, 20.0  ;;  %8349 = vpow2.f32 %v2790_v23  ;;  %v3218_v40 = vrot.slane %v3212_v55, 2  ;;  %vm3068_vm4 = vcmp.gt.f32.partialorder %v11066_v58, 20.0 }
 0x3fa   :  { %v2867_v25 = vmul.f32 %v2827_v62, %v2827_v62  ;;  %v2495_v47 = vpop.f32.mrf.mxu2  ;;  %8351 = vrcp.f32 %v2922_v45 }
 0x3fb   :  { %v2782_v5 = vmul.f32 1.442695, %v2708_v28  ;;  %v2496_v32 = vadd.f32 %v2495_v47, %v2482_v18  ;;  %v3298_v45 = vsel %vm163_vm1, %v3218_v40, %v3239_v1  ;;  %v13196_v18 = vrot.slane %v10726_v27, 2 }
 0x3fc   :  { %v2947_v24 = vadd.f32 1.0, %v2867_v25  ;;  %3444 = vmatpush.bf16.msra.mxu3 %v3298_v45  ;;  %v7656_v38 = vadd.f32 -1.0, %v2867_v25  ;;  %v7655_v47 = vadd.f32 -1.0, %v2866_v19  ;;  %v3193_v27 = vunpack.c.l.b16 %v11068_v33 }
 0x3fd   :  { %8353 = vpow2.f32 %v2782_v5  ;;  %v2585_v53 = vmul.f32 %v13189_v13, %v2496_v32  ;;  %v3219_v28 = vsel %vm1325_vm11, %v13196_v18, %v3218_v40  ;;  %v3001_v32 = vmul.f32 %v8348_v37, %v7630_v4 }
 0x3fe   :  { %8355 = vrcp.f32 %v2947_v24 }
 0x3ff   :  { %8357 = vrcp.f32 %v2946_v56  ;;  %v11082_v0 = vadd.f32 %v13192_v14, %v2585_v53  ;;  %v8350_v59 = vpop.eup %8349  ;;  %v3202_v14 = vunpack.c.h.b16 %v11084_v22  ;;  %v3081_v19 = vsel %vm3041_vm10, 1.0, %v3001_v32 }
 0x400   :  { %8359 = vrcp.f32 %v2951_v39  ;;  %v2832_v13 = vadd.f32 1.0, %v8350_v59  ;;  %v8352_v3 = vpop.eup %8351  ;;  %3445 = vmatpush.bf16.msra.mxu3 %v3219_v28  ;;  %v3192_v53 = vunpack.c.l.b16 %v11061_v20 }
 0x401   :  { %v2713_v30 = vmin.f32 %v11082_v0, 20.0  ;;  %v3209_v25 = vpack.c.b16 %v3202_v14, %v3201_v61  ;;  %v3002_v44 = vmul.f32 %v8352_v3, %v7631_v8  ;;  %vm3073_vm5 = vcmp.gt.f32.partialorder %v11082_v0, 20.0 }
 0x402   :  { %v2872_v7 = vmul.f32 %v2832_v13, %v2832_v13  ;;  %v3197_v13 = vpack.c.b16 %v3193_v27, %v3192_v53 }
 0x403   :  { %v8354_v15 = vpop.eup %8353  ;;  %v2792_v41 = vmul.f32 1.442695, %v2713_v30  ;;  %v3213_v36 = vrot.slane %v3209_v25, 2  ;;  %v3082_v55 = vsel %vm3042_vm12, 1.0, %v3002_v44  ;;  %vm3617_vm12 = vcmask 486400  }
 0x404   :  { %v8356_v43 = vpop.eup %8355  ;;  %v2828_v29 = vadd.f32 1.0, %v8354_v15  ;;  %v2952_v23 = vadd.f32 1.0, %v2872_v7  ;;  %3446 = vmatpush.bf16.msra.mxu3 %v10746_v17  ;;  %v7661_v50 = vadd.f32 -1.0, %v2872_v7  ;;  %v13197_v17 = vrot.slane %v10554_v49, 2 }
 0x405   :  { %v8358_v62 = vpop.eup %8357  ;;  %8361 = vpow2.f32 %v2792_v41  ;;  %v3027_v5 = vmul.f32 %v8356_v43, %v7656_v38  ;;  %v3121_v15 = vmul.f32 %v3081_v19, %v10965_v21  ;;  %v3294_v61 = vsel %vm1325_vm11, %v3197_v13, %v3213_v36  ;;  %v13198_v21 = vld [vmem:[#allocation77_spill] sm:$0xff] }
 0x406   :  { %v8360_v56 = vpop.eup %8359  ;;  %v2868_v9 = vmul.f32 %v2828_v29, %v2828_v29  ;;  %8363 = vrcp.f32 %v2952_v23  ;;  %v3026_v16 = vmul.f32 %v8358_v62, %v7655_v47  ;;  %v3215_v59 = vsel %vm1325_vm11, %v3213_v36, %v13197_v17 }
 0x407   :  { %v3031_v24 = vmul.f32 %v8360_v56, %v7660_v35  ;;  %v3107_v54 = vsel %vm3067_vm9, 1.0, %v3027_v5  ;;  %v3122_v29 = vmul.f32 %v3082_v55, %v10977_v63  ;;  %v3189_v62 = vunpack.c.l.b16 %v13198_v21  ;;  %v13199_v63 = vld [vmem:[#allocation29_spill] sm:$0xff]  ;;  %v7884_v21 = vld [vmem:[#allocation2 + $0xdc] sm:$0xf0] }
 0x408   :  { %v2948_v39 = vadd.f32 1.0, %v2868_v9  ;;  %v3106_v37 = vsel %vm3066_vm13, 1.0, %v3026_v16  ;;  %v3147_v30 = vmul.f32 %v3107_v54, %v11027_v2  ;;  %3447 = vmatpush.bf16.msra.mxu3 %v3215_v59  ;;  %v7657_v41 = vadd.f32 -1.0, %v2868_v9 }
 0x409   :  { %v3111_v40 = vsel %vm3071_vm14, 1.0, %v3031_v24  ;;  %v3146_v20 = vmul.f32 %v3106_v37, %v10992_v52  ;;  %v3188_v8 = vunpack.c.l.b16 %v13199_v63  ;;  %v3187_v5 = vunpack.c.l.b16 %v11084_v22  ;;  %v7885_v63 = vld [vmem:[#allocation2 + $0xe4] sm:$0xf0] }
 0x40a   :  { %8365 = vrcp.f32 %v2948_v39  ;;  %v3151_v14 = vmul.f32 %v3111_v40, %v10999_v12  ;;  %v11119_v12 = vpack.c.bf16 %v3122_v29, %v3121_v15  ;;  %v3186_v16 = vunpack.c.l.b16 %v11087_v34  ;;  %v7878_v39 = vld [vmem:[#allocation2 + $0x9c] sm:$0xf0]  ;;  %v7667_v29 = vld [vmem:[#allocation2 + $0xa0] sm:$0xf0] }
 0x40b   :  { %v8362_v60 = vpop.eup %8361  ;;  %v3173_v38 = vpack.c.bf16 %v3147_v30, %v3146_v20  ;;  %v3195_v9 = vpack.c.b16 %v3189_v62, %v3188_v8  ;;  %v13200_v24 = vrot.slane %v10809_v51, 6  ;;  %v3247_v54 = vunpack.c.h.b16 %v11015_v11  ;;  %v7673_v30 = vld [vmem:[#allocation2 + $0x98] sm:$0xf]  ;;  %v7701_v8 = vld [vmem:[#allocation2 + $0xf0] sm:$0xf] }
 0x40c   :  { %v2833_v33 = vadd.f32 1.0, %v8362_v60  ;;  %v8364_v1 = vpop.eup %8363  ;;  %3448 = vmatpush.bf16.msra.mxu3 %v3294_v61  ;;  %v3248_v25 = vunpack.c.h.b16 %v11119_v12  ;;  %v3194_v19 = vpack.c.b16 %v3187_v5, %v3186_v16  ;;  %v13201_v11 = vrot.slane %v10804_v6, 6  ;;  %v7677_v6 = vld [vmem:[#allocation2 + $0xb0] sm:$0xf]  ;;  %v7691_v5 = vld [vmem:[#allocation2 + $0xe0] sm:$0xf0] }
 0x40d   :  { %v3032_v3 = vmul.f32 %v8364_v1, %v7661_v50  ;;  %v3253_v23 = vunpack.c.h.b16 %v3173_v38  ;;  %v3237_v17 = vunpack.c.l.b16 %v3173_v38  ;;  %v13202_v13 = vpack.c.b16 %v10864_v10, %v10862_v42  ;;  %v7877_v10 = vld [vmem:[#allocation2 + $0x94] sm:$0xf]  ;;  %v7685_v38 = vld [vmem:[#allocation2 + $0xb8] sm:$0xf] }
 0x40e   :  { %v2873_v45 = vmul.f32 %v2833_v33, %v2833_v33  ;;  %v3255_v53 = vpack.c.b16 %v3248_v25, %v3247_v54  ;;  %v7888_v25 = vld [vmem:[#allocation2 + $0x104] sm:$0x30]  ;;  %v7886_v16 = vld [vmem:[#allocation2 + $0xf4] sm:$0xf]  ;;  %vm4314_vm13 = vcmask 973824   ;;  %vm4248_vm14 = vcmask 1039360  }
 0x40f   :  { %v3112_v49 = vsel %vm3072_vm0, 1.0, %v3032_v3  ;;  %v7881_v3 = vld [vmem:[#allocation2 + $0xbc] sm:$0xf0]  ;;  %vm4215_vm0 = vcmask 7168  }
 0x410   :  { %v8366_v7 = vpop.eup %8365  ;;  %v2953_v43 = vadd.f32 1.0, %v2873_v45  ;;  %v3152_v2 = vmul.f32 %v3112_v49, %v11050_v26  ;;  %3449 = vmatpush.bf16.msra.mxu3 %v10728_v31  ;;  %v7662_v26 = vadd.f32 -1.0, %v2873_v45  ;;  %v7665_v31 = vld [vmem:[#allocation2 + $0x90] sm:$0xf]  ;;  %v3259_v51 = vrot.slane %v3255_v53, 6 }
 0x411   :  { %v3028_v4 = vmul.f32 %v8366_v7, %v7657_v41  ;;  %v7666_v36 = vor.u32 %v7878_v39, %v7665_v31  ;;  %v7879_v45 = vld [vmem:[#allocation2 + $0xa4] sm:$0xf0]  ;;  %v7678_v41 = vor.u32 %v7881_v3, %v7677_v6  ;;  %v3232_v49 = vunpack.c.l.b16 %v11119_v12  ;;  %v7703_v31 = vld [vmem:[#allocation2 + $0x100] sm:$0x30]  ;;  %v3351_v3 = vpop.permute.xlu1 %3350 }
 0x412   :  { %8367 = vrcp.f32 %v2953_v43  ;;  %v3176_v52 = vpack.c.bf16 %v3152_v2, %v3151_v14  ;;  %v3261_v1 = vsel %vm1279_vm15, %v3259_v51, %v13201_v11  ;;  %v7674_v15 = vor.u32 %v7879_v45, %v7673_v30  ;;  %v13203_v7 = vld [vmem:[#allocation76_spill] sm:$0xff]  ;;  %v13204_v14 = vld [vmem:[#allocation70_spill] sm:$0xff] }
 0x413   :  { %v3108_v28 = vsel %vm3068_vm4, 1.0, %v3028_v4  ;;  %v13205_v43 = vpack.c.b16 %v13203_v7, %v13204_v14  ;;  %v7670_v2 = vor.u32 %v7877_v10, %v7667_v29  ;;  %v7882_v4 = vld [vmem:[#allocation2 + $0xc4] sm:$0xf0]  ;;  %v7706_v39 = vor.u32 %v7886_v16, %v7703_v31 }
 0x414   :  { %v3254_v18 = vunpack.c.h.b16 %v3176_v52  ;;  %v3148_v32 = vmul.f32 %v3108_v28, %v11066_v58  ;;  %3450 = vmatpush.bf16.msra.mxu3 %v3195_v9  ;;  %v3238_v37 = vunpack.c.l.b16 %v3176_v52  ;;  %v7689_v52 = vld [vmem:[#allocation2 + $0xd0] sm:$0xf]  ;;  %v7686_v62 = vor.u32 %v7882_v4, %v7685_v38  ;;  %v7697_v28 = vld [vmem:[#allocation2 + $0xd8] sm:$0xf]  ;;  %v7883_v9 = vld [vmem:[#allocation2 + $0xd4] sm:$0xf] }
 0x415   :  { %vm4292_vm4 = vcmask 982016  }
 0x416   :  { %v3258_v56 = vpack.c.b16 %v3254_v18, %v3253_v23  ;;  %v3174_v60 = vpack.c.bf16 %v3148_v32, %v3148_v32  ;;  %v3243_v40 = vpack.c.b16 %v3238_v37, %v3238_v37  ;;  %v7690_v23 = vor.u32 %v7884_v21, %v7689_v52  ;;  %v7679_v18 = vld [vmem:[#allocation2 + $0xc0] sm:$0xf0] }
 0x417   :  { %v7694_v32 = vor.u32 %v7883_v9, %v7691_v5 }
 0x418   :  { %v8368_v47 = vpop.eup %8367  ;;  %v3264_v35 = vrot.slane %v3258_v56, 6  ;;  %3451 = vmatpush.bf16.msra.mxu3 %v3194_v19  ;;  %v3283_v34 = vunpack.c.l.b16 %v3174_v60  ;;  %v3302_v59 = vsel %vm1279_vm15, %v3243_v40, %v3259_v51  ;;  %v7887_v56 = vld [vmem:[#allocation2 + $0xfc] sm:$0x30] }
 0x419   :  { %v3033_v44 = vmul.f32 %v8368_v47, %v7662_v26  ;;  %v7698_v26 = vor.u32 %v7885_v63, %v7697_v28  ;;  %v7702_v47 = vor.u32 %v7887_v56, %v7701_v8 }
 0x41a   :  { %v3265_v27 = vsel %vm1279_vm15, %v13200_v24, %v3264_v35  ;;  %v7709_v35 = vld [vmem:[#allocation2 + $0xf8] sm:$0xf]  ;;  %v3361_v24 = vpop.permute.xlu2 %3360 }
 0x41b   :  { %v3113_v22 = vsel %vm3073_vm5, 1.0, %v3033_v44  ;;  %3474 = vmatpush.bf16.msrb.mxu0 %v3265_v27  ;;  %3452 = vmatmul.bf16.vlgmr.msra.gmra.mxu3 %v7666_v36  ;;  %v7710_v44 = vor.u32 %v7888_v25, %v7709_v35  ;;  %vm4270_vm5 = vcmask 990208  }
 0x41c   :  { %v3153_v58 = vmul.f32 %v3113_v22, %v11082_v0 }
 0x41e   :  { %v3177_v55 = vpack.c.bf16 %v3153_v58, %v3153_v58 }
 0x41f   :  { %3475 = vmatpush.bf16.msrb.mxu0 %v10825_v57  ;;  %v3236_v57 = vunpack.c.l.b16 %v10800_v48  ;;  %v13206_v48 = vld [vmem:[#allocation26_spill] sm:$0xff] }
 0x420   :  { %v3284_v33 = vunpack.c.l.b16 %v3177_v55  ;;  %v3233_v42 = vunpack.c.l.b16 %v13206_v48 }
 0x421   :  { %v3242_v20 = vpack.c.b16 %v3237_v17, %v3236_v57 }
 0x422   :  { %v3288_v50 = vpack.c.b16 %v3284_v33, %v3283_v34  ;;  %v3240_v61 = vpack.c.b16 %v3233_v42, %v3232_v49  ;;  %v3356_v54 = vpop.permute.xlu2 %3355 }
 0x423   :  { %3476 = vmatpush.bf16.msrb.mxu0 %v3261_v1 }
 0x424   :  { %v3442_v0 = vsel %vm1325_vm11, %v3288_v50, 0 }
 0x425   :  { %3507 = vmatpush.bf16.msra.mxu2 %v3442_v0 }
 0x427   :  { %3477 = vmatpush.bf16.msrb.mxu0 %v3302_v59 }
 0x429   :  { %3508 = vmatpush.bf16.msra.mxu2 %v13202_v13  ;;  %v3366_v13 = vpop.permute.xlu0 %3365 }
 0x42a   :  { %v3331_v19 = vpop.permute.xlu2 %3330 }
 0x42b   :  { %3478 = vmatpush.bf16.msrb.mxu0 %v3242_v20  ;;  %3457 = vmatmul.bf16.gmra.mxu3 %v7678_v41  ;;  %v93_v20 = vld [vmem:[%s12865_s4 + $0x9] sm:$0x3] }
 0x42c   :  { %v3540_v41 = vpack.c.bf16 %v93_v20, %v93_v20 }
 0x42d   :  { %3509 = vmatpush.bf16.msra.mxu2 %v13205_v43 }
 0x42e   :  { %v3721_v42 = vshrl.u32 %v3540_v41, 16  ;;  %v3542_v21 = vpack.i.b16 %v3540_v41, %v3540_v41 }
 0x42f   :  { %3479 = vmatpush.bf16.msrb.mxu0 %v10788_v46  ;;  %v7880_v46 = vld [vmem:[#allocation2 + $0xb4] sm:$0xf] }
 0x430   :  { %7711 = vmatmul.msk.bf16.vlgmr.msra.gmra.mxu2 %vm3428_vm6, %v7674_v15  ;;  %v7682_v12 = vor.u32 %v7880_v46, %v7679_v18 }
 0x431   :  { %v3341_v15 = vpop.permute.xlu0 %3340 }
 0x433   :  { %3480 = vmatpush.bf16.msrb.mxu0 %v3240_v61 }
 0x436   :  { %3481 = vmatmul.bf16.vlgmr.msrb.gmra.mxu0 %v7670_v2  ;;  %v3346_v2 = vpop.permute.xlu1 %3345 }
 0x439   :  { %v3336_v46 = vpop.permute.xlu0 %3335 }
 0x43b   :  { %3462 = vmatmul.bf16.gmra.mxu3 %v7690_v23 }
 0x440   :  { %7712 = vmatmul.msk.bf16.gmra.mxu2 %vm3428_vm6, %v7686_v62  ;;  %v3722_v62 = vpack.i.b16 %v3721_v42, %v3721_v42 }
 0x442   :  { %v3724_v35 = vperm.slane %v3722_v62, 0 }
 0x446   :  { %3486 = vmatmul.bf16.gmra.mxu0 %v7682_v12 }
 0x44b   :  { %3467 = vmatmul.bf16.gmra.mxu3 %v7702_v47 }
 0x450   :  { %7713 = vmatmul.msk.bf16.gmra.mxu2 %vm3428_vm6, %v7698_v26 }
 0x456   :  { %3491 = vmatmul.bf16.gmra.mxu0 %v7694_v32  ;;  %v3544_v32 = vperm.slane %v3542_v21, 0 }
 0x460   :  { %7714 = vmatmul.msk.bf16.gmra.mxu2 %vm3428_vm6, %v7710_v44  ;;  %vm4169_vm6 = vcmask 64512  }
 0x466   :  { %3496 = vmatmul.bf16.gmra.mxu0 %v7706_v39 }
 0x49e   :  { %v3453_v27 = vpop.f32.mrf.mxu3 }
 0x49f   :  { %v3454_v58 = vadd.f32 %v3453_v27, %v3331_v19  ;;  %v11180_v19 = vunpack.c.l.bf16 %v3724_v35 }
 0x4a1   :  { %13215 = vst [vmem:[#allocation39_spill] sm:$0xff] %v11180_v19 }
 0x4a6   :  { %v3455_v22 = vpop.f32.mrf.mxu3 }
 0x4a7   :  { %v3456_v8 = vadd.f32 %v3455_v22, %v3336_v46  ;;  %v11178_v22 = vunpack.c.l.bf16 %v3544_v32  ;;  %v7725_v46 = vld [vmem:[#allocation2 + $0x110] sm:$0xf] }
 0x4a9   :  { %13214 = vst [vmem:[#allocation40_spill] sm:$0xff] %v11178_v22 }
 0x4ae   :  { %v3458_v55 = vpop.f32.mrf.mxu3 }
 0x4af   :  { %v3459_v18 = vadd.f32 %v3458_v55, %v3341_v15 }
 0x4b3   :  { %v3511_v60 = vpop.f32.mrf.mxu2  ;;  %v3482_v36 = vpop.f32.mrf.mxu0 }
 0x4b4   :  { %v3483_v53 = vadd.f32 %v3482_v36, %v3454_v58 }
 0x4b6   :  { %v11153_v37 = vadd.f32 %v3511_v60, %v3483_v53  ;;  %v3460_v51 = vpop.f32.mrf.mxu3 }
 0x4b7   :  { %v3461_v4 = vadd.f32 %v3460_v51, %v3346_v2 }
 0x4b8   :  { %13207 = vst [vmem:[#allocation34_spill] sm:$0xff] %v11153_v37 }
 0x4bb   :  { %v3513_v34 = vpop.f32.mrf.mxu2  ;;  %v3484_v33 = vpop.f32.mrf.mxu0 }
 0x4bc   :  { %v3485_v25 = vadd.f32 %v3484_v33, %v3456_v8 }
 0x4be   :  { %v3463_v1 = vpop.f32.mrf.mxu3  ;;  %v11182_v58 = vadd.f32 %v3513_v34, %v3485_v25 }
 0x4bf   :  { %v3464_v10 = vadd.f32 %v3463_v1, %v3351_v3 }
 0x4c0   :  { %13216 = vst [vmem:[#allocation27_spill] sm:$0xff] %v11182_v58  ;;  %v3533_v34 = vpack.c.bf16 %v11182_v58, %v11182_v58 }
 0x4c2   :  { %v3546_v15 = vunpack.c.l.bf16 %v3533_v34 }
 0x4c3   :  { %v3516_v50 = vpop.f32.mrf.mxu2  ;;  %v3487_v11 = vpop.f32.mrf.mxu0 }
 0x4c4   :  { %v3488_v47 = vadd.f32 %v3487_v11, %v3459_v18  ;;  %v3555_v2 = vmul.f32 %v11178_v22, %v3546_v15  ;;  %v7889_v18 = vld [vmem:[#allocation2 + $0x11c] sm:$0xf0] }
 0x4c6   :  { %v3465_v59 = vpop.f32.mrf.mxu3  ;;  %v11174_v27 = vadd.f32 %v3516_v50, %v3488_v47 }
 0x4c7   :  { %v3466_v48 = vadd.f32 %v3465_v59, %v3356_v54 }
 0x4c8   :  { %13213 = vst [vmem:[#allocation59_spill] sm:$0xff] %v11174_v27  ;;  %v3534_v11 = vpack.c.bf16 %v11174_v27, %v11174_v27 }
 0x4cb   :  { %v3518_v40 = vpop.f32.mrf.mxu2  ;;  %v3489_v0 = vpop.f32.mrf.mxu0 }
 0x4cc   :  { %v3490_v12 = vadd.f32 %v3489_v0, %v3461_v4 }
 0x4ce   :  { %v3468_v6 = vpop.f32.mrf.mxu3  ;;  %v11168_v16 = vadd.f32 %v3518_v40, %v3490_v12  ;;  %v7726_v12 = vor.u32 %v7889_v18, %v7725_v46 }
 0x4cf   :  { %v3469_v7 = vadd.f32 %v3468_v6, %v3361_v24  ;;  %v3547_v6 = vunpack.c.l.bf16 %v3534_v11 }
 0x4d0   :  { %13212 = vst [vmem:[#allocation57_spill] sm:$0xff] %v11168_v16  ;;  %v3535_v36 = vpack.c.bf16 %v11168_v16, %v11168_v16 }
 0x4d1   :  { %v3728_v42 = vmul.f32 %v11180_v19, %v3547_v6 }
 0x4d3   :  { %v3521_v17 = vpop.f32.mrf.mxu2  ;;  %v3492_v57 = vpop.f32.mrf.mxu0 }
 0x4d4   :  { %v3493_v52 = vadd.f32 %v3492_v57, %v3464_v10 }
 0x4d6   :  { %v3470_v29 = vpop.f32.mrf.mxu3  ;;  %v11164_v9 = vadd.f32 %v3521_v17, %v3493_v52  ;;  %v3548_v17 = vunpack.c.l.bf16 %v3535_v36 }
 0x4d7   :  { %v3471_v23 = vadd.f32 %v3470_v29, %v3366_v13 }
 0x4d8   :  { %13210 = vst [vmem:[#allocation64_spill] sm:$0xff] %v11164_v9  ;;  %v3536_v54 = vpack.c.bf16 %v11164_v9, %v11164_v9 }
 0x4da   :  { %v3549_v1 = vunpack.c.l.bf16 %v3536_v54 }
 0x4db   :  { %v3523_v30 = vpop.f32.mrf.mxu2  ;;  %v3494_v45 = vpop.f32.mrf.mxu0 }
 0x4dc   :  { %v3495_v61 = vadd.f32 %v3494_v45, %v3466_v48  ;;  %v3532_v45 = vpack.c.bf16 %v11153_v37, %v11153_v37  ;;  %v3558_v3 = vmul.f32 %v11178_v22, %v3549_v1  ;;  %v3730_v20 = vmul.f32 %v11180_v19, %v3549_v1 }
 0x4dd   :  { %v3556_v48 = vmul.f32 %v11178_v22, %v3547_v6  ;;  %v4010_v6 = vpop.permute.xlu2 %4009 }
 0x4de   :  { %v11160_v28 = vadd.f32 %v3523_v30, %v3495_v61  ;;  %v3727_v61 = vmul.f32 %v11180_v19, %v3546_v15 }
 0x4e0   :  { %13209 = vst [vmem:[#allocation35_spill] sm:$0xff] %v11160_v28  ;;  %v3537_v31 = vpack.c.bf16 %v11160_v28, %v11160_v28 }
 0x4e2   :  { %v3550_v53 = vunpack.c.l.bf16 %v3537_v31 }
 0x4e3   :  { %v3497_v14 = vpop.f32.mrf.mxu0  ;;  %v3526_v43 = vpop.f32.mrf.mxu2 }
 0x4e4   :  { %v3498_v49 = vadd.f32 %v3497_v14, %v3469_v7  ;;  %v3731_v59 = vmul.f32 %v11180_v19, %v3550_v53  ;;  %v3559_v57 = vmul.f32 %v11178_v22, %v3550_v53  ;;  %v3729_v14 = vmul.f32 %v11180_v19, %v3548_v17 }
 0x4e6   :  { %v11158_v38 = vadd.f32 %v3526_v43, %v3498_v49  ;;  %v3736_v41 = vpack.c.bf16 %v3731_v59, %v3730_v20  ;;  %v3564_v7 = vpack.c.bf16 %v3559_v57, %v3558_v3  ;;  %v3557_v43 = vmul.f32 %v11178_v22, %v3548_v17 }
 0x4e7   :  { %v3545_v49 = vunpack.c.l.bf16 %v3532_v45  ;;  %v3735_v10 = vpack.c.bf16 %v3729_v14, %v3728_v42  ;;  %v4057_v45 = vpop.permute.xlu0 %4056 }
 0x4e8   :  { %13208 = vst [vmem:[#allocation38_spill] sm:$0xff] %v11158_v38  ;;  %v3538_v56 = vpack.c.bf16 %v11158_v38, %v11158_v38  ;;  %v3563_v29 = vpack.c.bf16 %v3557_v43, %v3556_v48 }
 0x4e9   :  { %v3554_v4 = vmul.f32 %v11178_v22, %v3545_v49  ;;  %v3726_v52 = vmul.f32 %v11180_v19, %v3545_v49  ;;  %v4015_v49 = vpop.permute.xlu2 %4014 }
 0x4ea   :  { %v3551_v39 = vunpack.c.l.bf16 %v3538_v56 }
 0x4eb   :  { %v3499_v63 = vpop.f32.mrf.mxu0  ;;  %v3528_v5 = vpop.f32.mrf.mxu2  ;;  %v3734_v21 = vpack.c.bf16 %v3727_v61, %v3726_v52  ;;  %v3562_v62 = vpack.c.bf16 %v3555_v2, %v3554_v4 }
 0x4ec   :  { %v3500_v26 = vadd.f32 %v3499_v63, %v3471_v23  ;;  %v3560_v55 = vmul.f32 %v11178_v22, %v3551_v39  ;;  %v3732_v33 = vmul.f32 %v11180_v19, %v3551_v39  ;;  %v13217_v23 = vld [vmem:[#allocation15_spill] sm:$0xff]  ;;  %v3998_v63 = vld [vmem:[#allocation2 + $0x130] sm:$0xf] }
 0x4ed   :  { %v4022_v8 = vunpack.c.l.b16 %v3998_v63 }
 0x4ee   :  { %v11166_v44 = vadd.f32 %v3528_v5, %v3500_v26 }
 0x4ef   :  { %v4024_v56 = vpack.c.b16 %v4022_v8, %v4022_v8 }
 0x4f0   :  { %13211 = vst [vmem:[#allocation30_spill] sm:$0xff] %v11166_v44  ;;  %v3539_v24 = vpack.c.bf16 %v11166_v44, %v11166_v44 }
 0x4f1   :  { %v4067_v46 = vpop.permute.xlu2 %4066 }
 0x4f2   :  { %v3552_v60 = vunpack.c.l.bf16 %v3539_v24 }
 0x4f4   :  { %v3561_v51 = vmul.f32 %v11178_v22, %v3552_v60  ;;  %v3733_v50 = vmul.f32 %v11180_v19, %v3552_v60 }
 0x4f6   :  { %v3565_v40 = vpack.c.bf16 %v3561_v51, %v3560_v55  ;;  %v3737_v0 = vpack.c.bf16 %v3733_v50, %v3732_v33 }
 0x4f8   :  { %3570 = vmatpush.bf16.xpose.msrb.mxu1 %v3565_v40  ;;  %3742 = vmatpush.bf16.xpose.msrb.mxu2 %v3737_v0  ;;  %v3904_v13 = vsel %vm1325_vm11, %v3737_v0, 0  ;;  %v3948_v30 = vsel %vm1325_vm11, %v3565_v40, 0 }
 0x4f9   :  { %3910 = vmatpush.bf16.msrb.mxu3 %v3904_v13  ;;  %3954 = vmatpush.bf16.msra.mxu0 %v3948_v30  ;;  %v4005_v13 = vpop.permute.xlu1 %4004 }
 0x4fd   :  { %3911 = vmatpush.bf16.msrb.mxu3 %v3736_v41  ;;  %3955 = vmatpush.bf16.msra.mxu0 %v3564_v7 }
 0x500   :  { %3571 = vmatpush.bf16.xpose.msrb.mxu1 %v3564_v7  ;;  %3743 = vmatpush.bf16.xpose.msrb.mxu2 %v3736_v41 }
 0x501   :  { %3912 = vmatpush.bf16.msrb.mxu3 %v3735_v10  ;;  %3956 = vmatpush.bf16.msra.mxu0 %v3563_v29  ;;  %v4062_v15 = vpop.permute.xlu1 %4061 }
 0x505   :  { %3913 = vmatpush.bf16.msrb.mxu3 %v3734_v21  ;;  %3957 = vmatpush.bf16.msra.mxu0 %v3562_v62 }
 0x508   :  { %3572 = vmatpush.bf16.xpose.msrb.mxu1 %v3563_v29  ;;  %3744 = vmatpush.bf16.xpose.msrb.mxu2 %v3735_v10 }
 0x509   :  { %v4083_v61 = vpop.permute.xlu1 %4082 }
 0x510   :  { %3573 = vmatpush.bf16.xpose.msrb.mxu1 %v3562_v62  ;;  %3745 = vmatpush.bf16.xpose.msrb.mxu2 %v3734_v21 }
 0x517   :  { %3574 = vmatmul.bf16.vlgmr.msrb.gmra.mxu1 %v3562_v62  ;;  %3746 = vmatmul.bf16.vlgmr.msrb.gmra.mxu2 %v3734_v21 }
 0x518   :  { %4040 = vmatpush.bf16.msra.mxu1 %v13217_v23 }
 0x527   :  { %3579 = vmatmul.bf16.gmra.mxu1 %v3563_v29  ;;  %3751 = vmatmul.bf16.gmra.mxu2 %v3735_v10 }
 0x537   :  { %3584 = vmatmul.bf16.gmra.mxu1 %v3564_v7  ;;  %3756 = vmatmul.bf16.gmra.mxu2 %v3736_v41  ;;  %v4078_v7 = vpop.permute.xlu0 %4077 }
 0x53f   :  { %v4088_v63 = vpop.permute.xlu0 %4087 }
 0x547   :  { %3589 = vmatmul.bf16.gmra.mxu1 %v3565_v40  ;;  %3761 = vmatmul.bf16.gmra.mxu2 %v3737_v0 }
 0x557   :  { %7727 = vmatmul.msk.bf16.vlgmr.msra.gmra.mxu1 %vm4026_vm3, %v7726_v12 }
 0x567   :  { %7728 = vmatmul.msk.bf16.gmra.mxu1 %vm4026_vm3, %v4024_v56  ;;  %vm4144_vm3 = vcmask 72704  }
 0x594   :  { %v11211_v26 = vpop.f32.mrf.mxu1 }
 0x595   :  { %v3596_v47 = vsel %vm3595_vm7, %v11211_v26, -inf }
 0x596   :  { %3597 = vmax.xlane.f32.xlu1 %v3596_v47 }
 0x59a   :  { %v11215_v5 = vpop.f32.mrf.mxu2 }
 0x59b   :  { %v3767_v32 = vsel %vm3595_vm7, %v11215_v5, -inf }
 0x59c   :  { %3768 = vmax.xlane.f32.xlu2 %v3767_v32  ;;  %v11219_v35 = vpop.f32.mrf.mxu1 }
 0x59d   :  { %v3599_v39 = vsel %vm3595_vm7, %v11219_v35, -inf }
 0x5a2   :  { %v11221_v25 = vpop.f32.mrf.mxu2 }
 0x5a3   :  { %v3770_v31 = vsel %vm3595_vm7, %v11221_v25, -inf }
 0x5a4   :  { %3771 = vmax.xlane.f32.xlu0 %v3770_v31  ;;  %3600 = vmax.xlane.f32.xlu2 %v3599_v39  ;;  %v11227_v24 = vpop.f32.mrf.mxu1 }
 0x5a5   :  { %v3602_v54 = vsel %vm3595_vm7, %v11227_v24, -inf }
 0x5a6   :  { %3603 = vmax.xlane.f32.xlu1 %v3602_v54 }
 0x5aa   :  { %v11231_v60 = vpop.f32.mrf.mxu2 }
 0x5ab   :  { %v3773_v36 = vsel %vm3595_vm7, %v11231_v60, -inf }
 0x5ac   :  { %3774 = vmax.xlane.f32.xlu2 %v3773_v36  ;;  %v11235_v53 = vpop.f32.mrf.mxu1 }
 0x5ad   :  { %v3605_v51 = vsel %vm3595_vm7, %v11235_v53, -inf }
 0x5b2   :  { %v11237_v55 = vpop.f32.mrf.mxu2 }
 0x5b3   :  { %v3776_v33 = vsel %vm3595_vm7, %v11237_v55, -inf }
 0x5b4   :  { %3777 = vmax.xlane.f32.xlu0 %v3776_v33  ;;  %3606 = vmax.xlane.f32.xlu2 %v3605_v51  ;;  %v11243_v50 = vpop.f32.mrf.mxu1 }
 0x5b5   :  { %v3608_v34 = vsel %vm3595_vm7, %v11243_v50, -inf }
 0x5ba   :  { %v11245_v11 = vpop.f32.mrf.mxu2 }
 0x5bb   :  { %v3779_v1 = vsel %vm3595_vm7, %v11245_v11, -inf }
 0x5bc   :  { %3780 = vmax.xlane.f32.xlu0 %v3779_v1  ;;  %3609 = vmax.xlane.f32.xlu2 %v3608_v34  ;;  %v11251_v40 = vpop.f32.mrf.mxu1 }
 0x5bd   :  { %v3611_v59 = vsel %vm3595_vm7, %v11251_v40, -inf }
 0x5c2   :  { %v11253_v0 = vpop.f32.mrf.mxu2 }
 0x5c3   :  { %v3782_v17 = vsel %vm3595_vm7, %v11253_v0, -inf }
 0x5c4   :  { %3783 = vmax.xlane.f32.xlu1 %v3782_v17  ;;  %3612 = vmax.xlane.f32.xlu0 %v3611_v59  ;;  %v11259_v57 = vpop.f32.mrf.mxu1 }
 0x5cc   :  { %v11261_v30 = vpop.f32.mrf.mxu1 }
 0x5cd   :  { %13218 = vst [vmem:[#allocation45_spill] sm:$0xff] %v11261_v30 }
 0x5d4   :  { %v4042_v3 = vpop.f32.mrf.mxu1 }
 0x5d5   :  { %v11263_v20 = vadd.f32 %v4042_v3, %v4005_v13 }
 0x5d7   :  { %13219 = vst [vmem:[#allocation28_spill] sm:$0xff] %v11263_v20  ;;  %v4069_v41 = vmul.f32 %v4057_v45, %v11263_v20 }
 0x5d9   :  { %v4090_v14 = vadd.f32 %v4078_v7, %v4069_v41 }
 0x5db   :  { %v4093_v43 = vmin.f32 %v4090_v14, 20.0  ;;  %vm4120_vm8 = vcmp.gt.f32.partialorder %v4090_v14, 20.0 }
 0x5dc   :  { %v4044_v48 = vpop.f32.mrf.mxu1 }
 0x5dd   :  { %v4096_v42 = vmul.f32 1.442695, %v4093_v43  ;;  %v11266_v10 = vadd.f32 %v4044_v48, %v4010_v6 }
 0x5df   :  { %13220 = vst [vmem:[#allocation47_spill] sm:$0xff] %v11266_v10  ;;  %8369 = vpow2.f32 %v4096_v42  ;;  %v4070_v29 = vmul.f32 %v4062_v15, %v11266_v10 }
 0x5e1   :  { %v4091_v2 = vadd.f32 %v4083_v61, %v4070_v29 }
 0x5e3   :  { %v4094_v4 = vmin.f32 %v4091_v2, 20.0  ;;  %vm4121_vm9 = vcmp.gt.f32.partialorder %v4091_v2, 20.0 }
 0x5e4   :  { %v4047_v52 = vpop.f32.mrf.mxu1 }
 0x5e5   :  { %v8370_v21 = vpop.eup %8369  ;;  %v4098_v62 = vmul.f32 1.442695, %v4094_v4  ;;  %v11269_v23 = vadd.f32 %v4047_v52, %v4015_v49 }
 0x5e6   :  { %v4102_v18 = vadd.f32 1.0, %v8370_v21 }
 0x5e7   :  { %8371 = vpow2.f32 %v4098_v62  ;;  %v4071_v12 = vmul.f32 %v4067_v46, %v11269_v23  ;;  %v89_v46 = vld [vmem:[%s12865_s4] sm:$0xff] }
 0x5e8   :  { %v4105_v8 = vmul.f32 %v4102_v18, %v4102_v18 }
 0x5e9   :  { %v4092_v56 = vadd.f32 %v4088_v63, %v4071_v12 }
 0x5ea   :  { %v4111_v47 = vadd.f32 1.0, %v4105_v8  ;;  %v7729_v51 = vadd.f32 -1.0, %v4105_v8 }
 0x5eb   :  { %v4095_v32 = vmin.f32 %v4092_v56, 20.0  ;;  %vm4122_vm10 = vcmp.gt.f32.partialorder %v4092_v56, 20.0 }
 0x5ec   :  { %8373 = vrcp.f32 %v4111_v47  ;;  %v4049_v31 = vpop.f32.mrf.mxu1 }
 0x5ed   :  { %v8372_v39 = vpop.eup %8371  ;;  %v4100_v54 = vmul.f32 1.442695, %v4095_v32 }
 0x5ee   :  { %v4103_v36 = vadd.f32 1.0, %v8372_v39 }
 0x5ef   :  { %8375 = vpow2.f32 %v4100_v54 }
 0x5f0   :  { %v4106_v33 = vmul.f32 %v4103_v36, %v4103_v36 }
 0x5f2   :  { %v8374_v1 = vpop.eup %8373  ;;  %v4112_v34 = vadd.f32 1.0, %v4106_v33  ;;  %v7730_v3 = vadd.f32 -1.0, %v4106_v33 }
 0x5f3   :  { %v4117_v17 = vmul.f32 %v8374_v1, %v7729_v51 }
 0x5f4   :  { %8377 = vrcp.f32 %v4112_v34 }
 0x5f5   :  { %v8376_v59 = vpop.eup %8375  ;;  %v4123_v45 = vsel %vm4120_vm8, 1.0, %v4117_v17  ;;  %vm4455_vm8 = vcmask 719872  }
 0x5f6   :  { %v4104_v13 = vadd.f32 1.0, %v8376_v59  ;;  %v4126_v41 = vmul.f32 %v4123_v45, %v4090_v14  ;;  %v11275_v14 = vpack.c.bf16 %v89_v46, %v89_v46  ;;  %v4527_v59 = vld [vmem:[#allocation6 + $0x2f8] sm:$0xff] }
 0x5f8   :  { %v4107_v6 = vmul.f32 %v4104_v13, %v4104_v13  ;;  %v4129_v48 = vpack.c.bf16 %v4126_v41, %v4126_v41  ;;  %v3614_v13 = vsel %vm3595_vm7, %v11259_v57, -inf }
 0x5fa   :  { %v8378_v15 = vpop.eup %8377  ;;  %v4113_v7 = vadd.f32 1.0, %v4107_v6  ;;  %v7731_v61 = vadd.f32 -1.0, %v4107_v6  ;;  %v4135_v52 = vunpack.c.l.b16 %v4129_v48  ;;  %v4234_v31 = vunpack.c.l.bf16 %v4129_v48  ;;  %v11309_v6 = vpop.f32.mrf.mxu2 }
 0x5fb   :  { %v4118_v43 = vmul.f32 %v8378_v15, %v7730_v3  ;;  %13221 = vst [vmem:[#allocation24_spill] sm:$0xff] %v11309_v6 }
 0x5fc   :  { %8379 = vrcp.f32 %v4113_v7 }
 0x5fd   :  { %v4124_v49 = vsel %vm4121_vm9, 1.0, %v4118_v43  ;;  %v4434_v43 = vld [vmem:[#allocation6 + $0x2b0] sm:$0xff] }
 0x5fe   :  { %v4127_v42 = vmul.f32 %v4124_v49, %v4091_v2  ;;  %v11281_v2 = vpack.i.b16 %v11275_v14, %v11275_v14 }
 0x600   :  { %v4130_v29 = vpack.c.bf16 %v4127_v42, %v4127_v42  ;;  %v4233_v8 = vperm.slane %v11281_v2, 2 }
 0x602   :  { %v8380_v4 = vpop.eup %8379  ;;  %v4136_v21 = vunpack.c.l.b16 %v4130_v29  ;;  %v11287_v32 = vunpack.c.l.bf16 %v4233_v8  ;;  %v4235_v36 = vunpack.c.l.bf16 %v4130_v29  ;;  %v11313_v15 = vpop.f32.mrf.mxu2  ;;  %v4492_v29 = vld [vmem:[#allocation6 + $0x2d0] sm:$0xff] }
 0x603   :  { %v4119_v62 = vmul.f32 %v8380_v4, %v7731_v61  ;;  %13222 = vst [vmem:[#allocation62_spill] sm:$0xff] %v11313_v15  ;;  %v3788_v41 = vsel %vm3617_vm12, %v11313_v15, -inf }
 0x604   :  { %v4138_v18 = vpack.c.b16 %v4136_v21, %v4135_v52  ;;  %v4238_v54 = vmul.f32 %v11287_v32, %v4234_v31  ;;  %v3785_v52 = vsel %vm3595_vm7, %v11309_v6, -inf }
 0x605   :  { %v4125_v12 = vsel %vm4122_vm10, 1.0, %v4119_v62 }
 0x606   :  { %4310 = vrot.lane.b32.xlu2 %v4138_v18, %s8809_s23  ;;  %4211 = vrot.lane.b32.xlu0 %v4138_v18, %s8810_s24  ;;  %v4128_v63 = vmul.f32 %v4125_v12, %v4092_v56  ;;  %v4239_v56 = vmul.f32 %v11287_v32, %v4235_v36  ;;  %v4241_v51 = vpack.c.bf16 %v4238_v54, %v4238_v54  ;;  %v4176_v36 = vshrl.u32 %v11275_v14, 16 }
 0x607   :  { %4244 = vrot.lane.b32.xlu1 %v4138_v18, %s8811_s25 }
 0x608   :  { %v11285_v47 = vpack.c.bf16 %v4128_v63, %v4128_v63  ;;  %v4242_v1 = vpack.c.bf16 %v4239_v56, %v4239_v56  ;;  %v11296_v34 = vunpack.c.l.b16 %v4241_v51  ;;  %v4490_v56 = vld [vmem:[#allocation6 + $0x2c0] sm:$0xff] }
 0x609   :  { %v3598_v7 = vpop.xlane.xlu1 %3597 }
 0x60a   :  { %v4137_v39 = vunpack.c.l.b16 %v11285_v47  ;;  %v11298_v17 = vunpack.c.l.b16 %v4242_v1  ;;  %v11318_v49 = vsub.f32 %v3598_v7, %v11211_v26  ;;  %v90_v26 = vld [vmem:[%s12865_s4 + $0x8] sm:$0x1] }
 0x60b   :  { %v92_v62 = vpack.c.bf16 %v90_v26, %v90_v26 }
 0x60c   :  { %v4139_v33 = vpack.c.b16 %v4137_v39, %v4137_v39  ;;  %v3629_v42 = vsel %vm3595_vm7, %v11318_v49, -inf }
 0x60d   :  { %v4322_v46 = vpack.i.b16 %v92_v62, %v92_v62 }
 0x60e   :  { %4165 = vrot.lane.b32.xlu2 %v4138_v18, %s8801_s30 }
 0x60f   :  { %4288 = vrot.lane.b32.xlu1 %v4138_v18, %s8812_s26  ;;  %v11307_v45 = vpop.xlane.xlu2 %3768  ;;  %v4324_v63 = vperm.slane %v4322_v46, 0 }
 0x611   :  { %v11344_v31 = vunpack.c.l.bf16 %v4324_v63  ;;  %v4435_v63 = vld [vmem:[#allocation6 + $0x2b8] sm:$0xf] }
 0x613   :  { %13223 = vst [vmem:[#allocation25_spill] sm:$0xff] %v11344_v31 }
 0x616   :  { %4312 = vrot.lane.b32.xlu2 %v4139_v33, %s8809_s23 }
 0x617   :  { %4190 = vrot.lane.b32.xlu1 %v4138_v18, %s8813_s27  ;;  %v11311_v3 = vpop.xlane.xlu2 %3600 }
 0x619   :  { %v11340_v12 = vpop.xlane.xlu1 %3603 }
 0x61f   :  { %4266 = vrot.lane.b32.xlu1 %v4138_v18, %s8814_s28  ;;  %v11320_v48 = vpop.xlane.xlu2 %3774 }
 0x627   :  { %4140 = vrot.lane.b32.xlu1 %v4138_v18, %s8815_s29  ;;  %v11324_v61 = vpop.xlane.xlu2 %3606 }
 0x62f   :  { %4213 = vrot.lane.b32.xlu1 %v4139_v33, %s8810_s24  ;;  %v11327_v4 = vpop.xlane.xlu2 %3609 }
 0x630   :  { %3615 = vmax.xlane.f32.xlu0 %v3614_v13 }
 0x637   :  { %v11347_v1 = vpop.xlane.xlu1 %3783 }
 0x63f   :  { %3789 = vmax.xlane.f32.xlu2 %v3788_v41  ;;  %v4493_v41 = vld [vmem:[#allocation6 + $0x2d8] sm:$0xff] }
 0x644   :  { %4438 = vperm.xlu0 %7925, %v4434_v43   ;;  %v11350_v43 = vpop.xlane.xlu0 %3771 }
 0x647   :  { %3630 = vmax.xlane.f32.xlu2 %v3629_v42 }
 0x64c   :  { %4507 = vperm.xlu0 %7925, %v4492_v29   ;;  %v11354_v29 = vpack.i.b16 %v4176_v36, %v4176_v36  ;;  %v4525_v36 = vld [vmem:[#allocation6 + $0x2e8] sm:$0xff] }
 0x64e   :  { %v4255_v26 = vperm.slane %v11354_v29, 2 }
 0x654   :  { %4192 = vrot.lane.b32.xlu0 %v4139_v33, %s8813_s27 }
 0x659   :  { %3786 = vmax.xlane.f32.xlu1 %v3785_v52  ;;  %v4236_v52 = vunpack.c.l.bf16 %v11285_v47 }
 0x65c   :  { %4268 = vrot.lane.b32.xlu0 %v4139_v33, %s8814_s28 }
 0x65f   :  { %4290 = vrot.lane.b32.xlu2 %v4139_v33, %s8812_s26 }
 0x660   :  { %v4311_v21 = vpop.permute.xlu2 %4310 }
 0x661   :  { %v4316_v8 = vsel %vm4314_vm13, %v4311_v21, 0 }
 0x662   :  { %v4325_v39 = vunpack.c.l.bf16 %v4316_v8  ;;  %v4326_v54 = vunpack.c.h.bf16 %v4316_v8  ;;  %v4240_v8 = vmul.f32 %v11287_v32, %v4236_v52 }
 0x664   :  { %4167 = vrot.lane.b32.xlu0 %v4139_v33, %s8801_s30  ;;  %v4329_v42 = vmul.f32 %v11344_v31, %v4325_v39  ;;  %v11360_v39 = vunpack.c.l.bf16 %v4255_v26 }
 0x666   :  { %v4332_v62 = vpack.c.bf16 %v4329_v42, %v4329_v42 }
 0x667   :  { %4142 = vrot.lane.b32.xlu2 %v4139_v33, %s8815_s29 }
 0x668   :  { %v11338_v18 = vpop.permute.xlu2 %4165 }
 0x66c   :  { %4246 = vrot.lane.b32.xlu0 %v4139_v33, %s8811_s25  ;;  %v4330_v33 = vmul.f32 %v11344_v31, %v4326_v54 }
 0x66e   :  { %v4333_v46 = vpack.c.bf16 %v4330_v33, %v4330_v33  ;;  %v4243_v33 = vpack.c.bf16 %v4240_v8, %v4240_v8 }
 0x670   :  { %v4313_v51 = vpop.permute.xlu2 %4312 }
 0x671   :  { %v4319_v13 = vsel %vm4314_vm13, %v4313_v51, 0 }
 0x672   :  { %v4327_v7 = vunpack.c.l.bf16 %v4319_v13  ;;  %4497 = vperm.xlu1 %7926, %v4490_v56   ;;  %v11365_v13 = vpop.xlane.xlu0 %3777 }
 0x674   :  { %v4331_v14 = vmul.f32 %v11344_v31, %v4327_v7  ;;  %4512 = vperm.xlu0 %7925, %v4493_v41   ;;  %v4410_v41 = vunpack.c.l.b16 %v4332_v62  ;;  %v4411_v7 = vunpack.c.l.b16 %v4333_v46 }
 0x676   :  { %v4334_v21 = vpack.c.bf16 %v4331_v14, %v4331_v14 }
 0x678   :  { %v4412_v56 = vunpack.c.l.b16 %v4334_v21  ;;  %v4413_v21 = vpack.c.b16 %v4411_v7, %v4410_v41  ;;  %v13224_v41 = vpack.c.b16 %v11298_v17, %v11296_v34 }
 0x679   :  { %v4245_v54 = vpop.permute.xlu1 %4244 }
 0x67a   :  { %v11363_v51 = vsel %vm4248_vm14, %v4245_v54, 0  ;;  %4443 = vperm.xlu1 %7926, %v4435_v63   ;;  %v4414_v47 = vpack.c.b16 %v4412_v56, %v4412_v56  ;;  %v4376_v54 = vunpack.c.l.b16 %v4243_v33  ;;  %v4528_v56 = vld [vmem:[#allocation6 + $0x300] sm:$0xff]  ;;  %v11370_v27 = vpop.xlane.xlu0 %3780 }
 0x67b   :  { %v4256_v42 = vunpack.c.l.bf16 %v11363_v51 }
 0x67c   :  { %4532 = vperm.xlu0 %7925, %v4525_v36   ;;  %v4460_v52 = vsel %vm163_vm1, %v4414_v47, 0  ;;  %v4378_v46 = vpack.c.b16 %v4376_v54, %v4376_v54  ;;  %v4529_v36 = vld [vmem:[#allocation6 + $0x308] sm:$0xf] }
 0x67d   :  { %v4260_v14 = vmul.f32 %v11360_v39, %v4256_v42  ;;  %4478 = vmatpush.bf16.msra.mxu2 %v4460_v52  ;;  %v4494_v42 = vld [vmem:[#allocation6 + $0x2e0] sm:$0xf]  ;;  %v4222_v52 = vperm.slane %v11354_v29, 1 }
 0x67f   :  { %v4263_v26 = vpack.c.bf16 %v4260_v14, %v4260_v14 }
 0x681   :  { %v4383_v37 = vunpack.c.l.b16 %v4263_v26  ;;  %v4289_v63 = vpop.permute.xlu1 %4288  ;;  %4479 = vmatpush.bf16.msra.mxu2 %v4413_v21  ;;  %v11384_v21 = vunpack.c.l.bf16 %v4222_v52 }
 0x682   :  { %4542 = vperm.xlu1 %7926, %v4527_v59   ;;  %v11376_v7 = vpop.xlane.xlu0 %3612 }
 0x683   :  { %v4386_v62 = vpack.c.b16 %v4383_v37, %v4383_v37  ;;  %v3618_v37 = vsel %vm3617_vm12, %v11261_v30, -inf  ;;  %13225 = vst [vmem:[#allocation63_spill] sm:$0xff] %v11384_v21 }
 0x684   :  { %4547 = vperm.xlu0 %7925, %v4528_v56  }
 0x685   :  { %v4426_v8 = vsel %vm163_vm1, %v4378_v46, %v4386_v62 }
 0x686   :  { %4462 = vmatpush.bf16.msrb.mxu1 %v4426_v8 }
 0x689   :  { %v4191_v47 = vpop.permute.xlu1 %4190 }
 0x68a   :  { %4552 = vperm.xlu1 %7926, %v4529_v36   ;;  %4463 = vmatpush.bf16.msrb.mxu1 %v13224_v41  ;;  %v4212_v33 = vpop.permute.xlu0 %4211  ;;  %v4491_v36 = vld [vmem:[#allocation6 + $0x2c8] sm:$0xff] }
 0x68b   :  { %v4217_v26 = vsel %vm4215_vm0, 0, %v4212_v33  ;;  %v4526_v33 = vld [vmem:[#allocation6 + $0x2f0] sm:$0xff] }
 0x68c   :  { %4517 = vperm.xlu0 %7925, %v4494_v42   ;;  %v4224_v34 = vunpack.c.h.bf16 %v4217_v26 }
 0x68e   :  { %v4228_v17 = vmul.f32 %v11384_v21, %v4224_v34 }
 0x690   :  { %3619 = vmax.xlane.f32.xlu2 %v3618_v37  ;;  %v4231_v46 = vpack.c.bf16 %v4228_v17, %v4228_v17  ;;  %v4299_v17 = vperm.slane %v11354_v29, 3 }
 0x691   :  { %v4267_v59 = vpop.permute.xlu1 %4266 }
 0x692   :  { %v4366_v41 = vunpack.c.l.b16 %v4231_v46 }
 0x699   :  { %v11381_v14 = vpop.permute.xlu1 %4140 }
 0x6a1   :  { %v4214_v54 = vpop.permute.xlu1 %4213 }
 0x6a2   :  { %v4220_v56 = vsel %vm4215_vm0, 0, %v4214_v54 }
 0x6a3   :  { %v4225_v62 = vunpack.c.l.bf16 %v4220_v56  ;;  %v11389_v52 = vpop.xlane.xlu0 %3615  ;;  %v4294_v56 = vsel %vm4292_vm4, %v4289_v63, 0 }
 0x6a4   :  { %v4301_v46 = vunpack.c.h.bf16 %v4294_v56  ;;  %v4300_v22 = vunpack.c.l.bf16 %v4294_v56 }
 0x6a5   :  { %v4229_v8 = vmul.f32 %v11384_v21, %v4225_v62  ;;  %v11399_v62 = vunpack.c.l.bf16 %v4299_v17 }
 0x6a7   :  { %v4232_v42 = vpack.c.bf16 %v4229_v8, %v4229_v8  ;;  %13227 = vst [vmem:[#allocation74_spill] sm:$0xff] %v11399_v62 }
 0x6a8   :  { %4502 = vperm.xlu2 %7927, %v4491_v36   ;;  %v4200_v36 = vperm.slane %v11281_v2, 1 }
 0x6a9   :  { %v4367_v37 = vunpack.c.l.b16 %v4232_v42  ;;  %v4305_v42 = vmul.f32 %v11399_v62, %v4301_v46  ;;  %v4277_v46 = vperm.slane %v11281_v2, 3 }
 0x6aa   :  { %v11408_v9 = vunpack.c.l.bf16 %v4200_v36 }
 0x6ab   :  { %v4369_v16 = vpack.c.b16 %v4367_v37, %v4366_v41  ;;  %v4195_v41 = vsel %vm155_vm2, 0, %v4191_v47  ;;  %v4308_v44 = vpack.c.bf16 %v4305_v42, %v4305_v42  ;;  %v11418_v56 = vunpack.c.l.bf16 %v4277_v46 }
 0x6ac   :  { %v4201_v63 = vunpack.c.l.bf16 %v4195_v41  ;;  %v4202_v17 = vunpack.c.h.bf16 %v4195_v41 }
 0x6ad   :  { %4464 = vmatpush.bf16.msrb.mxu1 %v4369_v16  ;;  %v4223_v16 = vunpack.c.l.bf16 %v4217_v26  ;;  %v4402_v41 = vunpack.c.l.b16 %v4308_v44 }
 0x6ae   :  { %v4206_v36 = vmul.f32 %v11408_v9, %v4202_v17 }
 0x6af   :  { %v4227_v28 = vmul.f32 %v11384_v21, %v4223_v16  ;;  %v4205_v16 = vmul.f32 %v11408_v9, %v4201_v63 }
 0x6b0   :  { %4537 = vperm.xlu2 %7927, %v4526_v33   ;;  %v4209_v63 = vpack.c.bf16 %v4206_v36, %v4206_v36 }
 0x6b1   :  { %v4230_v31 = vpack.c.bf16 %v4227_v28, %v4227_v28  ;;  %v4208_v6 = vpack.c.bf16 %v4205_v16, %v4205_v16 }
 0x6b2   :  { %v11391_v58 = vpop.xlane.xlu2 %3789 }
 0x6b3   :  { %13226 = vst [vmem:[#allocation36_spill] sm:$0xff] %v11391_v58 }
 0x6b6   :  { %v11393_v34 = vpop.permute.xlu0 %4438 }
 0x6ba   :  { %v11396_v54 = vpop.xlane.xlu2 %3630 }
 0x6be   :  { %v11401_v8 = vpop.permute.xlu0 %4507 }
 0x6c2   :  { %v4291_v37 = vpop.permute.xlu2 %4290 }
 0x6c3   :  { %v4297_v33 = vsel %vm4292_vm4, %v4291_v37, 0 }
 0x6c4   :  { %v4302_v38 = vunpack.c.l.bf16 %v4297_v33  ;;  %v4272_v33 = vsel %vm4270_vm5, %v4267_v59, 0  ;;  %v4179_v59 = vperm.slane %v11354_v29, 0  ;;  %v4357_v29 = vunpack.c.l.b16 %v4209_v63 }
 0x6c5   :  { %v4278_v28 = vunpack.c.l.bf16 %v4272_v33  ;;  %v4279_v30 = vunpack.c.h.bf16 %v4272_v33 }
 0x6c6   :  { %v4306_v26 = vmul.f32 %v11399_v62, %v4302_v38  ;;  %v4193_v19 = vpop.permute.xlu0 %4192  ;;  %v4304_v38 = vmul.f32 %v11399_v62, %v4300_v22  ;;  %v4171_v22 = vsel %vm4169_vm6, 0, %v11338_v18 }
 0x6c7   :  { %v4198_v47 = vsel %vm155_vm2, 0, %v4193_v19  ;;  %v4365_v19 = vunpack.c.l.b16 %v4230_v31  ;;  %v4154_v31 = vperm.slane %v11281_v2, 0  ;;  %v4180_v2 = vunpack.c.l.bf16 %v4171_v22 }
 0x6c8   :  { %v4309_v58 = vpack.c.bf16 %v4306_v26, %v4306_v26  ;;  %v4203_v37 = vunpack.c.l.bf16 %v4198_v47  ;;  %v4307_v46 = vpack.c.bf16 %v4304_v38, %v4304_v38 }
 0x6c9   :  { %v4368_v33 = vpack.c.b16 %v4365_v19, %v4365_v19 }
 0x6ca   :  { %v4403_v42 = vunpack.c.l.b16 %v4309_v58  ;;  %v4207_v21 = vmul.f32 %v11408_v9, %v4203_v37  ;;  %v4143_v15 = vpop.permute.xlu2 %4142  ;;  %v4282_v37 = vmul.f32 %v11418_v56, %v4278_v28  ;;  %v4401_v62 = vunpack.c.l.b16 %v4307_v46 }
 0x6cb   :  { %v4149_v58 = vsel %vm4144_vm3, 0, %v4143_v15 }
 0x6cc   :  { %v4210_v26 = vpack.c.bf16 %v4207_v21, %v4207_v21  ;;  %v4405_v47 = vpack.c.b16 %v4403_v42, %v4402_v41  ;;  %v4356_v41 = vunpack.c.l.b16 %v4208_v6  ;;  %v4283_v42 = vmul.f32 %v11418_v56, %v4279_v30 }
 0x6cd   :  { %v4157_v15 = vunpack.c.l.bf16 %v4149_v58  ;;  %v4285_v28 = vpack.c.bf16 %v4282_v37, %v4282_v37  ;;  %v4146_v6 = vsel %vm4144_vm3, 0, %v11381_v14  ;;  %v4404_v46 = vpack.c.b16 %v4401_v62, %v4401_v62 }
 0x6ce   :  { %v4358_v44 = vunpack.c.l.b16 %v4210_v26  ;;  %v4269_v17 = vpop.permute.xlu0 %4268  ;;  %4480 = vmatpush.bf16.msra.mxu2 %v4405_v47  ;;  %v11428_v26 = vunpack.c.l.bf16 %v4179_v59  ;;  %v4181_v47 = vunpack.c.h.bf16 %v4171_v22  ;;  %v4286_v19 = vpack.c.bf16 %v4283_v42, %v4283_v42 }
 0x6cf   :  { %v4275_v21 = vsel %vm4270_vm5, %v4269_v17, 0  ;;  %v11432_v17 = vunpack.c.l.bf16 %v4154_v31  ;;  %v4359_v63 = vpack.c.b16 %v4357_v29, %v4356_v41  ;;  %v4155_v31 = vunpack.c.l.bf16 %v4146_v6 }
 0x6d0   :  { %v4360_v16 = vpack.c.b16 %v4358_v44, %v4358_v44  ;;  %v4280_v36 = vunpack.c.l.bf16 %v4275_v21  ;;  %v4185_v59 = vmul.f32 %v11428_v26, %v4181_v47  ;;  %v4156_v37 = vunpack.c.h.bf16 %v4146_v6 }
 0x6d1   :  { %v4161_v30 = vmul.f32 %v11432_v17, %v4157_v15  ;;  %v4392_v42 = vunpack.c.l.b16 %v4285_v28  ;;  %v4257_v41 = vunpack.c.h.bf16 %v11363_v51 }
 0x6d2   :  { %v4284_v18 = vmul.f32 %v11418_v56, %v4280_v36  ;;  %v4422_v38 = vsel %vm163_vm1, %v4360_v16, %v4368_v33  ;;  %v4184_v16 = vmul.f32 %v11428_v26, %v4180_v2  ;;  %v4159_v2 = vmul.f32 %v11432_v17, %v4155_v31 }
 0x6d3   :  { %4465 = vmatpush.bf16.msrb.mxu1 %v4422_v38  ;;  %v4164_v14 = vpack.c.bf16 %v4161_v30, %v4161_v30  ;;  %v4188_v38 = vpack.c.bf16 %v4185_v59, %v4185_v59  ;;  %v4160_v62 = vmul.f32 %v11432_v17, %v4156_v37  ;;  %v4261_v28 = vmul.f32 %v11360_v39, %v4257_v41  ;;  %v7734_v41 = vld [vmem:[#allocation2 + $0x140] sm:$0xf] }
 0x6d4   :  { %v4287_v44 = vpack.c.bf16 %v4284_v18, %v4284_v18  ;;  %v4393_v18 = vunpack.c.l.b16 %v4286_v19  ;;  %v4187_v47 = vpack.c.bf16 %v4184_v16, %v4184_v16 }
 0x6d5   :  { %v4340_v6 = vunpack.c.l.b16 %v4164_v14  ;;  %v4264_v31 = vpack.c.bf16 %v4261_v28, %v4261_v28  ;;  %v11449_v28 = vpop.xlane.xlu1 %3786 }
 0x6d6   :  { %v4394_v58 = vunpack.c.l.b16 %v4287_v44  ;;  %v4168_v21 = vpop.permute.xlu0 %4167  ;;  %v4347_v59 = vunpack.c.l.b16 %v4187_v47  ;;  %v7891_v47 = vld [vmem:[#allocation2 + $0x14c] sm:$0x30] }
 0x6d7   :  { %v4174_v22 = vsel %vm4169_vm6, 0, %v4168_v21  ;;  %4466 = vmatpush.bf16.msrb.mxu1 %v4359_v63  ;;  %v4395_v63 = vpack.c.b16 %v4393_v18, %v4392_v42  ;;  %v4162_v21 = vpack.c.bf16 %v4159_v2, %v4159_v2  ;;  %v7890_v2 = vld [vmem:[#allocation2 + $0x144] sm:$0xf] }
 0x6d8   :  { %v4396_v36 = vpack.c.b16 %v4394_v58, %v4394_v58  ;;  %v4182_v33 = vunpack.c.l.bf16 %v4174_v22  ;;  %v4348_v58 = vunpack.c.l.b16 %v4188_v38  ;;  %v4163_v22 = vpack.c.bf16 %v4160_v62, %v4160_v62  ;;  %v7736_v62 = vld [vmem:[#allocation2 + $0x150] sm:$0x30] }
 0x6d9   :  { %v4338_v42 = vunpack.c.l.b16 %v4162_v21 }
 0x6da   :  { %v4186_v29 = vmul.f32 %v11428_v26, %v4182_v33  ;;  %v4430_v15 = vsel %vm163_vm1, %v4396_v36, %v4404_v46  ;;  %v4342_v36 = vpack.c.b16 %v4340_v6, %v4340_v6  ;;  %v4350_v33 = vpack.c.b16 %v4347_v59, %v4347_v59 }
 0x6db   :  { %4481 = vmatpush.bf16.msra.mxu2 %v4430_v15  ;;  %v4339_v18 = vunpack.c.l.b16 %v4163_v22  ;;  %v7735_v6 = vor.u32 %v7891_v47, %v7734_v41 }
 0x6dc   :  { %v4189_v44 = vpack.c.bf16 %v4186_v29, %v4186_v29  ;;  %v4418_v38 = vsel %vm163_vm1, %v4342_v36, %v4350_v33  ;;  %v4384_v29 = vunpack.c.l.b16 %v4264_v31 }
 0x6de   :  { %v4349_v19 = vunpack.c.l.b16 %v4189_v44  ;;  %v4247_v30 = vpop.permute.xlu0 %4246  ;;  %v4341_v44 = vpack.c.b16 %v4339_v18, %v4338_v42 }
 0x6df   :  { %v4253_v51 = vsel %vm4248_vm14, %v4247_v30, 0  ;;  %4482 = vmatpush.bf16.msra.mxu2 %v4395_v63 }
 0x6e0   :  { %v4258_v16 = vunpack.c.l.bf16 %v4253_v51  ;;  %v4351_v46 = vpack.c.b16 %v4349_v19, %v4348_v58  ;;  %v7739_v58 = vor.u32 %v7890_v2, %v7736_v62 }
 0x6e2   :  { %v4262_v37 = vmul.f32 %v11360_v39, %v4258_v16  ;;  %4467 = vmatpush.bf16.msrb.mxu1 %v4351_v46 }
 0x6e4   :  { %v4265_v14 = vpack.c.bf16 %v4262_v37, %v4262_v37  ;;  %v4498_v30 = vpop.permute.xlu1 %4497 }
 0x6e5   :  { %v4520_v51 = vmul.f32 %v4498_v30, %v11263_v20 }
 0x6e6   :  { %v4385_v15 = vunpack.c.l.b16 %v4265_v14  ;;  %4468 = vmatpush.bf16.msrb.mxu1 %v4418_v38  ;;  %v11451_v19 = vpop.permute.xlu0 %4512 }
 0x6e8   :  { %v4387_v63 = vpack.c.b16 %v4385_v15, %v4384_v29 }
 0x6ea   :  { %4469 = vmatpush.bf16.msrb.mxu1 %v4341_v44  ;;  %4483 = vmatpush.bf16.msra.mxu2 %v4387_v63 }
 0x6ed   :  { %4470 = vmatmul.bf16.vlgmr.msrb.gmra.mxu1 %v7735_v6  ;;  %7740 = vmatmul.msk.bf16.vlgmr.msra.gmra.mxu2 %vm4455_vm8, %v7739_v58 }
 0x6ee   :  { %v4533_v59 = vpop.permute.xlu0 %4532 }
 0x6ef   :  { %v4555_v21 = vadd.f32 %v4533_v59, %v4520_v51 }
 0x6f1   :  { %v4560_v22 = vmin.f32 %v4555_v21, 20.0  ;;  %vm4605_vm9 = vcmp.gt.f32.partialorder %v4555_v21, 20.0 }
 0x6f3   :  { %v4565_v46 = vmul.f32 1.442695, %v4560_v22 }
 0x6f5   :  { %8381 = vpow2.f32 %v4565_v46 }
 0x6fb   :  { %v8382_v31 = vpop.eup %8381 }
 0x6fc   :  { %v4575_v37 = vadd.f32 1.0, %v8382_v31 }
 0x6fe   :  { %v4580_v14 = vmul.f32 %v4575_v37, %v4575_v37 }
 0x700   :  { %v4590_v29 = vadd.f32 1.0, %v4580_v14  ;;  %v7741_v44 = vadd.f32 -1.0, %v4580_v14 }
 0x703   :  { %v11454_v16 = vpop.xlane.xlu2 %3619 }
 0x70b   :  { %v4503_v36 = vpop.permute.xlu2 %4502 }
 0x70c   :  { %v4521_v33 = vmul.f32 %v4503_v36, %v11266_v10 }
 0x713   :  { %v4538_v42 = vpop.permute.xlu2 %4537 }
 0x714   :  { %v4556_v18 = vadd.f32 %v4538_v42, %v4521_v33 }
 0x716   :  { %v4561_v38 = vmin.f32 %v4556_v18, 20.0  ;;  %vm4606_vm10 = vcmp.gt.f32.partialorder %v4556_v18, 20.0 }
 0x718   :  { %v4567_v41 = vmul.f32 1.442695, %v4561_v38 }
 0x71a   :  { %8383 = vpow2.f32 %v4567_v41 }
 0x71b   :  { %8385 = vrcp.f32 %v4590_v29 }
 0x720   :  { %v8384_v15 = vpop.eup %8383 }
 0x721   :  { %v4576_v47 = vadd.f32 1.0, %v8384_v15  ;;  %v8386_v2 = vpop.eup %8385 }
 0x722   :  { %v4600_v6 = vmul.f32 %v8386_v2, %v7741_v44  ;;  %v11479_v44 = vpop.permute.xlu1 %4443 }
 0x723   :  { %v4581_v62 = vmul.f32 %v4576_v47, %v4576_v47 }
 0x724   :  { %v4610_v58 = vsel %vm4605_vm9, 1.0, %v4600_v6 }
 0x725   :  { %v4591_v63 = vadd.f32 1.0, %v4581_v62  ;;  %v7742_v30 = vadd.f32 -1.0, %v4581_v62  ;;  %v4615_v51 = vmul.f32 %v4610_v58, %v4555_v21 }
 0x727   :  { %8387 = vrcp.f32 %v4591_v63  ;;  %v4620_v36 = vpack.c.bf16 %v4615_v51, %v4615_v51  ;;  %v11483_v63 = vsub.f32 %v11350_v43, %v11221_v25  ;;  %v11495_v51 = vsub.f32 %v11324_v61, %v11235_v53 }
 0x728   :  { %v11510_v53 = vsub.f32 %v11365_v13, %v11237_v55  ;;  %v11514_v61 = vsub.f32 %v11307_v45, %v11215_v5  ;;  %v4548_v45 = vpop.permute.xlu0 %4547 }
 0x729   :  { %v4630_v33 = vunpack.c.l.b16 %v4620_v36  ;;  %v4758_v21 = vunpack.c.l.bf16 %v4620_v36  ;;  %v3802_v6 = vsel %vm3595_vm7, %v11483_v63, -inf  ;;  %v3638_v43 = vsel %vm3595_vm7, %v11495_v51, -inf }
 0x72a   :  { %v4543_v58 = vpop.permute.xlu1 %4542  ;;  %v3799_v5 = vsel %vm3595_vm7, %v11514_v61, -inf }
 0x72b   :  { %v4763_v14 = vmul.f32 %v4758_v21, %v11287_v32 }
 0x72d   :  { %v8388_v59 = vpop.eup %8387  ;;  %v4768_v29 = vpack.c.bf16 %v4763_v14, %v4763_v14 }
 0x72e   :  { %v4601_v22 = vmul.f32 %v8388_v59, %v7742_v30  ;;  %v11489_v30 = vsub.f32 %v11340_v12, %v11227_v24  ;;  %v4522_v59 = vmul.f32 %v11401_v8, %v11269_v23  ;;  %v11506_v12 = vsub.f32 %v11320_v48, %v11231_v60 }
 0x72f   :  { %v11473_v47 = vunpack.c.l.b16 %v4768_v29  ;;  %v3808_v60 = vsel %vm3595_vm7, %v11510_v53, -inf  ;;  %v11529_v48 = vsub.f32 %v11370_v27, %v11245_v11 }
 0x730   :  { %v4611_v46 = vsel %vm4606_vm10, 1.0, %v4601_v22  ;;  %v11497_v22 = vadd.f32 %v4543_v58, %v4522_v59  ;;  %v3635_v25 = vsel %vm3595_vm7, %v11489_v30, -inf }
 0x731   :  { %v4616_v31 = vmul.f32 %v4611_v46, %v4556_v18  ;;  %v3811_v14 = vsel %vm3595_vm7, %v11529_v48, -inf }
 0x732   :  { %v4562_v46 = vmin.f32 %v11497_v22, 20.0  ;;  %vm4607_vm8 = vcmp.gt.f32.partialorder %v11497_v22, 20.0 }
 0x733   :  { %v4621_v37 = vpack.c.bf16 %v4616_v31, %v4616_v31 }
 0x734   :  { %v4569_v8 = vmul.f32 1.442695, %v4562_v46 }
 0x735   :  { %v4631_v42 = vunpack.c.l.b16 %v4621_v37  ;;  %v4759_v18 = vunpack.c.l.bf16 %v4621_v37 }
 0x736   :  { %8389 = vpow2.f32 %v4569_v8  ;;  %v13231_v8 = vld [vmem:[#allocation36_spill] sm:$0xff] }
 0x737   :  { %v11457_v38 = vpack.c.b16 %v4631_v42, %v4630_v33  ;;  %v4764_v41 = vmul.f32 %v4759_v18, %v11287_v32  ;;  %v3805_v33 = vsel %vm3595_vm7, %v11506_v12, -inf  ;;  %v11537_v42 = vsub.f32 %v11311_v3, %v11219_v35 }
 0x738   :  { %v11547_v35 = vsub.f32 %v11376_v7, %v11251_v40  ;;  %v11551_v3 = vsub.f32 %v11389_v52, %v11259_v57 }
 0x739   :  { %4803 = vrot.lane.b32.xlu0 %v11457_v38, %s8814_s28  ;;  %4833 = vrot.lane.b32.xlu2 %v11457_v38, %s8812_s26  ;;  %v4769_v15 = vpack.c.bf16 %v4764_v41, %v4764_v41 }
 0x73a   :  { %4728 = vrot.lane.b32.xlu1 %v11457_v38, %s8810_s24  ;;  %v3647_v40 = vsel %vm3595_vm7, %v11551_v3, -inf }
 0x73b   :  { %v11475_v2 = vunpack.c.l.b16 %v4769_v15  ;;  %v3653_v15 = vsub.f32 %v11318_v49, %v11396_v54  ;;  %v13229_v49 = vld [vmem:[#allocation24_spill] sm:$0xff] }
 0x73c   :  { %v8390_v21 = vpop.eup %8389  ;;  %v11571_v54 = vsub.f32 %v11449_v28, %v13229_v49 }
 0x73d   :  { %v4971_v62 = vpack.c.b16 %v11475_v2, %v11473_v47  ;;  %v4577_v11 = vadd.f32 1.0, %v8390_v21 }
 0x73e   :  { %v3817_v46 = vsel %vm3595_vm7, %v11571_v54, -inf }
 0x73f   :  { %v4582_v41 = vmul.f32 %v4577_v11, %v4577_v11 }
 0x741   :  { %4668 = vrot.lane.b32.xlu0 %v11457_v38, %s8801_s30  ;;  %v4592_v7 = vadd.f32 1.0, %v4582_v41 }
 0x742   :  { %4698 = vrot.lane.b32.xlu1 %v11457_v38, %s8813_s27 }
 0x74a   :  { %4773 = vrot.lane.b32.xlu1 %v11457_v38, %s8811_s25 }
 0x762   :  { %3803 = vmax.xlane.f32.xlu2 %v3802_v6  ;;  %v3644_v6 = vsel %vm3595_vm7, %v11547_v35, -inf }
 0x76a   :  { %3636 = vmax.xlane.f32.xlu2 %v3635_v25  ;;  %v4471_v24 = vpop.f32.mrf.mxu1 }
 0x76b   :  { %3639 = vmax.xlane.f32.xlu0 %v3638_v43  ;;  %v4472_v36 = vadd.f32 %v4471_v24, %v11393_v34  ;;  %v11533_v34 = vsub.f32 %v11327_v4, %v11243_v50  ;;  %v3632_v50 = vsel %vm3595_vm7, %v11537_v42, -inf  ;;  %v11555_v4 = vsub.f32 %v11347_v1, %v11253_v0  ;;  %v13228_v1 = vld [vmem:[#allocation45_spill] sm:$0xff]  ;;  %v13230_v24 = vld [vmem:[#allocation62_spill] sm:$0xff] }
 0x76c   :  { %v3661_v0 = vmul.f32 1.442695, %v3653_v15  ;;  %v11567_v52 = vsub.f32 %v11454_v16, %v13228_v1  ;;  %v11579_v16 = vsub.f32 %v13231_v8, %v13230_v24 }
 0x76d   :  { %v3641_v27 = vsel %vm3595_vm7, %v11533_v34, -inf  ;;  %v3814_v57 = vsel %vm3595_vm7, %v11555_v4, -inf }
 0x76e   :  { %v3650_v25 = vsel %vm3617_vm12, %v11567_v52, -inf }
 0x770   :  { %v4485_v31 = vpop.f32.mrf.mxu2 }
 0x771   :  { %v11517_v37 = vadd.f32 %v4485_v31, %v4472_v36  ;;  %v7743_v31 = vadd.f32 -1.0, %v4582_v41 }
 0x772   :  { %3806 = vmax.xlane.f32.xlu2 %v3805_v33  ;;  %v4473_v1 = vpop.f32.mrf.mxu1 }
 0x773   :  { %v4523_v55 = vmul.f32 %v11451_v19, %v11517_v37  ;;  %3809 = vmax.xlane.f32.xlu0 %v3808_v60  ;;  %v3820_v60 = vsel %vm3617_vm12, %v11579_v16, -inf }
 0x774   :  { %3800 = vmax.xlane.f32.xlu1 %v3799_v5 }
 0x775   :  { %v4558_v13 = vadd.f32 %v4548_v45, %v4523_v55 }
 0x777   :  { %v4563_v19 = vmin.f32 %v4558_v13, 20.0  ;;  %vm4608_vm9 = vcmp.gt.f32.partialorder %v4558_v13, 20.0 }
 0x778   :  { %v4487_v49 = vpop.f32.mrf.mxu2 }
 0x779   :  { %v4571_v18 = vmul.f32 1.442695, %v4563_v19 }
 0x77a   :  { %3812 = vmax.xlane.f32.xlu2 %v3811_v14 }
 0x77b   :  { %8391 = vpow2.f32 %v4571_v18  ;;  %3642 = vmax.xlane.f32.xlu0 %v3641_v27 }
 0x77c   :  { %3633 = vmax.xlane.f32.xlu1 %v3632_v50  ;;  %8393 = vrcp.f32 %v4592_v7 }
 0x77d   :  { %8395 = vpow2.f32 %v3661_v0  ;;  %v4518_v0 = vpop.permute.xlu0 %4517 }
 0x781   :  { %v8392_v29 = vpop.eup %8391 }
 0x782   :  { %v4578_v58 = vadd.f32 1.0, %v8392_v29  ;;  %3645 = vmax.xlane.f32.xlu2 %v3644_v6  ;;  %v8394_v36 = vpop.eup %8393 }
 0x783   :  { %3648 = vmax.xlane.f32.xlu0 %v3647_v40  ;;  %v11581_v28 = vpop.eup %8395  ;;  %v4602_v33 = vmul.f32 %v8394_v36, %v7743_v31 }
 0x784   :  { %3815 = vmax.xlane.f32.xlu1 %v3814_v57  ;;  %v4583_v59 = vmul.f32 %v4578_v58, %v4578_v58  ;;  %v3677_v55 = vsel %vm3595_vm7, %v11581_v28, 0.0 }
 0x785   :  { %v4612_v45 = vsel %vm4607_vm8, 1.0, %v4602_v33 }
 0x786   :  { %v4593_v43 = vadd.f32 1.0, %v4583_v59  ;;  %v7744_v19 = vadd.f32 -1.0, %v4583_v59  ;;  %v4617_v18 = vmul.f32 %v4612_v45, %v11497_v22 }
 0x788   :  { %8397 = vrcp.f32 %v4593_v43  ;;  %v11589_v27 = vpack.c.bf16 %v4617_v18, %v4617_v18 }
 0x78a   :  { %3651 = vmax.xlane.f32.xlu2 %v3650_v25  ;;  %v4760_v11 = vunpack.c.l.bf16 %v11589_v27  ;;  %v4474_v25 = vadd.f32 %v4473_v1, %v11479_v44 }
 0x78b   :  { %3818 = vmax.xlane.f32.xlu0 %v3817_v46 }
 0x78c   :  { %v4765_v29 = vmul.f32 %v4760_v11, %v11287_v32  ;;  %v11610_v24 = vadd.f32 %v4487_v49, %v4474_v25 }
 0x78e   :  { %v8398_v5 = vpop.eup %8397  ;;  %v4770_v58 = vpack.c.bf16 %v4765_v29, %v4765_v29  ;;  %v4524_v8 = vmul.f32 %v4518_v0, %v11610_v24 }
 0x78f   :  { %v4603_v21 = vmul.f32 %v8398_v5, %v7744_v19 }
 0x790   :  { %v11597_v57 = vunpack.c.l.b16 %v4770_v58 }
 0x791   :  { %v4613_v14 = vsel %vm4608_vm9, 1.0, %v4603_v21 }
 0x792   :  { %3821 = vmax.xlane.f32.xlu2 %v3820_v60  ;;  %v4618_v50 = vmul.f32 %v4613_v14, %v4558_v13  ;;  %v4553_v13 = vpop.permute.xlu1 %4552 }
 0x793   :  { %3678 = vadd.xlane.f32.xlu0 %v3677_v55  ;;  %v11608_v46 = vpop.permute.xlu2 %4833  ;;  %v11615_v33 = vadd.f32 %v4553_v13, %v4524_v8 }
 0x794   :  { %v11592_v41 = vpack.c.bf16 %v4618_v50, %v4618_v50 }
 0x795   :  { %v4564_v55 = vmin.f32 %v11615_v33, 20.0  ;;  %vm4609_vm10 = vcmp.gt.f32.partialorder %v11615_v33, 20.0 }
 0x796   :  { %v4761_v15 = vunpack.c.l.bf16 %v11592_v41 }
 0x797   :  { %v4573_v45 = vmul.f32 1.442695, %v4564_v55 }
 0x798   :  { %v4766_v6 = vmul.f32 %v4761_v15, %v11287_v32 }
 0x799   :  { %8399 = vpow2.f32 %v4573_v45 }
 0x79a   :  { %v4771_v40 = vpack.c.bf16 %v4766_v6, %v4766_v6 }
 0x79c   :  { %v11599_v22 = vunpack.c.l.b16 %v4771_v40 }
 0x79e   :  { %v4972_v7 = vpack.c.b16 %v11599_v22, %v11597_v57 }
 0x79f   :  { %v8400_v11 = vpop.eup %8399 }
 0x7a0   :  { %v4579_v40 = vadd.f32 1.0, %v8400_v11 }
 0x7a2   :  { %v4584_v49 = vmul.f32 %v4579_v40, %v4579_v40 }
 0x7ab   :  { %v11606_v43 = vpop.permute.xlu0 %4803 }
 0x7ac   :  { %v11603_v59 = vpop.permute.xlu1 %4728 }
 0x7b3   :  { %v11617_v60 = vpop.permute.xlu0 %4668 }
 0x7b4   :  { %v11613_v36 = vpop.permute.xlu1 %4698 }
 0x7bc   :  { %v11620_v19 = vpop.permute.xlu1 %4773 }
 0x7d5   :  { %v3804_v31 = vpop.xlane.xlu2 %3803 }
 0x7dd   :  { %v3637_v5 = vpop.xlane.xlu2 %3636 }
 0x7de   :  { %v3640_v44 = vpop.xlane.xlu0 %3639 }
 0x7e5   :  { %v3807_v21 = vpop.xlane.xlu2 %3806 }
 0x7e6   :  { %v3810_v18 = vpop.xlane.xlu0 %3809  ;;  %v3825_v6 = vsub.f32 %v11506_v12, %v3807_v21  ;;  %v3656_v12 = vsub.f32 %v11495_v51, %v3640_v44  ;;  %v3655_v44 = vsub.f32 %v11489_v30, %v3637_v5 }
 0x7e7   :  { %v3826_v14 = vsub.f32 %v11510_v53, %v3810_v18  ;;  %v3801_v50 = vpop.xlane.xlu1 %3800 }
 0x7e8   :  { %v3823_v29 = vsub.f32 %v11514_v61, %v3801_v50  ;;  %v3835_v0 = vmul.f32 1.442695, %v3825_v6  ;;  %v3824_v61 = vsub.f32 %v11483_v63, %v3804_v31  ;;  %v4594_v50 = vadd.f32 1.0, %v4584_v49 }
 0x7e9   :  { %v3837_v15 = vmul.f32 1.442695, %v3826_v14  ;;  %v3667_v31 = vmul.f32 1.442695, %v3656_v12  ;;  %v3665_v5 = vmul.f32 1.442695, %v3655_v44 }
 0x7ea   :  { %v3831_v58 = vmul.f32 1.442695, %v3823_v29 }
 0x7eb   :  { %8401 = vpow2.f32 %v3837_v15 }
 0x7ec   :  { %8403 = vpow2.f32 %v3831_v58 }
 0x7ed   :  { %v3813_v13 = vpop.xlane.xlu2 %3812  ;;  %8405 = vpow2.f32 %v3835_v0 }
 0x7ee   :  { %v3643_v1 = vpop.xlane.xlu0 %3642  ;;  %v3827_v15 = vsub.f32 %v11529_v48, %v3813_v13 }
 0x7ef   :  { %v3657_v25 = vsub.f32 %v11533_v34, %v3643_v1  ;;  %v3634_v8 = vpop.xlane.xlu1 %3633 }
 0x7f0   :  { %v3654_v53 = vsub.f32 %v11537_v42, %v3634_v8  ;;  %v3833_v42 = vmul.f32 1.442695, %v3824_v61  ;;  %v3839_v48 = vmul.f32 1.442695, %v3827_v15 }
 0x7f1   :  { %v11627_v55 = vpop.eup %8401  ;;  %v3669_v45 = vmul.f32 1.442695, %v3657_v25  ;;  %v7745_v25 = vadd.f32 -1.0, %v4584_v49 }
 0x7f2   :  { %v11630_v18 = vpop.eup %8403  ;;  %v3663_v21 = vmul.f32 1.442695, %v3654_v53  ;;  %v3856_v14 = vsel %vm3595_vm7, %v11627_v55, 0.0 }
 0x7f3   :  { %8407 = vpow2.f32 %v3669_v45  ;;  %3857 = vadd.xlane.f32.xlu1 %v3856_v14  ;;  %v3847_v34 = vsel %vm3595_vm7, %v11630_v18, 0.0  ;;  %v11637_v11 = vpop.eup %8405 }
 0x7f4   :  { %8409 = vpow2.f32 %v3663_v21  ;;  %3848 = vadd.xlane.f32.xlu0 %v3847_v34  ;;  %v3853_v58 = vsel %vm3595_vm7, %v11637_v11, 0.0 }
 0x7f5   :  { %v3646_v63 = vpop.xlane.xlu2 %3645  ;;  %8411 = vrcp.f32 %v4594_v50 }
 0x7f6   :  { %8413 = vpow2.f32 %v3833_v42  ;;  %v11651_v0 = vpop.xlane.xlu0 %3648  ;;  %v3658_v45 = vsub.f32 %v11547_v35, %v3646_v63 }
 0x7f7   :  { %8415 = vpow2.f32 %v3667_v31  ;;  %v3816_v8 = vpop.xlane.xlu1 %3815 }
 0x7f8   :  { %8417 = vpow2.f32 %v3665_v5  ;;  %v3828_v12 = vsub.f32 %v11555_v4, %v3816_v8  ;;  %v3671_v50 = vmul.f32 1.442695, %v3658_v45 }
 0x7f9   :  { %v11639_v51 = vpop.eup %8407  ;;  %8419 = vpow2.f32 %v3839_v48 }
 0x7fa   :  { %v11642_v29 = vpop.eup %8409  ;;  %v3689_v6 = vsel %vm3595_vm7, %v11639_v51, 0.0  ;;  %v3841_v34 = vmul.f32 1.442695, %v3828_v12  ;;  %8421 = vpow2.f32 %v3671_v50 }
 0x7fb   :  { %3690 = vadd.xlane.f32.xlu1 %v3689_v6  ;;  %v3680_v40 = vsel %vm3595_vm7, %v11642_v29, 0.0  ;;  %v8412_v30 = vpop.eup %8411 }
 0x7fc   :  { %3854 = vadd.xlane.f32.xlu0 %v3853_v58  ;;  %3681 = vadd.xlane.f32.xlu2 %v3680_v40  ;;  %v11655_v13 = vpop.eup %8413  ;;  %v4604_v61 = vmul.f32 %v8412_v30, %v7745_v25  ;;  %8423 = vpow2.f32 %v3841_v34  ;;  %v3659_v34 = vsub.f32 %v11551_v3, %v11651_v0 }
 0x7fd   :  { %v11653_v1 = vpop.xlane.xlu2 %3651  ;;  %v11657_v53 = vpop.eup %8415  ;;  %v3850_v49 = vsel %vm3595_vm7, %v11655_v13, 0.0 }
 0x7fe   :  { %v3686_v21 = vsel %vm3595_vm7, %v11657_v53, 0.0  ;;  %v4614_v14 = vsel %vm4609_vm10, 1.0, %v4604_v61  ;;  %v3819_v42 = vpop.xlane.xlu0 %3818  ;;  %v11666_v31 = vpop.eup %8417 }
 0x7ff   :  { %v4619_v35 = vmul.f32 %v4614_v14, %v11615_v33  ;;  %v11669_v4 = vpop.eup %8419  ;;  %v3829_v44 = vsub.f32 %v11571_v54, %v3819_v42  ;;  %v3683_v40 = vsel %vm3595_vm7, %v11666_v31, 0.0  ;;  %v4632_v14 = vunpack.c.l.b16 %v11589_v27 }
 0x800   :  { %v3859_v58 = vsel %vm3595_vm7, %v11669_v4, 0.0  ;;  %v11679_v5 = vpop.eup %8421  ;;  %v3673_v42 = vmul.f32 1.442695, %v3659_v34  ;;  %v5073_v34 = vld [vmem:[#allocation6 + $0x318] sm:$0xf] }
 0x801   :  { %v11673_v6 = vpack.c.bf16 %v4619_v35, %v4619_v35  ;;  %v3843_v33 = vmul.f32 1.442695, %v3829_v44  ;;  %v3692_v48 = vsel %vm3595_vm7, %v11679_v5, 0.0  ;;  %v3660_v35 = vsub.f32 %v11567_v52, %v11653_v1  ;;  %v5159_v52 = vld [vmem:[#allocation6 + $0x338] sm:$0xff] }
 0x802   :  { %v11682_v54 = vpop.eup %8423 }
 0x803   :  { %v4634_v25 = vunpack.c.l.b16 %v11673_v6  ;;  %8425 = vpow2.f32 %v3843_v33  ;;  %v3862_v8 = vsel %vm3595_vm7, %v11682_v54, 0.0  ;;  %v3675_v3 = vmul.f32 1.442695, %v3660_v35  ;;  %v5200_v33 = vld [vmem:[#allocation6 + $0x360] sm:$0xff] }
 0x804   :  { %3687 = vadd.xlane.f32.xlu0 %v3686_v21  ;;  %3851 = vadd.xlane.f32.xlu2 %v3850_v49  ;;  %v4633_v49 = vunpack.c.l.b16 %v11592_v41 }
 0x805   :  { %v3822_v63 = vpop.xlane.xlu2 %3821 }
 0x806   :  { %v3830_v15 = vsub.f32 %v11579_v16, %v3822_v63  ;;  %v11684_v16 = vpack.c.b16 %v4634_v25, %v4634_v25  ;;  %v4636_v50 = vpack.c.b16 %v4633_v49, %v4632_v14  ;;  %v3679_v0 = vpop.xlane.xlu0 %3678  ;;  %v5199_v14 = vld [vmem:[#allocation6 + $0x358] sm:$0xff] }
 0x808   :  { %v3845_v30 = vmul.f32 1.442695, %v3830_v15 }
 0x809   :  { %v11692_v61 = vpop.eup %8425 }
 0x80a   :  { %8427 = vpow2.f32 %v3845_v30  ;;  %v3865_v12 = vsel %vm3595_vm7, %v11692_v61, 0.0 }
 0x80b   :  { %8429 = vpow2.f32 %v3673_v42 }
 0x80c   :  { %3860 = vadd.xlane.f32.xlu0 %v3859_v58  ;;  %3684 = vadd.xlane.f32.xlu2 %v3683_v40  ;;  %8431 = vpow2.f32 %v3675_v3 }
 0x80d   :  { %8433 = vrcp.f32 %v3679_v0 }
 0x810   :  { %v11694_v45 = vpop.eup %8427 }
 0x811   :  { %v3868_v21 = vsel %vm3617_vm12, %v11694_v45, 0.0  ;;  %v11715_v27 = vpop.eup %8429 }
 0x812   :  { %v3695_v41 = vsel %vm3595_vm7, %v11715_v27, 0.0  ;;  %v11726_v63 = vpop.eup %8431 }
 0x813   :  { %v3698_v44 = vsel %vm3617_vm12, %v11726_v63, 0.0  ;;  %v8434_v40 = vpop.eup %8433 }
 0x814   :  { %3693 = vadd.xlane.f32.xlu2 %v3692_v48  ;;  %3863 = vadd.xlane.f32.xlu0 %v3862_v8  ;;  %v3709_v8 = vmul.f32 %v8434_v40, %v11581_v28 }
 0x815   :  { %4702 = vrot.lane.b32.xlu1 %v11684_v16, %s8813_s27 }
 0x81c   :  { %3866 = vadd.xlane.f32.xlu2 %v3865_v12  ;;  %3869 = vadd.xlane.f32.xlu0 %v3868_v21 }
 0x81d   :  { %4642 = vrot.lane.b32.xlu1 %v11684_v16, %s8815_s29 }
 0x825   :  { %4867 = vrot.lane.b32.xlu1 %v11684_v16, %s8809_s23 }
 0x830   :  { %4700 = vrot.lane.b32.xlu0 %v4636_v50, %s8813_s27 }
 0x834   :  { %4730 = vrot.lane.b32.xlu2 %v4636_v50, %s8810_s24 }
 0x838   :  { %4805 = vrot.lane.b32.xlu0 %v4636_v50, %s8814_s28 }
 0x83c   :  { %4775 = vrot.lane.b32.xlu2 %v4636_v50, %s8811_s25 }
 0x840   :  { %4670 = vrot.lane.b32.xlu0 %v4636_v50, %s8801_s30 }
 0x848   :  { %4807 = vrot.lane.b32.xlu0 %v11684_v16, %s8814_s28 }
 0x84f   :  { %3696 = vadd.xlane.f32.xlu1 %v3695_v41 }
 0x850   :  { %4672 = vrot.lane.b32.xlu0 %v11684_v16, %s8801_s30 }
 0x858   :  { %4777 = vrot.lane.b32.xlu0 %v11684_v16, %s8811_s25 }
 0x860   :  { %4640 = vrot.lane.b32.xlu0 %v4636_v50, %s8815_s29 }
 0x865   :  { %3699 = vadd.xlane.f32.xlu2 %v3698_v44  ;;  %v5156_v44 = vld [vmem:[#allocation6 + $0x320] sm:$0xff] }
 0x866   :  { %v3858_v30 = vpop.xlane.xlu1 %3857 }
 0x867   :  { %v3849_v15 = vpop.xlane.xlu0 %3848 }
 0x868   :  { %4863 = vrot.lane.b32.xlu1 %v11457_v38, %s8809_s23  ;;  %4638 = vrot.lane.b32.xlu0 %v11457_v38, %s8815_s29 }
 0x86f   :  { %v3682_v1 = vpop.xlane.xlu2 %3681  ;;  %v3855_v58 = vpop.xlane.xlu0 %3854 }
 0x870   :  { %5179 = vperm.xlu1 %7926, %v5159_v52   ;;  %4835 = vrot.lane.b32.xlu0 %v4636_v50, %s8812_s26  ;;  %8435 = vrcp.f32 %v3682_v1 }
 0x871   :  { %8437 = vrcp.f32 %v3849_v15 }
 0x876   :  { %v8436_v25 = vpop.eup %8435 }
 0x877   :  { %v3852_v48 = vpop.xlane.xlu2 %3851  ;;  %v3710_v12 = vmul.f32 %v8436_v25, %v11642_v29  ;;  %v3688_v21 = vpop.xlane.xlu0 %3687  ;;  %v5072_v25 = vld [vmem:[#allocation6 + $0x310] sm:$0xff] }
 0x878   :  { %5216 = vperm.xlu1 %7926, %v5200_v33   ;;  %4732 = vrot.lane.b32.xlu0 %v11684_v16, %s8810_s24  ;;  %8439 = vrcp.f32 %v3852_v48  ;;  %v8438_v49 = vpop.eup %8437  ;;  %v3691_v29 = vpop.xlane.xlu1 %3690 }
 0x879   :  { %v3717_v38 = vpack.c.bf16 %v3710_v12, %v3709_v8  ;;  %8441 = vrcp.f32 %v3688_v21  ;;  %v3879_v28 = vmul.f32 %v8438_v49, %v11630_v18 }
 0x87b   :  { %7719 = vmatmul.msk.bf16.vlgmr.msra.gmra.mxu0 %vm3595_vm7, %v3717_v38 }
 0x87d   :  { %4865 = vrot.lane.b32.xlu2 %v4636_v50, %s8809_s23  ;;  %v5202_v50 = vld [vmem:[#allocation6 + $0x370] sm:$0xff] }
 0x87e   :  { %v8440_v42 = vpop.eup %8439 }
 0x87f   :  { %v3685_v41 = vpop.xlane.xlu2 %3684  ;;  %v3880_v35 = vmul.f32 %v8440_v42, %v11655_v13  ;;  %v8442_v0 = vpop.eup %8441  ;;  %v5158_v42 = vld [vmem:[#allocation6 + $0x330] sm:$0xff] }
 0x880   :  { %5211 = vperm.xlu1 %7926, %v5199_v14   ;;  %5081 = vperm.xlu0 %7925, %v5073_v34   ;;  %8443 = vrcp.f32 %v3685_v41  ;;  %v3861_v15 = vpop.xlane.xlu0 %3860  ;;  %v3712_v1 = vmul.f32 %v8442_v0, %v11657_v53 }
 0x881   :  { %v3887_v3 = vpack.c.bf16 %v3880_v35, %v3879_v28  ;;  %8445 = vrcp.f32 %v3855_v58  ;;  %v4735_v58 = vsel %vm4215_vm0, 0, %v11603_v59  ;;  %v13232_v59 = vld [vmem:[#allocation63_spill] sm:$0xff] }
 0x882   :  { %8447 = vrcp.f32 %v3858_v30  ;;  %v5201_v30 = vld [vmem:[#allocation6 + $0x368] sm:$0xff]  ;;  %v4743_v8 = vunpack.c.l.bf16 %v4735_v58  ;;  %v4744_v12 = vunpack.c.h.bf16 %v4735_v58 }
 0x883   :  { %7715 = vmatmul.msk.bf16.vlgmr.msrb.gmra.mxu3 %vm3595_vm7, %v3887_v3 }
 0x884   :  { %v4748_v14 = vmul.f32 %v4743_v8, %v13232_v59  ;;  %v4749_v28 = vmul.f32 %v4744_v12, %v13232_v59 }
 0x885   :  { %4837 = vrot.lane.b32.xlu2 %v11684_v16, %s8812_s26 }
 0x886   :  { %v8444_v52 = vpop.eup %8443  ;;  %v4753_v35 = vpack.c.bf16 %v4748_v14, %v4748_v14  ;;  %v4754_v3 = vpack.c.bf16 %v4749_v28, %v4749_v28 }
 0x887   :  { %v3694_v18 = vpop.xlane.xlu2 %3693  ;;  %v3711_v13 = vmul.f32 %v8444_v52, %v11666_v31  ;;  %v4703_v40 = vpop.permute.xlu1 %4702 }
 0x888   :  { %5226 = vperm.xlu1 %7926, %v5202_v50   ;;  %5164 = vperm.xlu0 %7925, %v5156_v44   ;;  %v8446_v48 = vpop.eup %8445  ;;  %8449 = vrcp.f32 %v3694_v18  ;;  %v3864_v21 = vpop.xlane.xlu0 %3863 }
 0x889   :  { %v3718_v33 = vpack.c.bf16 %v3712_v1, %v3711_v13  ;;  %v8448_v16 = vpop.eup %8447  ;;  %v3881_v53 = vmul.f32 %v8446_v48, %v11637_v11  ;;  %8451 = vrcp.f32 %v3691_v29  ;;  %v5160_v29 = vld [vmem:[#allocation6 + $0x340] sm:$0xff] }
 0x88a   :  { %v3882_v38 = vmul.f32 %v8448_v16, %v11627_v55  ;;  %8453 = vrcp.f32 %v3864_v21  ;;  %v5157_v16 = vld [vmem:[#allocation6 + $0x328] sm:$0xff] }
 0x88b   :  { %7720 = vmatmul.msk.bf16.gmra.mxu0 %vm3595_vm7, %v3718_v33  ;;  %8455 = vrcp.f32 %v3861_v15  ;;  %v4946_v33 = vunpack.c.l.b16 %v4753_v35  ;;  %v4711_v15 = vsel %vm155_vm2, 0, %v4703_v40  ;;  %v11772_v35 = vsel %vm155_vm2, 0, %v11613_v36 }
 0x88c   :  { %v3888_v34 = vpack.c.bf16 %v3882_v38, %v3881_v53  ;;  %v13233_v53 = vld [vmem:[#allocation25_spill] sm:$0xff] }
 0x88d   :  { %5076 = vperm.xlu2 %7927, %v5072_v25  }
 0x88e   :  { %v8450_v41 = vpop.eup %8449 }
 0x88f   :  { %v11752_v31 = vpop.xlane.xlu2 %3866  ;;  %v11755_v49 = vpop.permute.xlu1 %4642  ;;  %v3714_v55 = vmul.f32 %v8450_v41, %v11679_v5  ;;  %v4947_v5 = vunpack.c.l.b16 %v4754_v3  ;;  %v4717_v41 = vunpack.c.l.bf16 %v4711_v15 }
 0x890   :  { %5221 = vperm.xlu0 %7925, %v5201_v30   ;;  %v8452_v11 = vpop.eup %8451  ;;  %v3870_v25 = vpop.xlane.xlu0 %3869  ;;  %8457 = vrcp.f32 %v11752_v31 }
 0x891   :  { %v3713_v50 = vmul.f32 %v8452_v11, %v11639_v51  ;;  %v8454_v30 = vpop.eup %8453  ;;  %v4951_v11 = vpack.c.b16 %v4947_v5, %v4946_v33  ;;  %8459 = vrcp.f32 %v3870_v25 }
 0x892   :  { %v8456_v38 = vpop.eup %8455 }
 0x893   :  { %7716 = vmatmul.msk.bf16.gmra.mxu3 %vm3595_vm7, %v3888_v34  ;;  %v3719_v58 = vpack.c.bf16 %v3714_v55, %v3713_v50  ;;  %v5203_v34 = vld [vmem:[#allocation6 + $0x378] sm:$0xff]  ;;  %v3883_v55 = vmul.f32 %v8456_v38, %v11669_v4  ;;  %v4722_v50 = vmul.f32 %v4717_v41, %v11408_v9  ;;  %v4954_v33 = vrot.slane %v4951_v11, 2 }
 0x895   :  { %5174 = vperm.xlu2 %7927, %v5158_v42   ;;  %v3884_v42 = vmul.f32 %v8454_v30, %v11682_v54  ;;  %v5198_v54 = vld [vmem:[#allocation6 + $0x350] sm:$0xff]  ;;  %v4727_v30 = vpack.c.bf16 %v4722_v50, %v4722_v50 }
 0x896   :  { %v8458_v38 = vpop.eup %8457  ;;  %v13234_v50 = vld [vmem:[#allocation74_spill] sm:$0xff] }
 0x897   :  { %v4731_v0 = vpop.permute.xlu2 %4730  ;;  %v4868_v52 = vpop.permute.xlu1 %4867  ;;  %v4936_v25 = vunpack.c.l.b16 %v4727_v30  ;;  %v4675_v30 = vsel %vm4169_vm6, 0, %v11617_v60 }
 0x898   :  { %v4738_v44 = vsel %vm4215_vm0, 0, %v4731_v0  ;;  %5184 = vperm.xlu0 %7925, %v5160_v29   ;;  %v4876_v13 = vsel %vm4314_vm13, %v4868_v52, 0  ;;  %v3889_v52 = vpack.c.bf16 %v3884_v42, %v3883_v55  ;;  %v8460_v42 = vpop.eup %8459  ;;  %v3885_v55 = vmul.f32 %v8458_v38, %v11692_v61 }
 0x899   :  { %v4745_v18 = vunpack.c.l.bf16 %v4738_v44  ;;  %v4746_v1 = vunpack.c.h.bf16 %v4738_v44  ;;  %v4882_v48 = vunpack.c.l.bf16 %v4876_v13 }
 0x89b   :  { %v4750_v8 = vmul.f32 %v4745_v18, %v13232_v59  ;;  %v4751_v51 = vmul.f32 %v4746_v1, %v13232_v59  ;;  %v4887_v12 = vmul.f32 %v4882_v48, %v13233_v53  ;;  %7721 = vmatmul.msk.bf16.gmra.mxu0 %vm3595_vm7, %v3719_v58  ;;  %v4714_v1 = vunpack.c.h.bf16 %v11772_v35 }
 0x89d   :  { %v4755_v21 = vpack.c.bf16 %v4750_v8, %v4750_v8  ;;  %v4756_v14 = vpack.c.bf16 %v4751_v51, %v4751_v51  ;;  %5169 = vperm.xlu2 %7927, %v5157_v16   ;;  %v4892_v28 = vpack.c.bf16 %v4887_v12, %v4887_v12  ;;  %v4719_v31 = vmul.f32 %v4714_v1, %v11408_v9 }
 0x89e   :  { %v4840_v51 = vsel %vm4292_vm4, %v11608_v46, 0 }
 0x89f   :  { %v4948_v29 = vunpack.c.l.b16 %v4755_v21  ;;  %v4949_v40 = vunpack.c.l.b16 %v4756_v14  ;;  %v5038_v3 = vunpack.c.l.b16 %v4892_v28  ;;  %v4724_v41 = vpack.c.bf16 %v4719_v31, %v4719_v31 }
 0x8a0   :  { %5231 = vperm.xlu0 %7925, %v5203_v34   ;;  %v5161_v34 = vld [vmem:[#allocation6 + $0x348] sm:$0xff]  ;;  %v4848_v28 = vunpack.c.l.bf16 %v4840_v51  ;;  %v4849_v11 = vunpack.c.h.bf16 %v4840_v51 }
 0x8a1   :  { %v4952_v0 = vpack.c.b16 %v4949_v40, %v4948_v29  ;;  %v5041_v18 = vpack.c.b16 %v5038_v3, %v5038_v3  ;;  %v3886_v3 = vmul.f32 %v8460_v42, %v11694_v45  ;;  %v4933_v46 = vunpack.c.l.b16 %v4724_v41 }
 0x8a2   :  { %v4701_v44 = vpop.permute.xlu0 %4700 }
 0x8a3   :  { %v4708_v13 = vsel %vm155_vm2, 0, %v4701_v44  ;;  %v11778_v48 = vrot.slane %v4952_v0, 2  ;;  %7717 = vmatmul.msk.bf16.gmra.mxu3 %vm3595_vm7, %v3889_v52  ;;  %v5104_v58 = vsel %vm1279_vm15, %v5041_v18, 0  ;;  %v4853_v44 = vmul.f32 %v4848_v28, %v13234_v50 }
 0x8a4   :  { %v4715_v36 = vunpack.c.l.bf16 %v4708_v13  ;;  %v4716_v4 = vunpack.c.h.bf16 %v4708_v13  ;;  %5137 = vmatpush.bf16.msra.mxu1 %v5104_v58  ;;  %v4854_v52 = vmul.f32 %v4849_v11, %v13234_v50  ;;  %v3890_v1 = vpack.c.bf16 %v3886_v3, %v3885_v55 }
 0x8a5   :  { %5206 = vperm.xlu2 %7927, %v5198_v54   ;;  %v4956_v16 = vsel %vm1325_vm11, %v4954_v33, %v11778_v48  ;;  %v4713_v3 = vunpack.c.l.bf16 %v11772_v35 }
 0x8a6   :  { %v4720_v5 = vmul.f32 %v4715_v36, %v11408_v9  ;;  %v4721_v15 = vmul.f32 %v4716_v4, %v11408_v9  ;;  %5106 = vmatpush.bf16.msra.mxu3 %v4956_v16  ;;  %v4858_v36 = vpack.c.bf16 %v4853_v44, %v4853_v44  ;;  %v4859_v4 = vpack.c.bf16 %v4854_v52, %v4854_v52 }
 0x8a7   :  { %v4810_v16 = vsel %vm4270_vm5, %v11606_v43, 0  ;;  %v4718_v35 = vmul.f32 %v4713_v3, %v11408_v9 }
 0x8a8   :  { %v4726_v8 = vpack.c.bf16 %v4721_v15, %v4721_v15  ;;  %v4725_v12 = vpack.c.bf16 %v4720_v5, %v4720_v5  ;;  %v5015_v58 = vunpack.c.l.b16 %v4859_v4  ;;  %v4776_v15 = vpop.permute.xlu2 %4775  ;;  %v4819_v38 = vunpack.c.h.bf16 %v4810_v16 }
 0x8a9   :  { %v4783_v41 = vsel %vm4248_vm14, %v4776_v15, 0  ;;  %v4780_v15 = vsel %vm4248_vm14, %v11620_v19, 0 }
 0x8aa   :  { %v4935_v21 = vunpack.c.l.b16 %v4726_v8  ;;  %v4806_v14 = vpop.permute.xlu0 %4805  ;;  %v4934_v40 = vunpack.c.l.b16 %v4725_v12 }
 0x8ab   :  { %v4813_v13 = vsel %vm4270_vm5, %v4806_v14, 0 }
 0x8ac   :  { %v4939_v29 = vpack.c.b16 %v4936_v25, %v4935_v21  ;;  %v4938_v18 = vpack.c.b16 %v4934_v40, %v4933_v46  ;;  %v4821_v61 = vunpack.c.h.bf16 %v4813_v13  ;;  %v4820_v5 = vunpack.c.l.bf16 %v4813_v13 }
 0x8ad   :  { %5189 = vperm.xlu2 %7927, %v5161_v34   ;;  %v4683_v25 = vunpack.c.l.bf16 %v4675_v30  ;;  %v4684_v34 = vunpack.c.h.bf16 %v4675_v30  ;;  %v4824_v40 = vmul.f32 %v4819_v38, %v11418_v56 }
 0x8ae   :  { %v5054_v0 = vsel %vm1325_vm11, %v4939_v29, %v4954_v33  ;;  %v5014_v33 = vunpack.c.l.b16 %v4858_v36  ;;  %v4826_v31 = vmul.f32 %v4821_v61, %v11418_v56  ;;  %v4825_v43 = vmul.f32 %v4820_v5, %v11418_v56 }
 0x8af   :  { %5107 = vmatpush.bf16.msra.mxu3 %v5054_v0  ;;  %v4688_v55 = vmul.f32 %v4683_v25, %v11428_v26  ;;  %v4818_v0 = vunpack.c.l.bf16 %v4810_v16  ;;  %v4689_v46 = vmul.f32 %v4684_v34, %v11428_v26 }
 0x8b0   :  { %v5019_v14 = vpack.c.b16 %v5015_v58, %v5014_v33  ;;  %v4831_v28 = vpack.c.bf16 %v4826_v31, %v4826_v31  ;;  %v4830_v13 = vpack.c.bf16 %v4825_v43, %v4825_v43  ;;  %v4829_v58 = vpack.c.bf16 %v4824_v40, %v4824_v40 }
 0x8b1   :  { %v4693_v30 = vpack.c.bf16 %v4688_v55, %v4688_v55  ;;  %v4694_v5 = vpack.c.bf16 %v4689_v46, %v4689_v46  ;;  %v4788_v43 = vunpack.c.l.bf16 %v4780_v15  ;;  %v4823_v19 = vmul.f32 %v4818_v0, %v11418_v56 }
 0x8b2   :  { %v4671_v54 = vpop.permute.xlu0 %4670  ;;  %v11813_v52 = vrot.slane %v5019_v14, 2  ;;  %v5003_v36 = vunpack.c.l.b16 %v4831_v28  ;;  %v5002_v38 = vunpack.c.l.b16 %v4830_v13  ;;  %v4789_v28 = vunpack.c.h.bf16 %v4780_v15 }
 0x8b3   :  { %5108 = vmatpush.bf16.msra.mxu3 %v4938_v18  ;;  %v4678_v45 = vsel %vm4169_vm6, 0, %v4671_v54  ;;  %v4651_v18 = vsel %vm4144_vm3, 0, %v11755_v49  ;;  %v4790_v54 = vunpack.c.l.bf16 %v4783_v41  ;;  %v4914_v3 = vunpack.c.l.b16 %v4694_v5 }
 0x8b4   :  { %7718 = vmatmul.msk.bf16.gmra.mxu3 %vm3595_vm7, %v3890_v1  ;;  %v4685_v8 = vunpack.c.l.bf16 %v4678_v45  ;;  %v4686_v51 = vunpack.c.h.bf16 %v4678_v45  ;;  %v4791_v1 = vunpack.c.h.bf16 %v4783_v41  ;;  %v4723_v41 = vpack.c.bf16 %v4718_v35, %v4718_v35 }
 0x8b5   :  { %v4793_v13 = vmul.f32 %v4788_v43, %v11360_v39 }
 0x8b6   :  { %v4690_v60 = vmul.f32 %v4685_v8, %v11428_v26  ;;  %v4691_v11 = vmul.f32 %v4686_v51, %v11428_v26  ;;  %v4657_v8 = vunpack.c.l.bf16 %v4651_v18  ;;  %v4795_v51 = vmul.f32 %v4790_v54, %v11360_v39 }
 0x8b8   :  { %v4695_v4 = vpack.c.bf16 %v4690_v60, %v4690_v60  ;;  %v4696_v61 = vpack.c.bf16 %v4691_v11, %v4691_v11  ;;  %v4913_v11 = vunpack.c.l.b16 %v4693_v30  ;;  %v4800_v40 = vpack.c.bf16 %v4795_v51, %v4795_v51 }
 0x8b9   :  { %v4762_v30 = vunpack.c.l.bf16 %v11673_v6 }
 0x8ba   :  { %v4808_v12 = vpop.permute.xlu0 %4807  ;;  %v4915_v25 = vunpack.c.l.b16 %v4695_v4  ;;  %v4918_v51 = vpack.c.b16 %v4914_v3, %v4913_v11 }
 0x8bb   :  { %v4816_v21 = vsel %vm4270_vm5, %v4808_v12, 0  ;;  %v4796_v12 = vmul.f32 %v4791_v1, %v11360_v39  ;;  %v4932_v1 = vunpack.c.l.b16 %v4723_v41  ;;  %v4767_v43 = vmul.f32 %v4762_v30, %v11287_v32 }
 0x8bc   :  { %v4822_v42 = vunpack.c.l.bf16 %v4816_v21  ;;  %v4916_v21 = vunpack.c.l.b16 %v4696_v61 }
 0x8bd   :  { %v4801_v46 = vpack.c.bf16 %v4796_v12, %v4796_v12 }
 0x8be   :  { %v4827_v29 = vmul.f32 %v4822_v42, %v11418_v56  ;;  %v5001_v42 = vunpack.c.l.b16 %v4829_v58  ;;  %v4983_v58 = vunpack.c.l.b16 %v4800_v40 }
 0x8bf   :  { %v4984_v35 = vunpack.c.l.b16 %v4801_v46 }
 0x8c0   :  { %v4832_v44 = vpack.c.bf16 %v4827_v29, %v4827_v29  ;;  %v4662_v29 = vmul.f32 %v4657_v8, %v11432_v17  ;;  %v5006_v55 = vpack.c.b16 %v5002_v38, %v5001_v42  ;;  %v4937_v8 = vpack.c.b16 %v4932_v1, %v4932_v1 }
 0x8c2   :  { %v5004_v45 = vunpack.c.l.b16 %v4832_v44  ;;  %v4673_v33 = vpop.permute.xlu0 %4672  ;;  %v4919_v44 = vpack.c.b16 %v4916_v21, %v4915_v25  ;;  %v3697_v42 = vpop.xlane.xlu1 %3696 }
 0x8c3   :  { %v4681_v16 = vsel %vm4169_vm6, 0, %v4673_v33  ;;  %v4667_v33 = vpack.c.bf16 %v4662_v29, %v4662_v29  ;;  %v4921_v29 = vrot.slane %v4918_v51, 6  ;;  %8461 = vrcp.f32 %v3697_v42 }
 0x8c4   :  { %v5007_v31 = vpack.c.b16 %v5004_v45, %v5003_v36  ;;  %v4687_v49 = vunpack.c.l.bf16 %v4681_v16  ;;  %v4794_v36 = vmul.f32 %v4789_v28, %v11360_v39  ;;  %v4828_v45 = vpack.c.bf16 %v4823_v19, %v4823_v19 }
 0x8c5   :  { %v4922_v16 = vrot.slane %v4919_v44, 6  ;;  %v4902_v25 = vunpack.c.l.b16 %v4667_v33 }
 0x8c6   :  { %v4692_v14 = vmul.f32 %v4687_v49, %v11428_v26  ;;  %v5066_v34 = vsel %vm1325_vm11, %v5007_v31, %v11813_v52  ;;  %v4798_v31 = vpack.c.bf16 %v4793_v13, %v4793_v13  ;;  %v4799_v49 = vpack.c.bf16 %v4794_v36, %v4794_v36 }
 0x8c7   :  { %5120 = vmatpush.bf16.msrb.mxu0 %v5066_v34  ;;  %v4987_v34 = vpack.c.b16 %v4984_v35, %v4983_v58  ;;  %v4905_v3 = vpack.c.b16 %v4902_v25, %v4902_v25  ;;  %v4923_v46 = vsel %vm1279_vm15, %v4921_v29, %v4922_v16 }
 0x8c8   :  { %v4697_v60 = vpack.c.bf16 %v4692_v14, %v4692_v14  ;;  %v5000_v14 = vunpack.c.l.b16 %v4828_v45  ;;  %v4981_v28 = vunpack.c.l.b16 %v4798_v31  ;;  %v4982_v19 = vunpack.c.l.b16 %v4799_v49 }
 0x8c9   :  { %v4990_v44 = vrot.slane %v4987_v34, 6  ;;  %v5046_v30 = vsel %vm1279_vm15, %v4905_v3, %v4921_v29 }
 0x8ca   :  { %v4917_v18 = vunpack.c.l.b16 %v4697_v60  ;;  %v4778_v54 = vpop.permute.xlu0 %4777  ;;  %v5005_v13 = vpack.c.b16 %v5000_v14, %v5000_v14  ;;  %v4986_v36 = vpack.c.b16 %v4982_v19, %v4981_v28  ;;  %v8462_v14 = vpop.eup %8461 }
 0x8cb   :  { %v4786_v4 = vsel %vm4248_vm14, %v4778_v54, 0  ;;  %5121 = vmatpush.bf16.msrb.mxu0 %v5006_v55  ;;  %v3715_v3 = vmul.f32 %v8462_v14, %v11715_v27 }
 0x8cc   :  { %v4920_v0 = vpack.c.b16 %v4917_v18, %v4917_v18  ;;  %v4792_v61 = vunpack.c.l.bf16 %v4786_v4  ;;  %v4772_v4 = vpack.c.bf16 %v4767_v43, %v4767_v43  ;;  %v4989_v49 = vrot.slane %v4986_v36, 6 }
 0x8ce   :  { %v4924_v5 = vrot.slane %v4920_v0, 6  ;;  %v4797_v15 = vmul.f32 %v4792_v61, %v11360_v39 }
 0x8d0   :  { %v4802_v12 = vpack.c.bf16 %v4797_v15, %v4797_v15  ;;  %v4925_v38 = vsel %vm1279_vm15, %v4922_v16, %v4924_v5 }
 0x8d1   :  { %v5050_v21 = vsel %vm163_vm1, %v4925_v38, %v4937_v8  ;;  %v4970_v8 = vunpack.c.l.b16 %v4772_v4  ;;  %v7748_v4 = vld [vmem:[#allocation2 + $0x160] sm:$0xf] }
 0x8d2   :  { %v4985_v41 = vunpack.c.l.b16 %v4802_v12  ;;  %v4641_v6 = vpop.permute.xlu0 %4640  ;;  %5109 = vmatpush.bf16.msra.mxu3 %v5050_v21  ;;  %v4991_v21 = vsel %vm1279_vm15, %v4989_v49, %v4990_v44 }
 0x8d3   :  { %v4648_v60 = vsel %vm4144_vm3, 0, %v4641_v6  ;;  %v4973_v28 = vpack.c.b16 %v4970_v8, %v4970_v8 }
 0x8d4   :  { %v4988_v11 = vpack.c.b16 %v4985_v41, %v4985_v41  ;;  %v4655_v40 = vunpack.c.l.bf16 %v4648_v60  ;;  %v4656_v55 = vunpack.c.h.bf16 %v4648_v60 }
 0x8d6   :  { %v4992_v18 = vrot.slane %v4988_v11, 6  ;;  %v4660_v54 = vmul.f32 %v4655_v40, %v11432_v17  ;;  %v4661_v1 = vmul.f32 %v4656_v55, %v11432_v17  ;;  %5110 = vmatpush.bf16.msra.mxu3 %v4923_v46  ;;  %v5058_v55 = vsel %vm1279_vm15, %v4973_v28, %v4989_v49 }
 0x8d8   :  { %v4665_v0 = vpack.c.bf16 %v4660_v54, %v4660_v54  ;;  %v4666_v61 = vpack.c.bf16 %v4661_v1, %v4661_v1  ;;  %v3700_v45 = vpop.xlane.xlu2 %3699  ;;  %v4993_v33 = vsel %vm1279_vm15, %v4990_v44, %v4992_v18  ;;  %vm5099_vm15 = vcmask 556032  }
 0x8d9   :  { %8463 = vrcp.f32 %v3700_v45  ;;  %v5062_v58 = vsel %vm163_vm1, %v4993_v33, %v5005_v13 }
 0x8da   :  { %v4900_v35 = vunpack.c.l.b16 %v4665_v0  ;;  %v4901_v16 = vunpack.c.l.b16 %v4666_v61  ;;  %5122 = vmatpush.bf16.msrb.mxu0 %v5062_v58  ;;  %v4639_v5 = vpop.permute.xlu0 %4638  ;;  %5111 = vmatpush.bf16.msra.mxu3 %v5046_v30  ;;  %v4864_v15 = vpop.permute.xlu1 %4863  ;;  %v7893_v0 = vld [vmem:[#allocation2 + $0x16c] sm:$0x30] }
 0x8db   :  { %v4645_v31 = vsel %vm4144_vm3, 0, %v4639_v5  ;;  %v4870_v38 = vsel %vm4314_vm13, %v4864_v15, 0  ;;  %v7749_v15 = vor.u32 %v7893_v0, %v7748_v4 }
 0x8dc   :  { %v4653_v51 = vunpack.c.l.bf16 %v4645_v31  ;;  %v4654_v12 = vunpack.c.h.bf16 %v4645_v31  ;;  %v4904_v25 = vpack.c.b16 %v4901_v16, %v4900_v35  ;;  %v4878_v6 = vunpack.c.l.bf16 %v4870_v38 }
 0x8dd   :  { %v4879_v43 = vunpack.c.h.bf16 %v4870_v38 }
 0x8de   :  { %v4658_v34 = vmul.f32 %v4653_v51, %v11432_v17  ;;  %v4659_v42 = vmul.f32 %v4654_v12, %v11432_v17  ;;  %5123 = vmatpush.bf16.msrb.mxu0 %v4991_v21  ;;  %5112 = vmatpush.bf16.msra.mxu3 %v4904_v25  ;;  %v4883_v1 = vmul.f32 %v4878_v6, %v13233_v53 }
 0x8df   :  { %v8464_v41 = vpop.eup %8463  ;;  %v4884_v13 = vmul.f32 %v4879_v43, %v13233_v53 }
 0x8e0   :  { %v3716_v19 = vmul.f32 %v8464_v41, %v11726_v63  ;;  %v4663_v60 = vpack.c.bf16 %v4658_v34, %v4658_v34  ;;  %v4664_v29 = vpack.c.bf16 %v4659_v42, %v4659_v42  ;;  %v4866_v11 = vpop.permute.xlu2 %4865  ;;  %v4888_v31 = vpack.c.bf16 %v4883_v1, %v4883_v1 }
 0x8e1   :  { %v4873_v40 = vsel %vm4314_vm13, %v4866_v11, 0  ;;  %v4889_v49 = vpack.c.bf16 %v4884_v13, %v4884_v13 }
 0x8e2   :  { %v4898_v46 = vunpack.c.l.b16 %v4663_v60  ;;  %v4899_v44 = vunpack.c.l.b16 %v4664_v29  ;;  %v4880_v18 = vunpack.c.l.bf16 %v4873_v40  ;;  %5124 = vmatpush.bf16.msrb.mxu0 %v5058_v55  ;;  %v4836_v54 = vpop.permute.xlu0 %4835  ;;  %v4881_v36 = vunpack.c.h.bf16 %v4873_v40  ;;  %v5180_v60 = vpop.permute.xlu1 %5179 }
 0x8e3   :  { %v4843_v63 = vsel %vm4292_vm4, %v4836_v54, 0  ;;  %v3720_v58 = vpack.c.bf16 %v3716_v19, %v3715_v3  ;;  %v5034_v41 = vunpack.c.l.b16 %v4888_v31  ;;  %v5035_v6 = vunpack.c.l.b16 %v4889_v49 }
 0x8e4   :  { %v4885_v61 = vmul.f32 %v4880_v18, %v13233_v53  ;;  %v4850_v45 = vunpack.c.l.bf16 %v4843_v63  ;;  %v4851_v33 = vunpack.c.h.bf16 %v4843_v63  ;;  %v4886_v27 = vmul.f32 %v4881_v36, %v13233_v53 }
 0x8e5   :  { %v4903_v30 = vpack.c.b16 %v4899_v44, %v4898_v46  ;;  %7722 = vmatmul.msk.bf16.gmra.mxu0 %vm3595_vm7, %v3720_v58  ;;  %v5039_v40 = vpack.c.b16 %v5035_v6, %v5034_v41 }
 0x8e6   :  { %v4890_v35 = vpack.c.bf16 %v4885_v61, %v4885_v61  ;;  %v4855_v16 = vmul.f32 %v4850_v45, %v13234_v50  ;;  %v4856_v5 = vmul.f32 %v4851_v33, %v13234_v50  ;;  %v4891_v8 = vpack.c.bf16 %v4886_v27, %v4886_v27  ;;  %5125 = vmatpush.bf16.msrb.mxu0 %v4972_v7  ;;  %v7892_v27 = vld [vmem:[#allocation2 + $0x164] sm:$0xf] }
 0x8e7   :  { %5113 = vmatpush.bf16.msra.mxu3 %v4903_v30  ;;  %v7750_v30 = vld [vmem:[#allocation2 + $0x170] sm:$0x30] }
 0x8e8   :  { %v5036_v51 = vunpack.c.l.b16 %v4890_v35  ;;  %v4860_v12 = vpack.c.bf16 %v4855_v16, %v4855_v16  ;;  %v4861_v38 = vpack.c.bf16 %v4856_v5, %v4856_v5  ;;  %v4838_v25 = vpop.permute.xlu2 %4837  ;;  %v5037_v21 = vunpack.c.l.b16 %v4891_v8  ;;  %v7756_v35 = vld [vmem:[#allocation2 + $0x168] sm:$0xf] }
 0x8e9   :  { %v4846_v14 = vsel %vm4292_vm4, %v4838_v25, 0  ;;  %v7753_v5 = vor.u32 %v7892_v27, %v7750_v30 }
 0x8ea   :  { %v4852_v34 = vunpack.c.l.bf16 %v4846_v14  ;;  %5114 = vmatmul.bf16.vlgmr.msra.gmra.mxu3 %v7749_v15  ;;  %v4733_v42 = vpop.permute.xlu0 %4732  ;;  %5126 = vmatpush.bf16.msrb.mxu0 %v4971_v62  ;;  %v5040_v57 = vpack.c.b16 %v5037_v21, %v5036_v51  ;;  %v5016_v22 = vunpack.c.l.b16 %v4860_v12  ;;  %v5017_v7 = vunpack.c.l.b16 %v4861_v38  ;;  %v5217_v63 = vpop.permute.xlu1 %5216  ;;  %v7894_v15 = vld [vmem:[#allocation2 + $0x174] sm:$0x30] }
 0x8eb   :  { %v4741_v43 = vsel %vm4215_vm0, 0, %v4733_v42  ;;  %v7757_v31 = vor.u32 %v7894_v15, %v7756_v35  ;;  %v5195_v12 = vmul.f32 %v5180_v60, %v11517_v37 }
 0x8ec   :  { %v4857_v28 = vmul.f32 %v4852_v34, %v13234_v50  ;;  %v4747_v19 = vunpack.c.l.bf16 %v4741_v43  ;;  %5138 = vmatpush.bf16.msra.mxu1 %v5040_v57  ;;  %v5020_v47 = vpack.c.b16 %v5017_v7, %v5016_v22 }
 0x8ee   :  { %v4862_v29 = vpack.c.bf16 %v4857_v28, %v4857_v28  ;;  %v4752_v11 = vmul.f32 %v4747_v19, %v13232_v59  ;;  %v5023_v1 = vrot.slane %v5020_v47, 2 }
 0x8f0   :  { %v5018_v55 = vunpack.c.l.b16 %v4862_v29  ;;  %v4757_v3 = vpack.c.bf16 %v4752_v11, %v4752_v11  ;;  %v11870_v46 = vpop.permute.xlu2 %5076  ;;  %5139 = vmatpush.bf16.msra.mxu1 %v5039_v40  ;;  %v5024_v58 = vsel %vm1325_vm11, %v11813_v52, %v5023_v1 }
 0x8f2   :  { %v5021_v2 = vpack.c.b16 %v5018_v55, %v5018_v55  ;;  %v4950_v62 = vunpack.c.l.b16 %v4757_v3  ;;  %v11872_v44 = vpop.permute.xlu0 %5081  ;;  %v5212_v52 = vpop.permute.xlu1 %5211 }
 0x8f4   :  { %v5025_v18 = vrot.slane %v5021_v2, 2  ;;  %v4953_v54 = vpack.c.b16 %v4950_v62, %v4950_v62 }
 0x8f6   :  { %v5026_v13 = vsel %vm1325_vm11, %v5023_v1, %v5025_v18  ;;  %v4957_v36 = vrot.slane %v4953_v54, 2 }
 0x8f7   :  { %5140 = vmatpush.bf16.msra.mxu1 %v5026_v13 }
 0x8f8   :  { %v5175_v4 = vpop.permute.xlu2 %5174  ;;  %v4958_v45 = vsel %vm1325_vm11, %v11778_v48, %v4957_v36  ;;  %v3959_v8 = vpop.f32.mrf.mxu0 }
 0x8f9   :  { %v5194_v0 = vmul.f32 %v5175_v4, %v11269_v23  ;;  %5127 = vmatpush.bf16.msrb.mxu0 %v4958_v45 }
 0x8fa   :  { %v5165_v33 = vpop.permute.xlu0 %5164 }
 0x8fb   :  { %v11876_v61 = vadd.f32 %v5217_v63, %v5194_v0  ;;  %5141 = vmatpush.bf16.msra.mxu1 %v5024_v58  ;;  %v5192_v42 = vmul.f32 %v5165_v33, %v11263_v20 }
 0x8fc   :  { %5128 = vmatmul.bf16.vlgmr.msrb.gmra.mxu0 %v7753_v5 }
 0x8fd   :  { %v5242_v16 = vmin.f32 %v11876_v61, 20.0  ;;  %vm5296_vm12 = vcmp.gt.f32.partialorder %v11876_v61, 20.0 }
 0x8fe   :  { %7758 = vmatmul.msk.bf16.vlgmr.msra.gmra.mxu1 %vm5099_vm15, %v7757_v31 }
 0x8ff   :  { %v5250_v49 = vmul.f32 1.442695, %v5242_v16 }
 0x900   :  { %v5170_v48 = vpop.permute.xlu2 %5169  ;;  %v11891_v29 = vpop.f32.mrf.mxu0 }
 0x901   :  { %8465 = vpow2.f32 %v5250_v49  ;;  %v5193_v51 = vmul.f32 %v5170_v48, %v11266_v10 }
 0x902   :  { %v5222_v25 = vpop.permute.xlu0 %5221 }
 0x903   :  { %v11885_v38 = vadd.f32 %v5212_v52, %v5193_v51  ;;  %v5237_v14 = vadd.f32 %v5222_v25, %v5195_v12 }
 0x905   :  { %v5241_v21 = vmin.f32 %v11885_v38, 20.0  ;;  %v5243_v6 = vmin.f32 %v5237_v14, 20.0  ;;  %vm5295_vm8 = vcmp.gt.f32.partialorder %v11885_v38, 20.0  ;;  %vm5297_vm9 = vcmp.gt.f32.partialorder %v5237_v14, 20.0 }
 0x906   :  { %v3915_v57 = vpop.f32.mrf.mxu3 }
 0x907   :  { %v8466_v34 = vpop.eup %8465  ;;  %v5248_v41 = vmul.f32 1.442695, %v5241_v21  ;;  %v5252_v7 = vmul.f32 1.442695, %v5243_v6  ;;  %v11889_v28 = vadd.f32 %v3959_v8, %v3915_v57 }
 0x908   :  { %v5260_v43 = vadd.f32 1.0, %v8466_v34  ;;  %v5207_v22 = vpop.permute.xlu2 %5206  ;;  %v3964_v63 = vpop.f32.mrf.mxu0 }
 0x909   :  { %8467 = vpow2.f32 %v5248_v41  ;;  %v5234_v19 = vadd.f32 %v5207_v22, %v5192_v42 }
 0x90a   :  { %v5266_v60 = vmul.f32 %v5260_v43, %v5260_v43  ;;  %8469 = vpow2.f32 %v5252_v7 }
 0x90b   :  { %v5240_v11 = vmin.f32 %v5234_v19, 20.0  ;;  %vm5294_vm10 = vcmp.gt.f32.partialorder %v5234_v19, 20.0 }
 0x90c   :  { %v5278_v40 = vadd.f32 1.0, %v5266_v60  ;;  %v7761_v0 = vadd.f32 -1.0, %v5266_v60 }
 0x90d   :  { %v5246_v55 = vmul.f32 1.442695, %v5240_v11 }
 0x90e   :  { %8471 = vrcp.f32 %v5278_v40  ;;  %v11893_v2 = vpop.f32.mrf.mxu3 }
 0x90f   :  { %v8468_v3 = vpop.eup %8467  ;;  %8473 = vpow2.f32 %v5246_v55 }
 0x910   :  { %v5259_v47 = vadd.f32 1.0, %v8468_v3  ;;  %v8470_v62 = vpop.eup %8469  ;;  %v11900_v52 = vpop.f32.mrf.mxu0 }
 0x911   :  { %v5261_v54 = vadd.f32 1.0, %v8470_v62 }
 0x912   :  { %v5265_v18 = vmul.f32 %v5259_v47, %v5259_v47 }
 0x913   :  { %v5267_v36 = vmul.f32 %v5261_v54, %v5261_v54 }
 0x914   :  { %v8472_v1 = vpop.eup %8471  ;;  %v5277_v13 = vadd.f32 1.0, %v5265_v18  ;;  %v7760_v15 = vadd.f32 -1.0, %v5265_v18 }
 0x915   :  { %v8474_v4 = vpop.eup %8473  ;;  %v5279_v45 = vadd.f32 1.0, %v5267_v36  ;;  %v5290_v58 = vmul.f32 %v8472_v1, %v7761_v0  ;;  %v7762_v8 = vadd.f32 -1.0, %v5267_v36 }
 0x916   :  { %8475 = vrcp.f32 %v5277_v13  ;;  %v5258_v33 = vadd.f32 1.0, %v8474_v4  ;;  %v3920_v30 = vpop.f32.mrf.mxu3 }
 0x917   :  { %8477 = vrcp.f32 %v5279_v45  ;;  %v11895_v35 = vadd.f32 %v3964_v63, %v3920_v30  ;;  %v5302_v5 = vsel %vm5296_vm12, 1.0, %v5290_v58 }
 0x918   :  { %v5264_v27 = vmul.f32 %v5258_v33, %v5258_v33  ;;  %v5308_v51 = vmul.f32 %v5302_v5, %v11876_v61  ;;  %v3969_v62 = vpop.f32.mrf.mxu0 }
 0x91a   :  { %v5276_v16 = vadd.f32 1.0, %v5264_v27  ;;  %v7759_v42 = vadd.f32 -1.0, %v5264_v27  ;;  %v5314_v6 = vpack.c.bf16 %v5308_v51, %v5308_v51 }
 0x91c   :  { %v8476_v31 = vpop.eup %8475  ;;  %8479 = vrcp.f32 %v5276_v16  ;;  %v5326_v60 = vunpack.c.l.b16 %v5314_v6 }
 0x91d   :  { %v5289_v49 = vmul.f32 %v8476_v31, %v7760_v15  ;;  %v8478_v48 = vpop.eup %8477 }
 0x91e   :  { %v5291_v25 = vmul.f32 %v8478_v48, %v7762_v8  ;;  %v11902_v21 = vpop.f32.mrf.mxu3 }
 0x91f   :  { %v5301_v12 = vsel %vm5295_vm8, 1.0, %v5289_v49 }
 0x920   :  { %v5303_v34 = vsel %vm5297_vm9, 1.0, %v5291_v25  ;;  %v5307_v43 = vmul.f32 %v5301_v12, %v11885_v38  ;;  %v11949_v12 = vpop.f32.mrf.mxu0 }
 0x921   :  { %v5309_v57 = vmul.f32 %v5303_v34, %v5237_v14  ;;  %v5467_v14 = vunpack.c.l.bf16 %v5314_v6 }
 0x922   :  { %v8480_v41 = vpop.eup %8479  ;;  %v5313_v11 = vpack.c.bf16 %v5307_v43, %v5307_v43 }
 0x923   :  { %v5288_v22 = vmul.f32 %v8480_v41, %v7759_v42  ;;  %v5315_v7 = vpack.c.bf16 %v5309_v57, %v5309_v57  ;;  %v5473_v36 = vmul.f32 %v5467_v14, %v11287_v32 }
 0x924   :  { %v5325_v1 = vunpack.c.l.b16 %v5313_v11  ;;  %v5466_v63 = vunpack.c.l.bf16 %v5313_v11 }
 0x925   :  { %v5300_v61 = vsel %vm5294_vm10, 1.0, %v5288_v22  ;;  %v5327_v40 = vunpack.c.l.b16 %v5315_v7  ;;  %v5479_v0 = vpack.c.bf16 %v5473_v36, %v5473_v36 }
 0x926   :  { %v5306_v55 = vmul.f32 %v5300_v61, %v5234_v19  ;;  %v3925_v18 = vpop.f32.mrf.mxu3  ;;  %v5468_v19 = vunpack.c.l.bf16 %v5315_v7  ;;  %v5472_v58 = vmul.f32 %v5466_v63, %v11287_v32 }
 0x927   :  { %v11905_v3 = vpack.c.b16 %v5327_v40, %v5326_v60  ;;  %v11907_v54 = vadd.f32 %v3969_v62, %v3925_v18  ;;  %v11926_v27 = vunpack.c.l.b16 %v5479_v0  ;;  %v5190_v60 = vpop.permute.xlu2 %5189 }
 0x928   :  { %v5312_v47 = vpack.c.bf16 %v5306_v55, %v5306_v55  ;;  %v5474_v4 = vmul.f32 %v5468_v19, %v11287_v32  ;;  %v5478_v15 = vpack.c.bf16 %v5472_v58, %v5472_v58  ;;  %v5185_v55 = vpop.permute.xlu0 %5184 }
 0x929   :  { %5401 = vrot.lane.b32.xlu2 %v11905_v3, %s8813_s27 }
 0x92a   :  { %v5324_v13 = vunpack.c.l.b16 %v5312_v47  ;;  %v5465_v45 = vunpack.c.l.bf16 %v5312_v47  ;;  %v5480_v33 = vpack.c.bf16 %v5474_v4, %v5474_v4  ;;  %v11941_v8 = vunpack.c.l.b16 %v5478_v15 }
 0x92c   :  { %v11911_v38 = vpack.c.b16 %v5325_v1, %v5324_v13  ;;  %v11928_v30 = vunpack.c.l.b16 %v5480_v33  ;;  %v5471_v5 = vmul.f32 %v5465_v45, %v11287_v32  ;;  %v5227_v1 = vpop.permute.xlu1 %5226 }
 0x92e   :  { %5399 = vrot.lane.b32.xlu0 %v11911_v38, %s8813_s27  ;;  %5483 = vrot.lane.b32.xlu1 %v11911_v38, %s8811_s25  ;;  %v5700_v16 = vpack.c.b16 %v11928_v30, %v11926_v27  ;;  %v5477_v31 = vpack.c.bf16 %v5471_v5, %v5471_v5  ;;  %v11947_v51 = vpop.f32.mrf.mxu3  ;;  %v5781_v27 = vld [vmem:[#allocation6 + $0x380] sm:$0xff] }
 0x930   :  { %v11939_v49 = vunpack.c.l.b16 %v5477_v31 }
 0x931   :  { %5551 = vrot.lane.b32.xlu2 %v11905_v3, %s8812_s26 }
 0x932   :  { %v5699_v48 = vpack.c.b16 %v11941_v8, %v11939_v49 }
 0x936   :  { %5368 = vrot.lane.b32.xlu0 %v11905_v3, %s8801_s30  ;;  %5366 = vrot.lane.b32.xlu1 %v11911_v38, %s8801_s30 }
 0x937   :  { %v3930_v25 = vpop.f32.mrf.mxu3 }
 0x939   :  { %5549 = vrot.lane.b32.xlu2 %v11911_v38, %s8812_s26 }
 0x93e   :  { %5434 = vrot.lane.b32.xlu0 %v11905_v3, %s8810_s24  ;;  %5335 = vrot.lane.b32.xlu1 %v11905_v3, %s8815_s29 }
 0x93f   :  { %v11953_v41 = vpop.f32.mrf.mxu3 }
 0x946   :  { %5432 = vrot.lane.b32.xlu0 %v11911_v38, %s8810_s24 }
 0x962   :  { %v3974_v34 = vpop.f32.mrf.mxu0 }
 0x963   :  { %v11951_v42 = vadd.f32 %v3974_v34, %v3930_v25 }
 0x96a   :  { %v11955_v6 = vpop.f32.mrf.mxu0 }
 0x96d   :  { %v5115_v43 = vpop.f32.mrf.mxu3 }
 0x96e   :  { %v5116_v57 = vadd.f32 %v5115_v43, %v11870_v46 }
 0x975   :  { %v5117_v47 = vpop.f32.mrf.mxu3 }
 0x976   :  { %v5118_v13 = vadd.f32 %v5117_v47, %v11872_v44 }
 0x979   :  { %v5129_v22 = vpop.f32.mrf.mxu0 }
 0x97a   :  { %v5130_v61 = vadd.f32 %v5129_v22, %v5116_v57 }
 0x97b   :  { %v5143_v7 = vpop.f32.mrf.mxu1 }
 0x97c   :  { %v5144_v11 = vadd.f32 %v5143_v7, %v5130_v61  ;;  %v5232_v7 = vpop.permute.xlu0 %5231 }
 0x97e   :  { %v5150_v40 = vrot.slane %v5144_v11, 4 }
 0x980   :  { %v11960_v62 = vsel %vm163_vm1, %v11610_v24, %v5150_v40 }
 0x981   :  { %v5196_v18 = vmul.f32 %v5185_v55, %v11960_v62  ;;  %v5131_v19 = vpop.f32.mrf.mxu0 }
 0x982   :  { %v5132_v63 = vadd.f32 %v5131_v19, %v5118_v13 }
 0x983   :  { %v5238_v14 = vadd.f32 %v5227_v1, %v5196_v18  ;;  %v5402_v46 = vpop.permute.xlu2 %5401  ;;  %v5145_v0 = vpop.f32.mrf.mxu1 }
 0x984   :  { %v5409_v4 = vsel %vm155_vm2, 0, %v5402_v46  ;;  %v5146_v5 = vadd.f32 %v5145_v0, %v5132_v63 }
 0x985   :  { %v5244_v36 = vmin.f32 %v5238_v14, 20.0  ;;  %v5416_v45 = vunpack.c.l.bf16 %v5409_v4  ;;  %v5417_v33 = vunpack.c.h.bf16 %v5409_v4  ;;  %vm5298_vm15 = vcmp.gt.f32.partialorder %v5238_v14, 20.0 }
 0x986   :  { %v5151_v31 = vrot.slane %v5146_v5, 4 }
 0x987   :  { %v5254_v58 = vmul.f32 1.442695, %v5244_v36  ;;  %v5422_v24 = vmul.f32 %v5416_v45, %v11408_v9  ;;  %v5423_v15 = vmul.f32 %v5417_v33, %v11408_v9 }
 0x988   :  { %v11968_v34 = vsel %vm163_vm1, %v5150_v40, %v5151_v31 }
 0x989   :  { %8481 = vpow2.f32 %v5254_v58  ;;  %v5428_v25 = vpack.c.bf16 %v5422_v24, %v5422_v24  ;;  %v5429_v44 = vpack.c.bf16 %v5423_v15, %v5423_v15  ;;  %v5197_v22 = vmul.f32 %v5190_v60, %v11968_v34 }
 0x98b   :  { %v5659_v43 = vunpack.c.l.b16 %v5428_v25  ;;  %v5660_v57 = vunpack.c.l.b16 %v5429_v44  ;;  %v5239_v11 = vadd.f32 %v5232_v7, %v5197_v22  ;;  %v5552_v30 = vpop.permute.xlu2 %5551 }
 0x98d   :  { %v5664_v61 = vpack.c.b16 %v5660_v57, %v5659_v43  ;;  %v5245_v18 = vmin.f32 %v5239_v11, 20.0  ;;  %vm5299_vm12 = vcmp.gt.f32.partialorder %v5239_v11, 20.0 }
 0x98f   :  { %v8482_v55 = vpop.eup %8481  ;;  %5816 = vmatpush.bf16.msrb.mxu2 %v5664_v61  ;;  %v5256_v13 = vmul.f32 1.442695, %v5245_v18 }
 0x990   :  { %v5262_v47 = vadd.f32 1.0, %v8482_v55 }
 0x991   :  { %8483 = vpow2.f32 %v5256_v13 }
 0x992   :  { %v5268_v1 = vmul.f32 %v5262_v47, %v5262_v47 }
 0x993   :  { %v5550_v49 = vpop.permute.xlu2 %5549 }
 0x994   :  { %v5280_v19 = vadd.f32 1.0, %v5268_v1  ;;  %v7763_v36 = vadd.f32 -1.0, %v5268_v1 }
 0x996   :  { %8485 = vrcp.f32 %v5280_v19 }
 0x997   :  { %v8484_v46 = vpop.eup %8483 }
 0x998   :  { %v5263_v40 = vadd.f32 1.0, %v8484_v46 }
 0x99a   :  { %v5269_v60 = vmul.f32 %v5263_v40, %v5263_v40 }
 0x99c   :  { %v8486_v63 = vpop.eup %8485  ;;  %v5281_v24 = vadd.f32 1.0, %v5269_v60  ;;  %v7764_v19 = vadd.f32 -1.0, %v5269_v60 }
 0x99d   :  { %v5292_v45 = vmul.f32 %v8486_v63, %v7763_v36 }
 0x99e   :  { %8487 = vrcp.f32 %v5281_v24 }
 0x99f   :  { %v5304_v5 = vsel %vm5298_vm15, 1.0, %v5292_v45 }
 0x9a0   :  { %v5400_v4 = vpop.permute.xlu0 %5399  ;;  %v5484_v0 = vpop.permute.xlu1 %5483  ;;  %v5310_v25 = vmul.f32 %v5304_v5, %v5238_v14 }
 0x9a1   :  { %v5406_v33 = vsel %vm155_vm2, 0, %v5400_v4  ;;  %v5490_v58 = vsel %vm4248_vm14, %v5484_v0, 0 }
 0x9a2   :  { %v5414_v15 = vunpack.c.l.bf16 %v5406_v33  ;;  %v5415_v31 = vunpack.c.h.bf16 %v5406_v33  ;;  %v5498_v44 = vunpack.c.l.bf16 %v5490_v58  ;;  %v5499_v43 = vunpack.c.h.bf16 %v5490_v58 }
 0x9a3   :  { %v5316_v18 = vpack.c.bf16 %v5310_v25, %v5310_v25 }
 0x9a4   :  { %v5420_v57 = vmul.f32 %v5414_v15, %v11408_v9  ;;  %v5421_v22 = vmul.f32 %v5415_v31, %v11408_v9  ;;  %v5504_v7 = vmul.f32 %v5498_v44, %v11360_v39  ;;  %v5505_v61 = vmul.f32 %v5499_v43, %v11360_v39  ;;  %v8488_v14 = vpop.eup %8487 }
 0x9a5   :  { %v5293_v4 = vmul.f32 %v8488_v14, %v7764_v19  ;;  %v5469_v33 = vunpack.c.l.bf16 %v5316_v18  ;;  %v5328_v31 = vunpack.c.l.b16 %v5316_v18  ;;  %v5559_v18 = vsel %vm4292_vm4, %v5552_v30, 0 }
 0x9a6   :  { %v5426_v55 = vpack.c.bf16 %v5420_v57, %v5420_v57  ;;  %v5427_v47 = vpack.c.bf16 %v5421_v22, %v5421_v22  ;;  %v5510_v1 = vpack.c.bf16 %v5504_v7, %v5504_v7  ;;  %v5511_v13 = vpack.c.bf16 %v5505_v61, %v5505_v61 }
 0x9a7   :  { %v5305_v58 = vsel %vm5299_vm12, 1.0, %v5293_v4  ;;  %v5475_v15 = vmul.f32 %v5469_v33, %v11287_v32 }
 0x9a8   :  { %v5657_v46 = vunpack.c.l.b16 %v5426_v55  ;;  %v5658_v36 = vunpack.c.l.b16 %v5427_v47  ;;  %v5711_v40 = vunpack.c.l.b16 %v5510_v1  ;;  %v5712_v63 = vunpack.c.l.b16 %v5511_v13 }
 0x9a9   :  { %v5311_v5 = vmul.f32 %v5305_v58, %v5239_v11  ;;  %v5481_v57 = vpack.c.bf16 %v5475_v15, %v5475_v15  ;;  %v5556_v13 = vsel %vm4292_vm4, %v5550_v49, 0 }
 0x9aa   :  { %v5663_v0 = vpack.c.b16 %v5658_v36, %v5657_v46  ;;  %v5717_v45 = vpack.c.b16 %v5712_v63, %v5711_v40 }
 0x9ab   :  { %v5317_v24 = vpack.c.bf16 %v5311_v5, %v5311_v5  ;;  %v5697_v7 = vunpack.c.l.b16 %v5481_v57  ;;  %v5564_v5 = vunpack.c.l.bf16 %v5556_v13 }
 0x9ac   :  { %5817 = vmatpush.bf16.msrb.mxu2 %v5663_v0  ;;  %5830 = vmatpush.bf16.msrb.mxu3 %v5717_v45  ;;  %v5566_v0 = vunpack.c.l.bf16 %v5559_v18  ;;  %v5567_v45 = vunpack.c.h.bf16 %v5559_v18 }
 0x9ad   :  { %v5329_v25 = vunpack.c.l.b16 %v5317_v24  ;;  %v5470_v60 = vunpack.c.l.bf16 %v5317_v24  ;;  %v5565_v24 = vunpack.c.h.bf16 %v5556_v13 }
 0x9ae   :  { %v5572_v57 = vmul.f32 %v5566_v0, %v13234_v50 }
 0x9af   :  { %v5332_v44 = vpack.c.b16 %v5329_v25, %v5328_v31  ;;  %v5476_v43 = vmul.f32 %v5470_v60, %v11287_v32  ;;  %v5782_v32 = vld [vmem:[#allocation6 + $0x388] sm:$0xf] }
 0x9b1   :  { %5436 = vrot.lane.b32.xlu0 %v5332_v44, %s8810_s24  ;;  %5553 = vrot.lane.b32.xlu1 %v5332_v44, %s8812_s26  ;;  %v5482_v22 = vpack.c.bf16 %v5476_v43, %v5476_v43 }
 0x9b2   :  { %5370 = vrot.lane.b32.xlu2 %v5332_v44, %s8801_s30 }
 0x9b3   :  { %v5698_v11 = vunpack.c.l.b16 %v5482_v22  ;;  %v5573_v22 = vmul.f32 %v5567_v45, %v13234_v50 }
 0x9b5   :  { %v5701_v61 = vpack.c.b16 %v5698_v11, %v5697_v7  ;;  %v5579_v13 = vpack.c.bf16 %v5573_v22, %v5573_v22 }
 0x9b7   :  { %5831 = vmatpush.bf16.msrb.mxu3 %v5701_v61 }
 0x9b9   :  { %5403 = vrot.lane.b32.xlu0 %v5332_v44, %s8813_s27  ;;  %5337 = vrot.lane.b32.xlu1 %v5332_v44, %s8815_s29 }
 0x9ba   :  { %5518 = vrot.lane.b32.xlu2 %v11905_v3, %s8814_s28 }
 0x9bb   :  { %5832 = vmatpush.bf16.msrb.mxu3 %v5700_v16  ;;  %v5369_v16 = vpop.permute.xlu0 %5368 }
 0x9bc   :  { %v5376_v8 = vsel %vm4169_vm6, 0, %v5369_v16 }
 0x9bd   :  { %v5383_v55 = vunpack.c.l.bf16 %v5376_v8  ;;  %v5384_v47 = vunpack.c.h.bf16 %v5376_v8 }
 0x9bf   :  { %5833 = vmatpush.bf16.msrb.mxu3 %v5699_v48  ;;  %v5367_v48 = vpop.permute.xlu1 %5366  ;;  %v5389_v14 = vmul.f32 %v5383_v55, %v11428_v26  ;;  %v5390_v40 = vmul.f32 %v5384_v47, %v11428_v26 }
 0x9c1   :  { %5487 = vrot.lane.b32.xlu0 %v5332_v44, %s8811_s25  ;;  %5333 = vrot.lane.b32.xlu1 %v11911_v38, %s8815_s29  ;;  %v5395_v25 = vpack.c.bf16 %v5389_v14, %v5389_v14  ;;  %v5396_v60 = vpack.c.bf16 %v5390_v40, %v5390_v40 }
 0x9c2   :  { %5520 = vrot.lane.b32.xlu2 %v5332_v44, %s8814_s28 }
 0x9c3   :  { %v5435_v46 = vpop.permute.xlu0 %5434  ;;  %v5642_v8 = vunpack.c.l.b16 %v5396_v60 }
 0x9c4   :  { %v5442_v16 = vsel %vm4215_vm0, 0, %v5435_v46 }
 0x9c5   :  { %v5449_v18 = vunpack.c.l.bf16 %v5442_v16  ;;  %v5450_v40 = vunpack.c.h.bf16 %v5442_v16 }
 0x9c7   :  { %v5336_v49 = vpop.permute.xlu1 %5335  ;;  %v5455_v45 = vmul.f32 %v5449_v18, %v13232_v59 }
 0x9c9   :  { %5582 = vrot.lane.b32.xlu0 %v11911_v38, %s8809_s23  ;;  %5586 = vrot.lane.b32.xlu1 %v5332_v44, %s8809_s23  ;;  %v5461_v22 = vpack.c.bf16 %v5455_v45, %v5455_v45 }
 0x9ca   :  { %5516 = vrot.lane.b32.xlu2 %v11911_v38, %s8814_s28  ;;  %v5373_v38 = vsel %vm4169_vm6, 0, %v5367_v48 }
 0x9cb   :  { %v5382_v19 = vunpack.c.h.bf16 %v5373_v38  ;;  %v5433_v47 = vpop.permute.xlu0 %5432 }
 0x9cd   :  { %v5388_v31 = vmul.f32 %v5382_v19, %v11428_v26 }
 0x9cf   :  { %v5394_v48 = vpack.c.bf16 %v5388_v31, %v5388_v31 }
 0x9d1   :  { %5485 = vrot.lane.b32.xlu1 %v11905_v3, %s8811_s25  ;;  %v5640_v14 = vunpack.c.l.b16 %v5394_v48 }
 0x9d2   :  { %5584 = vrot.lane.b32.xlu2 %v11905_v3, %s8809_s23  ;;  %v5381_v3 = vunpack.c.l.bf16 %v5373_v38  ;;  %v5578_v38 = vpack.c.bf16 %v5572_v57, %v5572_v57 }
 0x9d4   :  { %v5387_v15 = vmul.f32 %v5381_v3, %v11428_v26 }
 0x9d6   :  { %v5393_v30 = vpack.c.bf16 %v5387_v15, %v5387_v15 }
 0x9d9   :  { %5790 = vperm.xlu1 %7926, %v5782_v32   ;;  %v5570_v32 = vmul.f32 %v5564_v5, %v13234_v50  ;;  %v12026_v5 = vunpack.c.l.b16 %v5579_v13 }
 0x9da   :  { %5785 = vperm.xlu2 %7927, %v5781_v27   ;;  %v5571_v27 = vmul.f32 %v5565_v24, %v13234_v50 }
 0x9db   :  { %v5576_v3 = vpack.c.bf16 %v5570_v32, %v5570_v32 }
 0x9dc   :  { %v5577_v19 = vpack.c.bf16 %v5571_v27, %v5571_v27 }
 0x9dd   :  { %v12028_v15 = vunpack.c.l.b16 %v5576_v3 }
 0x9de   :  { %v12030_v31 = vunpack.c.l.b16 %v5577_v19 }
 0xa0c   :  { %v5371_v1 = vpop.permute.xlu2 %5370 }
 0xa0d   :  { %v5379_v36 = vsel %vm4169_vm6, 0, %v5371_v1  ;;  %v5343_v1 = vsel %vm4144_vm3, 0, %v5336_v49 }
 0xa0e   :  { %v5385_v63 = vunpack.c.l.bf16 %v5379_v36  ;;  %v5386_v4 = vunpack.c.h.bf16 %v5379_v36  ;;  %v5639_v36 = vunpack.c.l.b16 %v5393_v30  ;;  %v5351_v0 = vunpack.c.h.bf16 %v5343_v1 }
 0xa0f   :  { %v5753_v30 = vpack.c.b16 %v12030_v31, %v12028_v15 }
 0xa10   :  { %v5391_v33 = vmul.f32 %v5385_v63, %v11428_v26  ;;  %v5392_v58 = vmul.f32 %v5386_v4, %v11428_v26  ;;  %v5641_v26 = vunpack.c.l.b16 %v5395_v25  ;;  %v5439_v63 = vsel %vm4215_vm0, 0, %v5433_v47 }
 0xa11   :  { %v5350_v4 = vunpack.c.l.bf16 %v5343_v1  ;;  %v5447_v24 = vunpack.c.l.bf16 %v5439_v63  ;;  %v5456_v25 = vmul.f32 %v5450_v40, %v13232_v59  ;;  %v5645_v60 = vpack.c.b16 %v5640_v14, %v5639_v36 }
 0xa12   :  { %v5397_v44 = vpack.c.bf16 %v5391_v33, %v5391_v33  ;;  %v5398_v43 = vpack.c.bf16 %v5392_v58, %v5392_v58  ;;  %v5646_v46 = vpack.c.b16 %v5642_v8, %v5641_v26  ;;  %v12024_v58 = vunpack.c.l.b16 %v5578_v38 }
 0xa13   :  { %v5448_v57 = vunpack.c.h.bf16 %v5439_v63  ;;  %v5462_v32 = vpack.c.bf16 %v5456_v25, %v5456_v25  ;;  %v12047_v47 = vunpack.c.l.b16 %v5461_v22 }
 0xa14   :  { %v5643_v7 = vunpack.c.l.b16 %v5397_v44  ;;  %v5644_v11 = vunpack.c.l.b16 %v5398_v43  ;;  %v5519_v61 = vpop.permute.xlu2 %5518  ;;  %v5356_v44 = vmul.f32 %v5350_v4, %v11432_v17  ;;  %v12035_v43 = vmul.f32 %v5351_v0, %v11432_v17 }
 0xa15   :  { %v5754_v27 = vpack.c.b16 %v12026_v5, %v12024_v58  ;;  %v5454_v26 = vmul.f32 %v5448_v57, %v13232_v59  ;;  %v12051_v14 = vunpack.c.l.b16 %v5462_v32 }
 0xa16   :  { %v5647_v55 = vpack.c.b16 %v5644_v11, %v5643_v7  ;;  %v5453_v7 = vmul.f32 %v5447_v24, %v13232_v59  ;;  %v5526_v11 = vsel %vm4270_vm5, %v5519_v61, 0  ;;  %v5362_v16 = vpack.c.bf16 %v5356_v44, %v5356_v44 }
 0xa17   :  { %v5363_v49 = vpack.c.bf16 %v12035_v43, %v12035_v43  ;;  %v5533_v61 = vunpack.c.l.bf16 %v5526_v11  ;;  %v5534_v40 = vunpack.c.h.bf16 %v5526_v11  ;;  %v5460_v4 = vpack.c.bf16 %v5454_v26, %v5454_v26 }
 0xa18   :  { %5818 = vmatpush.bf16.msrb.mxu2 %v5647_v55  ;;  %v5459_v1 = vpack.c.bf16 %v5453_v7, %v5453_v7  ;;  %v12056_v24 = vunpack.c.l.b16 %v5362_v16 }
 0xa19   :  { %v5539_v25 = vmul.f32 %v5533_v61, %v11418_v56  ;;  %v5540_v11 = vmul.f32 %v5534_v40, %v11418_v56 }
 0xa1a   :  { %v12060_v43 = vunpack.c.l.b16 %v5459_v1 }
 0xa1c   :  { %5819 = vmatpush.bf16.msrb.mxu2 %v5646_v46  ;;  %v5521_v33 = vpop.permute.xlu2 %5520 }
 0xa1d   :  { %v5529_v8 = vsel %vm4270_vm5, %v5521_v33, 0 }
 0xa1e   :  { %v5535_v63 = vunpack.c.l.bf16 %v5529_v8 }
 0xa20   :  { %5820 = vmatpush.bf16.msrb.mxu2 %v5645_v60  ;;  %v5536_v60 = vunpack.c.h.bf16 %v5529_v8  ;;  %v5541_v32 = vmul.f32 %v5535_v63, %v11418_v56 }
 0xa23   :  { %v5437_v48 = vpop.permute.xlu0 %5436  ;;  %v5554_v55 = vpop.permute.xlu1 %5553 }
 0xa24   :  { %v5445_v38 = vsel %vm4215_vm0, 0, %v5437_v48  ;;  %v5562_v18 = vsel %vm4292_vm4, %v5554_v55, 0  ;;  %v5517_v19 = vpop.permute.xlu2 %5516  ;;  %v12065_v48 = vunpack.c.l.b16 %v5460_v4 }
 0xa25   :  { %v5451_v13 = vunpack.c.l.bf16 %v5445_v38  ;;  %v5452_v3 = vunpack.c.h.bf16 %v5445_v38  ;;  %v5568_v36 = vunpack.c.l.bf16 %v5562_v18  ;;  %v5569_v46 = vunpack.c.h.bf16 %v5562_v18 }
 0xa26   :  { %v5542_v18 = vmul.f32 %v5536_v60, %v11418_v56  ;;  %v12072_v60 = vunpack.c.l.b16 %v5363_v49 }
 0xa27   :  { %v5457_v0 = vmul.f32 %v5451_v13, %v13232_v59  ;;  %v5458_v45 = vmul.f32 %v5452_v3, %v13232_v59  ;;  %v5574_v33 = vmul.f32 %v5568_v36, %v13234_v50  ;;  %v5575_v44 = vmul.f32 %v5569_v46, %v13234_v50 }
 0xa28   :  { %v5523_v59 = vsel %vm4270_vm5, %v5517_v19, 0  ;;  %v5545_v50 = vpack.c.bf16 %v5539_v25, %v5539_v25  ;;  %v5546_v19 = vpack.c.bf16 %v5540_v11, %v5540_v11  ;;  %v5547_v46 = vpack.c.bf16 %v5541_v32, %v5541_v32 }
 0xa29   :  { %v5463_v57 = vpack.c.bf16 %v5457_v0, %v5457_v0  ;;  %v5464_v22 = vpack.c.bf16 %v5458_v45, %v5458_v45  ;;  %v5580_v7 = vpack.c.bf16 %v5574_v33, %v5574_v33  ;;  %v5581_v26 = vpack.c.bf16 %v5575_v44, %v5575_v44 }
 0xa2a   :  { %v5531_v3 = vunpack.c.l.bf16 %v5523_v59  ;;  %v5682_v32 = vpack.c.b16 %v12051_v14, %v12047_v47  ;;  %v12083_v49 = vunpack.c.l.b16 %v5546_v19  ;;  %v5628_v5 = vpack.c.b16 %v12072_v60, %v12056_v24 }
 0xa2b   :  { %v5679_v16 = vunpack.c.l.b16 %v5463_v57  ;;  %v5680_v55 = vunpack.c.l.b16 %v5464_v22  ;;  %v5751_v61 = vunpack.c.l.b16 %v5580_v7  ;;  %v5404_v8 = vpop.permute.xlu0 %5403  ;;  %v5338_v38 = vpop.permute.xlu1 %5337  ;;  %v5752_v1 = vunpack.c.l.b16 %v5581_v26 }
 0xa2c   :  { %v5412_v13 = vsel %vm155_vm2, 0, %v5404_v8  ;;  %v5346_v63 = vsel %vm4144_vm3, 0, %v5338_v38  ;;  %v5585_v44 = vpop.permute.xlu2 %5584  ;;  %v5548_v22 = vpack.c.bf16 %v5542_v18, %v5542_v18  ;;  %v5532_v7 = vunpack.c.h.bf16 %v5523_v59 }
 0xa2d   :  { %v5418_v36 = vunpack.c.l.bf16 %v5412_v13  ;;  %v5419_v40 = vunpack.c.h.bf16 %v5412_v13  ;;  %v5755_v4 = vpack.c.b16 %v5752_v1, %v5751_v61  ;;  %v5352_v0 = vunpack.c.l.bf16 %v5346_v63 }
 0xa2e   :  { %v5353_v25 = vunpack.c.h.bf16 %v5346_v63  ;;  %v5683_v57 = vpack.c.b16 %v5680_v55, %v5679_v16  ;;  %v5537_v8 = vmul.f32 %v5531_v3, %v11418_v56  ;;  %v12081_v61 = vunpack.c.l.b16 %v5545_v50 }
 0xa2f   :  { %v5424_v45 = vmul.f32 %v5418_v36, %v11408_v9  ;;  %v5425_v33 = vmul.f32 %v5419_v40, %v11408_v9  ;;  %v5358_v26 = vmul.f32 %v5352_v0, %v11432_v17  ;;  %5844 = vmatpush.bf16.msra.mxu0 %v5755_v4  ;;  %v5681_v9 = vpack.c.b16 %v12065_v48, %v12060_v43 }
 0xa30   :  { %v5359_v11 = vmul.f32 %v5353_v25, %v11432_v17  ;;  %5834 = vmatpush.bf16.msrb.mxu3 %v5683_v57  ;;  %v5592_v59 = vsel %vm4314_vm13, %v5585_v44, 0  ;;  %v5733_v55 = vunpack.c.l.b16 %v5547_v46  ;;  %v5734_v36 = vunpack.c.l.b16 %v5548_v22 }
 0xa31   :  { %v5364_v16 = vpack.c.bf16 %v5358_v26, %v5358_v26  ;;  %v5430_v38 = vpack.c.bf16 %v5424_v45, %v5424_v45  ;;  %v5431_v18 = vpack.c.bf16 %v5425_v33, %v5425_v33  ;;  %v5538_v40 = vmul.f32 %v5532_v7, %v11418_v56  ;;  %v7895_v45 = vld [vmem:[#allocation2 + $0x184] sm:$0xf]  ;;  %v7769_v33 = vld [vmem:[#allocation2 + $0x190] sm:$0x30] }
 0xa32   :  { %v5365_v1 = vpack.c.bf16 %v5359_v11, %v5359_v11  ;;  %v5543_v43 = vpack.c.bf16 %v5537_v8, %v5537_v8  ;;  %v5599_v48 = vunpack.c.l.bf16 %v5592_v59  ;;  %v5600_v25 = vunpack.c.h.bf16 %v5592_v59 }
 0xa33   :  { %v5488_v13 = vpop.permute.xlu0 %5487  ;;  %v5334_v3 = vpop.permute.xlu1 %5333  ;;  %v5625_v47 = vunpack.c.l.b16 %v5364_v16  ;;  %5845 = vmatpush.bf16.msra.mxu0 %v5754_v27  ;;  %v5661_v56 = vunpack.c.l.b16 %v5430_v38  ;;  %v5662_v44 = vunpack.c.l.b16 %v5431_v18  ;;  %v5737_v27 = vpack.c.b16 %v5734_v36, %v5733_v55  ;;  %v7897_v18 = vld [vmem:[#allocation2 + $0x18c] sm:$0x30] }
 0xa34   :  { %v5496_v14 = vsel %vm4248_vm14, %v5488_v13, 0  ;;  %v5626_v50 = vunpack.c.l.b16 %v5365_v1  ;;  %5835 = vmatpush.bf16.msrb.mxu3 %v5682_v32  ;;  %v5340_v63 = vsel %vm4144_vm3, 0, %v5334_v3  ;;  %v5544_v7 = vpack.c.bf16 %v5538_v40, %v5538_v40 }
 0xa35   :  { %v5502_v19 = vunpack.c.l.bf16 %v5496_v14  ;;  %v5503_v46 = vunpack.c.h.bf16 %v5496_v14  ;;  %v5348_v4 = vunpack.c.l.bf16 %v5340_v63  ;;  %v5349_v0 = vunpack.c.h.bf16 %v5340_v63 }
 0xa36   :  { %v5629_v57 = vpack.c.b16 %v5626_v50, %v5625_v47  ;;  %v5736_v26 = vpack.c.b16 %v12083_v49, %v12081_v61  ;;  %v7772_v8 = vor.u32 %v7895_v45, %v7769_v33  ;;  %v5729_v16 = vunpack.c.l.b16 %v5543_v43  ;;  %v7767_v49 = vld [vmem:[#allocation2 + $0x180] sm:$0xf] }
 0xa37   :  { %v5354_v22 = vmul.f32 %v5348_v4, %v11432_v17  ;;  %v5355_v58 = vmul.f32 %v5349_v0, %v11432_v17  ;;  %5846 = vmatpush.bf16.msra.mxu0 %v5753_v30  ;;  %v5508_v11 = vmul.f32 %v5502_v19, %v11360_v39  ;;  %v5509_v32 = vmul.f32 %v5503_v46, %v11360_v39 }
 0xa38   :  { %5821 = vmatpush.bf16.msrb.mxu2 %v5629_v57  ;;  %5836 = vmatpush.bf16.msrb.mxu3 %v5681_v9  ;;  %v5605_v15 = vmul.f32 %v5599_v48, %v13233_v53  ;;  %v5606_v31 = vmul.f32 %v5600_v25, %v13233_v53  ;;  %v5665_v24 = vpack.c.b16 %v5662_v44, %v5661_v56  ;;  %v5730_v40 = vunpack.c.l.b16 %v5544_v7 }
 0xa39   :  { %v5360_v17 = vpack.c.bf16 %v5354_v22, %v5354_v22  ;;  %v5361_v59 = vpack.c.bf16 %v5355_v58, %v5355_v58  ;;  %v5514_v47 = vpack.c.bf16 %v5508_v11, %v5508_v11  ;;  %v5515_v14 = vpack.c.bf16 %v5509_v32, %v5509_v32 }
 0xa3a   :  { %v7768_v63 = vor.u32 %v7897_v18, %v7767_v49  ;;  %v5611_v19 = vpack.c.bf16 %v5605_v15, %v5605_v15  ;;  %v5612_v46 = vpack.c.bf16 %v5606_v31, %v5606_v31  ;;  %v5735_v25 = vpack.c.b16 %v5730_v40, %v5729_v16  ;;  %v7896_v49 = vld [vmem:[#allocation2 + $0x18c] sm:$0xf]  ;;  %v7777_v18 = vld [vmem:[#allocation2 + $0x198] sm:$0x30]  ;;  %v5786_v40 = vpop.permute.xlu2 %5785 }
 0xa3b   :  { %v5583_v30 = vpop.permute.xlu0 %5582  ;;  %v5587_v60 = vpop.permute.xlu1 %5586  ;;  %v5621_v55 = vunpack.c.l.b16 %v5360_v17  ;;  %v5622_v9 = vunpack.c.l.b16 %v5361_v59  ;;  %5847 = vmatpush.bf16.msra.mxu0 %v5737_v27  ;;  %v5715_v56 = vunpack.c.l.b16 %v5514_v47  ;;  %v5716_v44 = vunpack.c.l.b16 %v5515_v14 }
 0xa3c   :  { %v5589_v38 = vsel %vm4314_vm13, %v5583_v30, 0  ;;  %v5595_v61 = vsel %vm4314_vm13, %v5587_v60, 0  ;;  %5822 = vmatpush.bf16.msrb.mxu2 %v5628_v5  ;;  %5837 = vmatpush.bf16.msrb.mxu3 %v5665_v24  ;;  %v5767_v5 = vunpack.c.l.b16 %v5611_v19  ;;  %v5768_v27 = vunpack.c.l.b16 %v5612_v46 }
 0xa3d   :  { %v5597_v1 = vunpack.c.l.bf16 %v5589_v38  ;;  %v5598_v13 = vunpack.c.h.bf16 %v5589_v38  ;;  %v5601_v3 = vunpack.c.l.bf16 %v5595_v61  ;;  %v5602_v36 = vunpack.c.h.bf16 %v5595_v61  ;;  %v7898_v61 = vld [vmem:[#allocation2 + $0x194] sm:$0x30] }
 0xa3e   :  { %v5627_v43 = vpack.c.b16 %v5622_v9, %v5621_v55  ;;  %v5719_v17 = vpack.c.b16 %v5716_v44, %v5715_v56  ;;  %v5772_v16 = vpack.c.b16 %v5768_v27, %v5767_v5  ;;  %v7775_v55 = vld [vmem:[#allocation2 + $0x188] sm:$0xf]  ;;  %vm5812_vm2 = vcmask 392192  }
 0xa3f   :  { %v5607_v48 = vmul.f32 %v5601_v3, %v13233_v53  ;;  %v5608_v50 = vmul.f32 %v5602_v36, %v13233_v53  ;;  %v5603_v4 = vmul.f32 %v5597_v1, %v13233_v53  ;;  %5848 = vmatpush.bf16.msra.mxu0 %v5736_v26  ;;  %5838 = vmatmul.bf16.vlgmr.msrb.gmra.mxu3 %v7772_v8 }
 0xa40   :  { %v5604_v0 = vmul.f32 %v5598_v13, %v13233_v53  ;;  %5823 = vmatpush.bf16.msrb.mxu2 %v5627_v43  ;;  %v7776_v3 = vor.u32 %v7898_v61, %v7775_v55  ;;  %v7780_v36 = vor.u32 %v7896_v49, %v7777_v18 }
 0xa41   :  { %v5613_v45 = vpack.c.bf16 %v5607_v48, %v5607_v48  ;;  %v5614_v33 = vpack.c.bf16 %v5608_v50, %v5608_v50  ;;  %v5609_v7 = vpack.c.bf16 %v5603_v4, %v5603_v4 }
 0xa42   :  { %v5610_v26 = vpack.c.bf16 %v5604_v0, %v5604_v0 }
 0xa43   :  { %v5769_v57 = vunpack.c.l.b16 %v5613_v45  ;;  %v5770_v22 = vunpack.c.l.b16 %v5614_v33  ;;  %v5486_v58 = vpop.permute.xlu1 %5485  ;;  %5824 = vmatmul.bf16.vlgmr.msrb.gmra.mxu2 %v7768_v63  ;;  %5849 = vmatpush.bf16.msra.mxu0 %v5735_v25  ;;  %v5765_v31 = vunpack.c.l.b16 %v5609_v7  ;;  %v5902_v7 = vpack.c.bf16 %v11960_v62, %v11960_v62 }
 0xa44   :  { %v5493_v11 = vsel %vm4248_vm14, %v5486_v58, 0  ;;  %v5766_v30 = vunpack.c.l.b16 %v5610_v26  ;;  %v5903_v58 = vpack.c.bf16 %v11968_v34, %v11968_v34  ;;  %v5901_v26 = vpack.c.bf16 %v11517_v37, %v11517_v37 }
 0xa45   :  { %v5773_v8 = vpack.c.b16 %v5770_v22, %v5769_v57  ;;  %v5500_v32 = vunpack.c.l.bf16 %v5493_v11  ;;  %v5501_v53 = vunpack.c.h.bf16 %v5493_v11 }
 0xa46   :  { %v5771_v13 = vpack.c.b16 %v5766_v30, %v5765_v31  ;;  %v5909_v31 = vunpack.c.l.bf16 %v5901_v26  ;;  %v7793_v26 = vld [vmem:[#allocation2 + $0x1e0] sm:$0xf] }
 0xa47   :  { %v5506_v59 = vmul.f32 %v5500_v32, %v11360_v39  ;;  %v5507_v15 = vmul.f32 %v5501_v53, %v11360_v39  ;;  %5863 = vmatpush.bf16.msrb.mxu1 %v5773_v8  ;;  %5850 = vmatpush.bf16.msra.mxu0 %v5719_v17  ;;  %v5911_v8 = vunpack.c.l.bf16 %v5903_v58  ;;  %v13237_v32 = vld [vmem:[#allocation40_spill] sm:$0xff] }
 0xa48   :  { %v5917_v49 = vmul.f32 %v5909_v31, %v13237_v32 }
 0xa49   :  { %v5512_v24 = vpack.c.bf16 %v5506_v59, %v5506_v59  ;;  %v5513_v60 = vpack.c.bf16 %v5507_v15, %v5507_v15  ;;  %v5910_v59 = vunpack.c.l.bf16 %v5902_v7  ;;  %v5900_v15 = vpack.c.bf16 %v11269_v23, %v11269_v23 }
 0xa4a   :  { %v5919_v30 = vmul.f32 %v5911_v8, %v13237_v32 }
 0xa4b   :  { %v5713_v9 = vunpack.c.l.b16 %v5512_v24  ;;  %v5714_v38 = vunpack.c.l.b16 %v5513_v60  ;;  %5864 = vmatpush.bf16.msrb.mxu1 %v5772_v16  ;;  %v5791_v46 = vpop.permute.xlu1 %5790  ;;  %v5899_v24 = vpack.c.bf16 %v11266_v10, %v11266_v10  ;;  %v5918_v55 = vmul.f32 %v5910_v59, %v13237_v32 }
 0xa4d   :  { %v5718_v1 = vpack.c.b16 %v5714_v38, %v5713_v9  ;;  %v5908_v9 = vunpack.c.l.bf16 %v5900_v15  ;;  %v5898_v38 = vpack.c.bf16 %v11263_v20, %v11263_v20  ;;  %v5924_v61 = vpack.c.bf16 %v5919_v30, %v5918_v55  ;;  %v7797_v30 = vld [vmem:[#allocation2 + $0x200] sm:$0xf]  ;;  %v98_v55 = vld [vmem:[%s12865_s4 + $0x2b] sm:$0xff] }
 0xa4e   :  { %v5907_v18 = vunpack.c.l.bf16 %v5899_v24  ;;  %v7902_v24 = vld [vmem:[#allocation2 + $0x20c] sm:$0x30] }
 0xa4f   :  { %5851 = vmatpush.bf16.msra.mxu0 %v5718_v1  ;;  %5865 = vmatpush.bf16.msrb.mxu1 %v5771_v13  ;;  %v5916_v1 = vmul.f32 %v5908_v9, %v13237_v32  ;;  %v5906_v13 = vunpack.c.l.bf16 %v5898_v38 }
 0xa52   :  { %5852 = vmatmul.bf16.vlgmr.msra.gmra.mxu0 %v7776_v3  ;;  %7781 = vmatmul.msk.bf16.vlgmr.msrb.gmra.mxu1 %vm5812_vm2, %v7780_v36  ;;  %v5923_v3 = vpack.c.bf16 %v5917_v49, %v5916_v1  ;;  %v5915_v36 = vmul.f32 %v5907_v18, %v13237_v32  ;;  %v101_v49 = vld [vmem:[%s12865_s4 + $0x43] sm:$0xff]  ;;  %v102_v1 = vld [vmem:[%s12865_s4 + $0x4b] sm:$0xff] }
 0xac2   :  { %v5839_v14 = vpop.f32.mrf.mxu3 }
 0xac6   :  { %v5825_v39 = vpop.f32.mrf.mxu2 }
 0xac7   :  { %v5826_v47 = vadd.f32 %v5825_v39, %v5786_v40  ;;  %v5914_v39 = vmul.f32 %v5906_v13, %v13237_v32  ;;  %v7785_v40 = vld [vmem:[#allocation2 + $0x1a0] sm:$0xf] }
 0xac9   :  { %v5840_v43 = vadd.f32 %v5839_v14, %v5826_v47  ;;  %v7899_v47 = vld [vmem:[#allocation2 + $0x1ac] sm:$0xf0]  ;;  %v5922_v14 = vpack.c.bf16 %v5915_v36, %v5914_v39  ;;  %v104_v36 = vld [vmem:[%s12865_s4 + $0x5b] sm:$0xff]  ;;  %v105_v39 = vld [vmem:[%s12865_s4 + $0x63] sm:$0xff] }
 0xaca   :  { %v5841_v45 = vpop.f32.mrf.mxu3 }
 0xace   :  { %v5827_v48 = vpop.f32.mrf.mxu2 }
 0xacf   :  { %v5853_v50 = vpop.f32.mrf.mxu0  ;;  %v5867_v19 = vpop.f32.mrf.mxu1  ;;  %v5828_v4 = vadd.f32 %v5827_v48, %v5791_v46  ;;  %v12145_v48 = vld [vmem:[#allocation2 + $0x220] sm:$0x1] }
 0xad0   :  { %v5854_v63 = vadd.f32 %v5853_v50, %v5840_v43  ;;  %v12143_v43 = vor.u32 %v7899_v47, %v7785_v40  ;;  %v13238_v50 = vld [vmem:[#allocation39_spill] sm:$0xff]  ;;  %v12234_v40 = vpack.c.bf16 %v105_v39, %v104_v36  ;;  %v106_v47 = vld [vmem:[%s12865_s4 + $0x6b] sm:$0xff] }
 0xad1   :  { %v5842_v33 = vadd.f32 %v5841_v45, %v5828_v4  ;;  %v7789_v4 = vld [vmem:[#allocation2 + $0x1c0] sm:$0xf]  ;;  %v7900_v45 = vld [vmem:[#allocation2 + $0x1cc] sm:$0xf0]  ;;  %v6469_v7 = vmul.f32 %v5908_v9, %v13238_v50  ;;  %v6467_v15 = vmul.f32 %v5906_v13, %v13238_v50 }
 0xad2   :  { %v12114_v0 = vadd.f32 %v5867_v19, %v5854_v63  ;;  %v99_v9 = vld [vmem:[%s12865_s4 + $0x33] sm:$0xff] }
 0xad3   :  { %v12205_v38 = vpack.c.bf16 %v99_v9, %v98_v55  ;;  %v103_v13 = vld [vmem:[%s12865_s4 + $0x53] sm:$0xff] }
 0xad4   :  { %13235 = vst [vmem:[#allocation43_spill] sm:$0xff] %v12114_v0  ;;  %v5904_v44 = vpack.c.bf16 %v12114_v0, %v12114_v0 }
 0xad6   :  { %v5912_v5 = vunpack.c.l.bf16 %v5904_v44  ;;  %v6471_v44 = vmul.f32 %v5910_v59, %v13238_v50  ;;  %v6468_v59 = vmul.f32 %v5907_v18, %v13238_v50 }
 0xad7   :  { %v5855_v56 = vpop.f32.mrf.mxu0  ;;  %v5869_v57 = vpop.f32.mrf.mxu1 }
 0xad8   :  { %v5856_v25 = vadd.f32 %v5855_v56, %v5842_v33  ;;  %v5920_v53 = vmul.f32 %v5912_v5, %v13237_v32  ;;  %v6473_v19 = vmul.f32 %v5912_v5, %v13238_v50  ;;  %v12156_v33 = vor.u32 %v7900_v45, %v7789_v4  ;;  %v108_v4 = vld [vmem:[%s12865_s4 + $0x7b] sm:$0xff]  ;;  %v109_v45 = vld [vmem:[%s12865_s4 + $0x83] sm:$0xff] }
 0xad9   :  { %v6472_v56 = vmul.f32 %v5911_v8, %v13238_v50  ;;  %v7901_v8 = vld [vmem:[#allocation2 + $0x1ec] sm:$0xf0] }
 0xada   :  { %v12118_v22 = vadd.f32 %v5869_v57, %v5856_v25  ;;  %v94_v25 = vld [vmem:[%s12865_s4 + $0xb] sm:$0xff]  ;;  %v95_v57 = vld [vmem:[%s12865_s4 + $0x13] sm:$0xff] }
 0xadb   :  { %v12168_v58 = vpack.c.bf16 %v6472_v56, %v6471_v44  ;;  %v12170_v5 = vpack.c.bf16 %v95_v57, %v94_v25  ;;  %v12252_v56 = vpack.c.bf16 %v109_v45, %v108_v4 }
 0xadc   :  { %13236 = vst [vmem:[#allocation44_spill] sm:$0xff] %v12118_v22  ;;  %v5905_v27 = vpack.c.bf16 %v12118_v22, %v12118_v22 }
 0xade   :  { %v5913_v11 = vunpack.c.l.bf16 %v5905_v27  ;;  %v6470_v27 = vmul.f32 %v5909_v31, %v13238_v50  ;;  %v12193_v31 = vpack.c.bf16 %v6468_v59, %v6467_v15 }
 0xae0   :  { %v5921_v17 = vmul.f32 %v5913_v11, %v13237_v32  ;;  %v6474_v63 = vmul.f32 %v5913_v11, %v13238_v50  ;;  %v12176_v11 = vpack.c.bf16 %v6470_v27, %v6469_v7  ;;  %v12179_v32 = vor.u32 %v7901_v8, %v7793_v26 }
 0xae2   :  { %v5925_v16 = vpack.c.bf16 %v5921_v17, %v5920_v53  ;;  %v12153_v46 = vpack.c.bf16 %v6474_v63, %v6473_v19  ;;  %v96_v53 = vld [vmem:[%s12865_s4 + $0x1b] sm:$0xff]  ;;  %v97_v17 = vld [vmem:[%s12865_s4 + $0x23] sm:$0xff] }
 0xae4   :  { %5930 = vmatpush.bf16.xpose.msra.mxu1 %v5925_v16  ;;  %v6016_v60 = vsel %vm1325_vm11, %v5925_v16, 0  ;;  %v12189_v16 = vpack.c.bf16 %v97_v17, %v96_v53 }
 0xae5   :  { %6022 = vmatpush.bf16.msra.mxu2 %v6016_v60  ;;  %6058 = vmatpush.bf16.msra.mxu3 %v6016_v60 }
 0xae9   :  { %6023 = vmatpush.bf16.msra.mxu2 %v5924_v61  ;;  %6059 = vmatpush.bf16.msra.mxu3 %v5924_v61 }
 0xaec   :  { %5931 = vmatpush.bf16.xpose.msra.mxu1 %v5924_v61 }
 0xaed   :  { %6024 = vmatpush.bf16.msra.mxu2 %v5923_v3  ;;  %6060 = vmatpush.bf16.msra.mxu3 %v5923_v3 }
 0xaf1   :  { %6025 = vmatpush.bf16.msra.mxu2 %v5922_v14  ;;  %6061 = vmatpush.bf16.msra.mxu3 %v5922_v14 }
 0xaf4   :  { %5932 = vmatpush.bf16.xpose.msra.mxu1 %v5923_v3  ;;  %7799 = vmatmul.msk.bf16.vlgmr.msra.gmra.mxu2 %vm3595_vm7, %v12143_v43 }
 0xaf5   :  { %6384 = vmatpush.bf16.msrb.mxu3 %v6016_v60  ;;  %v12197_v60 = vor.u32 %v7902_v24, %v7797_v30 }
 0xaf6   :  { %7803 = vmatmul.msk.bf16.vlgmr.msra.gmra.mxu3 %vm3595_vm7, %v12145_v48 }
 0xaf9   :  { %6385 = vmatpush.bf16.msrb.mxu3 %v5924_v61  ;;  %v100_v61 = vld [vmem:[%s12865_s4 + $0x3b] sm:$0xff] }
 0xafa   :  { %v12216_v18 = vpack.c.bf16 %v101_v49, %v100_v61  ;;  %v12258_v61 = vsel %vm1325_vm11, %v12153_v46, 0 }
 0xafc   :  { %5933 = vmatpush.bf16.xpose.msra.mxu1 %v5922_v14 }
 0xafd   :  { %6386 = vmatpush.bf16.msrb.mxu3 %v5923_v3  ;;  %v12225_v3 = vpack.c.bf16 %v103_v13, %v102_v1 }
 0xb01   :  { %6387 = vmatpush.bf16.msrb.mxu3 %v5922_v14  ;;  %v107_v14 = vld [vmem:[%s12865_s4 + $0x73] sm:$0xff] }
 0xb02   :  { %v12243_v50 = vpack.c.bf16 %v107_v14, %v106_v47 }
 0xb03   :  { %5934 = vmatmul.bf16.vlgmr.msra.gmra.mxu1 %v12170_v5 }
 0xb04   :  { %7800 = vmatmul.msk.bf16.gmra.mxu2 %vm3595_vm7, %v12156_v33 }
 0xb05   :  { %6483 = vmatpush.bf16.xpose.msra.mxu3 %v12153_v46 }
 0xb0d   :  { %6484 = vmatpush.bf16.xpose.msra.mxu3 %v12168_v58 }
 0xb13   :  { %5939 = vmatmul.bf16.gmra.mxu1 %v12189_v16 }
 0xb14   :  { %7801 = vmatmul.msk.bf16.gmra.mxu2 %vm3595_vm7, %v12179_v32 }
 0xb15   :  { %6485 = vmatpush.bf16.xpose.msra.mxu3 %v12176_v11 }
 0xb1d   :  { %6486 = vmatpush.bf16.xpose.msra.mxu3 %v12193_v31 }
 0xb23   :  { %5944 = vmatmul.bf16.gmra.mxu1 %v12205_v38 }
 0xb24   :  { %7802 = vmatmul.msk.bf16.gmra.mxu2 %vm3595_vm7, %v12197_v60 }
 0xb33   :  { %5949 = vmatmul.bf16.gmra.mxu1 %v12216_v18 }
 0xb43   :  { %5954 = vmatmul.bf16.gmra.mxu1 %v12225_v3 }
 0xb53   :  { %5959 = vmatmul.bf16.gmra.mxu1 %v12234_v40 }
 0xb63   :  { %5964 = vmatmul.bf16.gmra.mxu1 %v12243_v50 }
 0xb73   :  { %5969 = vmatmul.bf16.gmra.mxu1 %v12252_v56 }
 0xb77   :  { %v6027_v63 = vpop.f32.mrf.mxu2 }
 0xb7f   :  { %v6029_v19 = vpop.f32.mrf.mxu2 }
 0xb80   :  { %v5935_v27 = vpop.f32.mrf.mxu1  ;;  %v6047_v9 = vpack.c.bf16 %v6029_v19, %v6027_v63 }
 0xb87   :  { %v6032_v44 = vpop.f32.mrf.mxu2 }
 0xb88   :  { %v5937_v26 = vpop.f32.mrf.mxu1 }
 0xb89   :  { %v5975_v1 = vpack.c.bf16 %v5937_v26, %v5935_v27  ;;  %v6063_v27 = vpop.f32.mrf.mxu3 }
 0xb8f   :  { %v6034_v25 = vpop.f32.mrf.mxu2 }
 0xb90   :  { %v5940_v53 = vpop.f32.mrf.mxu1  ;;  %v6048_v55 = vpack.c.bf16 %v6034_v25, %v6032_v44 }
 0xb91   :  { %v6065_v26 = vpop.f32.mrf.mxu3 }
 0xb97   :  { %v6037_v57 = vpop.f32.mrf.mxu2 }
 0xb98   :  { %v5942_v24 = vpop.f32.mrf.mxu1 }
 0xb99   :  { %v5976_v36 = vpack.c.bf16 %v5942_v24, %v5940_v53 }
 0xb9f   :  { %v6039_v7 = vpop.f32.mrf.mxu2 }
 0xba0   :  { %v6049_v30 = vpack.c.bf16 %v6039_v7, %v6037_v57  ;;  %v5945_v49 = vpop.f32.mrf.mxu1 }
 0xba7   :  { %v6042_v8 = vpop.f32.mrf.mxu2 }
 0xba8   :  { %v5947_v13 = vpop.f32.mrf.mxu1 }
 0xba9   :  { %v5977_v47 = vpack.c.bf16 %v5947_v13, %v5945_v49 }
 0xbaf   :  { %v6044_v17 = vpop.f32.mrf.mxu2 }
 0xbb0   :  { %v6050_v59 = vpack.c.bf16 %v6044_v17, %v6042_v8  ;;  %v5950_v46 = vpop.f32.mrf.mxu1 }
 0xbb2   :  { %v6093_v15 = vsel %vm1325_vm11, %v6050_v59, 0 }
 0xbb3   :  { %6099 = vmatpush.bf16.msrb.mxu0 %v6093_v15  ;;  %v12276_v15 = vperm.slane %v6063_v27, 0 }
 0xbb7   :  { %6100 = vmatpush.bf16.msrb.mxu0 %v6049_v30 }
 0xbb8   :  { %v5952_v39 = vpop.f32.mrf.mxu1 }
 0xbb9   :  { %v5978_v63 = vpack.c.bf16 %v5952_v39, %v5950_v46 }
 0xbbb   :  { %6101 = vmatpush.bf16.msrb.mxu0 %v6048_v55  ;;  %v8681_v55 = vld [vmem:[%s12865_s4 + $0x9] sm:$0x3] }
 0xbbc   :  { %vm6144_vm13 = vcmp.gt.f32.partialorder %v8681_v55, 0.0 }
 0xbbf   :  { %6102 = vmatpush.bf16.msrb.mxu0 %v6047_v9  ;;  %v13239_v9 = vmov 0  }
 0xbc0   :  { %v5955_v14 = vpop.f32.mrf.mxu1  ;;  %v12285_v49 = vsel %vm6144_vm13, 1, %v13239_v9 }
 0xbc1   :  { %v6146_v13 = vperm.slane %v12285_v49, 0 }
 0xbc2   :  { %7804 = vmatmul.msk.bf16.vlgmr.msrb.gmra.mxu0 %vm3595_vm7, %v5975_v1 }
 0xbc3   :  { %6576 = vmatpush.bf16.msra.mxu0 %v12258_v61  ;;  %vm12288_vm14 = vcmp.eq.s32.totalorder %v6146_v13, 1 }
 0xbc7   :  { %6577 = vmatpush.bf16.msra.mxu0 %v12168_v58 }
 0xbc8   :  { %v5957_v19 = vpop.f32.mrf.mxu1 }
 0xbc9   :  { %v5979_v45 = vpack.c.bf16 %v5957_v19, %v5955_v14 }
 0xbcb   :  { %6578 = vmatpush.bf16.msra.mxu0 %v12176_v11 }
 0xbcf   :  { %6579 = vmatpush.bf16.msra.mxu0 %v12193_v31 }
 0xbd0   :  { %v5960_v4 = vpop.f32.mrf.mxu1 }
 0xbd2   :  { %7805 = vmatmul.msk.bf16.gmra.mxu0 %vm3595_vm7, %v5976_v36  ;;  %v7818_v36 = vld [vmem:[#allocation2 + $0x250] sm:$0xf] }
 0xbd3   :  { %6828 = vmatpush.bf16.msrb.mxu0 %v12258_v61 }
 0xbd7   :  { %6829 = vmatpush.bf16.msrb.mxu0 %v12168_v58 }
 0xbd8   :  { %v5962_v44 = vpop.f32.mrf.mxu1 }
 0xbd9   :  { %v5980_v57 = vpack.c.bf16 %v5962_v44, %v5960_v4 }
 0xbdb   :  { %6830 = vmatpush.bf16.msrb.mxu0 %v12176_v11 }
 0xbdf   :  { %6831 = vmatpush.bf16.msrb.mxu0 %v12193_v31 }
 0xbe0   :  { %v5965_v25 = vpop.f32.mrf.mxu1 }
 0xbe2   :  { %7806 = vmatmul.msk.bf16.gmra.mxu0 %vm3595_vm7, %v5977_v47 }
 0xbe8   :  { %v5967_v7 = vpop.f32.mrf.mxu1 }
 0xbe9   :  { %v5981_v8 = vpack.c.bf16 %v5967_v7, %v5965_v25 }
 0xbf0   :  { %v5970_v53 = vpop.f32.mrf.mxu1 }
 0xbf2   :  { %7807 = vmatmul.msk.bf16.gmra.mxu0 %vm3595_vm7, %v5978_v63 }
 0xbf8   :  { %v5972_v17 = vpop.f32.mrf.mxu1 }
 0xbf9   :  { %v5982_v59 = vpack.c.bf16 %v5972_v17, %v5970_v53 }
 0xc02   :  { %7808 = vmatmul.msk.bf16.gmra.mxu0 %vm3595_vm7, %v5979_v45 }
 0xc12   :  { %7809 = vmatmul.msk.bf16.gmra.mxu0 %vm3595_vm7, %v5980_v57 }
 0xc22   :  { %7810 = vmatmul.msk.bf16.gmra.mxu0 %vm3595_vm7, %v5981_v8 }
 0xc32   :  { %7811 = vmatmul.msk.bf16.gmra.mxu0 %vm3595_vm7, %v5982_v59 }
 0xc3f   :  { %v6104_v30 = vpop.f32.mrf.mxu0 }
 0xc40   :  { %v6105_v24 = vadd.f32 %v6104_v30, %v12276_v15 }
 0xc42   :  { %7836 = vmatmul.msk.bf16.vlgmr.msra.gmra.mxu0 %vm3595_vm7, %v12145_v48  ;;  %v12294_v46 = vsel %vm12288_vm14, %v6105_v24, -inf }
 0xc47   :  { %v6106_v1 = vpop.f32.mrf.mxu0 }
 0xc4f   :  { %v6109_v48 = vpop.f32.mrf.mxu0 }
 0xc57   :  { %v6111_v39 = vpop.f32.mrf.mxu0 }
 0xc5f   :  { %v6114_v47 = vpop.f32.mrf.mxu0 }
 0xc60   :  { %v6115_v14 = vadd.f32 %v6114_v47, %v12276_v15 }
 0xc67   :  { %v6116_v63 = vpop.f32.mrf.mxu0 }
 0xc68   :  { %v6117_v19 = vadd.f32 %v6116_v63, %v12276_v15 }
 0xc6f   :  { %v6119_v4 = vpop.f32.mrf.mxu0 }
 0xc70   :  { %v6120_v45 = vadd.f32 %v6119_v4, %v12276_v15 }
 0xc72   :  { %v12314_v63 = vsel %vm12288_vm14, %v6120_v45, -inf }
 0xc77   :  { %v6121_v44 = vpop.f32.mrf.mxu0 }
 0xc78   :  { %v6122_v25 = vadd.f32 %v6121_v44, %v12276_v15 }
 0xc7f   :  { %v6124_v57 = vpop.f32.mrf.mxu0 }
 0xc80   :  { %v6125_v27 = vadd.f32 %v6124_v57, %v12276_v15 }
 0xc87   :  { %v6126_v7 = vpop.f32.mrf.mxu0 }
 0xc88   :  { %v6127_v26 = vadd.f32 %v6126_v7, %v12276_v15 }
 0xc8f   :  { %v6129_v8 = vpop.f32.mrf.mxu0 }
 0xc97   :  { %v6131_v53 = vpop.f32.mrf.mxu0 }
 0xc98   :  { %v6132_v24 = vadd.f32 %v6131_v53, %v12276_v15  ;;  %v12323_v53 = vsel %vm12288_vm14, %v6117_v19, -inf }
 0xc9a   :  { %v12308_v9 = vsel %vm12288_vm14, %v6132_v24, -inf  ;;  %v6130_v24 = vadd.f32 %v6129_v8, %v12276_v15  ;;  %v6110_v8 = vadd.f32 %v6109_v48, %v12276_v15  ;;  %v7814_v48 = vld [vmem:[#allocation2 + $0x230] sm:$0xf] }
 0xc9c   :  { %v6158_v19 = vsel %vm12288_vm14, %v6130_v24, -inf }
 0xc9f   :  { %v6134_v17 = vpop.f32.mrf.mxu0 }
 0xca0   :  { %v6135_v59 = vadd.f32 %v6134_v17, %v12276_v15 }
 0xca2   :  { %v6160_v30 = vsel %vm12288_vm14, %v6135_v59, -inf  ;;  %v6107_v59 = vadd.f32 %v6106_v1, %v12276_v15  ;;  %v12348_v1 = vsel %vm12288_vm14, %v6122_v25, -inf }
 0xca3   :  { %6188 = vmax.xlane.f32.xlu1 %v6160_v30 }
 0xca7   :  { %v6136_v55 = vpop.f32.mrf.mxu0 }
 0xca8   :  { %v6137_v44 = vadd.f32 %v6136_v55, %v12276_v15  ;;  %v12334_v55 = vsel %vm12288_vm14, %v6107_v59, -inf }
 0xcaa   :  { %v6161_v45 = vsel %vm12288_vm14, %v6137_v44, -inf  ;;  %v12354_v44 = vsel %vm12288_vm14, %v6115_v14, -inf  ;;  %v7903_v14 = vld [vmem:[#allocation2 + $0x23c] sm:$0xf0] }
 0xcab   :  { %6186 = vmax.xlane.f32.xlu1 %v12308_v9 }
 0xcaf   :  { %v6139_v13 = vpop.f32.mrf.mxu0 }
 0xcb0   :  { %v6140_v47 = vadd.f32 %v6139_v13, %v12276_v15  ;;  %v6156_v13 = vsel %vm12288_vm14, %v6125_v27, -inf  ;;  %v12359_v27 = vsel %vm12288_vm14, %v6110_v8, -inf }
 0xcb2   :  { %v6162_v4 = vsel %vm12288_vm14, %v6140_v47, -inf  ;;  %v12343_v47 = vsel %vm12288_vm14, %v6127_v26, -inf  ;;  %v6112_v26 = vadd.f32 %v6111_v39, %v12276_v15  ;;  %v7904_v39 = vld [vmem:[#allocation2 + $0x25c] sm:$0xf0] }
 0xcb3   :  { %6176 = vmax.xlane.f32.xlu1 %v12314_v63  ;;  %6192 = vmax.xlane.f32.xlu0 %v6162_v4  ;;  %v7819_v8 = vor.u32 %v7904_v39, %v7818_v36  ;;  %v7905_v36 = vld [vmem:[#allocation2 + $0x27c] sm:$0xf0] }
 0xcb4   :  { %v12365_v25 = vsel %vm12288_vm14, %v6112_v26, -inf }
 0xcb7   :  { %v6141_v57 = vpop.f32.mrf.mxu0 }
 0xcb8   :  { %v6142_v7 = vadd.f32 %v6141_v57, %v12276_v15 }
 0xcba   :  { %v6163_v17 = vsel %vm12288_vm14, %v6142_v7, -inf  ;;  %v7815_v7 = vor.u32 %v7903_v14, %v7814_v48 }
 0xcbb   :  { %6174 = vmax.xlane.f32.xlu1 %v12323_v53  ;;  %6194 = vmax.xlane.f32.xlu2 %v6163_v17 }
 0xcbc   :  { %6190 = vmax.xlane.f32.xlu0 %v6161_v45  ;;  %7828 = vmatmul.msk.bf16.vlgmr.msrb.gmra.mxu3 %vm3595_vm7, %v7815_v7 }
 0xcbd   :  { %7845 = vmatmul.msk.bf16.vlgmr.msrb.gmra.mxu0 %vm3595_vm7, %v7815_v7 }
 0xcc3   :  { %6166 = vmax.xlane.f32.xlu1 %v12334_v55  ;;  %6184 = vmax.xlane.f32.xlu2 %v6158_v19 }
 0xcc4   :  { %6180 = vmax.xlane.f32.xlu0 %v6156_v13 }
 0xccb   :  { %6182 = vmax.xlane.f32.xlu2 %v12343_v47 }
 0xccc   :  { %6178 = vmax.xlane.f32.xlu0 %v12348_v1  ;;  %7829 = vmatmul.msk.bf16.gmra.mxu3 %vm3595_vm7, %v7819_v8 }
 0xccd   :  { %7846 = vmatmul.msk.bf16.gmra.mxu0 %vm3595_vm7, %v7819_v8 }
 0xcd3   :  { %6172 = vmax.xlane.f32.xlu2 %v12354_v44 }
 0xcd4   :  { %6168 = vmax.xlane.f32.xlu0 %v12359_v27 }
 0xcdb   :  { %6170 = vmax.xlane.f32.xlu2 %v12365_v25 }
 0xce3   :  { %6164 = vmax.xlane.f32.xlu2 %v12294_v46 }
 0xd16   :  { %v6189_v57 = vpop.xlane.xlu1 %6188 }
 0xd17   :  { %v6208_v59 = vsub.f32 %v6160_v30, %v6189_v57 }
 0xd19   :  { %v6236_v24 = vmul.f32 1.442695, %v6208_v59 }
 0xd1b   :  { %8489 = vpow2.f32 %v6236_v24 }
 0xd1e   :  { %v6187_v48 = vpop.xlane.xlu1 %6186 }
 0xd1f   :  { %v6207_v0 = vsub.f32 %v12308_v9, %v6187_v48 }
 0xd21   :  { %v12371_v15 = vpop.eup %8489 }
 0xd22   :  { %6268 = vadd.xlane.f32.xlu0 %v12371_v15 }
 0xd26   :  { %v6193_v26 = vpop.xlane.xlu0 %6192  ;;  %v6177_v8 = vpop.xlane.xlu1 %6176 }
 0xd27   :  { %v6210_v22 = vsub.f32 %v6162_v4, %v6193_v26  ;;  %v7822_v4 = vld [vmem:[#allocation2 + $0x270] sm:$0xf]  ;;  %v6234_v26 = vmul.f32 1.442695, %v6207_v0  ;;  %v6202_v9 = vsub.f32 %v12314_v63, %v6177_v8 }
 0xd28   :  { %v7823_v39 = vor.u32 %v7905_v36, %v7822_v4 }
 0xd29   :  { %v6240_v30 = vmul.f32 1.442695, %v6210_v22 }
 0xd2a   :  { %7830 = vmatmul.msk.bf16.gmra.mxu3 %vm3595_vm7, %v7823_v39  ;;  %7847 = vmatmul.msk.bf16.gmra.mxu0 %vm3595_vm7, %v7823_v39 }
 0xd2b   :  { %8491 = vpow2.f32 %v6240_v30 }
 0xd2e   :  { %v6195_v14 = vpop.xlane.xlu2 %6194 }
 0xd2f   :  { %v6211_v57 = vsub.f32 %v6163_v17, %v6195_v14  ;;  %v6191_v7 = vpop.xlane.xlu0 %6190 }
 0xd30   :  { %v6209_v59 = vsub.f32 %v6161_v45, %v6191_v7 }
 0xd31   :  { %v6242_v24 = vmul.f32 1.442695, %v6211_v57  ;;  %v12376_v10 = vpop.eup %8491 }
 0xd32   :  { %v6238_v20 = vmul.f32 1.442695, %v6209_v59  ;;  %6272 = vadd.xlane.f32.xlu1 %v12376_v10 }
 0xd33   :  { %8493 = vpow2.f32 %v6242_v24 }
 0xd34   :  { %8495 = vpow2.f32 %v6238_v20  ;;  %v6224_v20 = vmul.f32 1.442695, %v6202_v9 }
 0xd35   :  { %8497 = vpow2.f32 %v6234_v26  ;;  %v7906_v26 = vld [vmem:[#allocation2 + $0x29c] sm:$0x30] }
 0xd36   :  { %v6185_v22 = vpop.xlane.xlu2 %6184 }
 0xd37   :  { %v6206_v30 = vsub.f32 %v6158_v19, %v6185_v22  ;;  %v6181_v17 = vpop.xlane.xlu0 %6180  ;;  %v6175_v19 = vpop.xlane.xlu1 %6174  ;;  %v7826_v22 = vld [vmem:[#allocation2 + $0x290] sm:$0xf] }
 0xd38   :  { %v6204_v14 = vsub.f32 %v6156_v13, %v6181_v17  ;;  %v6201_v39 = vsub.f32 %v12323_v53, %v6175_v19 }
 0xd39   :  { %v6232_v45 = vmul.f32 1.442695, %v6206_v30  ;;  %v12382_v57 = vpop.eup %8493 }
 0xd3a   :  { %v6228_v48 = vmul.f32 1.442695, %v6204_v14  ;;  %v12385_v7 = vpop.eup %8495  ;;  %6274 = vadd.xlane.f32.xlu0 %v12382_v57 }
 0xd3b   :  { %8499 = vpow2.f32 %v6232_v45  ;;  %6270 = vadd.xlane.f32.xlu2 %v12385_v7  ;;  %v12391_v4 = vpop.eup %8497 }
 0xd3c   :  { %8501 = vpow2.f32 %v6228_v48 }
 0xd3d   :  { %8503 = vpow2.f32 %v6224_v20 }
 0xd3e   :  { %v6183_v0 = vpop.xlane.xlu2 %6182 }
 0xd3f   :  { %v6205_v13 = vsub.f32 %v12343_v47, %v6183_v0  ;;  %v6179_v59 = vpop.xlane.xlu0 %6178  ;;  %v7827_v47 = vor.u32 %v7906_v26, %v7826_v22  ;;  %v6167_v19 = vpop.xlane.xlu1 %6166 }
 0xd40   :  { %v6203_v24 = vsub.f32 %v12348_v1, %v6179_v59  ;;  %v6222_v1 = vmul.f32 1.442695, %v6201_v39 }
 0xd41   :  { %v6230_v63 = vmul.f32 1.442695, %v6205_v13  ;;  %v12393_v36 = vpop.eup %8499  ;;  %7831 = vmatmul.msk.bf16.gmra.mxu3 %vm3595_vm7, %v7827_v47  ;;  %7848 = vmatmul.msk.bf16.gmra.mxu0 %vm3595_vm7, %v7827_v47 }
 0xd42   :  { %v6226_v8 = vmul.f32 1.442695, %v6203_v24  ;;  %v12396_v30 = vpop.eup %8501  ;;  %6266 = vadd.xlane.f32.xlu0 %v12391_v4  ;;  %6264 = vadd.xlane.f32.xlu1 %v12393_v36 }
 0xd43   :  { %8505 = vpow2.f32 %v6230_v63  ;;  %6260 = vadd.xlane.f32.xlu2 %v12396_v30  ;;  %v12402_v53 = vpop.eup %8503 }
 0xd44   :  { %8507 = vpow2.f32 %v6226_v8 }
 0xd45   :  { %8509 = vpow2.f32 %v6222_v1 }
 0xd46   :  { %v6173_v17 = vpop.xlane.xlu2 %6172 }
 0xd47   :  { %v6200_v14 = vsub.f32 %v12354_v44, %v6173_v17  ;;  %v6169_v45 = vpop.xlane.xlu0 %6168  ;;  %v6197_v44 = vsub.f32 %v12334_v55, %v6167_v19  ;;  %v5893_v19 = vld [vmem:[#allocation6 + $0x428] sm:$0xff] }
 0xd48   :  { %v6198_v9 = vsub.f32 %v12359_v27, %v6169_v45  ;;  %v5891_v45 = vld [vmem:[#allocation6 + $0x418] sm:$0xff] }
 0xd49   :  { %v12407_v48 = vpop.eup %8505  ;;  %v6220_v20 = vmul.f32 1.442695, %v6200_v14  ;;  %v6214_v39 = vmul.f32 1.442695, %v6197_v44  ;;  %v5892_v14 = vld [vmem:[#allocation6 + $0x420] sm:$0xff] }
 0xd4a   :  { %v12409_v0 = vpop.eup %8507  ;;  %v6216_v13 = vmul.f32 1.442695, %v6198_v9  ;;  %6256 = vadd.xlane.f32.xlu0 %v12402_v53  ;;  %6262 = vadd.xlane.f32.xlu1 %v12407_v48  ;;  %v5895_v9 = vld [vmem:[#allocation6 + $0x438] sm:$0xff]  ;;  %v5897_v44 = vld [vmem:[#allocation6 + $0x448] sm:$0xf] }
 0xd4b   :  { %8511 = vpow2.f32 %v6220_v20  ;;  %6258 = vadd.xlane.f32.xlu2 %v12409_v0  ;;  %v12416_v24 = vpop.eup %8509  ;;  %v5894_v20 = vld [vmem:[#allocation6 + $0x430] sm:$0xff] }
 0xd4c   :  { %8513 = vpow2.f32 %v6216_v13 }
 0xd4e   :  { %v6171_v27 = vpop.xlane.xlu2 %6170 }
 0xd4f   :  { %v6199_v59 = vsub.f32 %v12365_v25, %v6171_v27  ;;  %v5896_v27 = vld [vmem:[#allocation6 + $0x440] sm:$0xff] }
 0xd51   :  { %v12418_v63 = vpop.eup %8511  ;;  %v6218_v8 = vmul.f32 1.442695, %v6199_v59  ;;  %6487 = vmatmul.bf16.vlgmr.msra.gmra.mxu3 %v12170_v5  ;;  %v12437_v5 = vpop.f32.mrf.mxu0 }
 0xd52   :  { %v12420_v22 = vpop.eup %8513  ;;  %6254 = vadd.xlane.f32.xlu0 %v12416_v24  ;;  %6252 = vadd.xlane.f32.xlu1 %v12418_v63 }
 0xd53   :  { %8515 = vpow2.f32 %v6218_v8  ;;  %6248 = vadd.xlane.f32.xlu2 %v12420_v22 }
 0xd54   :  { %8517 = vpow2.f32 %v6214_v39 }
 0xd56   :  { %v6165_v55 = vpop.xlane.xlu2 %6164 }
 0xd57   :  { %v6196_v26 = vsub.f32 %v12294_v46, %v6165_v55  ;;  %v5890_v46 = vld [vmem:[#allocation6 + $0x410] sm:$0xff] }
 0xd59   :  { %v12427_v25 = vpop.eup %8515  ;;  %v6212_v47 = vmul.f32 1.442695, %v6196_v26  ;;  %v6583_v13 = vpop.f32.mrf.mxu0 }
 0xd5a   :  { %v12429_v1 = vpop.eup %8517  ;;  %6250 = vadd.xlane.f32.xlu1 %v12427_v25 }
 0xd5b   :  { %8519 = vpow2.f32 %v6212_v47  ;;  %6246 = vadd.xlane.f32.xlu2 %v12429_v1 }
 0xd61   :  { %v12433_v17 = vpop.eup %8519  ;;  %6492 = vmatmul.bf16.gmra.mxu3 %v12189_v16 }
 0xd62   :  { %6244 = vadd.xlane.f32.xlu0 %v12433_v17 }
 0xd71   :  { %6497 = vmatmul.bf16.gmra.mxu3 %v12205_v38 }
 0xd73   :  { %6320 = vperm.xlu2 %7927, %v5892_v14   ;;  %6310 = vperm.xlu1 %7926, %v5890_v46  }
 0xd76   :  { %6315 = vperm.xlu0 %7925, %v5891_v45  }
 0xd7b   :  { %6335 = vperm.xlu2 %7927, %v5895_v9   ;;  %6330 = vperm.xlu1 %7926, %v5894_v20  }
 0xd7e   :  { %6325 = vperm.xlu0 %7925, %v5893_v19  }
 0xd81   :  { %6502 = vmatmul.bf16.gmra.mxu3 %v12216_v18 }
 0xd83   :  { %6345 = vperm.xlu1 %7926, %v5897_v44  }
 0xd86   :  { %6340 = vperm.xlu0 %7925, %v5896_v27  }
 0xd91   :  { %6507 = vmatmul.bf16.gmra.mxu3 %v12225_v3 }
 0xd95   :  { %v6269_v16 = vpop.xlane.xlu0 %6268 }
 0xda1   :  { %6512 = vmatmul.bf16.gmra.mxu3 %v12234_v40 }
 0xda5   :  { %v6273_v59 = vpop.xlane.xlu1 %6272 }
 0xda6   :  { %8521 = vrcp.f32 %v6273_v59 }
 0xdac   :  { %v8522_v8 = vpop.eup %8521 }
 0xdad   :  { %v6275_v38 = vpop.xlane.xlu0 %6274  ;;  %v6306_v26 = vmul.f32 %v8522_v8, %v12376_v10 }
 0xdae   :  { %8523 = vrcp.f32 %v6275_v38  ;;  %v6271_v39 = vpop.xlane.xlu2 %6270 }
 0xdaf   :  { %8525 = vrcp.f32 %v6271_v39 }
 0xdb0   :  { %8527 = vrcp.f32 %v6269_v16 }
 0xdb1   :  { %6517 = vmatmul.bf16.gmra.mxu3 %v12243_v50 }
 0xdb4   :  { %v8524_v55 = vpop.eup %8523 }
 0xdb5   :  { %v6307_v47 = vmul.f32 %v8524_v55, %v12382_v57  ;;  %v6265_v14 = vpop.xlane.xlu1 %6264  ;;  %v6267_v18 = vpop.xlane.xlu0 %6266 }
 0xdb6   :  { %v8526_v3 = vpop.eup %8525  ;;  %8529 = vrcp.f32 %v6265_v14  ;;  %v6261_v9 = vpop.xlane.xlu2 %6260 }
 0xdb7   :  { %v6420_v46 = vpack.c.bf16 %v6307_v47, %v6306_v26  ;;  %v8528_v40 = vpop.eup %8527  ;;  %8531 = vrcp.f32 %v6267_v18  ;;  %v6305_v45 = vmul.f32 %v8526_v3, %v12385_v7  ;;  %v6833_v47 = vpop.f32.mrf.mxu0 }
 0xdb8   :  { %v6304_v20 = vmul.f32 %v8528_v40, %v12371_v15 }
 0xdb9   :  { %6421 = vmatpush.bf16.xpose.msrb.mxu2 %v6420_v46 }
 0xdba   :  { %v6419_v10 = vpack.c.bf16 %v6305_v45, %v6304_v20  ;;  %v6389_v20 = vpop.f32.mrf.mxu3 }
 0xdbc   :  { %v8530_v19 = vpop.eup %8529 }
 0xdbd   :  { %v6263_v13 = vpop.xlane.xlu1 %6262  ;;  %v8532_v44 = vpop.eup %8531  ;;  %v6302_v57 = vmul.f32 %v8530_v19, %v12393_v36 }
 0xdbe   :  { %8533 = vrcp.f32 %v6263_v13  ;;  %v6303_v50 = vmul.f32 %v8532_v44, %v12391_v4  ;;  %v6257_v27 = vpop.xlane.xlu0 %6256  ;;  %v6259_v16 = vpop.xlane.xlu2 %6258 }
 0xdbf   :  { %8535 = vrcp.f32 %v6261_v9 }
 0xdc0   :  { %v6418_v59 = vpack.c.bf16 %v6303_v50, %v6302_v57  ;;  %8537 = vrcp.f32 %v6259_v16 }
 0xdc1   :  { %6422 = vmatpush.bf16.xpose.msrb.mxu2 %v6419_v10  ;;  %6522 = vmatmul.bf16.gmra.mxu3 %v12252_v56  ;;  %8539 = vrcp.f32 %v6257_v27 }
 0xdc2   :  { %v6391_v16 = vpop.f32.mrf.mxu3 }
 0xdc4   :  { %v8534_v7 = vpop.eup %8533 }
 0xdc5   :  { %v8536_v15 = vpop.eup %8535  ;;  %v6301_v38 = vmul.f32 %v8534_v7, %v12407_v48  ;;  %v6253_v39 = vpop.xlane.xlu1 %6252 }
 0xdc6   :  { %v6300_v8 = vmul.f32 %v8536_v15, %v12396_v30  ;;  %v8538_v55 = vpop.eup %8537  ;;  %v6255_v36 = vpop.xlane.xlu0 %6254  ;;  %8541 = vrcp.f32 %v6253_v39 }
 0xdc7   :  { %v8540_v4 = vpop.eup %8539  ;;  %8543 = vrcp.f32 %v6255_v36  ;;  %v6299_v14 = vmul.f32 %v8538_v55, %v12409_v0  ;;  %v6249_v46 = vpop.xlane.xlu2 %6248 }
 0xdc8   :  { %v6417_v26 = vpack.c.bf16 %v6301_v38, %v6300_v8  ;;  %v6298_v56 = vmul.f32 %v8540_v4, %v12402_v53  ;;  %v6835_v30 = vpop.f32.mrf.mxu0 }
 0xdc9   :  { %6423 = vmatpush.bf16.xpose.msrb.mxu2 %v6418_v59 }
 0xdca   :  { %v6416_v40 = vpack.c.bf16 %v6299_v14, %v6298_v56 }
 0xdcc   :  { %v8542_v18 = vpop.eup %8541 }
 0xdcd   :  { %v6251_v3 = vpop.xlane.xlu1 %6250  ;;  %v8544_v48 = vpop.eup %8543  ;;  %v6296_v45 = vmul.f32 %v8542_v18, %v12418_v63 }
 0xdce   :  { %8545 = vrcp.f32 %v6251_v3  ;;  %v6297_v9 = vmul.f32 %v8544_v48, %v12416_v24 }
 0xdcf   :  { %8547 = vrcp.f32 %v6249_v46  ;;  %v6247_v53 = vpop.xlane.xlu2 %6246 }
 0xdd0   :  { %v6415_v13 = vpack.c.bf16 %v6297_v9, %v6296_v45  ;;  %v6838_v57 = vpop.f32.mrf.mxu0 }
 0xdd1   :  { %6424 = vmatpush.bf16.xpose.msrb.mxu2 %v6417_v26 }
 0xdd4   :  { %v8546_v10 = vpop.eup %8545 }
 0xdd5   :  { %v6245_v19 = vpop.xlane.xlu0 %6244  ;;  %v8548_v0 = vpop.eup %8547  ;;  %v6295_v44 = vmul.f32 %v8546_v10, %v12427_v25 }
 0xdd6   :  { %8549 = vrcp.f32 %v6245_v19  ;;  %v6294_v27 = vmul.f32 %v8548_v0, %v12420_v22 }
 0xdd7   :  { %8551 = vrcp.f32 %v6247_v53  ;;  %v6321_v8 = vpop.permute.xlu2 %6320 }
 0xdd8   :  { %v6414_v59 = vpack.c.bf16 %v6295_v44, %v6294_v27  ;;  %v6840_v36 = vpop.f32.mrf.mxu0  ;;  %v12467_v4 = vadd.f32 %v6838_v57, %v6321_v8 }
 0xdd9   :  { %6425 = vmatpush.bf16.xpose.msrb.mxu2 %v6416_v40 }
 0xddc   :  { %v8550_v24 = vpop.eup %8549 }
 0xddd   :  { %v8552_v38 = vpop.eup %8551  ;;  %v6292_v25 = vmul.f32 %v8550_v24, %v12433_v17 }
 0xdde   :  { %v6293_v55 = vmul.f32 %v8552_v38, %v12429_v1 }
 0xddf   :  { %v12479_v19 = vpop.permute.xlu2 %6335 }
 0xde0   :  { %v6413_v26 = vpack.c.bf16 %v6293_v55, %v6292_v25 }
 0xde1   :  { %6426 = vmatpush.bf16.xpose.msrb.mxu2 %v6415_v13 }
 0xde5   :  { %v6311_v50 = vpop.permute.xlu1 %6310 }
 0xde6   :  { %v12459_v7 = vadd.f32 %v6833_v47, %v6311_v50  ;;  %v6394_v47 = vpop.f32.mrf.mxu3  ;;  %v6390_v46 = vadd.f32 %v6389_v20, %v6311_v50 }
 0xde7   :  { %v6395_v40 = vadd.f32 %v6394_v47, %v6321_v8 }
 0xde8   :  { %v6316_v63 = vpop.permute.xlu0 %6315 }
 0xde9   :  { %v12461_v15 = vadd.f32 %v6835_v30, %v6316_v63  ;;  %6427 = vmatpush.bf16.xpose.msrb.mxu2 %v6414_v59  ;;  %v6392_v14 = vadd.f32 %v6391_v16, %v6316_v63 }
 0xdeb   :  { %v6409_v17 = vpack.c.bf16 %v6392_v14, %v6390_v46 }
 0xded   :  { %v12477_v9 = vpop.permute.xlu1 %6330 }
 0xdee   :  { %v6396_v1 = vpop.f32.mrf.mxu3 }
 0xdf0   :  { %v6326_v22 = vpop.permute.xlu0 %6325 }
 0xdf1   :  { %v12469_v56 = vadd.f32 %v6840_v36, %v6326_v22  ;;  %6428 = vmatpush.bf16.xpose.msrb.mxu2 %v6413_v26  ;;  %v6397_v3 = vadd.f32 %v6396_v1, %v6326_v22 }
 0xdf3   :  { %v6410_v30 = vpack.c.bf16 %v6397_v3, %v6395_v40 }
 0xdf5   :  { %v12485_v10 = vpop.permute.xlu1 %6345 }
 0xdf6   :  { %v6399_v48 = vpop.f32.mrf.mxu3 }
 0xdf8   :  { %6429 = vmatmul.bf16.vlgmr.msrb.gmra.mxu2 %v6409_v17 }
 0xdf9   :  { %6543 = vmatpush.bf16.msra.mxu2 %v12258_v61  ;;  %v6400_v61 = vadd.f32 %v6399_v48, %v12477_v9 }
 0xdfd   :  { %6544 = vmatpush.bf16.msra.mxu2 %v12168_v58 }
 0xdfe   :  { %v6401_v45 = vpop.f32.mrf.mxu3 }
 0xdff   :  { %v6402_v58 = vadd.f32 %v6401_v45, %v12479_v19 }
 0xe01   :  { %6545 = vmatpush.bf16.msra.mxu2 %v12176_v11  ;;  %v6411_v20 = vpack.c.bf16 %v6402_v58, %v6400_v61  ;;  %v12483_v11 = vpop.permute.xlu0 %6340 }
 0xe05   :  { %6546 = vmatpush.bf16.msra.mxu2 %v12193_v31 }
 0xe06   :  { %v6404_v13 = vpop.f32.mrf.mxu3 }
 0xe07   :  { %v6405_v53 = vadd.f32 %v6404_v13, %v12483_v11 }
 0xe08   :  { %6434 = vmatmul.bf16.gmra.mxu2 %v6410_v30 }
 0xe0e   :  { %v6406_v31 = vpop.f32.mrf.mxu3 }
 0xe0f   :  { %v6407_v0 = vadd.f32 %v6406_v31, %v12485_v10 }
 0xe11   :  { %v6412_v44 = vpack.c.bf16 %v6407_v0, %v6405_v53 }
 0xe16   :  { %v6488_v8 = vpop.f32.mrf.mxu3 }
 0xe18   :  { %6439 = vmatmul.bf16.gmra.mxu2 %v6411_v20 }
 0xe1e   :  { %v6490_v36 = vpop.f32.mrf.mxu3 }
 0xe1f   :  { %v6528_v30 = vpack.c.bf16 %v6490_v36, %v6488_v8 }
 0xe26   :  { %v6493_v26 = vpop.f32.mrf.mxu3 }
 0xe28   :  { %6444 = vmatmul.bf16.gmra.mxu2 %v6412_v44 }
 0xe2e   :  { %v6495_v1 = vpop.f32.mrf.mxu3 }
 0xe2f   :  { %v6529_v61 = vpack.c.bf16 %v6495_v1, %v6493_v26 }
 0xe36   :  { %v6498_v48 = vpop.f32.mrf.mxu3 }
 0xe38   :  { %7832 = vmatmul.msk.bf16.vlgmr.msra.gmra.mxu2 %vm3595_vm7, %v12143_v43 }
 0xe3e   :  { %v6500_v45 = vpop.f32.mrf.mxu3 }
 0xe3f   :  { %v6530_v13 = vpack.c.bf16 %v6500_v45, %v6498_v48 }
 0xe46   :  { %v6503_v58 = vpop.f32.mrf.mxu3 }
 0xe48   :  { %7833 = vmatmul.msk.bf16.gmra.mxu2 %vm3595_vm7, %v12156_v33 }
 0xe4e   :  { %v6505_v20 = vpop.f32.mrf.mxu3 }
 0xe4f   :  { %v6531_v53 = vpack.c.bf16 %v6505_v20, %v6503_v58  ;;  %v6662_v58 = vperm.slane %v12285_v49, 1  ;;  %v12526_v20 = vperm.slane %v12437_v5, 0 }
 0xe56   :  { %v6508_v31 = vpop.f32.mrf.mxu3 }
 0xe58   :  { %7834 = vmatmul.msk.bf16.gmra.mxu2 %vm3595_vm7, %v12179_v32 }
 0xe5e   :  { %v6510_v0 = vpop.f32.mrf.mxu3 }
 0xe66   :  { %v6513_v44 = vpop.f32.mrf.mxu3 }
 0xe68   :  { %7835 = vmatmul.msk.bf16.gmra.mxu2 %vm3595_vm7, %v12197_v60 }
 0xe7b   :  { %v12497_v57 = vpop.f32.mrf.mxu2 }
 0xe83   :  { %v12499_v50 = vpop.f32.mrf.mxu2 }
 0xe8b   :  { %v12501_v27 = vpop.f32.mrf.mxu2 }
 0xe93   :  { %v12503_v16 = vpop.f32.mrf.mxu2 }
 0xe9b   :  { %v12505_v63 = vpop.f32.mrf.mxu2 }
 0xea3   :  { %v12507_v43 = vpop.f32.mrf.mxu2 }
 0xeab   :  { %v12509_v59 = vpop.f32.mrf.mxu2 }
 0xeb3   :  { %v12511_v33 = vpop.f32.mrf.mxu2 }
 0xebb   :  { %v6548_v32 = vpop.f32.mrf.mxu2 }
 0xec3   :  { %v6550_v24 = vpop.f32.mrf.mxu2 }
 0xec4   :  { %v6568_v40 = vpack.c.bf16 %v6550_v24, %v6548_v32  ;;  %v6532_v32 = vpack.c.bf16 %v6510_v0, %v6508_v31  ;;  %v6515_v24 = vpop.f32.mrf.mxu3 }
 0xecb   :  { %v6553_v38 = vpop.f32.mrf.mxu2 }
 0xed3   :  { %v6555_v60 = vpop.f32.mrf.mxu2 }
 0xed4   :  { %v6569_v3 = vpack.c.bf16 %v6555_v60, %v6553_v38  ;;  %v6518_v38 = vpop.f32.mrf.mxu3  ;;  %v6533_v60 = vpack.c.bf16 %v6515_v24, %v6513_v44 }
 0xedb   :  { %v6558_v25 = vpop.f32.mrf.mxu2 }
 0xee3   :  { %v6560_v55 = vpop.f32.mrf.mxu2 }
 0xee4   :  { %v6570_v17 = vpack.c.bf16 %v6560_v55, %v6558_v25  ;;  %v6520_v25 = vpop.f32.mrf.mxu3 }
 0xee5   :  { %v6534_v8 = vpack.c.bf16 %v6520_v25, %v6518_v38 }
 0xeeb   :  { %v6563_v22 = vpop.f32.mrf.mxu2 }
 0xeec   :  { %v6523_v55 = vpop.f32.mrf.mxu3 }
 0xef3   :  { %v6565_v47 = vpop.f32.mrf.mxu2 }
 0xef4   :  { %v6571_v14 = vpack.c.bf16 %v6565_v47, %v6563_v22  ;;  %v6525_v36 = vpop.f32.mrf.mxu3 }
 0xef5   :  { %v6535_v22 = vpack.c.bf16 %v6525_v36, %v6523_v55 }
 0xef6   :  { %v6611_v46 = vsel %vm1325_vm11, %v6571_v14, 0  ;;  %vm12529_vm11 = vcmp.eq.s32.totalorder %v6662_v58, 1 }
 0xef7   :  { %6617 = vmatpush.bf16.msrb.mxu1 %v6611_v46 }
 0xefb   :  { %6618 = vmatpush.bf16.msrb.mxu1 %v6570_v17 }
 0xeff   :  { %6619 = vmatpush.bf16.msrb.mxu1 %v6569_v3 }
 0xf03   :  { %6620 = vmatpush.bf16.msrb.mxu1 %v6568_v40 }
 0xf06   :  { %7837 = vmatmul.msk.bf16.vlgmr.msrb.gmra.mxu1 %vm3595_vm7, %v6528_v30 }
 0xf16   :  { %7838 = vmatmul.msk.bf16.gmra.mxu1 %vm3595_vm7, %v6529_v61 }
 0xf26   :  { %7839 = vmatmul.msk.bf16.gmra.mxu1 %vm3595_vm7, %v6530_v13 }
 0xf36   :  { %7840 = vmatmul.msk.bf16.gmra.mxu1 %vm3595_vm7, %v6531_v53 }
 0xf46   :  { %7841 = vmatmul.msk.bf16.gmra.mxu1 %vm3595_vm7, %v6532_v32 }
 0xf56   :  { %7842 = vmatmul.msk.bf16.gmra.mxu1 %vm3595_vm7, %v6533_v60 }
 0xf66   :  { %7843 = vmatmul.msk.bf16.gmra.mxu1 %vm3595_vm7, %v6534_v8 }
 0xf76   :  { %7844 = vmatmul.msk.bf16.gmra.mxu1 %vm3595_vm7, %v6535_v22 }
 0xf83   :  { %v6622_v26 = vpop.f32.mrf.mxu1 }
 0xf8b   :  { %v12522_v47 = vpop.f32.mrf.mxu1 }
 0xf93   :  { %v6627_v14 = vpop.f32.mrf.mxu1 }
 0xf9b   :  { %v6629_v46 = vpop.f32.mrf.mxu1 }
 0xfa3   :  { %v6632_v17 = vpop.f32.mrf.mxu1 }
 0xfab   :  { %v6634_v1 = vpop.f32.mrf.mxu1 }
 0xfac   :  { %v6635_v55 = vadd.f32 %v6634_v1, %v12526_v20 }
 0xfae   :  { %v12562_v58 = vsel %vm12529_vm11, %v6635_v55, -inf }
 0xfb3   :  { %v6637_v3 = vpop.f32.mrf.mxu1 }
 0xfb4   :  { %v6638_v5 = vadd.f32 %v6637_v3, %v12526_v20 }
 0xfb6   :  { %v12550_v25 = vsel %vm12529_vm11, %v6638_v5, -inf }
 0xfbb   :  { %v6639_v40 = vpop.f32.mrf.mxu1 }
 0xfc3   :  { %v6642_v48 = vpop.f32.mrf.mxu1 }
 0xfcb   :  { %v6644_v30 = vpop.f32.mrf.mxu1 }
 0xfcc   :  { %v6645_v5 = vadd.f32 %v6644_v30, %v12526_v20  ;;  %v6630_v30 = vadd.f32 %v6629_v46, %v12526_v20 }
 0xfce   :  { %v12592_v55 = vsel %vm12529_vm11, %v6630_v30, -inf }
 0xfd3   :  { %v6647_v45 = vpop.f32.mrf.mxu1 }
 0xfd4   :  { %v6648_v1 = vadd.f32 %v6647_v45, %v12526_v20  ;;  %v6628_v45 = vadd.f32 %v6627_v14, %v12526_v20  ;;  %v6623_v14 = vadd.f32 %v6622_v26, %v12526_v20 }
 0xfdb   :  { %v6649_v61 = vpop.f32.mrf.mxu1 }
 0xfdc   :  { %v6650_v44 = vadd.f32 %v6649_v61, %v12526_v20 }
 0xfde   :  { %v12541_v49 = vsel %vm12529_vm11, %v6650_v44, -inf }
 0xfe3   :  { %v6652_v13 = vpop.f32.mrf.mxu1 }
 0xfe4   :  { %v6653_v31 = vadd.f32 %v6652_v13, %v12526_v20  ;;  %v6643_v13 = vadd.f32 %v6642_v48, %v12526_v20 }
 0xfe6   :  { %v12535_v0 = vsel %vm12529_vm11, %v6653_v31, -inf  ;;  %v6674_v31 = vsel %vm12529_vm11, %v6648_v1, -inf  ;;  %v6672_v44 = vsel %vm12529_vm11, %v6643_v13, -inf }
 0xfe7   :  { %6704 = vmax.xlane.f32.xlu1 %v12535_v0 }
 0xfeb   :  { %v6654_v32 = vpop.f32.mrf.mxu1 }
 0xfec   :  { %v6655_v8 = vadd.f32 %v6654_v32, %v12526_v20  ;;  %v6640_v32 = vadd.f32 %v6639_v40, %v12526_v20  ;;  %v12585_v40 = vsel %vm12529_vm11, %v6628_v45, -inf }
 0xfee   :  { %v6677_v61 = vsel %vm12529_vm11, %v6655_v8, -inf  ;;  %v6671_v48 = vsel %vm12529_vm11, %v6640_v32, -inf }
 0xfef   :  { %6702 = vmax.xlane.f32.xlu1 %v12541_v49 }
 0xff3   :  { %v6657_v24 = vpop.f32.mrf.mxu1 }
 0xff4   :  { %v6658_v38 = vadd.f32 %v6657_v24, %v12526_v20  ;;  %v6673_v24 = vsel %vm12529_vm11, %v6645_v5, -inf }
 0xff6   :  { %v6678_v60 = vsel %vm12529_vm11, %v6658_v38, -inf  ;;  %v6633_v38 = vadd.f32 %v6632_v17, %v12526_v20  ;;  %v12598_v17 = vsel %vm12529_vm11, %v6623_v14, -inf }
 0xff7   :  { %6708 = vmax.xlane.f32.xlu2 %v6678_v60  ;;  %6692 = vmax.xlane.f32.xlu1 %v12550_v25 }
 0xff8   :  { %v12581_v8 = vsel %vm12529_vm11, %v6633_v38, -inf }
 0xffb   :  { %v6659_v36 = vpop.f32.mrf.mxu1 }
 0xffc   :  { %v6660_v22 = vadd.f32 %v6659_v36, %v12526_v20 }
 0xffe   :  { %v6679_v3 = vsel %vm12529_vm11, %v6660_v22, -inf }
 0xfff   :  { %6710 = vmax.xlane.f32.xlu0 %v6679_v3  ;;  %6706 = vmax.xlane.f32.xlu2 %v6677_v61 }
0x1000   :  { %6690 = vmax.xlane.f32.xlu1 %v12562_v58 }
0x1007   :  { %6700 = vmax.xlane.f32.xlu0 %v6674_v31  ;;  %6696 = vmax.xlane.f32.xlu2 %v6672_v44 }
0x100f   :  { %6698 = vmax.xlane.f32.xlu0 %v6673_v24  ;;  %6694 = vmax.xlane.f32.xlu2 %v6671_v48 }
0x1017   :  { %6688 = vmax.xlane.f32.xlu0 %v12581_v8  ;;  %6684 = vmax.xlane.f32.xlu2 %v12585_v40 }
0x101f   :  { %6686 = vmax.xlane.f32.xlu0 %v12592_v55 }
0x1027   :  { %6680 = vmax.xlane.f32.xlu0 %v12598_v17 }
0x105a   :  { %v6705_v13 = vpop.xlane.xlu1 %6704 }
0x105b   :  { %v6724_v26 = vsub.f32 %v12535_v0, %v6705_v13 }
0x1062   :  { %v6703_v14 = vpop.xlane.xlu1 %6702 }
0x106a   :  { %v6709_v36 = vpop.xlane.xlu2 %6708 }
0x106b   :  { %v6726_v22 = vsub.f32 %v6678_v60, %v6709_v36  ;;  %v6625_v60 = vadd.f32 %v12522_v47, %v12526_v20  ;;  %v6752_v36 = vmul.f32 1.442695, %v6724_v26  ;;  %v6693_v47 = vpop.xlane.xlu1 %6692 }
0x106d   :  { %v6756_v1 = vmul.f32 1.442695, %v6726_v22  ;;  %v12611_v0 = vsel %vm12529_vm11, %v6625_v60, -inf }
0x106f   :  { %8553 = vpow2.f32 %v6756_v1 }
0x1072   :  { %v6711_v46 = vpop.xlane.xlu0 %6710  ;;  %v6707_v32 = vpop.xlane.xlu2 %6706 }
0x1073   :  { %v6727_v5 = vsub.f32 %v6679_v3, %v6711_v46  ;;  %v6725_v45 = vsub.f32 %v6677_v61, %v6707_v32 }
0x1075   :  { %v12601_v38 = vpop.eup %8553  ;;  %v6758_v30 = vmul.f32 1.442695, %v6727_v5  ;;  %v6754_v18 = vmul.f32 1.442695, %v6725_v45 }
0x1076   :  { %6788 = vadd.xlane.f32.xlu1 %v12601_v38 }
0x1077   :  { %8555 = vpow2.f32 %v6758_v30 }
0x1078   :  { %8557 = vpow2.f32 %v6754_v18  ;;  %v6723_v18 = vsub.f32 %v12541_v49, %v6703_v14  ;;  %v6718_v14 = vsub.f32 %v12550_v25, %v6693_v47 }
0x1079   :  { %8559 = vpow2.f32 %v6752_v36  ;;  %v6691_v36 = vpop.xlane.xlu1 %6690 }
0x107a   :  { %v6701_v22 = vpop.xlane.xlu0 %6700  ;;  %v6697_v1 = vpop.xlane.xlu2 %6696  ;;  %v6717_v47 = vsub.f32 %v12562_v58, %v6691_v36  ;;  %v7199_v36 = vld [vmem:[#allocation6 + $0x408] sm:$0xf] }
0x107b   :  { %v6722_v39 = vsub.f32 %v6674_v31, %v6701_v22  ;;  %v6720_v3 = vsub.f32 %v6672_v44, %v6697_v1 }
0x107d   :  { %v12607_v61 = vpop.eup %8555  ;;  %v6748_v46 = vmul.f32 1.442695, %v6722_v39  ;;  %v6744_v32 = vmul.f32 1.442695, %v6720_v3  ;;  %v6750_v39 = vmul.f32 1.442695, %v6723_v18 }
0x107e   :  { %v12613_v13 = vpop.eup %8557  ;;  %6790 = vadd.xlane.f32.xlu2 %v12607_v61  ;;  %6682 = vmax.xlane.f32.xlu1 %v12611_v0 }
0x107f   :  { %8561 = vpow2.f32 %v6748_v46  ;;  %6786 = vadd.xlane.f32.xlu0 %v12613_v13  ;;  %v12619_v5 = vpop.eup %8559 }
0x1080   :  { %8563 = vpow2.f32 %v6744_v32 }
0x1081   :  { %8565 = vpow2.f32 %v6750_v39 }
0x1082   :  { %v6699_v20 = vpop.xlane.xlu0 %6698  ;;  %v6695_v31 = vpop.xlane.xlu2 %6694 }
0x1083   :  { %v6721_v53 = vsub.f32 %v6673_v24, %v6699_v20  ;;  %v6719_v44 = vsub.f32 %v6671_v48, %v6695_v31  ;;  %v6740_v24 = vmul.f32 1.442695, %v6718_v14 }
0x1085   :  { %v12621_v45 = vpop.eup %8561  ;;  %v6746_v30 = vmul.f32 1.442695, %v6721_v53  ;;  %v6742_v49 = vmul.f32 1.442695, %v6719_v44 }
0x1086   :  { %v12623_v26 = vpop.eup %8563  ;;  %6784 = vadd.xlane.f32.xlu2 %v12619_v5  ;;  %6780 = vadd.xlane.f32.xlu1 %v12621_v45 }
0x1087   :  { %8567 = vpow2.f32 %v6746_v30  ;;  %6776 = vadd.xlane.f32.xlu0 %v12623_v26  ;;  %v12631_v3 = vpop.eup %8565 }
0x1088   :  { %8569 = vpow2.f32 %v6742_v49 }
0x1089   :  { %8571 = vpow2.f32 %v6740_v24 }
0x108a   :  { %v6689_v48 = vpop.xlane.xlu0 %6688  ;;  %v6685_v60 = vpop.xlane.xlu2 %6684 }
0x108b   :  { %v6716_v22 = vsub.f32 %v12581_v8, %v6689_v48  ;;  %v6714_v1 = vsub.f32 %v12585_v40, %v6685_v60  ;;  %v6738_v8 = vmul.f32 1.442695, %v6717_v47  ;;  %v6935_v48 = vld [vmem:[#allocation6 + $0x220] sm:$0xf]  ;;  %v7143_v60 = vld [vmem:[#allocation6 + $0x3c8] sm:$0xf] }
0x108c   :  { %v6932_v47 = vld [vmem:[#allocation6 + $0x208] sm:$0xff] }
0x108d   :  { %v12633_v46 = vpop.eup %8567  ;;  %v6736_v25 = vmul.f32 1.442695, %v6716_v22  ;;  %v6732_v32 = vmul.f32 1.442695, %v6714_v1  ;;  %v6990_v22 = vld [vmem:[#allocation6 + $0x258] sm:$0xff]  ;;  %v6933_v1 = vld [vmem:[#allocation6 + $0x210] sm:$0xff] }
0x108e   :  { %v12635_v18 = vpop.eup %8569  ;;  %6782 = vadd.xlane.f32.xlu2 %v12631_v3  ;;  %6778 = vadd.xlane.f32.xlu1 %v12633_v46 }
0x108f   :  { %8573 = vpow2.f32 %v6736_v25  ;;  %6774 = vadd.xlane.f32.xlu0 %v12635_v18  ;;  %v12642_v20 = vpop.eup %8571  ;;  %v7141_v25 = vld [vmem:[#allocation6 + $0x3b8] sm:$0xff] }
0x1090   :  { %8575 = vpow2.f32 %v6732_v32  ;;  %v7197_v32 = vld [vmem:[#allocation6 + $0x3f8] sm:$0xff] }
0x1091   :  { %8577 = vpow2.f32 %v6738_v8  ;;  %v6988_v8 = vld [vmem:[#allocation6 + $0x248] sm:$0xff] }
0x1092   :  { %v6687_v40 = vpop.xlane.xlu0 %6686 }
0x1093   :  { %v6715_v39 = vsub.f32 %v12592_v55, %v6687_v40  ;;  %v7196_v40 = vld [vmem:[#allocation6 + $0x3f0] sm:$0xff] }
0x1095   :  { %v12644_v31 = vpop.eup %8573  ;;  %v6734_v53 = vmul.f32 1.442695, %v6715_v39  ;;  %v7139_v39 = vld [vmem:[#allocation6 + $0x3a8] sm:$0xff] }
0x1096   :  { %v12646_v44 = vpop.eup %8575  ;;  %6772 = vadd.xlane.f32.xlu2 %v12642_v20  ;;  %6768 = vadd.xlane.f32.xlu1 %v12644_v31 }
0x1097   :  { %8579 = vpow2.f32 %v6734_v53  ;;  %6764 = vadd.xlane.f32.xlu0 %v12646_v44  ;;  %v12652_v49 = vpop.eup %8577  ;;  %v6987_v53 = vld [vmem:[#allocation6 + $0x240] sm:$0xff] }
0x109a   :  { %v6681_v58 = vpop.xlane.xlu0 %6680 }
0x109b   :  { %v6712_v30 = vsub.f32 %v12598_v17, %v6681_v58  ;;  %v7142_v17 = vld [vmem:[#allocation6 + $0x3c0] sm:$0xff] }
0x109d   :  { %v12654_v55 = vpop.eup %8579  ;;  %v6728_v14 = vmul.f32 1.442695, %v6712_v30  ;;  %v6930_v30 = vld [vmem:[#allocation6 + $0x1f8] sm:$0xff] }
0x109e   :  { %6770 = vadd.xlane.f32.xlu2 %v12652_v49  ;;  %6766 = vadd.xlane.f32.xlu1 %v12654_v55 }
0x109f   :  { %8581 = vpow2.f32 %v6728_v14  ;;  %v7138_v14 = vld [vmem:[#allocation6 + $0x3a0] sm:$0xff] }
0x10a5   :  { %v12658_v24 = vpop.eup %8581 }
0x10a6   :  { %6760 = vadd.xlane.f32.xlu2 %v12658_v24 }
0x10b7   :  { %6973 = vperm.xlu1 %7926, %v6935_v48  }
0x10be   :  { %7181 = vperm.xlu2 %7927, %v7143_v60  }
0x10bf   :  { %7237 = vperm.xlu1 %7926, %v7199_v36  }
0x10c6   :  { %7176 = vperm.xlu2 %7927, %v7142_v17   ;;  %v7194_v17 = vld [vmem:[#allocation6 + $0x3e0] sm:$0xff] }
0x10c7   :  { %7024 = vperm.xlu1 %7926, %v6990_v22  }
0x10ce   :  { %6963 = vperm.xlu2 %7927, %v6933_v1   ;;  %v6929_v1 = vld [vmem:[#allocation6 + $0x1f0] sm:$0xff] }
0x10cf   :  { %7171 = vperm.xlu1 %7926, %v7141_v25  }
0x10d6   :  { %7227 = vperm.xlu2 %7927, %v7197_v32  }
0x10d7   :  { %6958 = vperm.xlu1 %7926, %v6932_v47  }
0x10de   :  { %7014 = vperm.xlu2 %7927, %v6988_v8  }
0x10df   :  { %7222 = vperm.xlu1 %7926, %v7196_v40  }
0x10e6   :  { %7161 = vperm.xlu2 %7927, %v7139_v39  }
0x10e7   :  { %7009 = vperm.xlu1 %7926, %v6987_v53  }
0x10e9   :  { %v6789_v58 = vpop.xlane.xlu1 %6788 }
0x10ea   :  { %8583 = vrcp.f32 %v6789_v58 }
0x10ee   :  { %6948 = vperm.xlu2 %7927, %v6930_v30   ;;  %v6985_v30 = vld [vmem:[#allocation6 + $0x230] sm:$0xff] }
0x10ef   :  { %7156 = vperm.xlu1 %7926, %v7138_v14   ;;  %v7193_v14 = vld [vmem:[#allocation6 + $0x3d8] sm:$0xff] }
0x10f0   :  { %v8584_v32 = vpop.eup %8583 }
0x10f1   :  { %v6791_v48 = vpop.xlane.xlu2 %6790  ;;  %v6683_v60 = vpop.xlane.xlu1 %6682  ;;  %v6822_v8 = vmul.f32 %v8584_v32, %v12601_v38  ;;  %v6984_v32 = vld [vmem:[#allocation6 + $0x228] sm:$0xff] }
0x10f2   :  { %8585 = vrcp.f32 %v6791_v48  ;;  %v6713_v36 = vsub.f32 %v12611_v0, %v6683_v60  ;;  %v6787_v25 = vpop.xlane.xlu0 %6786 }
0x10f4   :  { %v6730_v22 = vmul.f32 1.442695, %v6713_v36 }
0x10f6   :  { %8587 = vpow2.f32 %v6730_v22  ;;  %7212 = vperm.xlu2 %7927, %v7194_v17  }
0x10f7   :  { %6943 = vperm.xlu1 %7926, %v6929_v1   ;;  %8589 = vrcp.f32 %v6787_v25  ;;  %v7136_v25 = vld [vmem:[#allocation6 + $0x390] sm:$0xff] }
0x10f8   :  { %v8586_v47 = vpop.eup %8585 }
0x10f9   :  { %v6823_v40 = vmul.f32 %v8586_v47, %v12607_v61  ;;  %v6785_v39 = vpop.xlane.xlu2 %6784  ;;  %v6781_v53 = vpop.xlane.xlu1 %6780 }
0x10fa   :  { %8591 = vrcp.f32 %v6785_v39  ;;  %v6777_v17 = vpop.xlane.xlu0 %6776 }
0x10fb   :  { %v6864_v58 = vpack.c.bf16 %v6823_v40, %v6822_v8  ;;  %8593 = vrcp.f32 %v6781_v53 }
0x10fc   :  { %v12664_v0 = vpop.eup %8587 }
0x10fd   :  { %6865 = vmatpush.bf16.xpose.msrb.mxu2 %v6864_v58  ;;  %6762 = vadd.xlane.f32.xlu0 %v12664_v0  ;;  %v8590_v48 = vpop.eup %8589 }
0x10fe   :  { %6999 = vperm.xlu2 %7927, %v6985_v30   ;;  %v6821_v61 = vmul.f32 %v8590_v48, %v12613_v13 }
0x10ff   :  { %7207 = vperm.xlu1 %7926, %v7193_v14   ;;  %v6991_v14 = vld [vmem:[#allocation6 + $0x260] sm:$0xf] }
0x1100   :  { %v8592_v60 = vpop.eup %8591 }
0x1101   :  { %v6783_v36 = vpop.xlane.xlu2 %6782  ;;  %v6820_v38 = vmul.f32 %v8592_v60, %v12619_v5  ;;  %v6779_v22 = vpop.xlane.xlu1 %6778 }
0x1102   :  { %8595 = vrcp.f32 %v6783_v36  ;;  %v8594_v47 = vpop.eup %8593  ;;  %v6775_v58 = vpop.xlane.xlu0 %6774 }
0x1103   :  { %v6863_v1 = vpack.c.bf16 %v6821_v61, %v6820_v38  ;;  %8597 = vrcp.f32 %v6779_v22  ;;  %v6818_v39 = vmul.f32 %v8594_v47, %v12621_v45 }
0x1104   :  { %8599 = vrcp.f32 %v6777_v17 }
0x1105   :  { %6866 = vmatpush.bf16.xpose.msrb.mxu2 %v6863_v1 }
0x1106   :  { %7146 = vperm.xlu2 %7927, %v7136_v25  }
0x1107   :  { %6994 = vperm.xlu1 %7926, %v6984_v32  }
0x1108   :  { %v8596_v8 = vpop.eup %8595 }
0x1109   :  { %v6773_v40 = vpop.xlane.xlu2 %6772  ;;  %v6819_v5 = vmul.f32 %v8596_v8, %v12631_v3  ;;  %v8598_v13 = vpop.eup %8597  ;;  %v6934_v3 = vld [vmem:[#allocation6 + $0x218] sm:$0xff] }
0x110a   :  { %v8600_v30 = vpop.eup %8599  ;;  %8601 = vrcp.f32 %v6773_v40  ;;  %v6817_v48 = vmul.f32 %v8598_v13, %v12633_v46  ;;  %v6769_v60 = vpop.xlane.xlu1 %6768  ;;  %v6989_v13 = vld [vmem:[#allocation6 + $0x250] sm:$0xff] }
0x110b   :  { %v6862_v53 = vpack.c.bf16 %v6819_v5, %v6818_v39  ;;  %8603 = vrcp.f32 %v6775_v58  ;;  %v6816_v36 = vmul.f32 %v8600_v30, %v12623_v26  ;;  %v6765_v47 = vpop.xlane.xlu0 %6764  ;;  %v7198_v26 = vld [vmem:[#allocation6 + $0x400] sm:$0xff] }
0x110d   :  { %6867 = vmatpush.bf16.xpose.msrb.mxu2 %v6862_v53  ;;  %v6861_v61 = vpack.c.bf16 %v6817_v48, %v6816_v36  ;;  %v6931_v48 = vld [vmem:[#allocation6 + $0x200] sm:$0xff] }
0x1110   :  { %v8602_v17 = vpop.eup %8601 }
0x1111   :  { %7029 = vperm.xlu0 %7925, %v6991_v14   ;;  %v6771_v38 = vpop.xlane.xlu2 %6770  ;;  %v8604_v45 = vpop.eup %8603  ;;  %v6814_v22 = vmul.f32 %v8602_v17, %v12642_v20  ;;  %v7140_v14 = vld [vmem:[#allocation6 + $0x3b0] sm:$0xff] }
0x1112   :  { %8605 = vrcp.f32 %v6771_v38  ;;  %v6815_v1 = vmul.f32 %v8604_v45, %v12635_v18  ;;  %v6767_v25 = vpop.xlane.xlu1 %6766  ;;  %v7192_v17 = vld [vmem:[#allocation6 + $0x3d0] sm:$0xff] }
0x1113   :  { %8607 = vrcp.f32 %v6769_v60  ;;  %v6986_v60 = vld [vmem:[#allocation6 + $0x238] sm:$0xff] }
0x1114   :  { %v6860_v46 = vpack.c.bf16 %v6815_v1, %v6814_v22  ;;  %8609 = vrcp.f32 %v6767_v25 }
0x1115   :  { %6868 = vmatpush.bf16.xpose.msrb.mxu2 %v6861_v61  ;;  %8611 = vrcp.f32 %v6765_v47  ;;  %v6928_v61 = vld [vmem:[#allocation6 + $0x1e8] sm:$0xff]  ;;  %v3977_v47 = vadd.f32 %v11955_v6, %v11953_v41  ;;  %v13245_v6 = vpack.c.bf16 %v12461_v15, %v12459_v7 }
0x1118   :  { %v8606_v32 = vpop.eup %8605 }
0x1119   :  { %6968 = vperm.xlu0 %7925, %v6934_v3   ;;  %v8608_v8 = vpop.eup %8607  ;;  %v6813_v40 = vmul.f32 %v8606_v32, %v12652_v49  ;;  %v7195_v49 = vld [vmem:[#allocation6 + $0x3e8] sm:$0xff]  ;;  %v6761_v36 = vpop.xlane.xlu2 %6760 }
0x111a   :  { %v6812_v39 = vmul.f32 %v8608_v8, %v12644_v31  ;;  %v8610_v20 = vpop.eup %8609  ;;  %v7137_v31 = vld [vmem:[#allocation6 + $0x398] sm:$0xff]  ;;  %8613 = vrcp.f32 %v6761_v36 }
0x111b   :  { %v8612_v53 = vpop.eup %8611  ;;  %v6811_v18 = vmul.f32 %v8610_v20, %v12654_v55 }
0x111c   :  { %v6859_v5 = vpack.c.bf16 %v6813_v40, %v6812_v39  ;;  %v6810_v58 = vmul.f32 %v8612_v53, %v12646_v44 }
0x111d   :  { %6869 = vmatpush.bf16.xpose.msrb.mxu2 %v6860_v46 }
0x111e   :  { %v6858_v30 = vpack.c.bf16 %v6811_v18, %v6810_v58 }
0x1120   :  { %v8614_v46 = vpop.eup %8613 }
0x1121   :  { %7232 = vperm.xlu0 %7925, %v7198_v26   ;;  %v12679_v55 = vpop.permute.xlu2 %7181  ;;  %v6808_v8 = vmul.f32 %v8614_v46, %v12658_v24 }
0x1125   :  { %6870 = vmatpush.bf16.xpose.msrb.mxu2 %v6859_v5  ;;  %v12693_v5 = vstv %s3531_s12 }
0x1126   :  { %v3987_v20 = vmul.f32 %v12693_v5, %v3977_v47  ;;  %v3984_v58 = vmul.f32 %v12693_v5, %v11907_v54  ;;  %v13247_v54 = vld [vmem:[#allocation38_spill] sm:$0xff]  ;;  %v6843_v47 = vpop.f32.mrf.mxu0 }
0x1129   :  { %7019 = vperm.xlu0 %7925, %v6989_v13   ;;  %v6974_v38 = vpop.permute.xlu1 %6973  ;;  %v12683_v45 = vpop.permute.xlu2 %7176  ;;  %v13244_v13 = vld [vmem:[#allocation30_spill] sm:$0xff] }
0x112a   :  { %v3995_v18 = vadd.f32 %v3987_v20, %v13244_v13 }
0x112d   :  { %6871 = vmatpush.bf16.xpose.msrb.mxu2 %v6858_v30  ;;  %v6983_v30 = vmul.f32 %v6974_v38, %v3995_v18  ;;  %v13248_v18 = vpack.c.bf16 %v12469_v56, %v12467_v4 }
0x1131   :  { %7166 = vperm.xlu0 %7925, %v7140_v14   ;;  %v12681_v44 = vpop.permute.xlu1 %7237  ;;  %v6964_v22 = vpop.permute.xlu2 %6963  ;;  %v3986_v14 = vmul.f32 %v12693_v5, %v11951_v42  ;;  %v3972_v42 = vadd.f32 %v11949_v12, %v11947_v51 }
0x1133   :  { %v3994_v38 = vadd.f32 %v3986_v14, %v13247_v54  ;;  %v6845_v14 = vpop.f32.mrf.mxu0  ;;  %v6844_v54 = vadd.f32 %v6843_v47, %v12477_v9 }
0x1139   :  { %6953 = vperm.xlu0 %7925, %v6931_v48   ;;  %v7025_v3 = vpop.permute.xlu1 %7024  ;;  %v12691_v40 = vpop.permute.xlu2 %7227  ;;  %v13246_v48 = vld [vmem:[#allocation64_spill] sm:$0xff] }
0x1141   :  { %7217 = vperm.xlu0 %7925, %v7195_v49   ;;  %v12685_v25 = vpop.permute.xlu1 %7171  ;;  %v7015_v41 = vpop.permute.xlu2 %7014  ;;  %v3992_v49 = vadd.f32 %v3984_v58, %v13246_v48  ;;  %v3985_v58 = vmul.f32 %v12693_v5, %v3972_v42 }
0x1149   :  { %7004 = vperm.xlu0 %7925, %v6986_v60   ;;  %v6959_v53 = vpop.permute.xlu1 %6958  ;;  %v12710_v15 = vpop.permute.xlu2 %7161 }
0x114a   :  { %v6980_v36 = vmul.f32 %v6959_v53, %v3992_v49 }
0x1151   :  { %7151 = vperm.xlu0 %7925, %v7137_v31   ;;  %v12705_v31 = vpop.permute.xlu1 %7222  ;;  %v12726_v12 = vpop.permute.xlu2 %6948 }
0x1159   :  { %6938 = vperm.xlu0 %7925, %v6928_v61  }
0x1161   :  { %7202 = vperm.xlu0 %7925, %v7192_v17  }
0x1170   :  { %v6763_v1 = vpop.xlane.xlu0 %6762 }
0x1171   :  { %8615 = vrcp.f32 %v6763_v1  ;;  %v12708_v1 = vadd.f32 %v7015_v41, %v6980_v36  ;;  %v13249_v41 = vld [vmem:[#allocation35_spill] sm:$0xff] }
0x1173   :  { %vm7116_vm6 = vcmp.gt.f32.partialorder %v12708_v1, 20.0 }
0x1177   :  { %v8616_v32 = vpop.eup %8615 }
0x1178   :  { %v6809_v26 = vmul.f32 %v8616_v32, %v12664_v0 }
0x117a   :  { %v6857_v39 = vpack.c.bf16 %v6809_v26, %v6808_v8  ;;  %v7044_v8 = vmin.f32 %v12708_v1, 20.0 }
0x117c   :  { %6872 = vmatpush.bf16.xpose.msrb.mxu2 %v6857_v39  ;;  %v12718_v39 = vpop.permute.xlu1 %7009 }
0x1183   :  { %6873 = vmatmul.bf16.vlgmr.msrb.gmra.mxu2 %v13245_v6  ;;  %v7030_v24 = vpop.permute.xlu0 %7029  ;;  %v3993_v6 = vadd.f32 %v3985_v58, %v13249_v41  ;;  %v13250_v41 = vld [vmem:[#allocation27_spill] sm:$0xff] }
0x1184   :  { %v7039_v0 = vadd.f32 %v7030_v24, %v6983_v30  ;;  %v7056_v30 = vmul.f32 1.442695, %v7044_v8  ;;  %v12729_v49 = vpop.permute.xlu1 %7156 }
0x1185   :  { %v6981_v48 = vmul.f32 %v6964_v22, %v3993_v6  ;;  %v6846_v22 = vadd.f32 %v6845_v14, %v12479_v19 }
0x1186   :  { %v7047_v60 = vmin.f32 %v7039_v0, 20.0  ;;  %vm7119_vm0 = vcmp.gt.f32.partialorder %v7039_v0, 20.0 }
0x1188   :  { %v7062_v61 = vmul.f32 1.442695, %v7047_v60 }
0x118a   :  { %8617 = vpow2.f32 %v7062_v61 }
0x118b   :  { %v6969_v17 = vpop.permute.xlu0 %6968 }
0x118c   :  { %v6982_v7 = vmul.f32 %v6969_v17, %v3994_v38 }
0x118e   :  { %v12712_v46 = vadd.f32 %v7025_v3, %v6982_v7  ;;  %v3962_v7 = vadd.f32 %v11891_v29, %v11893_v2  ;;  %v3967_v29 = vadd.f32 %v11900_v52, %v11902_v21  ;;  %v6848_v2 = vpop.f32.mrf.mxu0  ;;  %v13251_v52 = vld [vmem:[#allocation57_spill] sm:$0xff] }
0x1190   :  { %v8618_v32 = vpop.eup %8617  ;;  %v7046_v26 = vmin.f32 %v12712_v46, 20.0  ;;  %v3981_v9 = vmul.f32 %v12693_v5, %v3962_v7  ;;  %vm7118_vm4 = vcmp.gt.f32.partialorder %v12712_v46, 20.0 }
0x1191   :  { %v7071_v20 = vadd.f32 1.0, %v8618_v32 }
0x1192   :  { %v7060_v53 = vmul.f32 1.442695, %v7046_v26  ;;  %v3989_v6 = vadd.f32 %v3981_v9, %v13250_v41 }
0x1193   :  { %v7079_v13 = vmul.f32 %v7071_v20, %v7071_v20  ;;  %6878 = vmatmul.bf16.gmra.mxu2 %v13248_v18  ;;  %v12723_v3 = vpop.permute.xlu0 %7232  ;;  %v12738_v18 = vpop.permute.xlu2 %7212 }
0x1194   :  { %8619 = vpow2.f32 %v7060_v53  ;;  %v6855_v53 = vpack.c.bf16 %v6846_v22, %v6844_v54 }
0x1195   :  { %v7095_v51 = vadd.f32 1.0, %v7079_v13  ;;  %v7856_v60 = vadd.f32 -1.0, %v7079_v13 }
0x1197   :  { %8621 = vrcp.f32 %v7095_v51  ;;  %v3983_v51 = vmul.f32 %v12693_v5, %v3967_v29 }
0x1198   :  { %8623 = vpow2.f32 %v7056_v30  ;;  %v6944_v30 = vpop.permute.xlu1 %6943 }
0x1199   :  { %v3991_v21 = vadd.f32 %v3983_v51, %v13251_v52 }
0x119a   :  { %v8620_v24 = vpop.eup %8619 }
0x119b   :  { %v7070_v4 = vadd.f32 1.0, %v8620_v24  ;;  %v7020_v56 = vpop.permute.xlu0 %7019  ;;  %v7000_v54 = vpop.permute.xlu2 %6999 }
0x119c   :  { %v12731_v36 = vadd.f32 %v7020_v56, %v6981_v48  ;;  %v6977_v48 = vmul.f32 %v6944_v30, %v3989_v6  ;;  %v3982_v30 = vmul.f32 %v12693_v5, %v11895_v35 }
0x119d   :  { %v8622_v61 = vpop.eup %8621  ;;  %v7078_v38 = vmul.f32 %v7070_v4, %v7070_v4 }
0x119e   :  { %v8624_v17 = vpop.eup %8623  ;;  %v7111_v32 = vmul.f32 %v8622_v61, %v7856_v60  ;;  %v7045_v42 = vmin.f32 %v12731_v36, 20.0  ;;  %v12750_v22 = vadd.f32 %v7000_v54, %v6977_v48  ;;  %vm7117_vm5 = vcmp.gt.f32.partialorder %v12731_v36, 20.0 }
0x119f   :  { %v7094_v8 = vadd.f32 1.0, %v7078_v38  ;;  %v7068_v13 = vadd.f32 1.0, %v8624_v17  ;;  %v7855_v24 = vadd.f32 -1.0, %v7078_v38 }
0x11a0   :  { %v7127_v26 = vsel %vm7119_vm0, 1.0, %v7111_v32  ;;  %v7058_v20 = vmul.f32 1.442695, %v7045_v42  ;;  %v6850_v42 = vpop.f32.mrf.mxu0  ;;  %vm7113_vm9 = vcmp.gt.f32.partialorder %v12750_v22, 20.0 }
0x11a1   :  { %v7135_v58 = vmul.f32 %v7127_v26, %v7039_v0  ;;  %8625 = vrcp.f32 %v7094_v8  ;;  %v7076_v47 = vmul.f32 %v7068_v13, %v7068_v13  ;;  %v6849_v8 = vadd.f32 %v6848_v2, %v12483_v11 }
0x11a2   :  { %8627 = vpow2.f32 %v7058_v20  ;;  %v7041_v13 = vmin.f32 %v12750_v22, 20.0 }
0x11a3   :  { %6883 = vmatmul.bf16.gmra.mxu2 %v6855_v53  ;;  %7352 = vmatpush.xpose.msrb.mxu3 %v7135_v58  ;;  %v12743_v19 = vpop.permute.xlu0 %7166  ;;  %v7092_v56 = vadd.f32 1.0, %v7076_v47  ;;  %v6851_v53 = vadd.f32 %v6850_v42, %v12485_v10  ;;  %v7853_v41 = vadd.f32 -1.0, %v7076_v47 }
0x11a4   :  { %v7050_v11 = vmul.f32 1.442695, %v7041_v13 }
0x11a5   :  { %8629 = vrcp.f32 %v7092_v56  ;;  %v6856_v9 = vpack.c.bf16 %v6851_v53, %v6849_v8  ;;  %v3980_v8 = vmul.f32 %v12693_v5, %v11889_v28 }
0x11a7   :  { %v8626_v0 = vpop.eup %8625 }
0x11a8   :  { %v8628_v14 = vpop.eup %8627  ;;  %v7110_v4 = vmul.f32 %v8626_v0, %v7855_v24  ;;  %v13252_v24 = vld [vmem:[#allocation59_spill] sm:$0xff] }
0x11a9   :  { %v7069_v60 = vadd.f32 1.0, %v8628_v14  ;;  %v3990_v0 = vadd.f32 %v3982_v30, %v13252_v24 }
0x11aa   :  { %v7126_v61 = vsel %vm7118_vm4, 1.0, %v7110_v4 }
0x11ab   :  { %v7077_v17 = vmul.f32 %v7069_v60, %v7069_v60  ;;  %v6954_v7 = vpop.permute.xlu0 %6953  ;;  %v7134_v32 = vmul.f32 %v7126_v61, %v12712_v46  ;;  %v8630_v46 = vpop.eup %8629  ;;  %v6978_v4 = vmul.f32 %v12726_v12, %v3990_v0 }
0x11ac   :  { %v6979_v38 = vmul.f32 %v6954_v7, %v3991_v21  ;;  %v7108_v10 = vmul.f32 %v8630_v46, %v7853_v41 }
0x11ad   :  { %v7093_v26 = vadd.f32 1.0, %v7077_v17  ;;  %7353 = vmatpush.xpose.msrb.mxu3 %v7134_v32  ;;  %v7854_v2 = vadd.f32 -1.0, %v7077_v17 }
0x11ae   :  { %v7035_v20 = vadd.f32 %v12718_v39, %v6979_v38  ;;  %v7124_v56 = vsel %vm7116_vm6, 1.0, %v7108_v10 }
0x11af   :  { %8631 = vrcp.f32 %v7093_v26  ;;  %v7132_v61 = vmul.f32 %v7124_v56, %v12708_v1 }
0x11b0   :  { %v7043_v58 = vmin.f32 %v7035_v20, 20.0  ;;  %vm7115_vm3 = vcmp.gt.f32.partialorder %v7035_v20, 20.0 }
0x11b2   :  { %v7054_v29 = vmul.f32 1.442695, %v7043_v58 }
0x11b3   :  { %6888 = vmatmul.bf16.gmra.mxu2 %v6856_v9  ;;  %v12758_v51 = vpop.permute.xlu0 %7217 }
0x11b4   :  { %8633 = vpow2.f32 %v7054_v29  ;;  %v13253_v29 = vld [vmem:[#allocation34_spill] sm:$0xff] }
0x11b5   :  { %v8632_v39 = vpop.eup %8631  ;;  %8635 = vpow2.f32 %v7050_v11  ;;  %v3988_v46 = vadd.f32 %v3980_v8, %v13253_v29 }
0x11b6   :  { %v7109_v6 = vmul.f32 %v8632_v39, %v7854_v2 }
0x11b8   :  { %v7125_v14 = vsel %vm7117_vm5, 1.0, %v7109_v6 }
0x11b9   :  { %v7133_v48 = vmul.f32 %v7125_v14, %v12731_v36  ;;  %v12766_v36 = vpop.permute.xlu1 %7207 }
0x11ba   :  { %v8634_v35 = vpop.eup %8633 }
0x11bb   :  { %v7067_v60 = vadd.f32 1.0, %v8634_v35  ;;  %7354 = vmatpush.xpose.msrb.mxu3 %v7133_v48  ;;  %v7005_v47 = vpop.permute.xlu0 %7004  ;;  %v8636_v54 = vpop.eup %8635 }
0x11bc   :  { %v7034_v52 = vadd.f32 %v7005_v47, %v6978_v4  ;;  %v7065_v42 = vadd.f32 1.0, %v8636_v54 }
0x11bd   :  { %v7075_v21 = vmul.f32 %v7067_v60, %v7067_v60 }
0x11be   :  { %v7042_v17 = vmin.f32 %v7034_v52, 20.0  ;;  %v7073_v12 = vmul.f32 %v7065_v42, %v7065_v42  ;;  %vm7114_vm8 = vcmp.gt.f32.partialorder %v7034_v52, 20.0 }
0x11bf   :  { %v7091_v7 = vadd.f32 1.0, %v7075_v21  ;;  %7355 = vmatpush.xpose.msrb.mxu3 %v7132_v61  ;;  %v7852_v26 = vadd.f32 -1.0, %v7075_v21 }
0x11c0   :  { %v7052_v32 = vmul.f32 1.442695, %v7042_v17  ;;  %v7089_v58 = vadd.f32 1.0, %v7073_v12  ;;  %v7850_v48 = vadd.f32 -1.0, %v7073_v12 }
0x11c1   :  { %8637 = vrcp.f32 %v7091_v7  ;;  %v6995_v6 = vpop.permute.xlu1 %6994 }
0x11c2   :  { %8639 = vpow2.f32 %v7052_v32 }
0x11c3   :  { %v12768_v38 = vpop.permute.xlu0 %7151  ;;  %8641 = vrcp.f32 %v7089_v58 }
0x11c7   :  { %v8638_v53 = vpop.eup %8637 }
0x11c8   :  { %v8640_v13 = vpop.eup %8639  ;;  %v7107_v1 = vmul.f32 %v8638_v53, %v7852_v26 }
0x11c9   :  { %v7066_v9 = vadd.f32 1.0, %v8640_v13  ;;  %v8642_v0 = vpop.eup %8641 }
0x11ca   :  { %v7123_v30 = vsel %vm7115_vm3, 1.0, %v7107_v1  ;;  %v7105_v56 = vmul.f32 %v8642_v0, %v7850_v48 }
0x11cb   :  { %v7074_v11 = vmul.f32 %v7066_v9, %v7066_v9  ;;  %v6939_v2 = vpop.permute.xlu0 %6938  ;;  %v7131_v41 = vmul.f32 %v7123_v30, %v7035_v20 }
0x11cc   :  { %v6976_v39 = vmul.f32 %v6939_v2, %v3988_v46  ;;  %v7121_v21 = vsel %vm7113_vm9, 1.0, %v7105_v56 }
0x11cd   :  { %v7090_v10 = vadd.f32 1.0, %v7074_v11  ;;  %7356 = vmatpush.xpose.msrb.mxu3 %v7131_v41  ;;  %v7851_v14 = vadd.f32 -1.0, %v7074_v11  ;;  %v7129_v17 = vmul.f32 %v7121_v21, %v12750_v22 }
0x11ce   :  { %v7032_v24 = vadd.f32 %v6995_v6, %v6976_v39 }
0x11cf   :  { %8643 = vrcp.f32 %v7090_v10 }
0x11d0   :  { %v7040_v28 = vmin.f32 %v7032_v24, 20.0  ;;  %vm7112_vm10 = vcmp.gt.f32.partialorder %v7032_v24, 20.0 }
0x11d2   :  { %v7048_v5 = vmul.f32 1.442695, %v7040_v28 }
0x11d4   :  { %8645 = vpow2.f32 %v7048_v5 }
0x11d5   :  { %v8644_v35 = vpop.eup %8643 }
0x11d6   :  { %v7106_v4 = vmul.f32 %v8644_v35, %v7851_v14 }
0x11d8   :  { %v7122_v60 = vsel %vm7114_vm8, 1.0, %v7106_v4 }
0x11d9   :  { %v7130_v47 = vmul.f32 %v7122_v60, %v7034_v52  ;;  %v12778_v52 = vld [vmem:[%s12865_s4 + $0x9] sm:$0x3]  ;;  %s7782_s4 = sld [smem:[#allocation9 + $0x1]] }
0x11da   :  { %v8646_v20 = vpop.eup %8645  ;;  %v6450_v53 = vperm.slane %v12778_v52, 0  ;;  %v6894_v22 = vperm.slane %v12778_v52, 1 }
0x11db   :  { %v7064_v61 = vadd.f32 1.0, %v8646_v20  ;;  %7357 = vmatpush.xpose.msrb.mxu3 %v7130_v47 }
0x11dc   :  { %v6451_v1 = vmul.f32 %v6450_v53, %v12497_v57  ;;  %v6452_v46 = vmul.f32 %v6450_v53, %v12499_v50  ;;  %v6456_v28 = vmul.f32 %v6450_v53, %v12507_v43  ;;  %v6454_v48 = vmul.f32 %v6450_v53, %v12503_v16 }
0x11dd   :  { %v7072_v54 = vmul.f32 %v7064_v61, %v7064_v61  ;;  %v6453_v47 = vmul.f32 %v6450_v53, %v12501_v27  ;;  %v6457_v21 = vmul.f32 %v6450_v53, %v12509_v59 }
0x11df   :  { %v7088_v7 = vadd.f32 1.0, %v7072_v54  ;;  %7358 = vmatpush.xpose.msrb.mxu3 %v7129_v17  ;;  %v7849_v32 = vadd.f32 -1.0, %v7072_v54  ;;  %v6911_v35 = vstv %s7782_s4 }
0x11e1   :  { %8647 = vrcp.f32 %v7088_v7 }
0x11e7   :  { %v8648_v42 = vpop.eup %8647 }
0x11e8   :  { %v7104_v12 = vmul.f32 %v8648_v42, %v7849_v32 }
0x11ea   :  { %v7120_v8 = vsel %vm7112_vm10, 1.0, %v7104_v12 }
0x11eb   :  { %v7128_v26 = vmul.f32 %v7120_v8, %v7032_v24  ;;  %v6455_v24 = vmul.f32 %v6450_v53, %v12505_v63 }
0x11ed   :  { %7359 = vmatpush.xpose.msrb.mxu3 %v7128_v26  ;;  %v6458_v26 = vmul.f32 %v6450_v53, %v12511_v33  ;;  %v13255_v33 = vld [vmem:[#allocation28_spill] sm:$0xff] }
0x11f0   :  { %7360 = vmatmul.f32.vlgmr.msrb.gmra.mxu3 %v12778_v52 }
0x1206   :  { %v6874_v13 = vpop.f32.mrf.mxu2 }
0x1207   :  { %v6895_v58 = vmul.f32 %v6894_v22, %v6874_v13 }
0x1209   :  { %v6903_v9 = vadd.f32 %v6895_v58, %v6451_v1  ;;  %v13254_v58 = vld [vmem:[#allocation43_spill] sm:$0xff] }
0x120b   :  { %v6912_v59 = vmul.f32 %v6911_v35, %v6903_v9 }
0x120d   :  { %v6920_v53 = vadd.f32 %v6912_v59, %v13255_v33 }
0x120e   :  { %v6876_v29 = vpop.f32.mrf.mxu2 }
0x120f   :  { %v6896_v30 = vmul.f32 %v6894_v22, %v6876_v29 }
0x1211   :  { %v6904_v11 = vadd.f32 %v6896_v30, %v6452_v46 }
0x1213   :  { %v6913_v1 = vmul.f32 %v6911_v35, %v6904_v11 }
0x1216   :  { %v6879_v2 = vpop.f32.mrf.mxu2 }
0x1217   :  { %v6897_v50 = vmul.f32 %v6894_v22, %v6879_v2  ;;  %v13257_v2 = vld [vmem:[#allocation44_spill] sm:$0xff] }
0x1219   :  { %v6905_v63 = vadd.f32 %v6897_v50, %v6453_v47 }
0x121b   :  { %v6914_v32 = vmul.f32 %v6911_v35, %v6905_v63 }
0x121e   :  { %v6881_v41 = vpop.f32.mrf.mxu2 }
0x121f   :  { %v6898_v0 = vmul.f32 %v6894_v22, %v6881_v41 }
0x1221   :  { %v6906_v56 = vadd.f32 %v6898_v0, %v6454_v48 }
0x1223   :  { %v6915_v54 = vmul.f32 %v6911_v35, %v6906_v56 }
0x1225   :  { %v6923_v12 = vadd.f32 %v6915_v54, %v11517_v37 }
0x1226   :  { %v6884_v39 = vpop.f32.mrf.mxu2 }
0x1227   :  { %v6899_v6 = vmul.f32 %v6894_v22, %v6884_v39 }
0x1229   :  { %v6907_v57 = vadd.f32 %v6899_v6, %v6455_v24 }
0x122b   :  { %v6916_v60 = vmul.f32 %v6911_v35, %v6907_v57  ;;  %v7203_v57 = vpop.permute.xlu0 %7202 }
0x122d   :  { %v6924_v17 = vadd.f32 %v6916_v60, %v11960_v62 }
0x122e   :  { %v6886_v10 = vpop.f32.mrf.mxu2 }
0x122f   :  { %v6900_v5 = vmul.f32 %v6894_v22, %v6886_v10  ;;  %v7188_v8 = vmul.f32 %v12743_v19, %v6924_v17 }
0x1231   :  { %v6908_v14 = vadd.f32 %v6900_v5, %v6456_v28  ;;  %v12803_v37 = vadd.f32 %v12705_v31, %v7188_v8  ;;  %v7147_v31 = vpop.permute.xlu2 %7146 }
0x1232   :  { %v7184_v10 = vmul.f32 %v7147_v31, %v6920_v53 }
0x1233   :  { %v6917_v4 = vmul.f32 %v6911_v35, %v6908_v14  ;;  %vm7324_vm13 = vcmp.gt.f32.partialorder %v12803_v37, 20.0 }
0x1235   :  { %v6925_v43 = vadd.f32 %v6917_v4, %v11968_v34  ;;  %v6922_v34 = vadd.f32 %v6914_v32, %v11269_v23 }
0x1236   :  { %v6889_v20 = vpop.f32.mrf.mxu2 }
0x1237   :  { %v6901_v61 = vmul.f32 %v6894_v22, %v6889_v20  ;;  %v7189_v16 = vmul.f32 %v12685_v25, %v6925_v43  ;;  %v7187_v25 = vmul.f32 %v12710_v15, %v6923_v12  ;;  %v7186_v23 = vmul.f32 %v12729_v49, %v6922_v34 }
0x1238   :  { %v7252_v15 = vmin.f32 %v12803_v37, 20.0 }
0x1239   :  { %v6909_v7 = vadd.f32 %v6901_v61, %v6457_v21  ;;  %v12799_v62 = vadd.f32 %v12691_v40, %v7189_v16  ;;  %v12813_v39 = vadd.f32 %v12758_v51, %v7187_v25  ;;  %v12821_v49 = vadd.f32 %v12738_v18, %v7186_v23 }
0x123a   :  { %v7264_v5 = vmul.f32 1.442695, %v7252_v15 }
0x123b   :  { %v6918_v42 = vmul.f32 %v6911_v35, %v6909_v7  ;;  %v7253_v19 = vmin.f32 %v12799_v62, 20.0  ;;  %v7251_v51 = vmin.f32 %v12813_v39, 20.0  ;;  %vm7325_vm2 = vcmp.gt.f32.partialorder %v12799_v62, 20.0 }
0x123c   :  { %vm7323_vm14 = vcmp.gt.f32.partialorder %v12813_v39, 20.0  ;;  %vm7322_vm11 = vcmp.gt.f32.partialorder %v12821_v49, 20.0 }
0x123d   :  { %v6926_v29 = vadd.f32 %v6918_v42, %v13254_v58  ;;  %v7266_v41 = vmul.f32 1.442695, %v7253_v19  ;;  %v7262_v48 = vmul.f32 1.442695, %v7251_v51  ;;  %v7400_v51 = vld [vmem:[#allocation8 + $0x6c] sm:$0xff] }
0x123e   :  { %v6891_v27 = vpop.f32.mrf.mxu2 }
0x123f   :  { %v6902_v13 = vmul.f32 %v6894_v22, %v6891_v27  ;;  %v13256_v22 = vld [vmem:[#allocation47_spill] sm:$0xff]  ;;  %v7190_v11 = vmul.f32 %v12683_v45, %v6926_v29  ;;  %8649 = vpow2.f32 %v7266_v41 }
0x1240   :  { %v6921_v9 = vadd.f32 %v6913_v1, %v13256_v22  ;;  %8651 = vpow2.f32 %v7264_v5  ;;  %v7401_v5 = vld [vmem:[#allocation8 + $0x74] sm:$0xf] }
0x1241   :  { %v6910_v46 = vadd.f32 %v6902_v13, %v6458_v26  ;;  %v12818_v28 = vadd.f32 %v12723_v3, %v7190_v11  ;;  %v12832_v3 = vadd.f32 %v7203_v57, %v7184_v10  ;;  %7865 = vmatpush.msk.msra.mxu3 %vm163_vm1, %v7401_v5 }
0x1242   :  { %v7185_v24 = vmul.f32 %v12768_v38, %v6921_v9 }
0x1243   :  { %v6919_v30 = vmul.f32 %v6911_v35, %v6910_v46  ;;  %v7254_v0 = vmin.f32 %v12818_v28, 20.0  ;;  %v7248_v56 = vmin.f32 %v12832_v3, 20.0  ;;  %vm7326_vm12 = vcmp.gt.f32.partialorder %v12818_v28, 20.0  ;;  %7418 = vmatpush.msra.mxu3 %v7400_v51 }
0x1244   :  { %v12830_v38 = vadd.f32 %v12766_v36, %v7185_v24  ;;  %vm7320_vm4 = vcmp.gt.f32.partialorder %v12832_v3, 20.0 }
0x1245   :  { %v6927_v40 = vadd.f32 %v6919_v30, %v13257_v2  ;;  %v7268_v14 = vmul.f32 1.442695, %v7254_v0  ;;  %v8650_v35 = vpop.eup %8649  ;;  %v7256_v63 = vmul.f32 1.442695, %v7248_v56  ;;  %v7397_v56 = vld [vmem:[#allocation8 + $0x54] sm:$0xff] }
0x1246   :  { %v7249_v50 = vmin.f32 %v12830_v38, 20.0  ;;  %v7277_v60 = vadd.f32 1.0, %v8650_v35  ;;  %v8652_v47 = vpop.eup %8651  ;;  %v7398_v35 = vld [vmem:[#allocation8 + $0x5c] sm:$0xff]  ;;  %vm7321_vm0 = vcmp.gt.f32.partialorder %v12830_v38, 20.0 }
0x1247   :  { %v7191_v6 = vmul.f32 %v12679_v55, %v6927_v40  ;;  %8653 = vpow2.f32 %v7268_v14  ;;  %v7276_v17 = vadd.f32 1.0, %v8652_v47  ;;  %v7399_v14 = vld [vmem:[#allocation8 + $0x64] sm:$0xff] }
0x1248   :  { %v7258_v20 = vmul.f32 1.442695, %v7249_v50  ;;  %v7285_v54 = vmul.f32 %v7277_v60, %v7277_v60  ;;  %7419 = vmatpush.msra.mxu3 %v7399_v14 }
0x1249   :  { %v12824_v45 = vadd.f32 %v12681_v44, %v7191_v6  ;;  %v7250_v44 = vmin.f32 %v12821_v49, 20.0  ;;  %v7284_v27 = vmul.f32 %v7276_v17, %v7276_v17 }
0x124a   :  { %v7301_v8 = vadd.f32 1.0, %v7285_v54  ;;  %v7862_v40 = vadd.f32 -1.0, %v7285_v54  ;;  %7420 = vmatpush.msra.mxu3 %v7398_v35 }
0x124b   :  { %v7255_v55 = vmin.f32 %v12824_v45, 20.0  ;;  %v7260_v4 = vmul.f32 1.442695, %v7250_v44  ;;  %v7300_v1 = vadd.f32 1.0, %v7284_v27  ;;  %vm7327_vm15 = vcmp.gt.f32.partialorder %v12824_v45, 20.0 }
0x124c   :  { %v7861_v57 = vadd.f32 -1.0, %v7284_v27  ;;  %7421 = vmatpush.msra.mxu3 %v7397_v56 }
0x124d   :  { %v7270_v18 = vmul.f32 1.442695, %v7255_v55  ;;  %v8654_v36 = vpop.eup %8653 }
0x124e   :  { %v7278_v61 = vadd.f32 1.0, %v8654_v36 }
0x124f   :  { %8655 = vpow2.f32 %v7270_v18 }
0x1250   :  { %8657 = vpow2.f32 %v7262_v48  ;;  %v7286_v32 = vmul.f32 %v7278_v61, %v7278_v61 }
0x1251   :  { %8659 = vpow2.f32 %v7260_v4 }
0x1252   :  { %8661 = vpow2.f32 %v7258_v20  ;;  %v7302_v42 = vadd.f32 1.0, %v7286_v32  ;;  %v7863_v19 = vadd.f32 -1.0, %v7286_v32  ;;  %v7396_v20 = vld [vmem:[#allocation8 + $0x4c] sm:$0xff] }
0x1253   :  { %8663 = vpow2.f32 %v7256_v63  ;;  %7422 = vmatpush.msra.mxu3 %v7396_v20 }
0x1254   :  { %8665 = vrcp.f32 %v7302_v42 }
0x1255   :  { %v8656_v21 = vpop.eup %8655 }
0x1256   :  { %v7279_v43 = vadd.f32 1.0, %v8656_v21  ;;  %v8658_v7 = vpop.eup %8657 }
0x1257   :  { %v7275_v26 = vadd.f32 1.0, %v8658_v7  ;;  %v8660_v59 = vpop.eup %8659 }
0x1258   :  { %v7287_v16 = vmul.f32 %v7279_v43, %v7279_v43  ;;  %v8662_v13 = vpop.eup %8661  ;;  %v7274_v58 = vadd.f32 1.0, %v8660_v59 }
0x1259   :  { %v7283_v34 = vmul.f32 %v7275_v26, %v7275_v26  ;;  %v8664_v29 = vpop.eup %8663  ;;  %v7273_v30 = vadd.f32 1.0, %v8662_v13  ;;  %v7393_v13 = vld [vmem:[#allocation8 + $0x38] sm:$0xf] }
0x125a   :  { %v7303_v12 = vadd.f32 1.0, %v7287_v16  ;;  %v8666_v25 = vpop.eup %8665  ;;  %v7864_v46 = vadd.f32 -1.0, %v7287_v16  ;;  %v7282_v22 = vmul.f32 %v7274_v58, %v7274_v58  ;;  %v7272_v15 = vadd.f32 1.0, %v8664_v29  ;;  %v7390_v58 = vld [vmem:[#allocation8 + $0x20] sm:$0xff] }
0x125b   :  { %v7299_v53 = vadd.f32 1.0, %v7283_v34  ;;  %v7318_v23 = vmul.f32 %v8666_v25, %v7863_v19  ;;  %v7281_v41 = vmul.f32 %v7273_v30, %v7273_v30  ;;  %v7860_v4 = vadd.f32 -1.0, %v7283_v34  ;;  %v7395_v34 = vld [vmem:[#allocation8 + $0x44] sm:$0xff]  ;;  %v7394_v29 = vld [vmem:[#allocation8 + $0x3c] sm:$0xff]  ;;  %v7388_v25 = vld [vmem:[#allocation8 + $0x10] sm:$0xff] }
0x125c   :  { %8667 = vrcp.f32 %v7303_v12  ;;  %v7298_v6 = vadd.f32 1.0, %v7282_v22  ;;  %v7280_v55 = vmul.f32 %v7272_v15, %v7272_v15  ;;  %v7859_v61 = vadd.f32 -1.0, %v7282_v22  ;;  %7423 = vmatpush.msra.mxu3 %v7395_v34  ;;  %v7386_v30 = vld [vmem:[#allocation8] sm:$0xff]  ;;  %v7928_v22 = vld [vmem:[#allocation8 + $0x78] ss:$0 sm:$0xff] }
0x125d   :  { %8669 = vrcp.f32 %v7301_v8  ;;  %v7334_v10 = vsel %vm7326_vm12, 1.0, %v7318_v23  ;;  %v7858_v17 = vadd.f32 -1.0, %v7281_v41 }
0x125e   :  { %8671 = vrcp.f32 %v7300_v1  ;;  %v7342_v18 = vmul.f32 %v7334_v10, %v12818_v28  ;;  %v7296_v47 = vadd.f32 1.0, %v7280_v55  ;;  %v7857_v12 = vadd.f32 -1.0, %v7280_v55  ;;  %v7392_v1 = vld [vmem:[#allocation8 + $0x30] sm:$0xff]  ;;  %7424 = vmatpush.msra.mxu3 %v7394_v29 }
0x125f   :  { %8673 = vrcp.f32 %v7299_v53 }
0x1260   :  { %8675 = vrcp.f32 %v7298_v6 }
0x1262   :  { %v8668_v33 = vpop.eup %8667 }
0x1263   :  { %v7319_v9 = vmul.f32 %v8668_v33, %v7864_v46  ;;  %v8670_v11 = vpop.eup %8669  ;;  %v7387_v46 = vld [vmem:[#allocation8 + $0x8] sm:$0xff] }
0x1264   :  { %v7317_v24 = vmul.f32 %v8670_v11, %v7862_v40  ;;  %v8672_v0 = vpop.eup %8671 }
0x1265   :  { %v7335_v2 = vsel %vm7327_vm15, 1.0, %v7319_v9  ;;  %v7316_v44 = vmul.f32 %v8672_v0, %v7861_v57  ;;  %v8674_v50 = vpop.eup %8673 }
0x1266   :  { %v7343_v31 = vmul.f32 %v7335_v2, %v12824_v45  ;;  %v7297_v45 = vadd.f32 1.0, %v7281_v41  ;;  %v7333_v48 = vsel %vm7325_vm2, 1.0, %v7317_v24  ;;  %v7315_v36 = vmul.f32 %v8674_v50, %v7860_v4  ;;  %v8676_v21 = vpop.eup %8675 }
0x1267   :  { %v7341_v60 = vmul.f32 %v7333_v48, %v12799_v62  ;;  %v7332_v28 = vsel %vm7324_vm13, 1.0, %v7316_v44  ;;  %v7314_v62 = vmul.f32 %v8676_v21, %v7859_v61 }
0x1268   :  { %7373 = vmatpush.xpose.msra.mxu0 %v7343_v31  ;;  %8677 = vrcp.f32 %v7297_v45  ;;  %v7340_v63 = vmul.f32 %v7332_v28, %v12803_v37  ;;  %v7331_v43 = vsel %vm7323_vm14, 1.0, %v7315_v36 }
0x1269   :  { %8679 = vrcp.f32 %v7296_v47  ;;  %v7339_v7 = vmul.f32 %v7331_v43, %v12813_v39  ;;  %v7330_v32 = vsel %vm7322_vm11, 1.0, %v7314_v62 }
0x126a   :  { %v7338_v37 = vmul.f32 %v7330_v32, %v12821_v49  ;;  %v7391_v49 = vld [vmem:[#allocation8 + $0x28] sm:$0xff] }
0x126c   :  { %7374 = vmatpush.xpose.msra.mxu0 %v7342_v18 }
0x126e   :  { %v8678_v54 = vpop.eup %8677 }
0x126f   :  { %v7313_v16 = vmul.f32 %v8678_v54, %v7858_v17  ;;  %v8680_v42 = vpop.eup %8679 }
0x1270   :  { %7375 = vmatpush.xpose.msra.mxu0 %v7341_v60  ;;  %v7312_v27 = vmul.f32 %v8680_v42, %v7857_v12 }
0x1271   :  { %v7329_v8 = vsel %vm7321_vm0, 1.0, %v7313_v16 }
0x1272   :  { %v7337_v26 = vmul.f32 %v7329_v8, %v12830_v38  ;;  %v7328_v59 = vsel %vm7320_vm4, 1.0, %v7312_v27  ;;  %v7389_v38 = vld [vmem:[#allocation8 + $0x18] sm:$0xff] }
0x1273   :  { %v7336_v39 = vmul.f32 %v7328_v59, %v12832_v3  ;;  %v7361_v3 = vpop.f32.mrf.mxu3 }
0x1274   :  { %7376 = vmatpush.xpose.msra.mxu0 %v7340_v63  ;;  %v7364_v19 = vmul.f32 0.015625, %v7361_v3 }
0x1278   :  { %7377 = vmatpush.xpose.msra.mxu0 %v7339_v7 }
0x127c   :  { %7378 = vmatpush.xpose.msra.mxu0 %v7338_v37 }
0x1280   :  { %7379 = vmatpush.xpose.msra.mxu0 %v7337_v26 }
0x1284   :  { %7380 = vmatpush.xpose.msra.mxu0 %v7336_v39 }
0x1287   :  { %7381 = vmatmul.f32.vlgmr.msra.gmra.mxu0 %v12778_v52 }
0x1288   :  { %7867 = vmatpush.msk.msrb.mxu0 %vm163_vm1, %v7393_v13  ;;  %vm7457_vm1 = vcmask 66560  }
0x128a   :  { %7444 = vmatpush.msrb.mxu0 %v7392_v1 }
0x128c   :  { %7445 = vmatpush.msrb.mxu0 %v7391_v49 }
0x128e   :  { %7446 = vmatpush.msrb.mxu0 %v7390_v58 }
0x1290   :  { %7447 = vmatpush.msrb.mxu0 %v7389_v38 }
0x1292   :  { %7448 = vmatpush.msrb.mxu0 %v7388_v25 }
0x1294   :  { %7449 = vmatpush.msrb.mxu0 %v7387_v46 }
0x1296   :  { %7450 = vmatpush.msrb.mxu0 %v7386_v30 }
0x1297   :  { %7868 = vmatmul.msk.f32.vlgmr.msrb.gmra.mxu0 %vm3595_vm7, %v7364_v19 }
0x1304   :  { %v7382_v52 = vpop.f32.mrf.mxu0 }
0x1305   :  { %v7385_v33 = vmul.f32 0.015625, %v7382_v52 }
0x1307   :  { %7866 = vmatmul.msk.f32.vlgmr.msra.gmra.mxu3 %vm3595_vm7, %v7385_v33 }
0x1314   :  { %v7452_v53 = vpop.f32.mrf.mxu0 }
0x138a   :  { %v7426_v9 = vpop.f32.mrf.mxu3 }
0x138b   :  { %v7453_v23 = vadd.f32 %v7452_v53, %v7426_v9 }
0x138d   :  { %v7456_v11 = vadd.f32 %v7928_v22, %v7453_v23 }
0x138f   :  { %7458 = vst.msk [vmem:[#allocation10] sm:$0x3] %vm7457_vm1, %v7456_v11 }
0x1390   :  { %7469 = dma.vmem_to_hbm [thread:$0]  %s7465_s15, 32, %s7467_s3, [#allocation4]  }
0x1391   :  { %8797 = dma.done.wait [#allocation4], 32  }
0x1392   :  { %8798 = vsyncadd [#allocation4], 4294967264 }
0x1393   :  { %7474 = vsyncpa [#allocation3], 1 }
0x1394   :  { %7475 = vsyncpa [#allocation7], 1 }
0x1395   :  { %7476 = vsyncpa [#allocation4], 1 }
0x1396   :  { %7477 = vsyncpa [#allocation5], 1 }

</bundles_post_ra>
